<compile_context>
chip_gen: v5e
topology: v5e:2x2
jax: 0.10.0
libtpu: 0.0.40
codegen_flags: <defaults>
</compile_context>

<pallas_src>
import math
import functools

import jax
import jax.numpy as jnp
from jax import lax
from jax.experimental import pallas as pl
from jax.experimental.pallas import tpu as pltpu

F32 = jnp.float32
BF16 = jnp.bfloat16
_NEG = -1e30   # finite large-negative mask value (no -inf -> no NaN if a row were fully masked)


# ---------------------------------------------------------------------------
# In-kernel helpers (traced inside the Pallas kernels)
# ---------------------------------------------------------------------------

def _layer_norm(x, g, b, eps=1e-5):
    mu = jnp.mean(x, axis=-1, keepdims=True)
    var = jnp.mean((x - mu) ** 2, axis=-1, keepdims=True)
    return (x - mu) * lax.rsqrt(var + eps) * g + b


def _softmax(s, exact=False):
    s = s - jnp.max(s, axis=-1, keepdims=True)
    e = jnp.exp(s)
    d = jnp.sum(e, axis=-1, keepdims=True)
    if exact:                      # exact divide where probs feed the pointer head
        return e / d
    return e * pl.reciprocal(d, approx=True)


def _mha_heads(q, k, v, num_heads, mask=None, exact=False, want_probs=False):
    """Batched (B, L, E) multi-head attention.

    The 1/sqrt(dh) scale is pre-folded into the Q projection.  Returns the
    per-head contexts concatenated back to (B, Lq, E) in f32 so the caller can
    apply ONE K=E output projection (instead of H partial K=dh matmuls).
    """
    _, _, E = q.shape
    dh = E // num_heads
    ctx_heads = []
    probs_sum = None
    for h in range(num_heads):
        sl = slice(h * dh, (h + 1) * dh)
        qh = q[..., sl].astype(BF16)
        kh = k[..., sl].astype(BF16)
        vh = v[..., sl].astype(BF16)
        s = jnp.einsum('bqd,bkd->bqk', qh, kh, preferred_element_type=F32)
        if mask is not None:
            s = s + mask
        p = _softmax(s, exact=exact)
        ctx_heads.append(jnp.einsum('bqk,bkd->bqd', p.astype(BF16), vh,
                                    preferred_element_type=F32))
        if want_probs:
            probs_sum = p if probs_sum is None else probs_sum + p
    ctx = jnp.concatenate(ctx_heads, axis=-1)          # (B, Lq, E) f32
    if want_probs:
        return ctx, probs_sum * (1.0 / num_heads)      # head-averaged attn
    return ctx


# ---------------------------------------------------------------------------
# Fused kernels (grid = batch tiles, "parallel")
# ---------------------------------------------------------------------------

def _encoder_layer_kernel(x_ref, wqkv_ref, bqkv_ref, wo_ref, bo_ref,
                          ln1g_ref, ln1b_ref, ln2g_ref, ln2b_ref,
                          w1_ref, b1_ref, w2_ref, b2_ref, o_ref, *, num_heads):
    xb = x_ref[...]                                    # (Bt, S, E) bf16
    Bt, S, E = xb.shape
    x2 = xb.reshape(Bt * S, E)                         # row-batched for big-M matmuls
    qkv = jnp.dot(x2, wqkv_ref[...], preferred_element_type=F32) + bqkv_ref[...]
    ctx = _mha_heads(qkv[:, :E].reshape(Bt, S, E),
                     qkv[:, E:2 * E].reshape(Bt, S, E),
                     qkv[:, 2 * E:].reshape(Bt, S, E), num_heads)
    sa = jnp.dot(ctx.reshape(Bt * S, E).astype(BF16), wo_ref[...],
                 preferred_element_type=F32) + bo_ref[...]
    x = _layer_norm(x2.astype(F32) + sa, ln1g_ref[...], ln1b_ref[...])
    h = jnp.maximum(jnp.dot(x.astype(BF16), w1_ref[...],
                            preferred_element_type=F32) + b1_ref[...], 0.0)
    ff = jnp.dot(h.astype(BF16), w2_ref[...], preferred_element_type=F32) + b2_ref[...]
    y = _layer_norm(x + ff, ln2g_ref[...], ln2b_ref[...])
    o_ref[...] = y.reshape(Bt, S, E).astype(BF16)


def _decoder_core(yb, mb, wqkv, bqkv, wos, bos, wqc, bqc, wkvc, bkvc, woc, boc,
                  ln1g, ln1b, ln2g, ln2b, ln3g, ln3b, w1, b1, w2, b2,
                  num_heads, want_probs):
    Bt, T, E = yb.shape
    S = mb.shape[1]
    y2 = yb.reshape(Bt * T, E)

    # causal (square subsequent) mask, built in-kernel (never in HBM)
    rows = lax.broadcasted_iota(jnp.int32, (T, T), 0)
    cols = lax.broadcasted_iota(jnp.int32, (T, T), 1)
    causal = jnp.where(rows >= cols, 0.0, _NEG).astype(F32)

    # --- masked self-attention + residual + LN1 ---
    qkv = jnp.dot(y2, wqkv, preferred_element_type=F32) + bqkv
    ctx = _mha_heads(qkv[:, :E].reshape(Bt, T, E),
                     qkv[:, E:2 * E].reshape(Bt, T, E),
                     qkv[:, 2 * E:].reshape(Bt, T, E), num_heads, mask=causal)
    sa = jnp.dot(ctx.reshape(Bt * T, E).astype(BF16), wos,
                 preferred_element_type=F32) + bos
    x = _layer_norm(y2.astype(F32) + sa, ln1g, ln1b)

    # --- cross-attention + residual + LN2 ---
    qc = jnp.dot(x.astype(BF16), wqc, preferred_element_type=F32) + bqc
    kv = jnp.dot(mb.reshape(Bt * S, E), wkvc, preferred_element_type=F32) + bkvc
    kc = kv[:, :E].reshape(Bt, S, E)
    vc = kv[:, E:].reshape(Bt, S, E)
    if want_probs:   # final layer: exact softmax, probs consumed by the pointer head
        ctxc, probs = _mha_heads(qc.reshape(Bt, T, E), kc, vc, num_heads,
                                 exact=True, want_probs=True)
    else:
        ctxc = _mha_heads(qc.reshape(Bt, T, E), kc, vc, num_heads)
        probs = None
    ca = jnp.dot(ctxc.reshape(Bt * T, E).astype(BF16), woc,
                 preferred_element_type=F32) + boc
    x = _layer_norm(x + ca, ln2g, ln2b)

    # --- FFN + residual + LN3 ---
    h = jnp.maximum(jnp.dot(x.astype(BF16), w1, preferred_element_type=F32) + b1, 0.0)
    ff = jnp.dot(h.astype(BF16), w2, preferred_element_type=F32) + b2
    dec = _layer_norm(x + ff, ln3g, ln3b)              # (Bt*T, E) f32
    return dec, probs


def _decoder_layer_kernel(y_ref, mem_ref,
                          wqkv_ref, bqkv_ref, wos_ref, bos_ref,
                          wqc_ref, bqc_ref, wkvc_ref, bkvc_ref, woc_ref, boc_ref,
                          ln1g_ref, ln1b_ref, ln2g_ref, ln2b_ref, ln3g_ref, ln3b_ref,
                          w1_ref, b1_ref, w2_ref, b2_ref, o_ref, *, num_heads):
    yb = y_ref[...]
    mb = mem_ref[...]
    Bt, T, E = yb.shape
    dec, _ = _decoder_core(
        yb, mb,
        wqkv_ref[...], bqkv_ref[...], wos_ref[...], bos_ref[...],
        wqc_ref[...], bqc_ref[...], wkvc_ref[...], bkvc_ref[...],
        woc_ref[...], boc_ref[...],
        ln1g_ref[...], ln1b_ref[...], ln2g_ref[...], ln2b_ref[...],
        ln3g_ref[...], ln3b_ref[...],
        w1_ref[...], b1_ref[...], w2_ref[...], b2_ref[...],
        num_heads=num_heads, want_probs=False)
    o_ref[...] = dec.reshape(Bt, T, E).astype(BF16)


def _decoder_final_kernel(y_ref, mem_ref, tgt_ref, src_ref,
                          wqkv_ref, bqkv_ref, wos_ref, bos_ref,
                          wqc_ref, bqc_ref, wkvc_ref, bkvc_ref, woc_ref, boc_ref,
                          ln1g_ref, ln1b_ref, ln2g_ref, ln2b_ref, ln3g_ref, ln3b_ref,
                          w1_ref, b1_ref, w2_ref, b2_ref,
                          conv_ref, wv_ref, bv_ref, wg_ref, bg_ref,
                          logp_ref, *, num_heads):
    """Final decoder layer + fully fused pointer-generator head.

    Cross-attn probs, encoder memory and the decoder output never touch HBM.
    """
    yb = y_ref[...]                                    # (Bt, T, E) bf16
    mb = mem_ref[...]                                  # (Bt, S, E) bf16
    Bt, T, E = yb.shape
    S = mb.shape[1]

    dec, probs = _decoder_core(
        yb, mb,
        wqkv_ref[...], bqkv_ref[...], wos_ref[...], bos_ref[...],
        wqc_ref[...], bqc_ref[...], wkvc_ref[...], bkvc_ref[...],
        woc_ref[...], boc_ref[...],
        ln1g_ref[...], ln1b_ref[...], ln2g_ref[...], ln2b_ref[...],
        ln3g_ref[...], ln3b_ref[...],
        w1_ref[...], b1_ref[...], w2_ref[...], b2_ref[...],
        num_heads=num_heads, want_probs=True)
    dec3 = dec.reshape(Bt, T, E)                       # (Bt, T, E) f32
    conv = conv_ref[...]                               # (Vs, Vt) f32
    Vs = conv.shape[0]

    # context vectors: head-averaged attention @ memory
    ctx_vec = jnp.einsum('bts,bse->bte', probs.astype(BF16), mb,
                         preferred_element_type=F32)   # (Bt, T, E)

    # p_vocab = softmax(dec @ Wv + bv)  (exact softmax, f32)
    logits = jnp.dot(dec.astype(BF16), wv_ref[...],
                     preferred_element_type=F32) + bv_ref[...]        # (Bt*T, Vt)
    Vt = logits.shape[-1]
    p_vocab = _softmax(logits, exact=True).reshape(Bt, T, Vt)

    # p_gen = sigmoid([ctx; dec; tgt] . wg + bg) — one fused cross-lane reduce
    wg = wg_ref[...]                                   # (3, E) rows: [ctx, dec, tgt]
    tgtb = tgt_ref[...].astype(F32)                    # (Bt, T, E) target embedding
    g = jnp.sum(ctx_vec * wg[0:1, :].reshape(1, 1, E)
                + dec3 * wg[1:2, :].reshape(1, 1, E)
                + tgtb * wg[2:3, :].reshape(1, 1, E),
                axis=-1, keepdims=True) + bg_ref[0]
    p_gen = 1.0 / (1.0 + jnp.exp(-g))                  # (Bt, T, 1)

    # copy distribution: attn @ one_hot(src) @ conv  — one-hot built in-kernel
    src_ids = src_ref[...]                             # (Bt, S, 1) int32
    one_hot = (lax.broadcasted_iota(jnp.int32, (Bt, S, Vs), 2) == src_ids).astype(F32)
    p_copy_src = jnp.einsum('bts,bsv->btv', probs, one_hot,
                            preferred_element_type=F32)               # (Bt, T, Vs)
    p_copy = jnp.dot(p_copy_src.reshape(Bt * T, Vs), conv,
                     preferred_element_type=F32).reshape(Bt, T, Vt)

    p = p_vocab * p_gen + p_copy * (1.0 - p_gen)
    # clamp guards against log(0) = -inf when p_gen underflows and the token
    # is absent from src (matches torch for every non-zero probability).
    logp_ref[...] = jnp.log(jnp.maximum(p, 1e-30))


# ---------------------------------------------------------------------------
# pallas_call wrappers
# ---------------------------------------------------------------------------

def _const(shape):
    zero = (0,) * len(shape)
    return pl.BlockSpec(shape, lambda b: zero)
    # TODO(synk): mark these grid-invariant weight specs pipeline_mode=pl.Buffered(1)
    # on v7x once E/F grow and double-buffered weights threaten the 64 MiB VMEM.


def _cparams():
    return pltpu.CompilerParams(
        dimension_semantics=("parallel",),             # megacore / dual-TC batch split
        vmem_limit_bytes=64 * 1024 * 1024)


def _pick_bt(n, rows):
    """Batch-tile size: grow MXU M toward >=256 rows, but keep >=2 grid steps
    (v7x has 2 TensorCores) whenever the batch allows it."""
    divs = [d for d in range(1, n + 1) if n % d == 0]
    cands = [d for d in divs if (n // d) >= 2] or divs
    for d in cands:
        if d * rows >= 256:
            return d
    return cands[-1]


def _dec_weight_specs(E, F):
    return [_const((E, 3 * E)), _const((1, 3 * E)),
            _const((E, E)), _const((1, E)),
            _const((E, E)), _const((1, E)),
            _const((E, 2 * E)), _const((1, 2 * E)),
            _const((E, E)), _const((1, E)),
            _const((1, E)), _const((1, E)),
            _const((1, E)), _const((1, E)),
            _const((1, E)), _const((1, E)),
            _const((E, F)), _const((1, F)),
            _const((F, E)), _const((1, E))]


def _dec_weight_args(p):
    return (p["wqkv_s"], p["bqkv_s"], p["wo_s"], p["bo_s"],
            p["wq_c"], p["bq_c"], p["wkv_c"], p["bkv_c"], p["wo_c"], p["bo_c"],
            p["ln1_g"], p["ln1_b"], p["ln2_g"], p["ln2_b"], p["ln3_g"], p["ln3_b"],
            p["w1"], p["b1"], p["w2"], p["b2"])


def encoder_layer_pallas(x, p, num_heads, bt):
    N, S, E = x.shape
    F = p["w1"].shape[1]
    return pl.pallas_call(
        functools.partial(_encoder_layer_kernel, num_heads=num_heads),
        out_shape=jax.ShapeDtypeStruct((N, S, E), BF16),
        grid=(N // bt,),
        in_specs=[pl.BlockSpec((bt, S, E), lambda b: (b, 0, 0)),
                  _const((E, 3 * E)), _const((1, 3 * E)),
                  _const((E, E)), _const((1, E)),
                  _const((1, E)), _const((1, E)), _const((1, E)), _const((1, E)),
                  _const((E, F)), _const((1, F)),
                  _const((F, E)), _const((1, E))],
        out_specs=pl.BlockSpec((bt, S, E), lambda b: (b, 0, 0)),
        compiler_params=_cparams(),
    )(x, p["wqkv"], p["bqkv"], p["wo"], p["bo"],
      p["ln1_g"], p["ln1_b"], p["ln2_g"], p["ln2_b"],
      p["w1"], p["b1"], p["w2"], p["b2"])


def decoder_layer_pallas(y, memory, p, num_heads, bt):
    N, T, E = y.shape
    S = memory.shape[1]
    F = p["w1"].shape[1]
    return pl.pallas_call(
        functools.partial(_decoder_layer_kernel, num_heads=num_heads),
        out_shape=jax.ShapeDtypeStruct((N, T, E), BF16),
        grid=(N // bt,),
        in_specs=[pl.BlockSpec((bt, T, E), lambda b: (b, 0, 0)),
                  pl.BlockSpec((bt, S, E), lambda b: (b, 0, 0))]
                 + _dec_weight_specs(E, F),
        out_specs=pl.BlockSpec((bt, T, E), lambda b: (b, 0, 0)),
        compiler_params=_cparams(),
    )(y, memory, *_dec_weight_args(p))


def decoder_final_pallas(y, memory, tgt_embed, src_ids, p, head, num_heads, bt):
    N, T, E = y.shape
    S = memory.shape[1]
    F = p["w1"].shape[1]
    Vs, Vt = head["conv"].shape
    return pl.pallas_call(
        functools.partial(_decoder_final_kernel, num_heads=num_heads),
        out_shape=jax.ShapeDtypeStruct((N, T, Vt), F32),
        grid=(N // bt,),
        in_specs=[pl.BlockSpec((bt, T, E), lambda b: (b, 0, 0)),
                  pl.BlockSpec((bt, S, E), lambda b: (b, 0, 0)),
                  pl.BlockSpec((bt, T, E), lambda b: (b, 0, 0)),
                  pl.BlockSpec((bt, S, 1), lambda b: (b, 0, 0))]
                 + _dec_weight_specs(E, F)
                 + [_const((Vs, Vt)),
                    _const((E, Vt)), _const((1, Vt)),
                    _const((3, E)),
                    pl.BlockSpec(memory_space=pltpu.MemorySpace.SMEM)],
        out_specs=pl.BlockSpec((bt, T, Vt), lambda b: (b, 0, 0)),
        compiler_params=_cparams(),
    )(y, memory, tgt_embed, src_ids, *_dec_weight_args(p),
      head["conv"], head["p_vocab_w"], head["p_vocab_b"],
      head["p_gen_w3"], head["p_gen_b"])
    # TODO(synk): for Vt >= 16k, add a vocab-tiled grid axis with a two-pass
    # softmax so the (E, Vt) head weight never exceeds v7x's 64 MiB VMEM.


# ---------------------------------------------------------------------------
# Model glue (plain JAX: embedding gathers, positional encoding, plumbing)
# ---------------------------------------------------------------------------

def positional_encoding(L, E):
    pos = jnp.arange(L, dtype=F32)[:, None]
    div = jnp.exp(jnp.arange(0, E, 2, dtype=F32) * (-math.log(10000.0) / E))
    pe = jnp.zeros((L, E), F32)
    pe = pe.at[:, 0::2].set(jnp.sin(pos * div))
    pe = pe.at[:, 1::2].set(jnp.cos(pos * div))
    return pe


def forward(params, src, tgt, cfg):
    E, H = cfg["E"], cfg["H"]
    N, S = src.shape
    _, T = tgt.shape
    bt_e = _pick_bt(N, S)
    bt_d = _pick_bt(N, T)
    emb_scale = math.sqrt(E)   # Embedding wrapper assumed to scale by sqrt(E)

    # ---- encode (batch-major (N, S, E) activations, bf16 between layers) ----
    x = jnp.take(params["src_embed"], src, axis=0).astype(F32) * emb_scale
    x = (x + positional_encoding(S, E)[None, :, :]).astype(BF16)
    for lp in params["encoder"]:
        x = encoder_layer_pallas(x, lp, H, bt_e)
    memory = x                                          # (N, S, E) bf16

    # ---- decode ----
    tgt_embed = (jnp.take(params["tgt_embed"], tgt, axis=0).astype(F32)
                 * emb_scale).astype(BF16)              # (N, T, E) pre-pos-enc
    y = (tgt_embed.astype(F32) + positional_encoding(T, E)[None, :, :]).astype(BF16)
    for lp in params["decoder_mid"]:
        y = decoder_layer_pallas(y, memory, lp, H, bt_d)

    # ---- final decoder layer + fused pointer-generator head ----
    src_ids = src.astype(jnp.int32)[..., None]          # (N, S, 1) for in-kernel one-hot
    logp = decoder_final_pallas(y, memory, tgt_embed, src_ids,
                                params["decoder_final"], params["head"], H, bt_d)
    return logp                                         # (N, T, Vt) = log p


# ---------------------------------------------------------------------------
# Deterministic synthetic parameter init (xavier_uniform for dim>1, zero biases)
# and one-time kernel-ready packing (bf16 cast, scale folding, bias rows).
# ---------------------------------------------------------------------------

def init_params(key, cfg):
    E, F, Vs, Vt, L = cfg["E"], cfg["F"], cfg["Vs"], cfg["Vt"], cfg["layers"]
    keys = iter(jax.random.split(key, 512))

    def xavier(shape):
        fan_in, fan_out = shape[0], shape[-1]
        bound = math.sqrt(6.0 / (fan_in + fan_out))
        return jax.random.uniform(next(keys), shape, F32, -bound, bound)

    zeros = lambda s: jnp.zeros(s, F32)
    ones = lambda s: jnp.ones(s, F32)

    def fused_proj(n):  # n separate (E, E) xavier matrices fused along output dim
        return jnp.concatenate([xavier((E, E)) for _ in range(n)], axis=1)

    def enc_layer():
        return {"wqkv": fused_proj(3), "bqkv": zeros((3 * E,)),
                "wo": xavier((E, E)), "bo": zeros((E,)),
                "ln1_g": ones((E,)), "ln1_b": zeros((E,)),
                "ln2_g": ones((E,)), "ln2_b": zeros((E,)),
                "w1": xavier((E, F)), "b1": zeros((F,)),
                "w2": xavier((F, E)), "b2": zeros((E,))}

    def dec_layer():
        return {"wqkv_s": fused_proj(3), "bqkv_s": zeros((3 * E,)),
                "wo_s": xavier((E, E)), "bo_s": zeros((E,)),
                "wq_c": xavier((E, E)), "bq_c": zeros((E,)),
                "wkv_c": fused_proj(2), "bkv_c": zeros((2 * E,)),
                "wo_c": xavier((E, E)), "bo_c": zeros((E,)),
                "ln1_g": ones((E,)), "ln1_b": zeros((E,)),
                "ln2_g": ones((E,)), "ln2_b": zeros((E,)),
                "ln3_g": ones((E,)), "ln3_b": zeros((E,)),
                "w1": xavier((E, F)), "b1": zeros((F,)),
                "w2": xavier((F, E)), "b2": zeros((E,))}

    src_emb = xavier((Vs, E)).at[2].set(0.0)   # padding_idx = 2
    tgt_emb = xavier((Vt, E)).at[2].set(0.0)

    return {
        "src_embed": src_emb, "tgt_embed": tgt_emb,
        "encoder": [enc_layer() for _ in range(L)],
        "decoder": [dec_layer() for _ in range(L)],    # last one is the "final" layer
        "p_vocab_w": xavier((E, Vt)), "p_vocab_b": zeros((Vt,)),
        "p_gen_w": xavier((3 * E, 1)), "p_gen_b": zeros((1,)),
        # src_to_tgt_vocab_conversion_matrix (identity here; general matrices fine)
        "conv": jnp.eye(Vs, Vt, dtype=F32),
    }


def prepare_params(raw, cfg):
    """One-time packing: bf16 matmul weights, f32 bias rows / LN params, and
    the attention scale folded into the Q projections (weight + bias)."""
    E, H = cfg["E"], cfg["H"]
    scale = (E // H) ** -0.5
    row = lambda a: a.reshape(1, -1).astype(F32)
    w = lambda a: a.astype(BF16)

    def enc(lp):
        wqkv = lp["wqkv"].at[:, :E].multiply(scale)
        bqkv = lp["bqkv"].at[:E].multiply(scale)
        return {"wqkv": w(wqkv), "bqkv": row(bqkv),
                "wo": w(lp["wo"]), "bo": row(lp["bo"]),
                "ln1_g": row(lp["ln1_g"]), "ln1_b": row(lp["ln1_b"]),
                "ln2_g": row(lp["ln2_g"]), "ln2_b": row(lp["ln2_b"]),
                "w1": w(lp["w1"]), "b1": row(lp["b1"]),
                "w2": w(lp["w2"]), "b2": row(lp["b2"])}

    def dec(lp):
        wqkv = lp["wqkv_s"].at[:, :E].multiply(scale)
        bqkv = lp["bqkv_s"].at[:E].multiply(scale)
        return {"wqkv_s": w(wqkv), "bqkv_s": row(bqkv),
                "wo_s": w(lp["wo_s"]), "bo_s": row(lp["bo_s"]),
                "wq_c": w(lp["wq_c"] * scale), "bq_c": row(lp["bq_c"] * scale),
                "wkv_c": w(lp["wkv_c"]), "bkv_c": row(lp["bkv_c"]),
                "wo_c": w(lp["wo_c"]), "bo_c": row(lp["bo_c"]),
                "ln1_g": row(lp["ln1_g"]), "ln1_b": row(lp["ln1_b"]),
                "ln2_g": row(lp["ln2_g"]), "ln2_b": row(lp["ln2_b"]),
                "ln3_g": row(lp["ln3_g"]), "ln3_b": row(lp["ln3_b"]),
                "w1": w(lp["w1"]), "b1": row(lp["b1"]),
                "w2": w(lp["w2"]), "b2": row(lp["b2"])}

    head = {"conv": raw["conv"].astype(F32),
            "p_vocab_w": w(raw["p_vocab_w"]), "p_vocab_b": row(raw["p_vocab_b"]),
            "p_gen_w3": raw["p_gen_w"].reshape(3, E).astype(F32),
            "p_gen_b": raw["p_gen_b"].reshape(1).astype(F32)}      # SMEM scalar

    return {"src_embed": raw["src_embed"].astype(BF16),
            "tgt_embed": raw["tgt_embed"].astype(BF16),
            "encoder": [enc(lp) for lp in raw["encoder"]],
            "decoder_mid": [dec(lp) for lp in raw["decoder"][:-1]],
            "decoder_final": dec(raw["decoder"][-1]),
            "head": head}
    # TODO(synk): on v6e, the per-layer pallas_calls could be further fused into a
    # single call with a layer grid axis streaming stacked weights (128 MiB VMEM).


# ---------------------------------------------------------------------------

if __name__ == "__main__":
    cfg = dict(E=128, F=128, Vs=128, Vt=128, H=4, layers=2)
    N, S, T = 2, 8, 8

    key = jax.random.PRNGKey(0)
    pkey, skey, tkey = jax.random.split(key, 3)
    params = prepare_params(init_params(pkey, cfg), cfg)
    src = jax.random.randint(skey, (N, S), 0, cfg["Vs"], dtype=jnp.int32)
    tgt = jax.random.randint(tkey, (N, T), 0, cfg["Vt"], dtype=jnp.int32)

    fwd = jax.jit(functools.partial(forward, cfg=cfg))
    out = jax.block_until_ready(fwd(params, src, tgt))

    assert out.shape == (N, T, cfg["Vt"]), out.shape
    assert bool(jnp.all(jnp.isfinite(out)))
    # TODO(synk): dropout layers are eval-mode identities; training-mode dropout not modeled.
    print("KERNEL_OK")
</pallas_src>

<mosaic_0001>
module attributes {stable_mosaic.version = 11 : i64} {
  func.func @_encoder_layer_kernel(%arg0: i32, %arg1: memref<1x8x128xbf16, #tpu.memory_space<vmem>>, %arg2: memref<128x384xbf16, #tpu.memory_space<vmem>>, %arg3: memref<1x384xf32, #tpu.memory_space<vmem>>, %arg4: memref<128x128xbf16, #tpu.memory_space<vmem>>, %arg5: memref<1x128xf32, #tpu.memory_space<vmem>>, %arg6: memref<1x128xf32, #tpu.memory_space<vmem>>, %arg7: memref<1x128xf32, #tpu.memory_space<vmem>>, %arg8: memref<1x128xf32, #tpu.memory_space<vmem>>, %arg9: memref<1x128xf32, #tpu.memory_space<vmem>>, %arg10: memref<128x128xbf16, #tpu.memory_space<vmem>>, %arg11: memref<1x128xf32, #tpu.memory_space<vmem>>, %arg12: memref<128x128xbf16, #tpu.memory_space<vmem>>, %arg13: memref<1x128xf32, #tpu.memory_space<vmem>>, %arg14: memref<1x8x128xbf16, #tpu.memory_space<vmem>>) attributes {dimension_semantics = [#tpu.dimension_semantics<parallel>], iteration_bounds = array<i64: 2>, scalar_prefetch = 0 : i64, scratch_operands = 0 : i64, tpu.core_type = #tpu.core_type<tc>, window_params = [{transform_indices = @transform_0, window_bounds = array<i64: 1, 8, 128>}, {pipeline_mode = #tpu.pipeline_mode<synchronous>, transform_indices = @transform_1, window_bounds = array<i64: 128, 384>}, {pipeline_mode = #tpu.pipeline_mode<synchronous>, transform_indices = @transform_2, window_bounds = array<i64: 1, 384>}, {pipeline_mode = #tpu.pipeline_mode<synchronous>, transform_indices = @transform_3, window_bounds = array<i64: 128, 128>}, {pipeline_mode = #tpu.pipeline_mode<synchronous>, transform_indices = @transform_4, window_bounds = array<i64: 1, 128>}, {pipeline_mode = #tpu.pipeline_mode<synchronous>, transform_indices = @transform_5, window_bounds = array<i64: 1, 128>}, {pipeline_mode = #tpu.pipeline_mode<synchronous>, transform_indices = @transform_6, window_bounds = array<i64: 1, 128>}, {pipeline_mode = #tpu.pipeline_mode<synchronous>, transform_indices = @transform_7, window_bounds = array<i64: 1, 128>}, {pipeline_mode = #tpu.pipeline_mode<synchronous>, transform_indices = @transform_8, window_bounds = array<i64: 1, 128>}, {pipeline_mode = #tpu.pipeline_mode<synchronous>, transform_indices = @transform_9, window_bounds = array<i64: 128, 128>}, {pipeline_mode = #tpu.pipeline_mode<synchronous>, transform_indices = @transform_10, window_bounds = array<i64: 1, 128>}, {pipeline_mode = #tpu.pipeline_mode<synchronous>, transform_indices = @transform_11, window_bounds = array<i64: 128, 128>}, {pipeline_mode = #tpu.pipeline_mode<synchronous>, transform_indices = @transform_12, window_bounds = array<i64: 1, 128>}, {transform_indices = @transform_13, window_bounds = array<i64: 1, 8, 128>}]} {
    %c0 = arith.constant 0 : index
    %c0_0 = arith.constant 0 : index
    %c0_1 = arith.constant 0 : index
    %0 = vector.load %arg1[%c0, %c0_0, %c0_1] : memref<1x8x128xbf16, #tpu.memory_space<vmem>>, vector<1x8x128xbf16>
    %1 = vector.shape_cast %0 : vector<1x8x128xbf16> to vector<8x128xbf16>
    %c0_2 = arith.constant 0 : index
    %c0_3 = arith.constant 0 : index
    %2 = vector.load %arg2[%c0_2, %c0_3] : memref<128x384xbf16, #tpu.memory_space<vmem>>, vector<128x384xbf16>
    %cst = arith.constant dense<0.000000e+00> : vector<8x384xf32>
    %3 = tpu.matmul %1, %2, %cst {dimension_numbers = #tpu.dot_dimension_numbers<[1], [0], [0], [1], [0, 0, 1, 1], [], []>} : vector<8x128xbf16>, vector<128x384xbf16>, vector<8x384xf32> -> vector<8x384xf32>
    %c0_4 = arith.constant 0 : index
    %c0_5 = arith.constant 0 : index
    %4 = vector.load %arg3[%c0_4, %c0_5] : memref<1x384xf32, #tpu.memory_space<vmem>>, vector<1x384xf32>
    %5 = vector.broadcast %4 : vector<1x384xf32> to vector<8x384xf32>
    %6 = arith.addf %3, %5 : vector<8x384xf32>
    %7 = vector.extract_strided_slice %6 {offsets = [0, 0], sizes = [8, 128], strides = [1, 1]} : vector<8x384xf32> to vector<8x128xf32>
    %8 = vector.shape_cast %7 : vector<8x128xf32> to vector<1x8x128xf32>
    %9 = vector.extract_strided_slice %6 {offsets = [0, 128], sizes = [8, 128], strides = [1, 1]} : vector<8x384xf32> to vector<8x128xf32>
    %10 = vector.shape_cast %9 : vector<8x128xf32> to vector<1x8x128xf32>
    %11 = vector.extract_strided_slice %6 {offsets = [0, 256], sizes = [8, 128], strides = [1, 1]} : vector<8x384xf32> to vector<8x128xf32>
    %12 = vector.shape_cast %11 : vector<8x128xf32> to vector<1x8x128xf32>
    %13 = vector.extract_strided_slice %8 {offsets = [0, 0, 0], sizes = [1, 8, 32], strides = [1, 1, 1]} : vector<1x8x128xf32> to vector<1x8x32xf32>
    %14 = arith.truncf %13 : vector<1x8x32xf32> to vector<1x8x32xbf16>
    %15 = vector.extract_strided_slice %10 {offsets = [0, 0, 0], sizes = [1, 8, 32], strides = [1, 1, 1]} : vector<1x8x128xf32> to vector<1x8x32xf32>
    %16 = arith.truncf %15 : vector<1x8x32xf32> to vector<1x8x32xbf16>
    %17 = vector.extract_strided_slice %12 {offsets = [0, 0, 0], sizes = [1, 8, 32], strides = [1, 1, 1]} : vector<1x8x128xf32> to vector<1x8x32xf32>
    %18 = arith.truncf %17 : vector<1x8x32xf32> to vector<1x8x32xbf16>
    "tpu.trace_start"() <{level = 10 : i32, message = "bqd,bkd->bqk"}> : () -> ()
    %cst_6 = arith.constant dense<0.000000e+00> : vector<1x8x8xf32>
    %19 = tpu.matmul %14, %16, %cst_6 {dimension_numbers = #tpu.dot_dimension_numbers<[2], [2], [1], [1], [0, 0, 0, 1, 1, 1], [0], [0]>} : vector<1x8x32xbf16>, vector<1x8x32xbf16>, vector<1x8x8xf32> -> vector<1x8x8xf32>
    "tpu.trace_stop"() : () -> ()
    %cst_7 = arith.constant dense<0xFF800000> : vector<1x8xf32>
    %20 = vector.multi_reduction <maximumf>, %19, %cst_7 [2] : vector<1x8x8xf32> to vector<1x8xf32>
    %21 = vector.shape_cast %20 : vector<1x8xf32> to vector<1x8x1xf32>
    %22 = vector.broadcast %21 : vector<1x8x1xf32> to vector<1x8x8xf32>
    %23 = arith.subf %19, %22 : vector<1x8x8xf32>
    %24 = math.exp %23 : vector<1x8x8xf32>
    %cst_8 = arith.constant dense<0.000000e+00> : vector<1x8xf32>
    %25 = vector.multi_reduction <add>, %24, %cst_8 [2] : vector<1x8x8xf32> to vector<1x8xf32>
    %26 = vector.shape_cast %25 : vector<1x8xf32> to vector<1x8x1xf32>
    %27 = tpu.reciprocal %26 {approx = true} : vector<1x8x1xf32> -> vector<1x8x1xf32>
    %28 = vector.broadcast %27 : vector<1x8x1xf32> to vector<1x8x8xf32>
    %29 = arith.mulf %24, %28 : vector<1x8x8xf32>
    %30 = arith.truncf %29 : vector<1x8x8xf32> to vector<1x8x8xbf16>
    "tpu.trace_start"() <{level = 10 : i32, message = "bqk,bkd->bqd"}> : () -> ()
    %cst_9 = arith.constant dense<0.000000e+00> : vector<1x8x32xf32>
    %31 = tpu.matmul %30, %18, %cst_9 {dimension_numbers = #tpu.dot_dimension_numbers<[2], [1], [1], [2], [0, 0, 0, 1, 1, 2], [0], [0]>} : vector<1x8x8xbf16>, vector<1x8x32xbf16>, vector<1x8x32xf32> -> vector<1x8x32xf32>
    "tpu.trace_stop"() : () -> ()
    %32 = vector.extract_strided_slice %8 {offsets = [0, 0, 32], sizes = [1, 8, 32], strides = [1, 1, 1]} : vector<1x8x128xf32> to vector<1x8x32xf32>
    %33 = arith.truncf %32 : vector<1x8x32xf32> to vector<1x8x32xbf16>
    %34 = vector.extract_strided_slice %10 {offsets = [0, 0, 32], sizes = [1, 8, 32], strides = [1, 1, 1]} : vector<1x8x128xf32> to vector<1x8x32xf32>
    %35 = arith.truncf %34 : vector<1x8x32xf32> to vector<1x8x32xbf16>
    %36 = vector.extract_strided_slice %12 {offsets = [0, 0, 32], sizes = [1, 8, 32], strides = [1, 1, 1]} : vector<1x8x128xf32> to vector<1x8x32xf32>
    %37 = arith.truncf %36 : vector<1x8x32xf32> to vector<1x8x32xbf16>
    "tpu.trace_start"() <{level = 10 : i32, message = "bqd,bkd->bqk"}> : () -> ()
    %cst_10 = arith.constant dense<0.000000e+00> : vector<1x8x8xf32>
    %38 = tpu.matmul %33, %35, %cst_10 {dimension_numbers = #tpu.dot_dimension_numbers<[2], [2], [1], [1], [0, 0, 0, 1, 1, 1], [0], [0]>} : vector<1x8x32xbf16>, vector<1x8x32xbf16>, vector<1x8x8xf32> -> vector<1x8x8xf32>
    "tpu.trace_stop"() : () -> ()
    %cst_11 = arith.constant dense<0xFF800000> : vector<1x8xf32>
    %39 = vector.multi_reduction <maximumf>, %38, %cst_11 [2] : vector<1x8x8xf32> to vector<1x8xf32>
    %40 = vector.shape_cast %39 : vector<1x8xf32> to vector<1x8x1xf32>
    %41 = vector.broadcast %40 : vector<1x8x1xf32> to vector<1x8x8xf32>
    %42 = arith.subf %38, %41 : vector<1x8x8xf32>
    %43 = math.exp %42 : vector<1x8x8xf32>
    %cst_12 = arith.constant dense<0.000000e+00> : vector<1x8xf32>
    %44 = vector.multi_reduction <add>, %43, %cst_12 [2] : vector<1x8x8xf32> to vector<1x8xf32>
    %45 = vector.shape_cast %44 : vector<1x8xf32> to vector<1x8x1xf32>
    %46 = tpu.reciprocal %45 {approx = true} : vector<1x8x1xf32> -> vector<1x8x1xf32>
    %47 = vector.broadcast %46 : vector<1x8x1xf32> to vector<1x8x8xf32>
    %48 = arith.mulf %43, %47 : vector<1x8x8xf32>
    %49 = arith.truncf %48 : vector<1x8x8xf32> to vector<1x8x8xbf16>
    "tpu.trace_start"() <{level = 10 : i32, message = "bqk,bkd->bqd"}> : () -> ()
    %cst_13 = arith.constant dense<0.000000e+00> : vector<1x8x32xf32>
    %50 = tpu.matmul %49, %37, %cst_13 {dimension_numbers = #tpu.dot_dimension_numbers<[2], [1], [1], [2], [0, 0, 0, 1, 1, 2], [0], [0]>} : vector<1x8x8xbf16>, vector<1x8x32xbf16>, vector<1x8x32xf32> -> vector<1x8x32xf32>
    "tpu.trace_stop"() : () -> ()
    %51 = vector.extract_strided_slice %8 {offsets = [0, 0, 64], sizes = [1, 8, 32], strides = [1, 1, 1]} : vector<1x8x128xf32> to vector<1x8x32xf32>
    %52 = arith.truncf %51 : vector<1x8x32xf32> to vector<1x8x32xbf16>
    %53 = vector.extract_strided_slice %10 {offsets = [0, 0, 64], sizes = [1, 8, 32], strides = [1, 1, 1]} : vector<1x8x128xf32> to vector<1x8x32xf32>
    %54 = arith.truncf %53 : vector<1x8x32xf32> to vector<1x8x32xbf16>
    %55 = vector.extract_strided_slice %12 {offsets = [0, 0, 64], sizes = [1, 8, 32], strides = [1, 1, 1]} : vector<1x8x128xf32> to vector<1x8x32xf32>
    %56 = arith.truncf %55 : vector<1x8x32xf32> to vector<1x8x32xbf16>
    "tpu.trace_start"() <{level = 10 : i32, message = "bqd,bkd->bqk"}> : () -> ()
    %cst_14 = arith.constant dense<0.000000e+00> : vector<1x8x8xf32>
    %57 = tpu.matmul %52, %54, %cst_14 {dimension_numbers = #tpu.dot_dimension_numbers<[2], [2], [1], [1], [0, 0, 0, 1, 1, 1], [0], [0]>} : vector<1x8x32xbf16>, vector<1x8x32xbf16>, vector<1x8x8xf32> -> vector<1x8x8xf32>
    "tpu.trace_stop"() : () -> ()
    %cst_15 = arith.constant dense<0xFF800000> : vector<1x8xf32>
    %58 = vector.multi_reduction <maximumf>, %57, %cst_15 [2] : vector<1x8x8xf32> to vector<1x8xf32>
    %59 = vector.shape_cast %58 : vector<1x8xf32> to vector<1x8x1xf32>
    %60 = vector.broadcast %59 : vector<1x8x1xf32> to vector<1x8x8xf32>
    %61 = arith.subf %57, %60 : vector<1x8x8xf32>
    %62 = math.exp %61 : vector<1x8x8xf32>
    %cst_16 = arith.constant dense<0.000000e+00> : vector<1x8xf32>
    %63 = vector.multi_reduction <add>, %62, %cst_16 [2] : vector<1x8x8xf32> to vector<1x8xf32>
    %64 = vector.shape_cast %63 : vector<1x8xf32> to vector<1x8x1xf32>
    %65 = tpu.reciprocal %64 {approx = true} : vector<1x8x1xf32> -> vector<1x8x1xf32>
    %66 = vector.broadcast %65 : vector<1x8x1xf32> to vector<1x8x8xf32>
    %67 = arith.mulf %62, %66 : vector<1x8x8xf32>
    %68 = arith.truncf %67 : vector<1x8x8xf32> to vector<1x8x8xbf16>
    "tpu.trace_start"() <{level = 10 : i32, message = "bqk,bkd->bqd"}> : () -> ()
    %cst_17 = arith.constant dense<0.000000e+00> : vector<1x8x32xf32>
    %69 = tpu.matmul %68, %56, %cst_17 {dimension_numbers = #tpu.dot_dimension_numbers<[2], [1], [1], [2], [0, 0, 0, 1, 1, 2], [0], [0]>} : vector<1x8x8xbf16>, vector<1x8x32xbf16>, vector<1x8x32xf32> -> vector<1x8x32xf32>
    "tpu.trace_stop"() : () -> ()
    %70 = vector.extract_strided_slice %8 {offsets = [0, 0, 96], sizes = [1, 8, 32], strides = [1, 1, 1]} : vector<1x8x128xf32> to vector<1x8x32xf32>
    %71 = arith.truncf %70 : vector<1x8x32xf32> to vector<1x8x32xbf16>
    %72 = vector.extract_strided_slice %10 {offsets = [0, 0, 96], sizes = [1, 8, 32], strides = [1, 1, 1]} : vector<1x8x128xf32> to vector<1x8x32xf32>
    %73 = arith.truncf %72 : vector<1x8x32xf32> to vector<1x8x32xbf16>
    %74 = vector.extract_strided_slice %12 {offsets = [0, 0, 96], sizes = [1, 8, 32], strides = [1, 1, 1]} : vector<1x8x128xf32> to vector<1x8x32xf32>
    %75 = arith.truncf %74 : vector<1x8x32xf32> to vector<1x8x32xbf16>
    "tpu.trace_start"() <{level = 10 : i32, message = "bqd,bkd->bqk"}> : () -> ()
    %cst_18 = arith.constant dense<0.000000e+00> : vector<1x8x8xf32>
    %76 = tpu.matmul %71, %73, %cst_18 {dimension_numbers = #tpu.dot_dimension_numbers<[2], [2], [1], [1], [0, 0, 0, 1, 1, 1], [0], [0]>} : vector<1x8x32xbf16>, vector<1x8x32xbf16>, vector<1x8x8xf32> -> vector<1x8x8xf32>
    "tpu.trace_stop"() : () -> ()
    %cst_19 = arith.constant dense<0xFF800000> : vector<1x8xf32>
    %77 = vector.multi_reduction <maximumf>, %76, %cst_19 [2] : vector<1x8x8xf32> to vector<1x8xf32>
    %78 = vector.shape_cast %77 : vector<1x8xf32> to vector<1x8x1xf32>
    %79 = vector.broadcast %78 : vector<1x8x1xf32> to vector<1x8x8xf32>
    %80 = arith.subf %76, %79 : vector<1x8x8xf32>
    %81 = math.exp %80 : vector<1x8x8xf32>
    %cst_20 = arith.constant dense<0.000000e+00> : vector<1x8xf32>
    %82 = vector.multi_reduction <add>, %81, %cst_20 [2] : vector<1x8x8xf32> to vector<1x8xf32>
    %83 = vector.shape_cast %82 : vector<1x8xf32> to vector<1x8x1xf32>
    %84 = tpu.reciprocal %83 {approx = true} : vector<1x8x1xf32> -> vector<1x8x1xf32>
    %85 = vector.broadcast %84 : vector<1x8x1xf32> to vector<1x8x8xf32>
    %86 = arith.mulf %81, %85 : vector<1x8x8xf32>
    %87 = arith.truncf %86 : vector<1x8x8xf32> to vector<1x8x8xbf16>
    "tpu.trace_start"() <{level = 10 : i32, message = "bqk,bkd->bqd"}> : () -> ()
    %cst_21 = arith.constant dense<0.000000e+00> : vector<1x8x32xf32>
    %88 = tpu.matmul %87, %75, %cst_21 {dimension_numbers = #tpu.dot_dimension_numbers<[2], [1], [1], [2], [0, 0, 0, 1, 1, 2], [0], [0]>} : vector<1x8x8xbf16>, vector<1x8x32xbf16>, vector<1x8x32xf32> -> vector<1x8x32xf32>
    "tpu.trace_stop"() : () -> ()
    %89 = tpu.concatenate %31, %50, %69, %88 in 2 : vector<1x8x32xf32>, vector<1x8x32xf32>, vector<1x8x32xf32>, vector<1x8x32xf32> -> vector<1x8x128xf32>
    %90 = vector.shape_cast %89 : vector<1x8x128xf32> to vector<8x128xf32>
    %91 = arith.truncf %90 : vector<8x128xf32> to vector<8x128xbf16>
    %c0_22 = arith.constant 0 : index
    %c0_23 = arith.constant 0 : index
    %92 = vector.load %arg4[%c0_22, %c0_23] : memref<128x128xbf16, #tpu.memory_space<vmem>>, vector<128x128xbf16>
    %cst_24 = arith.constant dense<0.000000e+00> : vector<8x128xf32>
    %93 = tpu.matmul %91, %92, %cst_24 {dimension_numbers = #tpu.dot_dimension_numbers<[1], [0], [0], [1], [0, 0, 1, 1], [], []>} : vector<8x128xbf16>, vector<128x128xbf16>, vector<8x128xf32> -> vector<8x128xf32>
    %c0_25 = arith.constant 0 : index
    %c0_26 = arith.constant 0 : index
    %94 = vector.load %arg5[%c0_25, %c0_26] : memref<1x128xf32, #tpu.memory_space<vmem>>, vector<1x128xf32>
    %95 = vector.broadcast %94 : vector<1x128xf32> to vector<8x128xf32>
    %96 = arith.addf %93, %95 : vector<8x128xf32>
    %97 = arith.extf %1 : vector<8x128xbf16> to vector<8x128xf32>
    %98 = arith.addf %97, %96 : vector<8x128xf32>
    %c0_27 = arith.constant 0 : index
    %c0_28 = arith.constant 0 : index
    %99 = vector.load %arg6[%c0_27, %c0_28] : memref<1x128xf32, #tpu.memory_space<vmem>>, vector<1x128xf32>
    %c0_29 = arith.constant 0 : index
    %c0_30 = arith.constant 0 : index
    %100 = vector.load %arg7[%c0_29, %c0_30] : memref<1x128xf32, #tpu.memory_space<vmem>>, vector<1x128xf32>
    %cst_31 = arith.constant dense<0.000000e+00> : vector<8xf32>
    %101 = vector.multi_reduction <add>, %98, %cst_31 [1] : vector<8x128xf32> to vector<8xf32>
    %102 = vector.shape_cast %101 : vector<8xf32> to vector<8x1xf32>
    %cst_32 = arith.constant 1.280000e+02 : f32
    %103 = vector.broadcast %cst_32 : f32 to vector<8x1xf32>
    %104 = arith.divf %102, %103 : vector<8x1xf32>
    %105 = vector.broadcast %104 : vector<8x1xf32> to vector<8x128xf32>
    %106 = arith.subf %98, %105 : vector<8x128xf32>
    %107 = arith.mulf %106, %106 : vector<8x128xf32>
    %cst_33 = arith.constant dense<0.000000e+00> : vector<8xf32>
    %108 = vector.multi_reduction <add>, %107, %cst_33 [1] : vector<8x128xf32> to vector<8xf32>
    %109 = vector.shape_cast %108 : vector<8xf32> to vector<8x1xf32>
    %cst_34 = arith.constant 1.280000e+02 : f32
    %110 = vector.broadcast %cst_34 : f32 to vector<8x1xf32>
    %111 = arith.divf %109, %110 : vector<8x1xf32>
    %112 = vector.broadcast %104 : vector<8x1xf32> to vector<8x128xf32>
    %113 = arith.subf %98, %112 : vector<8x128xf32>
    %cst_35 = arith.constant 9.99999974E-6 : f32
    %114 = vector.broadcast %cst_35 : f32 to vector<8x1xf32>
    %115 = arith.addf %111, %114 : vector<8x1xf32>
    %116 = math.rsqrt %115 : vector<8x1xf32>
    %117 = vector.broadcast %116 : vector<8x1xf32> to vector<8x128xf32>
    %118 = arith.mulf %113, %117 : vector<8x128xf32>
    %119 = vector.broadcast %99 : vector<1x128xf32> to vector<8x128xf32>
    %120 = arith.mulf %118, %119 : vector<8x128xf32>
    %121 = vector.broadcast %100 : vector<1x128xf32> to vector<8x128xf32>
    %122 = arith.addf %120, %121 : vector<8x128xf32>
    %123 = arith.truncf %122 : vector<8x128xf32> to vector<8x128xbf16>
    %c0_36 = arith.constant 0 : index
    %c0_37 = arith.constant 0 : index
    %124 = vector.load %arg10[%c0_36, %c0_37] : memref<128x128xbf16, #tpu.memory_space<vmem>>, vector<128x128xbf16>
    %cst_38 = arith.constant dense<0.000000e+00> : vector<8x128xf32>
    %125 = tpu.matmul %123, %124, %cst_38 {dimension_numbers = #tpu.dot_dimension_numbers<[1], [0], [0], [1], [0, 0, 1, 1], [], []>} : vector<8x128xbf16>, vector<128x128xbf16>, vector<8x128xf32> -> vector<8x128xf32>
    %c0_39 = arith.constant 0 : index
    %c0_40 = arith.constant 0 : index
    %126 = vector.load %arg11[%c0_39, %c0_40] : memref<1x128xf32, #tpu.memory_space<vmem>>, vector<1x128xf32>
    %127 = vector.broadcast %126 : vector<1x128xf32> to vector<8x128xf32>
    %128 = arith.addf %125, %127 : vector<8x128xf32>
    %cst_41 = arith.constant 0.000000e+00 : f32
    %129 = vector.broadcast %cst_41 : f32 to vector<8x128xf32>
    %130 = arith.maximumf %128, %129 : vector<8x128xf32>
    %131 = arith.truncf %130 : vector<8x128xf32> to vector<8x128xbf16>
    %c0_42 = arith.constant 0 : index
    %c0_43 = arith.constant 0 : index
    %132 = vector.load %arg12[%c0_42, %c0_43] : memref<128x128xbf16, #tpu.memory_space<vmem>>, vector<128x128xbf16>
    %cst_44 = arith.constant dense<0.000000e+00> : vector<8x128xf32>
    %133 = tpu.matmul %131, %132, %cst_44 {dimension_numbers = #tpu.dot_dimension_numbers<[1], [0], [0], [1], [0, 0, 1, 1], [], []>} : vector<8x128xbf16>, vector<128x128xbf16>, vector<8x128xf32> -> vector<8x128xf32>
    %c0_45 = arith.constant 0 : index
    %c0_46 = arith.constant 0 : index
    %134 = vector.load %arg13[%c0_45, %c0_46] : memref<1x128xf32, #tpu.memory_space<vmem>>, vector<1x128xf32>
    %135 = vector.broadcast %134 : vector<1x128xf32> to vector<8x128xf32>
    %136 = arith.addf %133, %135 : vector<8x128xf32>
    %137 = arith.addf %122, %136 : vector<8x128xf32>
    %c0_47 = arith.constant 0 : index
    %c0_48 = arith.constant 0 : index
    %138 = vector.load %arg8[%c0_47, %c0_48] : memref<1x128xf32, #tpu.memory_space<vmem>>, vector<1x128xf32>
    %c0_49 = arith.constant 0 : index
    %c0_50 = arith.constant 0 : index
    %139 = vector.load %arg9[%c0_49, %c0_50] : memref<1x128xf32, #tpu.memory_space<vmem>>, vector<1x128xf32>
    %cst_51 = arith.constant dense<0.000000e+00> : vector<8xf32>
    %140 = vector.multi_reduction <add>, %137, %cst_51 [1] : vector<8x128xf32> to vector<8xf32>
    %141 = vector.shape_cast %140 : vector<8xf32> to vector<8x1xf32>
    %cst_52 = arith.constant 1.280000e+02 : f32
    %142 = vector.broadcast %cst_52 : f32 to vector<8x1xf32>
    %143 = arith.divf %141, %142 : vector<8x1xf32>
    %144 = vector.broadcast %143 : vector<8x1xf32> to vector<8x128xf32>
    %145 = arith.subf %137, %144 : vector<8x128xf32>
    %146 = arith.mulf %145, %145 : vector<8x128xf32>
    %cst_53 = arith.constant dense<0.000000e+00> : vector<8xf32>
    %147 = vector.multi_reduction <add>, %146, %cst_53 [1] : vector<8x128xf32> to vector<8xf32>
    %148 = vector.shape_cast %147 : vector<8xf32> to vector<8x1xf32>
    %cst_54 = arith.constant 1.280000e+02 : f32
    %149 = vector.broadcast %cst_54 : f32 to vector<8x1xf32>
    %150 = arith.divf %148, %149 : vector<8x1xf32>
    %151 = vector.broadcast %143 : vector<8x1xf32> to vector<8x128xf32>
    %152 = arith.subf %137, %151 : vector<8x128xf32>
    %cst_55 = arith.constant 9.99999974E-6 : f32
    %153 = vector.broadcast %cst_55 : f32 to vector<8x1xf32>
    %154 = arith.addf %150, %153 : vector<8x1xf32>
    %155 = math.rsqrt %154 : vector<8x1xf32>
    %156 = vector.broadcast %155 : vector<8x1xf32> to vector<8x128xf32>
    %157 = arith.mulf %152, %156 : vector<8x128xf32>
    %158 = vector.broadcast %138 : vector<1x128xf32> to vector<8x128xf32>
    %159 = arith.mulf %157, %158 : vector<8x128xf32>
    %160 = vector.broadcast %139 : vector<1x128xf32> to vector<8x128xf32>
    %161 = arith.addf %159, %160 : vector<8x128xf32>
    %162 = vector.shape_cast %161 : vector<8x128xf32> to vector<1x8x128xf32>
    %163 = arith.truncf %162 : vector<1x8x128xf32> to vector<1x8x128xbf16>
    %c0_56 = arith.constant 0 : index
    %c0_57 = arith.constant 0 : index
    %c0_58 = arith.constant 0 : index
    %164 = vector.load %arg14[%c0_56, %c0_57, %c0_58] : memref<1x8x128xbf16, #tpu.memory_space<vmem>>, vector<1x8x128xbf16>
    tpu.vector_store %arg14[%c0_56, %c0_57, %c0_58], %163 {strides = array<i32>} : memref<1x8x128xbf16, #tpu.memory_space<vmem>>, vector<1x8x128xbf16>,
    return
  }
  func.func @transform_0(%arg0: i32) -> (i32, i32, i32) {
    %c0_i32 = arith.constant 0 : i32
    %c0_i32_0 = arith.constant 0 : i32
    %c0_i32_1 = arith.constant 0 : i32
    return %arg0, %c0_i32, %c0_i32_0 : i32, i32, i32
  }
  func.func @transform_1(%arg0: i32) -> (i32, i32) {
    %c0_i32 = arith.constant 0 : i32
    %c0_i32_0 = arith.constant 0 : i32
    %c0_i32_1 = arith.constant 0 : i32
    return %c0_i32, %c0_i32_0 : i32, i32
  }
  func.func @transform_2(%arg0: i32) -> (i32, i32) {
    %c0_i32 = arith.constant 0 : i32
    %c0_i32_0 = arith.constant 0 : i32
    %c0_i32_1 = arith.constant 0 : i32
    return %c0_i32, %c0_i32_0 : i32, i32
  }
  func.func @transform_3(%arg0: i32) -> (i32, i32) {
    %c0_i32 = arith.constant 0 : i32
    %c0_i32_0 = arith.constant 0 : i32
    %c0_i32_1 = arith.constant 0 : i32
    return %c0_i32, %c0_i32_0 : i32, i32
  }
  func.func @transform_4(%arg0: i32) -> (i32, i32) {
    %c0_i32 = arith.constant 0 : i32
    %c0_i32_0 = arith.constant 0 : i32
    %c0_i32_1 = arith.constant 0 : i32
    return %c0_i32, %c0_i32_0 : i32, i32
  }
  func.func @transform_5(%arg0: i32) -> (i32, i32) {
    %c0_i32 = arith.constant 0 : i32
    %c0_i32_0 = arith.constant 0 : i32
    %c0_i32_1 = arith.constant 0 : i32
    return %c0_i32, %c0_i32_0 : i32, i32
  }
  func.func @transform_6(%arg0: i32) -> (i32, i32) {
    %c0_i32 = arith.constant 0 : i32
    %c0_i32_0 = arith.constant 0 : i32
    %c0_i32_1 = arith.constant 0 : i32
    return %c0_i32, %c0_i32_0 : i32, i32
  }
  func.func @transform_7(%arg0: i32) -> (i32, i32) {
    %c0_i32 = arith.constant 0 : i32
    %c0_i32_0 = arith.constant 0 : i32
    %c0_i32_1 = arith.constant 0 : i32
    return %c0_i32, %c0_i32_0 : i32, i32
  }
  func.func @transform_8(%arg0: i32) -> (i32, i32) {
    %c0_i32 = arith.constant 0 : i32
    %c0_i32_0 = arith.constant 0 : i32
    %c0_i32_1 = arith.constant 0 : i32
    return %c0_i32, %c0_i32_0 : i32, i32
  }
  func.func @transform_9(%arg0: i32) -> (i32, i32) {
    %c0_i32 = arith.constant 0 : i32
    %c0_i32_0 = arith.constant 0 : i32
    %c0_i32_1 = arith.constant 0 : i32
    return %c0_i32, %c0_i32_0 : i32, i32
  }
  func.func @transform_10(%arg0: i32) -> (i32, i32) {
    %c0_i32 = arith.constant 0 : i32
    %c0_i32_0 = arith.constant 0 : i32
    %c0_i32_1 = arith.constant 0 : i32
    return %c0_i32, %c0_i32_0 : i32, i32
  }
  func.func @transform_11(%arg0: i32) -> (i32, i32) {
    %c0_i32 = arith.constant 0 : i32
    %c0_i32_0 = arith.constant 0 : i32
    %c0_i32_1 = arith.constant 0 : i32
    return %c0_i32, %c0_i32_0 : i32, i32
  }
  func.func @transform_12(%arg0: i32) -> (i32, i32) {
    %c0_i32 = arith.constant 0 : i32
    %c0_i32_0 = arith.constant 0 : i32
    %c0_i32_1 = arith.constant 0 : i32
    return %c0_i32, %c0_i32_0 : i32, i32
  }
  func.func @transform_13(%arg0: i32) -> (i32, i32, i32) {
    %c0_i32 = arith.constant 0 : i32
    %c0_i32_0 = arith.constant 0 : i32
    %c0_i32_1 = arith.constant 0 : i32
    return %arg0, %c0_i32, %c0_i32_0 : i32, i32, i32
  }
}

module attributes {stable_mosaic.version = 11 : i64} {
  func.func @_decoder_layer_kernel(%arg0: i32, %arg1: memref<1x8x128xbf16, #tpu.memory_space<vmem>>, %arg2: memref<1x8x128xbf16, #tpu.memory_space<vmem>>, %arg3: memref<128x384xbf16, #tpu.memory_space<vmem>>, %arg4: memref<1x384xf32, #tpu.memory_space<vmem>>, %arg5: memref<128x128xbf16, #tpu.memory_space<vmem>>, %arg6: memref<1x128xf32, #tpu.memory_space<vmem>>, %arg7: memref<128x128xbf16, #tpu.memory_space<vmem>>, %arg8: memref<1x128xf32, #tpu.memory_space<vmem>>, %arg9: memref<128x256xbf16, #tpu.memory_space<vmem>>, %arg10: memref<1x256xf32, #tpu.memory_space<vmem>>, %arg11: memref<128x128xbf16, #tpu.memory_space<vmem>>, %arg12: memref<1x128xf32, #tpu.memory_space<vmem>>, %arg13: memref<1x128xf32, #tpu.memory_space<vmem>>, %arg14: memref<1x128xf32, #tpu.memory_space<vmem>>, %arg15: memref<1x128xf32, #tpu.memory_space<vmem>>, %arg16: memref<1x128xf32, #tpu.memory_space<vmem>>, %arg17: memref<1x128xf32, #tpu.memory_space<vmem>>, %arg18: memref<1x128xf32, #tpu.memory_space<vmem>>, %arg19: memref<128x128xbf16, #tpu.memory_space<vmem>>, %arg20: memref<1x128xf32, #tpu.memory_space<vmem>>, %arg21: memref<128x128xbf16, #tpu.memory_space<vmem>>, %arg22: memref<1x128xf32, #tpu.memory_space<vmem>>, %arg23: memref<1x8x128xbf16, #tpu.memory_space<vmem>>) attributes {dimension_semantics = [#tpu.dimension_semantics<parallel>], iteration_bounds = array<i64: 2>, scalar_prefetch = 0 : i64, scratch_operands = 0 : i64, tpu.core_type = #tpu.core_type<tc>, window_params = [{transform_indices = @transform_0, window_bounds = array<i64: 1, 8, 128>}, {transform_indices = @transform_1, window_bounds = array<i64: 1, 8, 128>}, {pipeline_mode = #tpu.pipeline_mode<synchronous>, transform_indices = @transform_2, window_bounds = array<i64: 128, 384>}, {pipeline_mode = #tpu.pipeline_mode<synchronous>, transform_indices = @transform_3, window_bounds = array<i64: 1, 384>}, {pipeline_mode = #tpu.pipeline_mode<synchronous>, transform_indices = @transform_4, window_bounds = array<i64: 128, 128>}, {pipeline_mode = #tpu.pipeline_mode<synchronous>, transform_indices = @transform_5, window_bounds = array<i64: 1, 128>}, {pipeline_mode = #tpu.pipeline_mode<synchronous>, transform_indices = @transform_6, window_bounds = array<i64: 128, 128>}, {pipeline_mode = #tpu.pipeline_mode<synchronous>, transform_indices = @transform_7, window_bounds = array<i64: 1, 128>}, {pipeline_mode = #tpu.pipeline_mode<synchronous>, transform_indices = @transform_8, window_bounds = array<i64: 128, 256>}, {pipeline_mode = #tpu.pipeline_mode<synchronous>, transform_indices = @transform_9, window_bounds = array<i64: 1, 256>}, {pipeline_mode = #tpu.pipeline_mode<synchronous>, transform_indices = @transform_10, window_bounds = array<i64: 128, 128>}, {pipeline_mode = #tpu.pipeline_mode<synchronous>, transform_indices = @transform_11, window_bounds = array<i64: 1, 128>}, {pipeline_mode = #tpu.pipeline_mode<synchronous>, transform_indices = @transform_12, window_bounds = array<i64: 1, 128>}, {pipeline_mode = #tpu.pipeline_mode<synchronous>, transform_indices = @transform_13, window_bounds = array<i64: 1, 128>}, {pipeline_mode = #tpu.pipeline_mode<synchronous>, transform_indices = @transform_14, window_bounds = array<i64: 1, 128>}, {pipeline_mode = #tpu.pipeline_mode<synchronous>, transform_indices = @transform_15, window_bounds = array<i64: 1, 128>}, {pipeline_mode = #tpu.pipeline_mode<synchronous>, transform_indices = @transform_16, window_bounds = array<i64: 1, 128>}, {pipeline_mode = #tpu.pipeline_mode<synchronous>, transform_indices = @transform_17, window_bounds = array<i64: 1, 128>}, {pipeline_mode = #tpu.pipeline_mode<synchronous>, transform_indices = @transform_18, window_bounds = array<i64: 128, 128>}, {pipeline_mode = #tpu.pipeline_mode<synchronous>, transform_indices = @transform_19, window_bounds = array<i64: 1, 128>}, {pipeline_mode = #tpu.pipeline_mode<synchronous>, transform_indices = @transform_20, window_bounds = array<i64: 128, 128>}, {pipeline_mode = #tpu.pipeline_mode<synchronous>, transform_indices = @transform_21, window_bounds = array<i64: 1, 128>}, {transform_indices = @transform_22, window_bounds = array<i64: 1, 8, 128>}]} {
    %c0 = arith.constant 0 : index
    %c0_0 = arith.constant 0 : index
    %c0_1 = arith.constant 0 : index
    %0 = vector.load %arg1[%c0, %c0_0, %c0_1] : memref<1x8x128xbf16, #tpu.memory_space<vmem>>, vector<1x8x128xbf16>
    %c0_2 = arith.constant 0 : index
    %c0_3 = arith.constant 0 : index
    %c0_4 = arith.constant 0 : index
    %1 = vector.load %arg2[%c0_2, %c0_3, %c0_4] : memref<1x8x128xbf16, #tpu.memory_space<vmem>>, vector<1x8x128xbf16>
    %c0_5 = arith.constant 0 : index
    %c0_6 = arith.constant 0 : index
    %2 = vector.load %arg3[%c0_5, %c0_6] : memref<128x384xbf16, #tpu.memory_space<vmem>>, vector<128x384xbf16>
    %c0_7 = arith.constant 0 : index
    %c0_8 = arith.constant 0 : index
    %3 = vector.load %arg4[%c0_7, %c0_8] : memref<1x384xf32, #tpu.memory_space<vmem>>, vector<1x384xf32>
    %c0_9 = arith.constant 0 : index
    %c0_10 = arith.constant 0 : index
    %4 = vector.load %arg5[%c0_9, %c0_10] : memref<128x128xbf16, #tpu.memory_space<vmem>>, vector<128x128xbf16>
    %c0_11 = arith.constant 0 : index
    %c0_12 = arith.constant 0 : index
    %5 = vector.load %arg6[%c0_11, %c0_12] : memref<1x128xf32, #tpu.memory_space<vmem>>, vector<1x128xf32>
    %c0_13 = arith.constant 0 : index
    %c0_14 = arith.constant 0 : index
    %6 = vector.load %arg7[%c0_13, %c0_14] : memref<128x128xbf16, #tpu.memory_space<vmem>>, vector<128x128xbf16>
    %c0_15 = arith.constant 0 : index
    %c0_16 = arith.constant 0 : index
    %7 = vector.load %arg8[%c0_15, %c0_16] : memref<1x128xf32, #tpu.memory_space<vmem>>, vector<1x128xf32>
    %c0_17 = arith.constant 0 : index
    %c0_18 = arith.constant 0 : index
    %8 = vector.load %arg9[%c0_17, %c0_18] : memref<128x256xbf16, #tpu.memory_space<vmem>>, vector<128x256xbf16>
    %c0_19 = arith.constant 0 : index
    %c0_20 = arith.constant 0 : index
    %9 = vector.load %arg10[%c0_19, %c0_20] : memref<1x256xf32, #tpu.memory_space<vmem>>, vector<1x256xf32>
    %c0_21 = arith.constant 0 : index
    %c0_22 = arith.constant 0 : index
    %10 = vector.load %arg11[%c0_21, %c0_22] : memref<128x128xbf16, #tpu.memory_space<vmem>>, vector<128x128xbf16>
    %c0_23 = arith.constant 0 : index
    %c0_24 = arith.constant 0 : index
    %11 = vector.load %arg12[%c0_23, %c0_24] : memref<1x128xf32, #tpu.memory_space<vmem>>, vector<1x128xf32>
    %c0_25 = arith.constant 0 : index
    %c0_26 = arith.constant 0 : index
    %12 = vector.load %arg13[%c0_25, %c0_26] : memref<1x128xf32, #tpu.memory_space<vmem>>, vector<1x128xf32>
    %c0_27 = arith.constant 0 : index
    %c0_28 = arith.constant 0 : index
    %13 = vector.load %arg14[%c0_27, %c0_28] : memref<1x128xf32, #tpu.memory_space<vmem>>, vector<1x128xf32>
    %c0_29 = arith.constant 0 : index
    %c0_30 = arith.constant 0 : index
    %14 = vector.load %arg15[%c0_29, %c0_30] : memref<1x128xf32, #tpu.memory_space<vmem>>, vector<1x128xf32>
    %c0_31 = arith.constant 0 : index
    %c0_32 = arith.constant 0 : index
    %15 = vector.load %arg16[%c0_31, %c0_32] : memref<1x128xf32, #tpu.memory_space<vmem>>, vector<1x128xf32>
    %c0_33 = arith.constant 0 : index
    %c0_34 = arith.constant 0 : index
    %16 = vector.load %arg17[%c0_33, %c0_34] : memref<1x128xf32, #tpu.memory_space<vmem>>, vector<1x128xf32>
    %c0_35 = arith.constant 0 : index
    %c0_36 = arith.constant 0 : index
    %17 = vector.load %arg18[%c0_35, %c0_36] : memref<1x128xf32, #tpu.memory_space<vmem>>, vector<1x128xf32>
    %c0_37 = arith.constant 0 : index
    %c0_38 = arith.constant 0 : index
    %18 = vector.load %arg19[%c0_37, %c0_38] : memref<128x128xbf16, #tpu.memory_space<vmem>>, vector<128x128xbf16>
    %c0_39 = arith.constant 0 : index
    %c0_40 = arith.constant 0 : index
    %19 = vector.load %arg20[%c0_39, %c0_40] : memref<1x128xf32, #tpu.memory_space<vmem>>, vector<1x128xf32>
    %c0_41 = arith.constant 0 : index
    %c0_42 = arith.constant 0 : index
    %20 = vector.load %arg21[%c0_41, %c0_42] : memref<128x128xbf16, #tpu.memory_space<vmem>>, vector<128x128xbf16>
    %c0_43 = arith.constant 0 : index
    %c0_44 = arith.constant 0 : index
    %21 = vector.load %arg22[%c0_43, %c0_44] : memref<1x128xf32, #tpu.memory_space<vmem>>, vector<1x128xf32>
    %22 = vector.shape_cast %0 : vector<1x8x128xbf16> to vector<8x128xbf16>
    %23 = tpu.iota {dimensions = array<i32: 0>} : vector<8x8xi32>
    %24 = tpu.iota {dimensions = array<i32: 1>} : vector<8x8xi32>
    %25 = arith.cmpi sge, %23, %24 : vector<8x8xi32>
    %cst = arith.constant 0.000000e+00 : f32
    %cst_45 = arith.constant -1.000000e+30 : f32
    %26 = vector.broadcast %cst : f32 to vector<8x8xf32>
    %27 = vector.broadcast %cst_45 : f32 to vector<8x8xf32>
    %28 = arith.select %25, %26, %27 : vector<8x8xi1>, vector<8x8xf32>
    %cst_46 = arith.constant dense<0.000000e+00> : vector<8x384xf32>
    %29 = tpu.matmul %22, %2, %cst_46 {dimension_numbers = #tpu.dot_dimension_numbers<[1], [0], [0], [1], [0, 0, 1, 1], [], []>} : vector<8x128xbf16>, vector<128x384xbf16>, vector<8x384xf32> -> vector<8x384xf32>
    %30 = vector.broadcast %3 : vector<1x384xf32> to vector<8x384xf32>
    %31 = arith.addf %29, %30 : vector<8x384xf32>
    %32 = vector.extract_strided_slice %31 {offsets = [0, 0], sizes = [8, 128], strides = [1, 1]} : vector<8x384xf32> to vector<8x128xf32>
    %33 = vector.shape_cast %32 : vector<8x128xf32> to vector<1x8x128xf32>
    %34 = vector.extract_strided_slice %31 {offsets = [0, 128], sizes = [8, 128], strides = [1, 1]} : vector<8x384xf32> to vector<8x128xf32>
    %35 = vector.shape_cast %34 : vector<8x128xf32> to vector<1x8x128xf32>
    %36 = vector.extract_strided_slice %31 {offsets = [0, 256], sizes = [8, 128], strides = [1, 1]} : vector<8x384xf32> to vector<8x128xf32>
    %37 = vector.shape_cast %36 : vector<8x128xf32> to vector<1x8x128xf32>
    %38 = vector.extract_strided_slice %33 {offsets = [0, 0, 0], sizes = [1, 8, 32], strides = [1, 1, 1]} : vector<1x8x128xf32> to vector<1x8x32xf32>
    %39 = arith.truncf %38 : vector<1x8x32xf32> to vector<1x8x32xbf16>
    %40 = vector.extract_strided_slice %35 {offsets = [0, 0, 0], sizes = [1, 8, 32], strides = [1, 1, 1]} : vector<1x8x128xf32> to vector<1x8x32xf32>
    %41 = arith.truncf %40 : vector<1x8x32xf32> to vector<1x8x32xbf16>
    %42 = vector.extract_strided_slice %37 {offsets = [0, 0, 0], sizes = [1, 8, 32], strides = [1, 1, 1]} : vector<1x8x128xf32> to vector<1x8x32xf32>
    %43 = arith.truncf %42 : vector<1x8x32xf32> to vector<1x8x32xbf16>
    "tpu.trace_start"() <{level = 10 : i32, message = "bqd,bkd->bqk"}> : () -> ()
    %cst_47 = arith.constant dense<0.000000e+00> : vector<1x8x8xf32>
    %44 = tpu.matmul %39, %41, %cst_47 {dimension_numbers = #tpu.dot_dimension_numbers<[2], [2], [1], [1], [0, 0, 0, 1, 1, 1], [0], [0]>} : vector<1x8x32xbf16>, vector<1x8x32xbf16>, vector<1x8x8xf32> -> vector<1x8x8xf32>
    "tpu.trace_stop"() : () -> ()
    %45 = vector.shape_cast %28 : vector<8x8xf32> to vector<1x8x8xf32>
    %46 = arith.addf %44, %45 : vector<1x8x8xf32>
    %cst_48 = arith.constant dense<0xFF800000> : vector<1x8xf32>
    %47 = vector.multi_reduction <maximumf>, %46, %cst_48 [2] : vector<1x8x8xf32> to vector<1x8xf32>
    %48 = vector.shape_cast %47 : vector<1x8xf32> to vector<1x8x1xf32>
    %49 = vector.broadcast %48 : vector<1x8x1xf32> to vector<1x8x8xf32>
    %50 = arith.subf %46, %49 : vector<1x8x8xf32>
    %51 = math.exp %50 : vector<1x8x8xf32>
    %cst_49 = arith.constant dense<0.000000e+00> : vector<1x8xf32>
    %52 = vector.multi_reduction <add>, %51, %cst_49 [2] : vector<1x8x8xf32> to vector<1x8xf32>
    %53 = vector.shape_cast %52 : vector<1x8xf32> to vector<1x8x1xf32>
    %54 = tpu.reciprocal %53 {approx = true} : vector<1x8x1xf32> -> vector<1x8x1xf32>
    %55 = vector.broadcast %54 : vector<1x8x1xf32> to vector<1x8x8xf32>
    %56 = arith.mulf %51, %55 : vector<1x8x8xf32>
    %57 = arith.truncf %56 : vector<1x8x8xf32> to vector<1x8x8xbf16>
    "tpu.trace_start"() <{level = 10 : i32, message = "bqk,bkd->bqd"}> : () -> ()
    %cst_50 = arith.constant dense<0.000000e+00> : vector<1x8x32xf32>
    %58 = tpu.matmul %57, %43, %cst_50 {dimension_numbers = #tpu.dot_dimension_numbers<[2], [1], [1], [2], [0, 0, 0, 1, 1, 2], [0], [0]>} : vector<1x8x8xbf16>, vector<1x8x32xbf16>, vector<1x8x32xf32> -> vector<1x8x32xf32>
    "tpu.trace_stop"() : () -> ()
    %59 = vector.extract_strided_slice %33 {offsets = [0, 0, 32], sizes = [1, 8, 32], strides = [1, 1, 1]} : vector<1x8x128xf32> to vector<1x8x32xf32>
    %60 = arith.truncf %59 : vector<1x8x32xf32> to vector<1x8x32xbf16>
    %61 = vector.extract_strided_slice %35 {offsets = [0, 0, 32], sizes = [1, 8, 32], strides = [1, 1, 1]} : vector<1x8x128xf32> to vector<1x8x32xf32>
    %62 = arith.truncf %61 : vector<1x8x32xf32> to vector<1x8x32xbf16>
    %63 = vector.extract_strided_slice %37 {offsets = [0, 0, 32], sizes = [1, 8, 32], strides = [1, 1, 1]} : vector<1x8x128xf32> to vector<1x8x32xf32>
    %64 = arith.truncf %63 : vector<1x8x32xf32> to vector<1x8x32xbf16>
    "tpu.trace_start"() <{level = 10 : i32, message = "bqd,bkd->bqk"}> : () -> ()
    %cst_51 = arith.constant dense<0.000000e+00> : vector<1x8x8xf32>
    %65 = tpu.matmul %60, %62, %cst_51 {dimension_numbers = #tpu.dot_dimension_numbers<[2], [2], [1], [1], [0, 0, 0, 1, 1, 1], [0], [0]>} : vector<1x8x32xbf16>, vector<1x8x32xbf16>, vector<1x8x8xf32> -> vector<1x8x8xf32>
    "tpu.trace_stop"() : () -> ()
    %66 = vector.shape_cast %28 : vector<8x8xf32> to vector<1x8x8xf32>
    %67 = arith.addf %65, %66 : vector<1x8x8xf32>
    %cst_52 = arith.constant dense<0xFF800000> : vector<1x8xf32>
    %68 = vector.multi_reduction <maximumf>, %67, %cst_52 [2] : vector<1x8x8xf32> to vector<1x8xf32>
    %69 = vector.shape_cast %68 : vector<1x8xf32> to vector<1x8x1xf32>
    %70 = vector.broadcast %69 : vector<1x8x1xf32> to vector<1x8x8xf32>
    %71 = arith.subf %67, %70 : vector<1x8x8xf32>
    %72 = math.exp %71 : vector<1x8x8xf32>
    %cst_53 = arith.constant dense<0.000000e+00> : vector<1x8xf32>
    %73 = vector.multi_reduction <add>, %72, %cst_53 [2] : vector<1x8x8xf32> to vector<1x8xf32>
    %74 = vector.shape_cast %73 : vector<1x8xf32> to vector<1x8x1xf32>
    %75 = tpu.reciprocal %74 {approx = true} : vector<1x8x1xf32> -> vector<1x8x1xf32>
    %76 = vector.broadcast %75 : vector<1x8x1xf32> to vector<1x8x8xf32>
    %77 = arith.mulf %72, %76 : vector<1x8x8xf32>
    %78 = arith.truncf %77 : vector<1x8x8xf32> to vector<1x8x8xbf16>
    "tpu.trace_start"() <{level = 10 : i32, message = "bqk,bkd->bqd"}> : () -> ()
    %cst_54 = arith.constant dense<0.000000e+00> : vector<1x8x32xf32>
    %79 = tpu.matmul %78, %64, %cst_54 {dimension_numbers = #tpu.dot_dimension_numbers<[2], [1], [1], [2], [0, 0, 0, 1, 1, 2], [0], [0]>} : vector<1x8x8xbf16>, vector<1x8x32xbf16>, vector<1x8x32xf32> -> vector<1x8x32xf32>
    "tpu.trace_stop"() : () -> ()
    %80 = vector.extract_strided_slice %33 {offsets = [0, 0, 64], sizes = [1, 8, 32], strides = [1, 1, 1]} : vector<1x8x128xf32> to vector<1x8x32xf32>
    %81 = arith.truncf %80 : vector<1x8x32xf32> to vector<1x8x32xbf16>
    %82 = vector.extract_strided_slice %35 {offsets = [0, 0, 64], sizes = [1, 8, 32], strides = [1, 1, 1]} : vector<1x8x128xf32> to vector<1x8x32xf32>
    %83 = arith.truncf %82 : vector<1x8x32xf32> to vector<1x8x32xbf16>
    %84 = vector.extract_strided_slice %37 {offsets = [0, 0, 64], sizes = [1, 8, 32], strides = [1, 1, 1]} : vector<1x8x128xf32> to vector<1x8x32xf32>
    %85 = arith.truncf %84 : vector<1x8x32xf32> to vector<1x8x32xbf16>
    "tpu.trace_start"() <{level = 10 : i32, message = "bqd,bkd->bqk"}> : () -> ()
    %cst_55 = arith.constant dense<0.000000e+00> : vector<1x8x8xf32>
    %86 = tpu.matmul %81, %83, %cst_55 {dimension_numbers = #tpu.dot_dimension_numbers<[2], [2], [1], [1], [0, 0, 0, 1, 1, 1], [0], [0]>} : vector<1x8x32xbf16>, vector<1x8x32xbf16>, vector<1x8x8xf32> -> vector<1x8x8xf32>
    "tpu.trace_stop"() : () -> ()
    %87 = vector.shape_cast %28 : vector<8x8xf32> to vector<1x8x8xf32>
    %88 = arith.addf %86, %87 : vector<1x8x8xf32>
    %cst_56 = arith.constant dense<0xFF800000> : vector<1x8xf32>
    %89 = vector.multi_reduction <maximumf>, %88, %cst_56 [2] : vector<1x8x8xf32> to vector<1x8xf32>
    %90 = vector.shape_cast %89 : vector<1x8xf32> to vector<1x8x1xf32>
    %91 = vector.broadcast %90 : vector<1x8x1xf32> to vector<1x8x8xf32>
    %92 = arith.subf %88, %91 : vector<1x8x8xf32>
    %93 = math.exp %92 : vector<1x8x8xf32>
    %cst_57 = arith.constant dense<0.000000e+00> : vector<1x8xf32>
    %94 = vector.multi_reduction <add>, %93, %cst_57 [2] : vector<1x8x8xf32> to vector<1x8xf32>
    %95 = vector.shape_cast %94 : vector<1x8xf32> to vector<1x8x1xf32>
    %96 = tpu.reciprocal %95 {approx = true} : vector<1x8x1xf32> -> vector<1x8x1xf32>
    %97 = vector.broadcast %96 : vector<1x8x1xf32> to vector<1x8x8xf32>
    %98 = arith.mulf %93, %97 : vector<1x8x8xf32>
    %99 = arith.truncf %98 : vector<1x8x8xf32> to vector<1x8x8xbf16>
    "tpu.trace_start"() <{level = 10 : i32, message = "bqk,bkd->bqd"}> : () -> ()
    %cst_58 = arith.constant dense<0.000000e+00> : vector<1x8x32xf32>
    %100 = tpu.matmul %99, %85, %cst_58 {dimension_numbers = #tpu.dot_dimension_numbers<[2], [1], [1], [2], [0, 0, 0, 1, 1, 2], [0], [0]>} : vector<1x8x8xbf16>, vector<1x8x32xbf16>, vector<1x8x32xf32> -> vector<1x8x32xf32>
    "tpu.trace_stop"() : () -> ()
    %101 = vector.extract_strided_slice %33 {offsets = [0, 0, 96], sizes = [1, 8, 32], strides = [1, 1, 1]} : vector<1x8x128xf32> to vector<1x8x32xf32>
    %102 = arith.truncf %101 : vector<1x8x32xf32> to vector<1x8x32xbf16>
    %103 = vector.extract_strided_slice %35 {offsets = [0, 0, 96], sizes = [1, 8, 32], strides = [1, 1, 1]} : vector<1x8x128xf32> to vector<1x8x32xf32>
    %104 = arith.truncf %103 : vector<1x8x32xf32> to vector<1x8x32xbf16>
    %105 = vector.extract_strided_slice %37 {offsets = [0, 0, 96], sizes = [1, 8, 32], strides = [1, 1, 1]} : vector<1x8x128xf32> to vector<1x8x32xf32>
    %106 = arith.truncf %105 : vector<1x8x32xf32> to vector<1x8x32xbf16>
    "tpu.trace_start"() <{level = 10 : i32, message = "bqd,bkd->bqk"}> : () -> ()
    %cst_59 = arith.constant dense<0.000000e+00> : vector<1x8x8xf32>
    %107 = tpu.matmul %102, %104, %cst_59 {dimension_numbers = #tpu.dot_dimension_numbers<[2], [2], [1], [1], [0, 0, 0, 1, 1, 1], [0], [0]>} : vector<1x8x32xbf16>, vector<1x8x32xbf16>, vector<1x8x8xf32> -> vector<1x8x8xf32>
    "tpu.trace_stop"() : () -> ()
    %108 = vector.shape_cast %28 : vector<8x8xf32> to vector<1x8x8xf32>
    %109 = arith.addf %107, %108 : vector<1x8x8xf32>
    %cst_60 = arith.constant dense<0xFF800000> : vector<1x8xf32>
    %110 = vector.multi_reduction <maximumf>, %109, %cst_60 [2] : vector<1x8x8xf32> to vector<1x8xf32>
    %111 = vector.shape_cast %110 : vector<1x8xf32> to vector<1x8x1xf32>
    %112 = vector.broadcast %111 : vector<1x8x1xf32> to vector<1x8x8xf32>
    %113 = arith.subf %109, %112 : vector<1x8x8xf32>
    %114 = math.exp %113 : vector<1x8x8xf32>
    %cst_61 = arith.constant dense<0.000000e+00> : vector<1x8xf32>
    %115 = vector.multi_reduction <add>, %114, %cst_61 [2] : vector<1x8x8xf32> to vector<1x8xf32>
    %116 = vector.shape_cast %115 : vector<1x8xf32> to vector<1x8x1xf32>
    %117 = tpu.reciprocal %116 {approx = true} : vector<1x8x1xf32> -> vector<1x8x1xf32>
    %118 = vector.broadcast %117 : vector<1x8x1xf32> to vector<1x8x8xf32>
    %119 = arith.mulf %114, %118 : vector<1x8x8xf32>
    %120 = arith.truncf %119 : vector<1x8x8xf32> to vector<1x8x8xbf16>
    "tpu.trace_start"() <{level = 10 : i32, message = "bqk,bkd->bqd"}> : () -> ()
    %cst_62 = arith.constant dense<0.000000e+00> : vector<1x8x32xf32>
    %121 = tpu.matmul %120, %106, %cst_62 {dimension_numbers = #tpu.dot_dimension_numbers<[2], [1], [1], [2], [0, 0, 0, 1, 1, 2], [0], [0]>} : vector<1x8x8xbf16>, vector<1x8x32xbf16>, vector<1x8x32xf32> -> vector<1x8x32xf32>
    "tpu.trace_stop"() : () -> ()
    %122 = tpu.concatenate %58, %79, %100, %121 in 2 : vector<1x8x32xf32>, vector<1x8x32xf32>, vector<1x8x32xf32>, vector<1x8x32xf32> -> vector<1x8x128xf32>
    %123 = vector.shape_cast %122 : vector<1x8x128xf32> to vector<8x128xf32>
    %124 = arith.truncf %123 : vector<8x128xf32> to vector<8x128xbf16>
    %cst_63 = arith.constant dense<0.000000e+00> : vector<8x128xf32>
    %125 = tpu.matmul %124, %4, %cst_63 {dimension_numbers = #tpu.dot_dimension_numbers<[1], [0], [0], [1], [0, 0, 1, 1], [], []>} : vector<8x128xbf16>, vector<128x128xbf16>, vector<8x128xf32> -> vector<8x128xf32>
    %126 = vector.broadcast %5 : vector<1x128xf32> to vector<8x128xf32>
    %127 = arith.addf %125, %126 : vector<8x128xf32>
    %128 = arith.extf %22 : vector<8x128xbf16> to vector<8x128xf32>
    %129 = arith.addf %128, %127 : vector<8x128xf32>
    %cst_64 = arith.constant dense<0.000000e+00> : vector<8xf32>
    %130 = vector.multi_reduction <add>, %129, %cst_64 [1] : vector<8x128xf32> to vector<8xf32>
    %131 = vector.shape_cast %130 : vector<8xf32> to vector<8x1xf32>
    %cst_65 = arith.constant 1.280000e+02 : f32
    %132 = vector.broadcast %cst_65 : f32 to vector<8x1xf32>
    %133 = arith.divf %131, %132 : vector<8x1xf32>
    %134 = vector.broadcast %133 : vector<8x1xf32> to vector<8x128xf32>
    %135 = arith.subf %129, %134 : vector<8x128xf32>
    %136 = arith.mulf %135, %135 : vector<8x128xf32>
    %cst_66 = arith.constant dense<0.000000e+00> : vector<8xf32>
    %137 = vector.multi_reduction <add>, %136, %cst_66 [1] : vector<8x128xf32> to vector<8xf32>
    %138 = vector.shape_cast %137 : vector<8xf32> to vector<8x1xf32>
    %cst_67 = arith.constant 1.280000e+02 : f32
    %139 = vector.broadcast %cst_67 : f32 to vector<8x1xf32>
    %140 = arith.divf %138, %139 : vector<8x1xf32>
    %141 = vector.broadcast %133 : vector<8x1xf32> to vector<8x128xf32>
    %142 = arith.subf %129, %141 : vector<8x128xf32>
    %cst_68 = arith.constant 9.99999974E-6 : f32
    %143 = vector.broadcast %cst_68 : f32 to vector<8x1xf32>
    %144 = arith.addf %140, %143 : vector<8x1xf32>
    %145 = math.rsqrt %144 : vector<8x1xf32>
    %146 = vector.broadcast %145 : vector<8x1xf32> to vector<8x128xf32>
    %147 = arith.mulf %142, %146 : vector<8x128xf32>
    %148 = vector.broadcast %12 : vector<1x128xf32> to vector<8x128xf32>
    %149 = arith.mulf %147, %148 : vector<8x128xf32>
    %150 = vector.broadcast %13 : vector<1x128xf32> to vector<8x128xf32>
    %151 = arith.addf %149, %150 : vector<8x128xf32>
    %152 = arith.truncf %151 : vector<8x128xf32> to vector<8x128xbf16>
    %cst_69 = arith.constant dense<0.000000e+00> : vector<8x128xf32>
    %153 = tpu.matmul %152, %6, %cst_69 {dimension_numbers = #tpu.dot_dimension_numbers<[1], [0], [0], [1], [0, 0, 1, 1], [], []>} : vector<8x128xbf16>, vector<128x128xbf16>, vector<8x128xf32> -> vector<8x128xf32>
    %154 = vector.broadcast %7 : vector<1x128xf32> to vector<8x128xf32>
    %155 = arith.addf %153, %154 : vector<8x128xf32>
    %156 = vector.shape_cast %1 : vector<1x8x128xbf16> to vector<8x128xbf16>
    %cst_70 = arith.constant dense<0.000000e+00> : vector<8x256xf32>
    %157 = tpu.matmul %156, %8, %cst_70 {dimension_numbers = #tpu.dot_dimension_numbers<[1], [0], [0], [1], [0, 0, 1, 1], [], []>} : vector<8x128xbf16>, vector<128x256xbf16>, vector<8x256xf32> -> vector<8x256xf32>
    %158 = vector.broadcast %9 : vector<1x256xf32> to vector<8x256xf32>
    %159 = arith.addf %157, %158 : vector<8x256xf32>
    %160 = vector.extract_strided_slice %159 {offsets = [0, 0], sizes = [8, 128], strides = [1, 1]} : vector<8x256xf32> to vector<8x128xf32>
    %161 = vector.shape_cast %160 : vector<8x128xf32> to vector<1x8x128xf32>
    %162 = vector.extract_strided_slice %159 {offsets = [0, 128], sizes = [8, 128], strides = [1, 1]} : vector<8x256xf32> to vector<8x128xf32>
    %163 = vector.shape_cast %162 : vector<8x128xf32> to vector<1x8x128xf32>
    %164 = vector.shape_cast %155 : vector<8x128xf32> to vector<1x8x128xf32>
    %165 = vector.extract_strided_slice %164 {offsets = [0, 0, 0], sizes = [1, 8, 32], strides = [1, 1, 1]} : vector<1x8x128xf32> to vector<1x8x32xf32>
    %166 = arith.truncf %165 : vector<1x8x32xf32> to vector<1x8x32xbf16>
    %167 = vector.extract_strided_slice %161 {offsets = [0, 0, 0], sizes = [1, 8, 32], strides = [1, 1, 1]} : vector<1x8x128xf32> to vector<1x8x32xf32>
    %168 = arith.truncf %167 : vector<1x8x32xf32> to vector<1x8x32xbf16>
    %169 = vector.extract_strided_slice %163 {offsets = [0, 0, 0], sizes = [1, 8, 32], strides = [1, 1, 1]} : vector<1x8x128xf32> to vector<1x8x32xf32>
    %170 = arith.truncf %169 : vector<1x8x32xf32> to vector<1x8x32xbf16>
    "tpu.trace_start"() <{level = 10 : i32, message = "bqd,bkd->bqk"}> : () -> ()
    %cst_71 = arith.constant dense<0.000000e+00> : vector<1x8x8xf32>
    %171 = tpu.matmul %166, %168, %cst_71 {dimension_numbers = #tpu.dot_dimension_numbers<[2], [2], [1], [1], [0, 0, 0, 1, 1, 1], [0], [0]>} : vector<1x8x32xbf16>, vector<1x8x32xbf16>, vector<1x8x8xf32> -> vector<1x8x8xf32>
    "tpu.trace_stop"() : () -> ()
    %cst_72 = arith.constant dense<0xFF800000> : vector<1x8xf32>
    %172 = vector.multi_reduction <maximumf>, %171, %cst_72 [2] : vector<1x8x8xf32> to vector<1x8xf32>
    %173 = vector.shape_cast %172 : vector<1x8xf32> to vector<1x8x1xf32>
    %174 = vector.broadcast %173 : vector<1x8x1xf32> to vector<1x8x8xf32>
    %175 = arith.subf %171, %174 : vector<1x8x8xf32>
    %176 = math.exp %175 : vector<1x8x8xf32>
    %cst_73 = arith.constant dense<0.000000e+00> : vector<1x8xf32>
    %177 = vector.multi_reduction <add>, %176, %cst_73 [2] : vector<1x8x8xf32> to vector<1x8xf32>
    %178 = vector.shape_cast %177 : vector<1x8xf32> to vector<1x8x1xf32>
    %179 = tpu.reciprocal %178 {approx = true} : vector<1x8x1xf32> -> vector<1x8x1xf32>
    %180 = vector.broadcast %179 : vector<1x8x1xf32> to vector<1x8x8xf32>
    %181 = arith.mulf %176, %180 : vector<1x8x8xf32>
    %182 = arith.truncf %181 : vector<1x8x8xf32> to vector<1x8x8xbf16>
    "tpu.trace_start"() <{level = 10 : i32, message = "bqk,bkd->bqd"}> : () -> ()
    %cst_74 = arith.constant dense<0.000000e+00> : vector<1x8x32xf32>
    %183 = tpu.matmul %182, %170, %cst_74 {dimension_numbers = #tpu.dot_dimension_numbers<[2], [1], [1], [2], [0, 0, 0, 1, 1, 2], [0], [0]>} : vector<1x8x8xbf16>, vector<1x8x32xbf16>, vector<1x8x32xf32> -> vector<1x8x32xf32>
    "tpu.trace_stop"() : () -> ()
    %184 = vector.extract_strided_slice %164 {offsets = [0, 0, 32], sizes = [1, 8, 32], strides = [1, 1, 1]} : vector<1x8x128xf32> to vector<1x8x32xf32>
    %185 = arith.truncf %184 : vector<1x8x32xf32> to vector<1x8x32xbf16>
    %186 = vector.extract_strided_slice %161 {offsets = [0, 0, 32], sizes = [1, 8, 32], strides = [1, 1, 1]} : vector<1x8x128xf32> to vector<1x8x32xf32>
    %187 = arith.truncf %186 : vector<1x8x32xf32> to vector<1x8x32xbf16>
    %188 = vector.extract_strided_slice %163 {offsets = [0, 0, 32], sizes = [1, 8, 32], strides = [1, 1, 1]} : vector<1x8x128xf32> to vector<1x8x32xf32>
    %189 = arith.truncf %188 : vector<1x8x32xf32> to vector<1x8x32xbf16>
    "tpu.trace_start"() <{level = 10 : i32, message = "bqd,bkd->bqk"}> : () -> ()
    %cst_75 = arith.constant dense<0.000000e+00> : vector<1x8x8xf32>
    %190 = tpu.matmul %185, %187, %cst_75 {dimension_numbers = #tpu.dot_dimension_numbers<[2], [2], [1], [1], [0, 0, 0, 1, 1, 1], [0], [0]>} : vector<1x8x32xbf16>, vector<1x8x32xbf16>, vector<1x8x8xf32> -> vector<1x8x8xf32>
    "tpu.trace_stop"() : () -> ()
    %cst_76 = arith.constant dense<0xFF800000> : vector<1x8xf32>
    %191 = vector.multi_reduction <maximumf>, %190, %cst_76 [2] : vector<1x8x8xf32> to vector<1x8xf32>
    %192 = vector.shape_cast %191 : vector<1x8xf32> to vector<1x8x1xf32>
    %193 = vector.broadcast %192 : vector<1x8x1xf32> to vector<1x8x8xf32>
    %194 = arith.subf %190, %193 : vector<1x8x8xf32>
    %195 = math.exp %194 : vector<1x8x8xf32>
    %cst_77 = arith.constant dense<0.000000e+00> : vector<1x8xf32>
    %196 = vector.multi_reduction <add>, %195, %cst_77 [2] : vector<1x8x8xf32> to vector<1x8xf32>
    %197 = vector.shape_cast %196 : vector<1x8xf32> to vector<1x8x1xf32>
    %198 = tpu.reciprocal %197 {approx = true} : vector<1x8x1xf32> -> vector<1x8x1xf32>
    %199 = vector.broadcast %198 : vector<1x8x1xf32> to vector<1x8x8xf32>
    %200 = arith.mulf %195, %199 : vector<1x8x8xf32>
    %201 = arith.truncf %200 : vector<1x8x8xf32> to vector<1x8x8xbf16>
    "tpu.trace_start"() <{level = 10 : i32, message = "bqk,bkd->bqd"}> : () -> ()
    %cst_78 = arith.constant dense<0.000000e+00> : vector<1x8x32xf32>
    %202 = tpu.matmul %201, %189, %cst_78 {dimension_numbers = #tpu.dot_dimension_numbers<[2], [1], [1], [2], [0, 0, 0, 1, 1, 2], [0], [0]>} : vector<1x8x8xbf16>, vector<1x8x32xbf16>, vector<1x8x32xf32> -> vector<1x8x32xf32>
    "tpu.trace_stop"() : () -> ()
    %203 = vector.extract_strided_slice %164 {offsets = [0, 0, 64], sizes = [1, 8, 32], strides = [1, 1, 1]} : vector<1x8x128xf32> to vector<1x8x32xf32>
    %204 = arith.truncf %203 : vector<1x8x32xf32> to vector<1x8x32xbf16>
    %205 = vector.extract_strided_slice %161 {offsets = [0, 0, 64], sizes = [1, 8, 32], strides = [1, 1, 1]} : vector<1x8x128xf32> to vector<1x8x32xf32>
    %206 = arith.truncf %205 : vector<1x8x32xf32> to vector<1x8x32xbf16>
    %207 = vector.extract_strided_slice %163 {offsets = [0, 0, 64], sizes = [1, 8, 32], strides = [1, 1, 1]} : vector<1x8x128xf32> to vector<1x8x32xf32>
    %208 = arith.truncf %207 : vector<1x8x32xf32> to vector<1x8x32xbf16>
    "tpu.trace_start"() <{level = 10 : i32, message = "bqd,bkd->bqk"}> : () -> ()
    %cst_79 = arith.constant dense<0.000000e+00> : vector<1x8x8xf32>
    %209 = tpu.matmul %204, %206, %cst_79 {dimension_numbers = #tpu.dot_dimension_numbers<[2], [2], [1], [1], [0, 0, 0, 1, 1, 1], [0], [0]>} : vector<1x8x32xbf16>, vector<1x8x32xbf16>, vector<1x8x8xf32> -> vector<1x8x8xf32>
    "tpu.trace_stop"() : () -> ()
    %cst_80 = arith.constant dense<0xFF800000> : vector<1x8xf32>
    %210 = vector.multi_reduction <maximumf>, %209, %cst_80 [2] : vector<1x8x8xf32> to vector<1x8xf32>
    %211 = vector.shape_cast %210 : vector<1x8xf32> to vector<1x8x1xf32>
    %212 = vector.broadcast %211 : vector<1x8x1xf32> to vector<1x8x8xf32>
    %213 = arith.subf %209, %212 : vector<1x8x8xf32>
    %214 = math.exp %213 : vector<1x8x8xf32>
    %cst_81 = arith.constant dense<0.000000e+00> : vector<1x8xf32>
    %215 = vector.multi_reduction <add>, %214, %cst_81 [2] : vector<1x8x8xf32> to vector<1x8xf32>
    %216 = vector.shape_cast %215 : vector<1x8xf32> to vector<1x8x1xf32>
    %217 = tpu.reciprocal %216 {approx = true} : vector<1x8x1xf32> -> vector<1x8x1xf32>
    %218 = vector.broadcast %217 : vector<1x8x1xf32> to vector<1x8x8xf32>
    %219 = arith.mulf %214, %218 : vector<1x8x8xf32>
    %220 = arith.truncf %219 : vector<1x8x8xf32> to vector<1x8x8xbf16>
    "tpu.trace_start"() <{level = 10 : i32, message = "bqk,bkd->bqd"}> : () -> ()
    %cst_82 = arith.constant dense<0.000000e+00> : vector<1x8x32xf32>
    %221 = tpu.matmul %220, %208, %cst_82 {dimension_numbers = #tpu.dot_dimension_numbers<[2], [1], [1], [2], [0, 0, 0, 1, 1, 2], [0], [0]>} : vector<1x8x8xbf16>, vector<1x8x32xbf16>, vector<1x8x32xf32> -> vector<1x8x32xf32>
    "tpu.trace_stop"() : () -> ()
    %222 = vector.extract_strided_slice %164 {offsets = [0, 0, 96], sizes = [1, 8, 32], strides = [1, 1, 1]} : vector<1x8x128xf32> to vector<1x8x32xf32>
    %223 = arith.truncf %222 : vector<1x8x32xf32> to vector<1x8x32xbf16>
    %224 = vector.extract_strided_slice %161 {offsets = [0, 0, 96], sizes = [1, 8, 32], strides = [1, 1, 1]} : vector<1x8x128xf32> to vector<1x8x32xf32>
    %225 = arith.truncf %224 : vector<1x8x32xf32> to vector<1x8x32xbf16>
    %226 = vector.extract_strided_slice %163 {offsets = [0, 0, 96], sizes = [1, 8, 32], strides = [1, 1, 1]} : vector<1x8x128xf32> to vector<1x8x32xf32>
    %227 = arith.truncf %226 : vector<1x8x32xf32> to vector<1x8x32xbf16>
    "tpu.trace_start"() <{level = 10 : i32, message = "bqd,bkd->bqk"}> : () -> ()
    %cst_83 = arith.constant dense<0.000000e+00> : vector<1x8x8xf32>
    %228 = tpu.matmul %223, %225, %cst_83 {dimension_numbers = #tpu.dot_dimension_numbers<[2], [2], [1], [1], [0, 0, 0, 1, 1, 1], [0], [0]>} : vector<1x8x32xbf16>, vector<1x8x32xbf16>, vector<1x8x8xf32> -> vector<1x8x8xf32>
    "tpu.trace_stop"() : () -> ()
    %cst_84 = arith.constant dense<0xFF800000> : vector<1x8xf32>
    %229 = vector.multi_reduction <maximumf>, %228, %cst_84 [2] : vector<1x8x8xf32> to vector<1x8xf32>
    %230 = vector.shape_cast %229 : vector<1x8xf32> to vector<1x8x1xf32>
    %231 = vector.broadcast %230 : vector<1x8x1xf32> to vector<1x8x8xf32>
    %232 = arith.subf %228, %231 : vector<1x8x8xf32>
    %233 = math.exp %232 : vector<1x8x8xf32>
    %cst_85 = arith.constant dense<0.000000e+00> : vector<1x8xf32>
    %234 = vector.multi_reduction <add>, %233, %cst_85 [2] : vector<1x8x8xf32> to vector<1x8xf32>
    %235 = vector.shape_cast %234 : vector<1x8xf32> to vector<1x8x1xf32>
    %236 = tpu.reciprocal %235 {approx = true} : vector<1x8x1xf32> -> vector<1x8x1xf32>
    %237 = vector.broadcast %236 : vector<1x8x1xf32> to vector<1x8x8xf32>
    %238 = arith.mulf %233, %237 : vector<1x8x8xf32>
    %239 = arith.truncf %238 : vector<1x8x8xf32> to vector<1x8x8xbf16>
    "tpu.trace_start"() <{level = 10 : i32, message = "bqk,bkd->bqd"}> : () -> ()
    %cst_86 = arith.constant dense<0.000000e+00> : vector<1x8x32xf32>
    %240 = tpu.matmul %239, %227, %cst_86 {dimension_numbers = #tpu.dot_dimension_numbers<[2], [1], [1], [2], [0, 0, 0, 1, 1, 2], [0], [0]>} : vector<1x8x8xbf16>, vector<1x8x32xbf16>, vector<1x8x32xf32> -> vector<1x8x32xf32>
    "tpu.trace_stop"() : () -> ()
    %241 = tpu.concatenate %183, %202, %221, %240 in 2 : vector<1x8x32xf32>, vector<1x8x32xf32>, vector<1x8x32xf32>, vector<1x8x32xf32> -> vector<1x8x128xf32>
    %242 = vector.shape_cast %241 : vector<1x8x128xf32> to vector<8x128xf32>
    %243 = arith.truncf %242 : vector<8x128xf32> to vector<8x128xbf16>
    %cst_87 = arith.constant dense<0.000000e+00> : vector<8x128xf32>
    %244 = tpu.matmul %243, %10, %cst_87 {dimension_numbers = #tpu.dot_dimension_numbers<[1], [0], [0], [1], [0, 0, 1, 1], [], []>} : vector<8x128xbf16>, vector<128x128xbf16>, vector<8x128xf32> -> vector<8x128xf32>
    %245 = vector.broadcast %11 : vector<1x128xf32> to vector<8x128xf32>
    %246 = arith.addf %244, %245 : vector<8x128xf32>
    %247 = arith.addf %151, %246 : vector<8x128xf32>
    %cst_88 = arith.constant dense<0.000000e+00> : vector<8xf32>
    %248 = vector.multi_reduction <add>, %247, %cst_88 [1] : vector<8x128xf32> to vector<8xf32>
    %249 = vector.shape_cast %248 : vector<8xf32> to vector<8x1xf32>
    %cst_89 = arith.constant 1.280000e+02 : f32
    %250 = vector.broadcast %cst_89 : f32 to vector<8x1xf32>
    %251 = arith.divf %249, %250 : vector<8x1xf32>
    %252 = vector.broadcast %251 : vector<8x1xf32> to vector<8x128xf32>
    %253 = arith.subf %247, %252 : vector<8x128xf32>
    %254 = arith.mulf %253, %253 : vector<8x128xf32>
    %cst_90 = arith.constant dense<0.000000e+00> : vector<8xf32>
    %255 = vector.multi_reduction <add>, %254, %cst_90 [1] : vector<8x128xf32> to vector<8xf32>
    %256 = vector.shape_cast %255 : vector<8xf32> to vector<8x1xf32>
    %cst_91 = arith.constant 1.280000e+02 : f32
    %257 = vector.broadcast %cst_91 : f32 to vector<8x1xf32>
    %258 = arith.divf %256, %257 : vector<8x1xf32>
    %259 = vector.broadcast %251 : vector<8x1xf32> to vector<8x128xf32>
    %260 = arith.subf %247, %259 : vector<8x128xf32>
    %cst_92 = arith.constant 9.99999974E-6 : f32
    %261 = vector.broadcast %cst_92 : f32 to vector<8x1xf32>
    %262 = arith.addf %258, %261 : vector<8x1xf32>
    %263 = math.rsqrt %262 : vector<8x1xf32>
    %264 = vector.broadcast %263 : vector<8x1xf32> to vector<8x128xf32>
    %265 = arith.mulf %260, %264 : vector<8x128xf32>
    %266 = vector.broadcast %14 : vector<1x128xf32> to vector<8x128xf32>
    %267 = arith.mulf %265, %266 : vector<8x128xf32>
    %268 = vector.broadcast %15 : vector<1x128xf32> to vector<8x128xf32>
    %269 = arith.addf %267, %268 : vector<8x128xf32>
    %270 = arith.truncf %269 : vector<8x128xf32> to vector<8x128xbf16>
    %cst_93 = arith.constant dense<0.000000e+00> : vector<8x128xf32>
    %271 = tpu.matmul %270, %18, %cst_93 {dimension_numbers = #tpu.dot_dimension_numbers<[1], [0], [0], [1], [0, 0, 1, 1], [], []>} : vector<8x128xbf16>, vector<128x128xbf16>, vector<8x128xf32> -> vector<8x128xf32>
    %272 = vector.broadcast %19 : vector<1x128xf32> to vector<8x128xf32>
    %273 = arith.addf %271, %272 : vector<8x128xf32>
    %cst_94 = arith.constant 0.000000e+00 : f32
    %274 = vector.broadcast %cst_94 : f32 to vector<8x128xf32>
    %275 = arith.maximumf %273, %274 : vector<8x128xf32>
    %276 = arith.truncf %275 : vector<8x128xf32> to vector<8x128xbf16>
    %cst_95 = arith.constant dense<0.000000e+00> : vector<8x128xf32>
    %277 = tpu.matmul %276, %20, %cst_95 {dimension_numbers = #tpu.dot_dimension_numbers<[1], [0], [0], [1], [0, 0, 1, 1], [], []>} : vector<8x128xbf16>, vector<128x128xbf16>, vector<8x128xf32> -> vector<8x128xf32>
    %278 = vector.broadcast %21 : vector<1x128xf32> to vector<8x128xf32>
    %279 = arith.addf %277, %278 : vector<8x128xf32>
    %280 = arith.addf %269, %279 : vector<8x128xf32>
    %cst_96 = arith.constant dense<0.000000e+00> : vector<8xf32>
    %281 = vector.multi_reduction <add>, %280, %cst_96 [1] : vector<8x128xf32> to vector<8xf32>
    %282 = vector.shape_cast %281 : vector<8xf32> to vector<8x1xf32>
    %cst_97 = arith.constant 1.280000e+02 : f32
    %283 = vector.broadcast %cst_97 : f32 to vector<8x1xf32>
    %284 = arith.divf %282, %283 : vector<8x1xf32>
    %285 = vector.broadcast %284 : vector<8x1xf32> to vector<8x128xf32>
    %286 = arith.subf %280, %285 : vector<8x128xf32>
    %287 = arith.mulf %286, %286 : vector<8x128xf32>
    %cst_98 = arith.constant dense<0.000000e+00> : vector<8xf32>
    %288 = vector.multi_reduction <add>, %287, %cst_98 [1] : vector<8x128xf32> to vector<8xf32>
    %289 = vector.shape_cast %288 : vector<8xf32> to vector<8x1xf32>
    %cst_99 = arith.constant 1.280000e+02 : f32
    %290 = vector.broadcast %cst_99 : f32 to vector<8x1xf32>
    %291 = arith.divf %289, %290 : vector<8x1xf32>
    %292 = vector.broadcast %284 : vector<8x1xf32> to vector<8x128xf32>
    %293 = arith.subf %280, %292 : vector<8x128xf32>
    %cst_100 = arith.constant 9.99999974E-6 : f32
    %294 = vector.broadcast %cst_100 : f32 to vector<8x1xf32>
    %295 = arith.addf %291, %294 : vector<8x1xf32>
    %296 = math.rsqrt %295 : vector<8x1xf32>
    %297 = vector.broadcast %296 : vector<8x1xf32> to vector<8x128xf32>
    %298 = arith.mulf %293, %297 : vector<8x128xf32>
    %299 = vector.broadcast %16 : vector<1x128xf32> to vector<8x128xf32>
    %300 = arith.mulf %298, %299 : vector<8x128xf32>
    %301 = vector.broadcast %17 : vector<1x128xf32> to vector<8x128xf32>
    %302 = arith.addf %300, %301 : vector<8x128xf32>
    %303 = vector.shape_cast %302 : vector<8x128xf32> to vector<1x8x128xf32>
    %304 = arith.truncf %303 : vector<1x8x128xf32> to vector<1x8x128xbf16>
    %c0_101 = arith.constant 0 : index
    %c0_102 = arith.constant 0 : index
    %c0_103 = arith.constant 0 : index
    %305 = vector.load %arg23[%c0_101, %c0_102, %c0_103] : memref<1x8x128xbf16, #tpu.memory_space<vmem>>, vector<1x8x128xbf16>
    tpu.vector_store %arg23[%c0_101, %c0_102, %c0_103], %304 {strides = array<i32>} : memref<1x8x128xbf16, #tpu.memory_space<vmem>>, vector<1x8x128xbf16>,
    return
  }
  func.func @transform_0(%arg0: i32) -> (i32, i32, i32) {
    %c0_i32 = arith.constant 0 : i32
    %c0_i32_0 = arith.constant 0 : i32
    %c0_i32_1 = arith.constant 0 : i32
    return %arg0, %c0_i32, %c0_i32_0 : i32, i32, i32
  }
  func.func @transform_1(%arg0: i32) -> (i32, i32, i32) {
    %c0_i32 = arith.constant 0 : i32
    %c0_i32_0 = arith.constant 0 : i32
    %c0_i32_1 = arith.constant 0 : i32
    return %arg0, %c0_i32, %c0_i32_0 : i32, i32, i32
  }
  func.func @transform_2(%arg0: i32) -> (i32, i32) {
    %c0_i32 = arith.constant 0 : i32
    %c0_i32_0 = arith.constant 0 : i32
    %c0_i32_1 = arith.constant 0 : i32
    return %c0_i32, %c0_i32_0 : i32, i32
  }
  func.func @transform_3(%arg0: i32) -> (i32, i32) {
    %c0_i32 = arith.constant 0 : i32
    %c0_i32_0 = arith.constant 0 : i32
    %c0_i32_1 = arith.constant 0 : i32
    return %c0_i32, %c0_i32_0 : i32, i32
  }
  func.func @transform_4(%arg0: i32) -> (i32, i32) {
    %c0_i32 = arith.constant 0 : i32
    %c0_i32_0 = arith.constant 0 : i32
    %c0_i32_1 = arith.constant 0 : i32
    return %c0_i32, %c0_i32_0 : i32, i32
  }
  func.func @transform_5(%arg0: i32) -> (i32, i32) {
    %c0_i32 = arith.constant 0 : i32
    %c0_i32_0 = arith.constant 0 : i32
    %c0_i32_1 = arith.constant 0 : i32
    return %c0_i32, %c0_i32_0 : i32, i32
  }
  func.func @transform_6(%arg0: i32) -> (i32, i32) {
    %c0_i32 = arith.constant 0 : i32
    %c0_i32_0 = arith.constant 0 : i32
    %c0_i32_1 = arith.constant 0 : i32
    return %c0_i32, %c0_i32_0 : i32, i32
  }
  func.func @transform_7(%arg0: i32) -> (i32, i32) {
    %c0_i32 = arith.constant 0 : i32
    %c0_i32_0 = arith.constant 0 : i32
    %c0_i32_1 = arith.constant 0 : i32
    return %c0_i32, %c0_i32_0 : i32, i32
  }
  func.func @transform_8(%arg0: i32) -> (i32, i32) {
    %c0_i32 = arith.constant 0 : i32
    %c0_i32_0 = arith.constant 0 : i32
    %c0_i32_1 = arith.constant 0 : i32
    return %c0_i32, %c0_i32_0 : i32, i32
  }
  func.func @transform_9(%arg0: i32) -> (i32, i32) {
    %c0_i32 = arith.constant 0 : i32
    %c0_i32_0 = arith.constant 0 : i32
    %c0_i32_1 = arith.constant 0 : i32
    return %c0_i32, %c0_i32_0 : i32, i32
  }
  func.func @transform_10(%arg0: i32) -> (i32, i32) {
    %c0_i32 = arith.constant 0 : i32
    %c0_i32_0 = arith.constant 0 : i32
    %c0_i32_1 = arith.constant 0 : i32
    return %c0_i32, %c0_i32_0 : i32, i32
  }
  func.func @transform_11(%arg0: i32) -> (i32, i32) {
    %c0_i32 = arith.constant 0 : i32
    %c0_i32_0 = arith.constant 0 : i32
    %c0_i32_1 = arith.constant 0 : i32
    return %c0_i32, %c0_i32_0 : i32, i32
  }
  func.func @transform_12(%arg0: i32) -> (i32, i32) {
    %c0_i32 = arith.constant 0 : i32
    %c0_i32_0 = arith.constant 0 : i32
    %c0_i32_1 = arith.constant 0 : i32
    return %c0_i32, %c0_i32_0 : i32, i32
  }
  func.func @transform_13(%arg0: i32) -> (i32, i32) {
    %c0_i32 = arith.constant 0 : i32
    %c0_i32_0 = arith.constant 0 : i32
    %c0_i32_1 = arith.constant 0 : i32
    return %c0_i32, %c0_i32_0 : i32, i32
  }
  func.func @transform_14(%arg0: i32) -> (i32, i32) {
    %c0_i32 = arith.constant 0 : i32
    %c0_i32_0 = arith.constant 0 : i32
    %c0_i32_1 = arith.constant 0 : i32
    return %c0_i32, %c0_i32_0 : i32, i32
  }
  func.func @transform_15(%arg0: i32) -> (i32, i32) {
    %c0_i32 = arith.constant 0 : i32
    %c0_i32_0 = arith.constant 0 : i32
    %c0_i32_1 = arith.constant 0 : i32
    return %c0_i32, %c0_i32_0 : i32, i32
  }
  func.func @transform_16(%arg0: i32) -> (i32, i32) {
    %c0_i32 = arith.constant 0 : i32
    %c0_i32_0 = arith.constant 0 : i32
    %c0_i32_1 = arith.constant 0 : i32
    return %c0_i32, %c0_i32_0 : i32, i32
  }
  func.func @transform_17(%arg0: i32) -> (i32, i32) {
    %c0_i32 = arith.constant 0 : i32
    %c0_i32_0 = arith.constant 0 : i32
    %c0_i32_1 = arith.constant 0 : i32
    return %c0_i32, %c0_i32_0 : i32, i32
  }
  func.func @transform_18(%arg0: i32) -> (i32, i32) {
    %c0_i32 = arith.constant 0 : i32
    %c0_i32_0 = arith.constant 0 : i32
    %c0_i32_1 = arith.constant 0 : i32
    return %c0_i32, %c0_i32_0 : i32, i32
  }
  func.func @transform_19(%arg0: i32) -> (i32, i32) {
    %c0_i32 = arith.constant 0 : i32
    %c0_i32_0 = arith.constant 0 : i32
    %c0_i32_1 = arith.constant 0 : i32
    return %c0_i32, %c0_i32_0 : i32, i32
  }
  func.func @transform_20(%arg0: i32) -> (i32, i32) {
    %c0_i32 = arith.constant 0 : i32
    %c0_i32_0 = arith.constant 0 : i32
    %c0_i32_1 = arith.constant 0 : i32
    return %c0_i32, %c0_i32_0 : i32, i32
  }
  func.func @transform_21(%arg0: i32) -> (i32, i32) {
    %c0_i32 = arith.constant 0 : i32
    %c0_i32_0 = arith.constant 0 : i32
    %c0_i32_1 = arith.constant 0 : i32
    return %c0_i32, %c0_i32_0 : i32, i32
  }
  func.func @transform_22(%arg0: i32) -> (i32, i32, i32) {
    %c0_i32 = arith.constant 0 : i32
    %c0_i32_0 = arith.constant 0 : i32
    %c0_i32_1 = arith.constant 0 : i32
    return %arg0, %c0_i32, %c0_i32_0 : i32, i32, i32
  }
}

module attributes {stable_mosaic.version = 11 : i64} {
  func.func @_decoder_final_kernel(%arg0: i32, %arg1: memref<1x8x128xbf16, #tpu.memory_space<vmem>>, %arg2: memref<1x8x128xbf16, #tpu.memory_space<vmem>>, %arg3: memref<1x8x128xbf16, #tpu.memory_space<vmem>>, %arg4: memref<1x8x1xi32, #tpu.memory_space<vmem>>, %arg5: memref<128x384xbf16, #tpu.memory_space<vmem>>, %arg6: memref<1x384xf32, #tpu.memory_space<vmem>>, %arg7: memref<128x128xbf16, #tpu.memory_space<vmem>>, %arg8: memref<1x128xf32, #tpu.memory_space<vmem>>, %arg9: memref<128x128xbf16, #tpu.memory_space<vmem>>, %arg10: memref<1x128xf32, #tpu.memory_space<vmem>>, %arg11: memref<128x256xbf16, #tpu.memory_space<vmem>>, %arg12: memref<1x256xf32, #tpu.memory_space<vmem>>, %arg13: memref<128x128xbf16, #tpu.memory_space<vmem>>, %arg14: memref<1x128xf32, #tpu.memory_space<vmem>>, %arg15: memref<1x128xf32, #tpu.memory_space<vmem>>, %arg16: memref<1x128xf32, #tpu.memory_space<vmem>>, %arg17: memref<1x128xf32, #tpu.memory_space<vmem>>, %arg18: memref<1x128xf32, #tpu.memory_space<vmem>>, %arg19: memref<1x128xf32, #tpu.memory_space<vmem>>, %arg20: memref<1x128xf32, #tpu.memory_space<vmem>>, %arg21: memref<128x128xbf16, #tpu.memory_space<vmem>>, %arg22: memref<1x128xf32, #tpu.memory_space<vmem>>, %arg23: memref<128x128xbf16, #tpu.memory_space<vmem>>, %arg24: memref<1x128xf32, #tpu.memory_space<vmem>>, %arg25: memref<128x128xf32, #tpu.memory_space<vmem>>, %arg26: memref<128x128xbf16, #tpu.memory_space<vmem>>, %arg27: memref<1x128xf32, #tpu.memory_space<vmem>>, %arg28: memref<3x128xf32, #tpu.memory_space<vmem>>, %arg29: memref<1xf32, #tpu.memory_space<smem>>, %arg30: memref<1x8x128xf32, #tpu.memory_space<vmem>>) attributes {dimension_semantics = [#tpu.dimension_semantics<parallel>], iteration_bounds = array<i64: 2>, scalar_prefetch = 0 : i64, scratch_operands = 0 : i64, tpu.core_type = #tpu.core_type<tc>, window_params = [{transform_indices = @transform_0, window_bounds = array<i64: 1, 8, 128>}, {transform_indices = @transform_1, window_bounds = array<i64: 1, 8, 128>}, {transform_indices = @transform_2, window_bounds = array<i64: 1, 8, 128>}, {transform_indices = @transform_3, window_bounds = array<i64: 1, 8, 1>}, {pipeline_mode = #tpu.pipeline_mode<synchronous>, transform_indices = @transform_4, window_bounds = array<i64: 128, 384>}, {pipeline_mode = #tpu.pipeline_mode<synchronous>, transform_indices = @transform_5, window_bounds = array<i64: 1, 384>}, {pipeline_mode = #tpu.pipeline_mode<synchronous>, transform_indices = @transform_6, window_bounds = array<i64: 128, 128>}, {pipeline_mode = #tpu.pipeline_mode<synchronous>, transform_indices = @transform_7, window_bounds = array<i64: 1, 128>}, {pipeline_mode = #tpu.pipeline_mode<synchronous>, transform_indices = @transform_8, window_bounds = array<i64: 128, 128>}, {pipeline_mode = #tpu.pipeline_mode<synchronous>, transform_indices = @transform_9, window_bounds = array<i64: 1, 128>}, {pipeline_mode = #tpu.pipeline_mode<synchronous>, transform_indices = @transform_10, window_bounds = array<i64: 128, 256>}, {pipeline_mode = #tpu.pipeline_mode<synchronous>, transform_indices = @transform_11, window_bounds = array<i64: 1, 256>}, {pipeline_mode = #tpu.pipeline_mode<synchronous>, transform_indices = @transform_12, window_bounds = array<i64: 128, 128>}, {pipeline_mode = #tpu.pipeline_mode<synchronous>, transform_indices = @transform_13, window_bounds = array<i64: 1, 128>}, {pipeline_mode = #tpu.pipeline_mode<synchronous>, transform_indices = @transform_14, window_bounds = array<i64: 1, 128>}, {pipeline_mode = #tpu.pipeline_mode<synchronous>, transform_indices = @transform_15, window_bounds = array<i64: 1, 128>}, {pipeline_mode = #tpu.pipeline_mode<synchronous>, transform_indices = @transform_16, window_bounds = array<i64: 1, 128>}, {pipeline_mode = #tpu.pipeline_mode<synchronous>, transform_indices = @transform_17, window_bounds = array<i64: 1, 128>}, {pipeline_mode = #tpu.pipeline_mode<synchronous>, transform_indices = @transform_18, window_bounds = array<i64: 1, 128>}, {pipeline_mode = #tpu.pipeline_mode<synchronous>, transform_indices = @transform_19, window_bounds = array<i64: 1, 128>}, {pipeline_mode = #tpu.pipeline_mode<synchronous>, transform_indices = @transform_20, window_bounds = array<i64: 128, 128>}, {pipeline_mode = #tpu.pipeline_mode<synchronous>, transform_indices = @transform_21, window_bounds = array<i64: 1, 128>}, {pipeline_mode = #tpu.pipeline_mode<synchronous>, transform_indices = @transform_22, window_bounds = array<i64: 128, 128>}, {pipeline_mode = #tpu.pipeline_mode<synchronous>, transform_indices = @transform_23, window_bounds = array<i64: 1, 128>}, {pipeline_mode = #tpu.pipeline_mode<synchronous>, transform_indices = @transform_24, window_bounds = array<i64: 128, 128>}, {pipeline_mode = #tpu.pipeline_mode<synchronous>, transform_indices = @transform_25, window_bounds = array<i64: 128, 128>}, {pipeline_mode = #tpu.pipeline_mode<synchronous>, transform_indices = @transform_26, window_bounds = array<i64: 1, 128>}, {pipeline_mode = #tpu.pipeline_mode<synchronous>, transform_indices = @transform_27, window_bounds = array<i64: 3, 128>}, {transform_indices = @transform_28, window_bounds = array<i64: 1>}, {transform_indices = @transform_29, window_bounds = array<i64: 1, 8, 128>}]} {
    %c0 = arith.constant 0 : index
    %c0_0 = arith.constant 0 : index
    %c0_1 = arith.constant 0 : index
    %0 = vector.load %arg1[%c0, %c0_0, %c0_1] : memref<1x8x128xbf16, #tpu.memory_space<vmem>>, vector<1x8x128xbf16>
    %c0_2 = arith.constant 0 : index
    %c0_3 = arith.constant 0 : index
    %c0_4 = arith.constant 0 : index
    %1 = vector.load %arg2[%c0_2, %c0_3, %c0_4] : memref<1x8x128xbf16, #tpu.memory_space<vmem>>, vector<1x8x128xbf16>
    %c0_5 = arith.constant 0 : index
    %c0_6 = arith.constant 0 : index
    %2 = vector.load %arg5[%c0_5, %c0_6] : memref<128x384xbf16, #tpu.memory_space<vmem>>, vector<128x384xbf16>
    %c0_7 = arith.constant 0 : index
    %c0_8 = arith.constant 0 : index
    %3 = vector.load %arg6[%c0_7, %c0_8] : memref<1x384xf32, #tpu.memory_space<vmem>>, vector<1x384xf32>
    %c0_9 = arith.constant 0 : index
    %c0_10 = arith.constant 0 : index
    %4 = vector.load %arg7[%c0_9, %c0_10] : memref<128x128xbf16, #tpu.memory_space<vmem>>, vector<128x128xbf16>
    %c0_11 = arith.constant 0 : index
    %c0_12 = arith.constant 0 : index
    %5 = vector.load %arg8[%c0_11, %c0_12] : memref<1x128xf32, #tpu.memory_space<vmem>>, vector<1x128xf32>
    %c0_13 = arith.constant 0 : index
    %c0_14 = arith.constant 0 : index
    %6 = vector.load %arg9[%c0_13, %c0_14] : memref<128x128xbf16, #tpu.memory_space<vmem>>, vector<128x128xbf16>
    %c0_15 = arith.constant 0 : index
    %c0_16 = arith.constant 0 : index
    %7 = vector.load %arg10[%c0_15, %c0_16] : memref<1x128xf32, #tpu.memory_space<vmem>>, vector<1x128xf32>
    %c0_17 = arith.constant 0 : index
    %c0_18 = arith.constant 0 : index
    %8 = vector.load %arg11[%c0_17, %c0_18] : memref<128x256xbf16, #tpu.memory_space<vmem>>, vector<128x256xbf16>
    %c0_19 = arith.constant 0 : index
    %c0_20 = arith.constant 0 : index
    %9 = vector.load %arg12[%c0_19, %c0_20] : memref<1x256xf32, #tpu.memory_space<vmem>>, vector<1x256xf32>
    %c0_21 = arith.constant 0 : index
    %c0_22 = arith.constant 0 : index
    %10 = vector.load %arg13[%c0_21, %c0_22] : memref<128x128xbf16, #tpu.memory_space<vmem>>, vector<128x128xbf16>
    %c0_23 = arith.constant 0 : index
    %c0_24 = arith.constant 0 : index
    %11 = vector.load %arg14[%c0_23, %c0_24] : memref<1x128xf32, #tpu.memory_space<vmem>>, vector<1x128xf32>
    %c0_25 = arith.constant 0 : index
    %c0_26 = arith.constant 0 : index
    %12 = vector.load %arg15[%c0_25, %c0_26] : memref<1x128xf32, #tpu.memory_space<vmem>>, vector<1x128xf32>
    %c0_27 = arith.constant 0 : index
    %c0_28 = arith.constant 0 : index
    %13 = vector.load %arg16[%c0_27, %c0_28] : memref<1x128xf32, #tpu.memory_space<vmem>>, vector<1x128xf32>
    %c0_29 = arith.constant 0 : index
    %c0_30 = arith.constant 0 : index
    %14 = vector.load %arg17[%c0_29, %c0_30] : memref<1x128xf32, #tpu.memory_space<vmem>>, vector<1x128xf32>
    %c0_31 = arith.constant 0 : index
    %c0_32 = arith.constant 0 : index
    %15 = vector.load %arg18[%c0_31, %c0_32] : memref<1x128xf32, #tpu.memory_space<vmem>>, vector<1x128xf32>
    %c0_33 = arith.constant 0 : index
    %c0_34 = arith.constant 0 : index
    %16 = vector.load %arg19[%c0_33, %c0_34] : memref<1x128xf32, #tpu.memory_space<vmem>>, vector<1x128xf32>
    %c0_35 = arith.constant 0 : index
    %c0_36 = arith.constant 0 : index
    %17 = vector.load %arg20[%c0_35, %c0_36] : memref<1x128xf32, #tpu.memory_space<vmem>>, vector<1x128xf32>
    %c0_37 = arith.constant 0 : index
    %c0_38 = arith.constant 0 : index
    %18 = vector.load %arg21[%c0_37, %c0_38] : memref<128x128xbf16, #tpu.memory_space<vmem>>, vector<128x128xbf16>
    %c0_39 = arith.constant 0 : index
    %c0_40 = arith.constant 0 : index
    %19 = vector.load %arg22[%c0_39, %c0_40] : memref<1x128xf32, #tpu.memory_space<vmem>>, vector<1x128xf32>
    %c0_41 = arith.constant 0 : index
    %c0_42 = arith.constant 0 : index
    %20 = vector.load %arg23[%c0_41, %c0_42] : memref<128x128xbf16, #tpu.memory_space<vmem>>, vector<128x128xbf16>
    %c0_43 = arith.constant 0 : index
    %c0_44 = arith.constant 0 : index
    %21 = vector.load %arg24[%c0_43, %c0_44] : memref<1x128xf32, #tpu.memory_space<vmem>>, vector<1x128xf32>
    %22 = vector.shape_cast %0 : vector<1x8x128xbf16> to vector<8x128xbf16>
    %23 = tpu.iota {dimensions = array<i32: 0>} : vector<8x8xi32>
    %24 = tpu.iota {dimensions = array<i32: 1>} : vector<8x8xi32>
    %25 = arith.cmpi sge, %23, %24 : vector<8x8xi32>
    %cst = arith.constant 0.000000e+00 : f32
    %cst_45 = arith.constant -1.000000e+30 : f32
    %26 = vector.broadcast %cst : f32 to vector<8x8xf32>
    %27 = vector.broadcast %cst_45 : f32 to vector<8x8xf32>
    %28 = arith.select %25, %26, %27 : vector<8x8xi1>, vector<8x8xf32>
    %cst_46 = arith.constant dense<0.000000e+00> : vector<8x384xf32>
    %29 = tpu.matmul %22, %2, %cst_46 {dimension_numbers = #tpu.dot_dimension_numbers<[1], [0], [0], [1], [0, 0, 1, 1], [], []>} : vector<8x128xbf16>, vector<128x384xbf16>, vector<8x384xf32> -> vector<8x384xf32>
    %30 = vector.broadcast %3 : vector<1x384xf32> to vector<8x384xf32>
    %31 = arith.addf %29, %30 : vector<8x384xf32>
    %32 = vector.extract_strided_slice %31 {offsets = [0, 0], sizes = [8, 128], strides = [1, 1]} : vector<8x384xf32> to vector<8x128xf32>
    %33 = vector.shape_cast %32 : vector<8x128xf32> to vector<1x8x128xf32>
    %34 = vector.extract_strided_slice %31 {offsets = [0, 128], sizes = [8, 128], strides = [1, 1]} : vector<8x384xf32> to vector<8x128xf32>
    %35 = vector.shape_cast %34 : vector<8x128xf32> to vector<1x8x128xf32>
    %36 = vector.extract_strided_slice %31 {offsets = [0, 256], sizes = [8, 128], strides = [1, 1]} : vector<8x384xf32> to vector<8x128xf32>
    %37 = vector.shape_cast %36 : vector<8x128xf32> to vector<1x8x128xf32>
    %38 = vector.extract_strided_slice %33 {offsets = [0, 0, 0], sizes = [1, 8, 32], strides = [1, 1, 1]} : vector<1x8x128xf32> to vector<1x8x32xf32>
    %39 = arith.truncf %38 : vector<1x8x32xf32> to vector<1x8x32xbf16>
    %40 = vector.extract_strided_slice %35 {offsets = [0, 0, 0], sizes = [1, 8, 32], strides = [1, 1, 1]} : vector<1x8x128xf32> to vector<1x8x32xf32>
    %41 = arith.truncf %40 : vector<1x8x32xf32> to vector<1x8x32xbf16>
    %42 = vector.extract_strided_slice %37 {offsets = [0, 0, 0], sizes = [1, 8, 32], strides = [1, 1, 1]} : vector<1x8x128xf32> to vector<1x8x32xf32>
    %43 = arith.truncf %42 : vector<1x8x32xf32> to vector<1x8x32xbf16>
    "tpu.trace_start"() <{level = 10 : i32, message = "bqd,bkd->bqk"}> : () -> ()
    %cst_47 = arith.constant dense<0.000000e+00> : vector<1x8x8xf32>
    %44 = tpu.matmul %39, %41, %cst_47 {dimension_numbers = #tpu.dot_dimension_numbers<[2], [2], [1], [1], [0, 0, 0, 1, 1, 1], [0], [0]>} : vector<1x8x32xbf16>, vector<1x8x32xbf16>, vector<1x8x8xf32> -> vector<1x8x8xf32>
    "tpu.trace_stop"() : () -> ()
    %45 = vector.shape_cast %28 : vector<8x8xf32> to vector<1x8x8xf32>
    %46 = arith.addf %44, %45 : vector<1x8x8xf32>
    %cst_48 = arith.constant dense<0xFF800000> : vector<1x8xf32>
    %47 = vector.multi_reduction <maximumf>, %46, %cst_48 [2] : vector<1x8x8xf32> to vector<1x8xf32>
    %48 = vector.shape_cast %47 : vector<1x8xf32> to vector<1x8x1xf32>
    %49 = vector.broadcast %48 : vector<1x8x1xf32> to vector<1x8x8xf32>
    %50 = arith.subf %46, %49 : vector<1x8x8xf32>
    %51 = math.exp %50 : vector<1x8x8xf32>
    %cst_49 = arith.constant dense<0.000000e+00> : vector<1x8xf32>
    %52 = vector.multi_reduction <add>, %51, %cst_49 [2] : vector<1x8x8xf32> to vector<1x8xf32>
    %53 = vector.shape_cast %52 : vector<1x8xf32> to vector<1x8x1xf32>
    %54 = tpu.reciprocal %53 {approx = true} : vector<1x8x1xf32> -> vector<1x8x1xf32>
    %55 = vector.broadcast %54 : vector<1x8x1xf32> to vector<1x8x8xf32>
    %56 = arith.mulf %51, %55 : vector<1x8x8xf32>
    %57 = arith.truncf %56 : vector<1x8x8xf32> to vector<1x8x8xbf16>
    "tpu.trace_start"() <{level = 10 : i32, message = "bqk,bkd->bqd"}> : () -> ()
    %cst_50 = arith.constant dense<0.000000e+00> : vector<1x8x32xf32>
    %58 = tpu.matmul %57, %43, %cst_50 {dimension_numbers = #tpu.dot_dimension_numbers<[2], [1], [1], [2], [0, 0, 0, 1, 1, 2], [0], [0]>} : vector<1x8x8xbf16>, vector<1x8x32xbf16>, vector<1x8x32xf32> -> vector<1x8x32xf32>
    "tpu.trace_stop"() : () -> ()
    %59 = vector.extract_strided_slice %33 {offsets = [0, 0, 32], sizes = [1, 8, 32], strides = [1, 1, 1]} : vector<1x8x128xf32> to vector<1x8x32xf32>
    %60 = arith.truncf %59 : vector<1x8x32xf32> to vector<1x8x32xbf16>
    %61 = vector.extract_strided_slice %35 {offsets = [0, 0, 32], sizes = [1, 8, 32], strides = [1, 1, 1]} : vector<1x8x128xf32> to vector<1x8x32xf32>
    %62 = arith.truncf %61 : vector<1x8x32xf32> to vector<1x8x32xbf16>
    %63 = vector.extract_strided_slice %37 {offsets = [0, 0, 32], sizes = [1, 8, 32], strides = [1, 1, 1]} : vector<1x8x128xf32> to vector<1x8x32xf32>
    %64 = arith.truncf %63 : vector<1x8x32xf32> to vector<1x8x32xbf16>
    "tpu.trace_start"() <{level = 10 : i32, message = "bqd,bkd->bqk"}> : () -> ()
    %cst_51 = arith.constant dense<0.000000e+00> : vector<1x8x8xf32>
    %65 = tpu.matmul %60, %62, %cst_51 {dimension_numbers = #tpu.dot_dimension_numbers<[2], [2], [1], [1], [0, 0, 0, 1, 1, 1], [0], [0]>} : vector<1x8x32xbf16>, vector<1x8x32xbf16>, vector<1x8x8xf32> -> vector<1x8x8xf32>
    "tpu.trace_stop"() : () -> ()
    %66 = vector.shape_cast %28 : vector<8x8xf32> to vector<1x8x8xf32>
    %67 = arith.addf %65, %66 : vector<1x8x8xf32>
    %cst_52 = arith.constant dense<0xFF800000> : vector<1x8xf32>
    %68 = vector.multi_reduction <maximumf>, %67, %cst_52 [2] : vector<1x8x8xf32> to vector<1x8xf32>
    %69 = vector.shape_cast %68 : vector<1x8xf32> to vector<1x8x1xf32>
    %70 = vector.broadcast %69 : vector<1x8x1xf32> to vector<1x8x8xf32>
    %71 = arith.subf %67, %70 : vector<1x8x8xf32>
    %72 = math.exp %71 : vector<1x8x8xf32>
    %cst_53 = arith.constant dense<0.000000e+00> : vector<1x8xf32>
    %73 = vector.multi_reduction <add>, %72, %cst_53 [2] : vector<1x8x8xf32> to vector<1x8xf32>
    %74 = vector.shape_cast %73 : vector<1x8xf32> to vector<1x8x1xf32>
    %75 = tpu.reciprocal %74 {approx = true} : vector<1x8x1xf32> -> vector<1x8x1xf32>
    %76 = vector.broadcast %75 : vector<1x8x1xf32> to vector<1x8x8xf32>
    %77 = arith.mulf %72, %76 : vector<1x8x8xf32>
    %78 = arith.truncf %77 : vector<1x8x8xf32> to vector<1x8x8xbf16>
    "tpu.trace_start"() <{level = 10 : i32, message = "bqk,bkd->bqd"}> : () -> ()
    %cst_54 = arith.constant dense<0.000000e+00> : vector<1x8x32xf32>
    %79 = tpu.matmul %78, %64, %cst_54 {dimension_numbers = #tpu.dot_dimension_numbers<[2], [1], [1], [2], [0, 0, 0, 1, 1, 2], [0], [0]>} : vector<1x8x8xbf16>, vector<1x8x32xbf16>, vector<1x8x32xf32> -> vector<1x8x32xf32>
    "tpu.trace_stop"() : () -> ()
    %80 = vector.extract_strided_slice %33 {offsets = [0, 0, 64], sizes = [1, 8, 32], strides = [1, 1, 1]} : vector<1x8x128xf32> to vector<1x8x32xf32>
    %81 = arith.truncf %80 : vector<1x8x32xf32> to vector<1x8x32xbf16>
    %82 = vector.extract_strided_slice %35 {offsets = [0, 0, 64], sizes = [1, 8, 32], strides = [1, 1, 1]} : vector<1x8x128xf32> to vector<1x8x32xf32>
    %83 = arith.truncf %82 : vector<1x8x32xf32> to vector<1x8x32xbf16>
    %84 = vector.extract_strided_slice %37 {offsets = [0, 0, 64], sizes = [1, 8, 32], strides = [1, 1, 1]} : vector<1x8x128xf32> to vector<1x8x32xf32>
    %85 = arith.truncf %84 : vector<1x8x32xf32> to vector<1x8x32xbf16>
    "tpu.trace_start"() <{level = 10 : i32, message = "bqd,bkd->bqk"}> : () -> ()
    %cst_55 = arith.constant dense<0.000000e+00> : vector<1x8x8xf32>
    %86 = tpu.matmul %81, %83, %cst_55 {dimension_numbers = #tpu.dot_dimension_numbers<[2], [2], [1], [1], [0, 0, 0, 1, 1, 1], [0], [0]>} : vector<1x8x32xbf16>, vector<1x8x32xbf16>, vector<1x8x8xf32> -> vector<1x8x8xf32>
    "tpu.trace_stop"() : () -> ()
    %87 = vector.shape_cast %28 : vector<8x8xf32> to vector<1x8x8xf32>
    %88 = arith.addf %86, %87 : vector<1x8x8xf32>
    %cst_56 = arith.constant dense<0xFF800000> : vector<1x8xf32>
    %89 = vector.multi_reduction <maximumf>, %88, %cst_56 [2] : vector<1x8x8xf32> to vector<1x8xf32>
    %90 = vector.shape_cast %89 : vector<1x8xf32> to vector<1x8x1xf32>
    %91 = vector.broadcast %90 : vector<1x8x1xf32> to vector<1x8x8xf32>
    %92 = arith.subf %88, %91 : vector<1x8x8xf32>
    %93 = math.exp %92 : vector<1x8x8xf32>
    %cst_57 = arith.constant dense<0.000000e+00> : vector<1x8xf32>
    %94 = vector.multi_reduction <add>, %93, %cst_57 [2] : vector<1x8x8xf32> to vector<1x8xf32>
    %95 = vector.shape_cast %94 : vector<1x8xf32> to vector<1x8x1xf32>
    %96 = tpu.reciprocal %95 {approx = true} : vector<1x8x1xf32> -> vector<1x8x1xf32>
    %97 = vector.broadcast %96 : vector<1x8x1xf32> to vector<1x8x8xf32>
    %98 = arith.mulf %93, %97 : vector<1x8x8xf32>
    %99 = arith.truncf %98 : vector<1x8x8xf32> to vector<1x8x8xbf16>
    "tpu.trace_start"() <{level = 10 : i32, message = "bqk,bkd->bqd"}> : () -> ()
    %cst_58 = arith.constant dense<0.000000e+00> : vector<1x8x32xf32>
    %100 = tpu.matmul %99, %85, %cst_58 {dimension_numbers = #tpu.dot_dimension_numbers<[2], [1], [1], [2], [0, 0, 0, 1, 1, 2], [0], [0]>} : vector<1x8x8xbf16>, vector<1x8x32xbf16>, vector<1x8x32xf32> -> vector<1x8x32xf32>
    "tpu.trace_stop"() : () -> ()
    %101 = vector.extract_strided_slice %33 {offsets = [0, 0, 96], sizes = [1, 8, 32], strides = [1, 1, 1]} : vector<1x8x128xf32> to vector<1x8x32xf32>
    %102 = arith.truncf %101 : vector<1x8x32xf32> to vector<1x8x32xbf16>
    %103 = vector.extract_strided_slice %35 {offsets = [0, 0, 96], sizes = [1, 8, 32], strides = [1, 1, 1]} : vector<1x8x128xf32> to vector<1x8x32xf32>
    %104 = arith.truncf %103 : vector<1x8x32xf32> to vector<1x8x32xbf16>
    %105 = vector.extract_strided_slice %37 {offsets = [0, 0, 96], sizes = [1, 8, 32], strides = [1, 1, 1]} : vector<1x8x128xf32> to vector<1x8x32xf32>
    %106 = arith.truncf %105 : vector<1x8x32xf32> to vector<1x8x32xbf16>
    "tpu.trace_start"() <{level = 10 : i32, message = "bqd,bkd->bqk"}> : () -> ()
    %cst_59 = arith.constant dense<0.000000e+00> : vector<1x8x8xf32>
    %107 = tpu.matmul %102, %104, %cst_59 {dimension_numbers = #tpu.dot_dimension_numbers<[2], [2], [1], [1], [0, 0, 0, 1, 1, 1], [0], [0]>} : vector<1x8x32xbf16>, vector<1x8x32xbf16>, vector<1x8x8xf32> -> vector<1x8x8xf32>
    "tpu.trace_stop"() : () -> ()
    %108 = vector.shape_cast %28 : vector<8x8xf32> to vector<1x8x8xf32>
    %109 = arith.addf %107, %108 : vector<1x8x8xf32>
    %cst_60 = arith.constant dense<0xFF800000> : vector<1x8xf32>
    %110 = vector.multi_reduction <maximumf>, %109, %cst_60 [2] : vector<1x8x8xf32> to vector<1x8xf32>
    %111 = vector.shape_cast %110 : vector<1x8xf32> to vector<1x8x1xf32>
    %112 = vector.broadcast %111 : vector<1x8x1xf32> to vector<1x8x8xf32>
    %113 = arith.subf %109, %112 : vector<1x8x8xf32>
    %114 = math.exp %113 : vector<1x8x8xf32>
    %cst_61 = arith.constant dense<0.000000e+00> : vector<1x8xf32>
    %115 = vector.multi_reduction <add>, %114, %cst_61 [2] : vector<1x8x8xf32> to vector<1x8xf32>
    %116 = vector.shape_cast %115 : vector<1x8xf32> to vector<1x8x1xf32>
    %117 = tpu.reciprocal %116 {approx = true} : vector<1x8x1xf32> -> vector<1x8x1xf32>
    %118 = vector.broadcast %117 : vector<1x8x1xf32> to vector<1x8x8xf32>
    %119 = arith.mulf %114, %118 : vector<1x8x8xf32>
    %120 = arith.truncf %119 : vector<1x8x8xf32> to vector<1x8x8xbf16>
    "tpu.trace_start"() <{level = 10 : i32, message = "bqk,bkd->bqd"}> : () -> ()
    %cst_62 = arith.constant dense<0.000000e+00> : vector<1x8x32xf32>
    %121 = tpu.matmul %120, %106, %cst_62 {dimension_numbers = #tpu.dot_dimension_numbers<[2], [1], [1], [2], [0, 0, 0, 1, 1, 2], [0], [0]>} : vector<1x8x8xbf16>, vector<1x8x32xbf16>, vector<1x8x32xf32> -> vector<1x8x32xf32>
    "tpu.trace_stop"() : () -> ()
    %122 = tpu.concatenate %58, %79, %100, %121 in 2 : vector<1x8x32xf32>, vector<1x8x32xf32>, vector<1x8x32xf32>, vector<1x8x32xf32> -> vector<1x8x128xf32>
    %123 = vector.shape_cast %122 : vector<1x8x128xf32> to vector<8x128xf32>
    %124 = arith.truncf %123 : vector<8x128xf32> to vector<8x128xbf16>
    %cst_63 = arith.constant dense<0.000000e+00> : vector<8x128xf32>
    %125 = tpu.matmul %124, %4, %cst_63 {dimension_numbers = #tpu.dot_dimension_numbers<[1], [0], [0], [1], [0, 0, 1, 1], [], []>} : vector<8x128xbf16>, vector<128x128xbf16>, vector<8x128xf32> -> vector<8x128xf32>
    %126 = vector.broadcast %5 : vector<1x128xf32> to vector<8x128xf32>
    %127 = arith.addf %125, %126 : vector<8x128xf32>
    %128 = arith.extf %22 : vector<8x128xbf16> to vector<8x128xf32>
    %129 = arith.addf %128, %127 : vector<8x128xf32>
    %cst_64 = arith.constant dense<0.000000e+00> : vector<8xf32>
    %130 = vector.multi_reduction <add>, %129, %cst_64 [1] : vector<8x128xf32> to vector<8xf32>
    %131 = vector.shape_cast %130 : vector<8xf32> to vector<8x1xf32>
    %cst_65 = arith.constant 1.280000e+02 : f32
    %132 = vector.broadcast %cst_65 : f32 to vector<8x1xf32>
    %133 = arith.divf %131, %132 : vector<8x1xf32>
    %134 = vector.broadcast %133 : vector<8x1xf32> to vector<8x128xf32>
    %135 = arith.subf %129, %134 : vector<8x128xf32>
    %136 = arith.mulf %135, %135 : vector<8x128xf32>
    %cst_66 = arith.constant dense<0.000000e+00> : vector<8xf32>
    %137 = vector.multi_reduction <add>, %136, %cst_66 [1] : vector<8x128xf32> to vector<8xf32>
    %138 = vector.shape_cast %137 : vector<8xf32> to vector<8x1xf32>
    %cst_67 = arith.constant 1.280000e+02 : f32
    %139 = vector.broadcast %cst_67 : f32 to vector<8x1xf32>
    %140 = arith.divf %138, %139 : vector<8x1xf32>
    %141 = vector.broadcast %133 : vector<8x1xf32> to vector<8x128xf32>
    %142 = arith.subf %129, %141 : vector<8x128xf32>
    %cst_68 = arith.constant 9.99999974E-6 : f32
    %143 = vector.broadcast %cst_68 : f32 to vector<8x1xf32>
    %144 = arith.addf %140, %143 : vector<8x1xf32>
    %145 = math.rsqrt %144 : vector<8x1xf32>
    %146 = vector.broadcast %145 : vector<8x1xf32> to vector<8x128xf32>
    %147 = arith.mulf %142, %146 : vector<8x128xf32>
    %148 = vector.broadcast %12 : vector<1x128xf32> to vector<8x128xf32>
    %149 = arith.mulf %147, %148 : vector<8x128xf32>
    %150 = vector.broadcast %13 : vector<1x128xf32> to vector<8x128xf32>
    %151 = arith.addf %149, %150 : vector<8x128xf32>
    %152 = arith.truncf %151 : vector<8x128xf32> to vector<8x128xbf16>
    %cst_69 = arith.constant dense<0.000000e+00> : vector<8x128xf32>
    %153 = tpu.matmul %152, %6, %cst_69 {dimension_numbers = #tpu.dot_dimension_numbers<[1], [0], [0], [1], [0, 0, 1, 1], [], []>} : vector<8x128xbf16>, vector<128x128xbf16>, vector<8x128xf32> -> vector<8x128xf32>
    %154 = vector.broadcast %7 : vector<1x128xf32> to vector<8x128xf32>
    %155 = arith.addf %153, %154 : vector<8x128xf32>
    %156 = vector.shape_cast %1 : vector<1x8x128xbf16> to vector<8x128xbf16>
    %cst_70 = arith.constant dense<0.000000e+00> : vector<8x256xf32>
    %157 = tpu.matmul %156, %8, %cst_70 {dimension_numbers = #tpu.dot_dimension_numbers<[1], [0], [0], [1], [0, 0, 1, 1], [], []>} : vector<8x128xbf16>, vector<128x256xbf16>, vector<8x256xf32> -> vector<8x256xf32>
    %158 = vector.broadcast %9 : vector<1x256xf32> to vector<8x256xf32>
    %159 = arith.addf %157, %158 : vector<8x256xf32>
    %160 = vector.extract_strided_slice %159 {offsets = [0, 0], sizes = [8, 128], strides = [1, 1]} : vector<8x256xf32> to vector<8x128xf32>
    %161 = vector.shape_cast %160 : vector<8x128xf32> to vector<1x8x128xf32>
    %162 = vector.extract_strided_slice %159 {offsets = [0, 128], sizes = [8, 128], strides = [1, 1]} : vector<8x256xf32> to vector<8x128xf32>
    %163 = vector.shape_cast %162 : vector<8x128xf32> to vector<1x8x128xf32>
    %164 = vector.shape_cast %155 : vector<8x128xf32> to vector<1x8x128xf32>
    %165 = vector.extract_strided_slice %164 {offsets = [0, 0, 0], sizes = [1, 8, 32], strides = [1, 1, 1]} : vector<1x8x128xf32> to vector<1x8x32xf32>
    %166 = arith.truncf %165 : vector<1x8x32xf32> to vector<1x8x32xbf16>
    %167 = vector.extract_strided_slice %161 {offsets = [0, 0, 0], sizes = [1, 8, 32], strides = [1, 1, 1]} : vector<1x8x128xf32> to vector<1x8x32xf32>
    %168 = arith.truncf %167 : vector<1x8x32xf32> to vector<1x8x32xbf16>
    %169 = vector.extract_strided_slice %163 {offsets = [0, 0, 0], sizes = [1, 8, 32], strides = [1, 1, 1]} : vector<1x8x128xf32> to vector<1x8x32xf32>
    %170 = arith.truncf %169 : vector<1x8x32xf32> to vector<1x8x32xbf16>
    "tpu.trace_start"() <{level = 10 : i32, message = "bqd,bkd->bqk"}> : () -> ()
    %cst_71 = arith.constant dense<0.000000e+00> : vector<1x8x8xf32>
    %171 = tpu.matmul %166, %168, %cst_71 {dimension_numbers = #tpu.dot_dimension_numbers<[2], [2], [1], [1], [0, 0, 0, 1, 1, 1], [0], [0]>} : vector<1x8x32xbf16>, vector<1x8x32xbf16>, vector<1x8x8xf32> -> vector<1x8x8xf32>
    "tpu.trace_stop"() : () -> ()
    %cst_72 = arith.constant dense<0xFF800000> : vector<1x8xf32>
    %172 = vector.multi_reduction <maximumf>, %171, %cst_72 [2] : vector<1x8x8xf32> to vector<1x8xf32>
    %173 = vector.shape_cast %172 : vector<1x8xf32> to vector<1x8x1xf32>
    %174 = vector.broadcast %173 : vector<1x8x1xf32> to vector<1x8x8xf32>
    %175 = arith.subf %171, %174 : vector<1x8x8xf32>
    %176 = math.exp %175 : vector<1x8x8xf32>
    %cst_73 = arith.constant dense<0.000000e+00> : vector<1x8xf32>
    %177 = vector.multi_reduction <add>, %176, %cst_73 [2] : vector<1x8x8xf32> to vector<1x8xf32>
    %178 = vector.shape_cast %177 : vector<1x8xf32> to vector<1x8x1xf32>
    %179 = vector.broadcast %178 : vector<1x8x1xf32> to vector<1x8x8xf32>
    %180 = arith.divf %176, %179 : vector<1x8x8xf32>
    %181 = arith.truncf %180 : vector<1x8x8xf32> to vector<1x8x8xbf16>
    "tpu.trace_start"() <{level = 10 : i32, message = "bqk,bkd->bqd"}> : () -> ()
    %cst_74 = arith.constant dense<0.000000e+00> : vector<1x8x32xf32>
    %182 = tpu.matmul %181, %170, %cst_74 {dimension_numbers = #tpu.dot_dimension_numbers<[2], [1], [1], [2], [0, 0, 0, 1, 1, 2], [0], [0]>} : vector<1x8x8xbf16>, vector<1x8x32xbf16>, vector<1x8x32xf32> -> vector<1x8x32xf32>
    "tpu.trace_stop"() : () -> ()
    %183 = vector.extract_strided_slice %164 {offsets = [0, 0, 32], sizes = [1, 8, 32], strides = [1, 1, 1]} : vector<1x8x128xf32> to vector<1x8x32xf32>
    %184 = arith.truncf %183 : vector<1x8x32xf32> to vector<1x8x32xbf16>
    %185 = vector.extract_strided_slice %161 {offsets = [0, 0, 32], sizes = [1, 8, 32], strides = [1, 1, 1]} : vector<1x8x128xf32> to vector<1x8x32xf32>
    %186 = arith.truncf %185 : vector<1x8x32xf32> to vector<1x8x32xbf16>
    %187 = vector.extract_strided_slice %163 {offsets = [0, 0, 32], sizes = [1, 8, 32], strides = [1, 1, 1]} : vector<1x8x128xf32> to vector<1x8x32xf32>
    %188 = arith.truncf %187 : vector<1x8x32xf32> to vector<1x8x32xbf16>
    "tpu.trace_start"() <{level = 10 : i32, message = "bqd,bkd->bqk"}> : () -> ()
    %cst_75 = arith.constant dense<0.000000e+00> : vector<1x8x8xf32>
    %189 = tpu.matmul %184, %186, %cst_75 {dimension_numbers = #tpu.dot_dimension_numbers<[2], [2], [1], [1], [0, 0, 0, 1, 1, 1], [0], [0]>} : vector<1x8x32xbf16>, vector<1x8x32xbf16>, vector<1x8x8xf32> -> vector<1x8x8xf32>
    "tpu.trace_stop"() : () -> ()
    %cst_76 = arith.constant dense<0xFF800000> : vector<1x8xf32>
    %190 = vector.multi_reduction <maximumf>, %189, %cst_76 [2] : vector<1x8x8xf32> to vector<1x8xf32>
    %191 = vector.shape_cast %190 : vector<1x8xf32> to vector<1x8x1xf32>
    %192 = vector.broadcast %191 : vector<1x8x1xf32> to vector<1x8x8xf32>
    %193 = arith.subf %189, %192 : vector<1x8x8xf32>
    %194 = math.exp %193 : vector<1x8x8xf32>
    %cst_77 = arith.constant dense<0.000000e+00> : vector<1x8xf32>
    %195 = vector.multi_reduction <add>, %194, %cst_77 [2] : vector<1x8x8xf32> to vector<1x8xf32>
    %196 = vector.shape_cast %195 : vector<1x8xf32> to vector<1x8x1xf32>
    %197 = vector.broadcast %196 : vector<1x8x1xf32> to vector<1x8x8xf32>
    %198 = arith.divf %194, %197 : vector<1x8x8xf32>
    %199 = arith.truncf %198 : vector<1x8x8xf32> to vector<1x8x8xbf16>
    "tpu.trace_start"() <{level = 10 : i32, message = "bqk,bkd->bqd"}> : () -> ()
    %cst_78 = arith.constant dense<0.000000e+00> : vector<1x8x32xf32>
    %200 = tpu.matmul %199, %188, %cst_78 {dimension_numbers = #tpu.dot_dimension_numbers<[2], [1], [1], [2], [0, 0, 0, 1, 1, 2], [0], [0]>} : vector<1x8x8xbf16>, vector<1x8x32xbf16>, vector<1x8x32xf32> -> vector<1x8x32xf32>
    "tpu.trace_stop"() : () -> ()
    %201 = arith.addf %180, %198 : vector<1x8x8xf32>
    %202 = vector.extract_strided_slice %164 {offsets = [0, 0, 64], sizes = [1, 8, 32], strides = [1, 1, 1]} : vector<1x8x128xf32> to vector<1x8x32xf32>
    %203 = arith.truncf %202 : vector<1x8x32xf32> to vector<1x8x32xbf16>
    %204 = vector.extract_strided_slice %161 {offsets = [0, 0, 64], sizes = [1, 8, 32], strides = [1, 1, 1]} : vector<1x8x128xf32> to vector<1x8x32xf32>
    %205 = arith.truncf %204 : vector<1x8x32xf32> to vector<1x8x32xbf16>
    %206 = vector.extract_strided_slice %163 {offsets = [0, 0, 64], sizes = [1, 8, 32], strides = [1, 1, 1]} : vector<1x8x128xf32> to vector<1x8x32xf32>
    %207 = arith.truncf %206 : vector<1x8x32xf32> to vector<1x8x32xbf16>
    "tpu.trace_start"() <{level = 10 : i32, message = "bqd,bkd->bqk"}> : () -> ()
    %cst_79 = arith.constant dense<0.000000e+00> : vector<1x8x8xf32>
    %208 = tpu.matmul %203, %205, %cst_79 {dimension_numbers = #tpu.dot_dimension_numbers<[2], [2], [1], [1], [0, 0, 0, 1, 1, 1], [0], [0]>} : vector<1x8x32xbf16>, vector<1x8x32xbf16>, vector<1x8x8xf32> -> vector<1x8x8xf32>
    "tpu.trace_stop"() : () -> ()
    %cst_80 = arith.constant dense<0xFF800000> : vector<1x8xf32>
    %209 = vector.multi_reduction <maximumf>, %208, %cst_80 [2] : vector<1x8x8xf32> to vector<1x8xf32>
    %210 = vector.shape_cast %209 : vector<1x8xf32> to vector<1x8x1xf32>
    %211 = vector.broadcast %210 : vector<1x8x1xf32> to vector<1x8x8xf32>
    %212 = arith.subf %208, %211 : vector<1x8x8xf32>
    %213 = math.exp %212 : vector<1x8x8xf32>
    %cst_81 = arith.constant dense<0.000000e+00> : vector<1x8xf32>
    %214 = vector.multi_reduction <add>, %213, %cst_81 [2] : vector<1x8x8xf32> to vector<1x8xf32>
    %215 = vector.shape_cast %214 : vector<1x8xf32> to vector<1x8x1xf32>
    %216 = vector.broadcast %215 : vector<1x8x1xf32> to vector<1x8x8xf32>
    %217 = arith.divf %213, %216 : vector<1x8x8xf32>
    %218 = arith.truncf %217 : vector<1x8x8xf32> to vector<1x8x8xbf16>
    "tpu.trace_start"() <{level = 10 : i32, message = "bqk,bkd->bqd"}> : () -> ()
    %cst_82 = arith.constant dense<0.000000e+00> : vector<1x8x32xf32>
    %219 = tpu.matmul %218, %207, %cst_82 {dimension_numbers = #tpu.dot_dimension_numbers<[2], [1], [1], [2], [0, 0, 0, 1, 1, 2], [0], [0]>} : vector<1x8x8xbf16>, vector<1x8x32xbf16>, vector<1x8x32xf32> -> vector<1x8x32xf32>
    "tpu.trace_stop"() : () -> ()
    %220 = arith.addf %201, %217 : vector<1x8x8xf32>
    %221 = vector.extract_strided_slice %164 {offsets = [0, 0, 96], sizes = [1, 8, 32], strides = [1, 1, 1]} : vector<1x8x128xf32> to vector<1x8x32xf32>
    %222 = arith.truncf %221 : vector<1x8x32xf32> to vector<1x8x32xbf16>
    %223 = vector.extract_strided_slice %161 {offsets = [0, 0, 96], sizes = [1, 8, 32], strides = [1, 1, 1]} : vector<1x8x128xf32> to vector<1x8x32xf32>
    %224 = arith.truncf %223 : vector<1x8x32xf32> to vector<1x8x32xbf16>
    %225 = vector.extract_strided_slice %163 {offsets = [0, 0, 96], sizes = [1, 8, 32], strides = [1, 1, 1]} : vector<1x8x128xf32> to vector<1x8x32xf32>
    %226 = arith.truncf %225 : vector<1x8x32xf32> to vector<1x8x32xbf16>
    "tpu.trace_start"() <{level = 10 : i32, message = "bqd,bkd->bqk"}> : () -> ()
    %cst_83 = arith.constant dense<0.000000e+00> : vector<1x8x8xf32>
    %227 = tpu.matmul %222, %224, %cst_83 {dimension_numbers = #tpu.dot_dimension_numbers<[2], [2], [1], [1], [0, 0, 0, 1, 1, 1], [0], [0]>} : vector<1x8x32xbf16>, vector<1x8x32xbf16>, vector<1x8x8xf32> -> vector<1x8x8xf32>
    "tpu.trace_stop"() : () -> ()
    %cst_84 = arith.constant dense<0xFF800000> : vector<1x8xf32>
    %228 = vector.multi_reduction <maximumf>, %227, %cst_84 [2] : vector<1x8x8xf32> to vector<1x8xf32>
    %229 = vector.shape_cast %228 : vector<1x8xf32> to vector<1x8x1xf32>
    %230 = vector.broadcast %229 : vector<1x8x1xf32> to vector<1x8x8xf32>
    %231 = arith.subf %227, %230 : vector<1x8x8xf32>
    %232 = math.exp %231 : vector<1x8x8xf32>
    %cst_85 = arith.constant dense<0.000000e+00> : vector<1x8xf32>
    %233 = vector.multi_reduction <add>, %232, %cst_85 [2] : vector<1x8x8xf32> to vector<1x8xf32>
    %234 = vector.shape_cast %233 : vector<1x8xf32> to vector<1x8x1xf32>
    %235 = vector.broadcast %234 : vector<1x8x1xf32> to vector<1x8x8xf32>
    %236 = arith.divf %232, %235 : vector<1x8x8xf32>
    %237 = arith.truncf %236 : vector<1x8x8xf32> to vector<1x8x8xbf16>
    "tpu.trace_start"() <{level = 10 : i32, message = "bqk,bkd->bqd"}> : () -> ()
    %cst_86 = arith.constant dense<0.000000e+00> : vector<1x8x32xf32>
    %238 = tpu.matmul %237, %226, %cst_86 {dimension_numbers = #tpu.dot_dimension_numbers<[2], [1], [1], [2], [0, 0, 0, 1, 1, 2], [0], [0]>} : vector<1x8x8xbf16>, vector<1x8x32xbf16>, vector<1x8x32xf32> -> vector<1x8x32xf32>
    "tpu.trace_stop"() : () -> ()
    %239 = arith.addf %220, %236 : vector<1x8x8xf32>
    %240 = tpu.concatenate %182, %200, %219, %238 in 2 : vector<1x8x32xf32>, vector<1x8x32xf32>, vector<1x8x32xf32>, vector<1x8x32xf32> -> vector<1x8x128xf32>
    %cst_87 = arith.constant 2.500000e-01 : f32
    %241 = vector.broadcast %cst_87 : f32 to vector<1x8x8xf32>
    %242 = arith.mulf %239, %241 : vector<1x8x8xf32>
    %243 = vector.shape_cast %240 : vector<1x8x128xf32> to vector<8x128xf32>
    %244 = arith.truncf %243 : vector<8x128xf32> to vector<8x128xbf16>
    %cst_88 = arith.constant dense<0.000000e+00> : vector<8x128xf32>
    %245 = tpu.matmul %244, %10, %cst_88 {dimension_numbers = #tpu.dot_dimension_numbers<[1], [0], [0], [1], [0, 0, 1, 1], [], []>} : vector<8x128xbf16>, vector<128x128xbf16>, vector<8x128xf32> -> vector<8x128xf32>
    %246 = vector.broadcast %11 : vector<1x128xf32> to vector<8x128xf32>
    %247 = arith.addf %245, %246 : vector<8x128xf32>
    %248 = arith.addf %151, %247 : vector<8x128xf32>
    %cst_89 = arith.constant dense<0.000000e+00> : vector<8xf32>
    %249 = vector.multi_reduction <add>, %248, %cst_89 [1] : vector<8x128xf32> to vector<8xf32>
    %250 = vector.shape_cast %249 : vector<8xf32> to vector<8x1xf32>
    %cst_90 = arith.constant 1.280000e+02 : f32
    %251 = vector.broadcast %cst_90 : f32 to vector<8x1xf32>
    %252 = arith.divf %250, %251 : vector<8x1xf32>
    %253 = vector.broadcast %252 : vector<8x1xf32> to vector<8x128xf32>
    %254 = arith.subf %248, %253 : vector<8x128xf32>
    %255 = arith.mulf %254, %254 : vector<8x128xf32>
    %cst_91 = arith.constant dense<0.000000e+00> : vector<8xf32>
    %256 = vector.multi_reduction <add>, %255, %cst_91 [1] : vector<8x128xf32> to vector<8xf32>
    %257 = vector.shape_cast %256 : vector<8xf32> to vector<8x1xf32>
    %cst_92 = arith.constant 1.280000e+02 : f32
    %258 = vector.broadcast %cst_92 : f32 to vector<8x1xf32>
    %259 = arith.divf %257, %258 : vector<8x1xf32>
    %260 = vector.broadcast %252 : vector<8x1xf32> to vector<8x128xf32>
    %261 = arith.subf %248, %260 : vector<8x128xf32>
    %cst_93 = arith.constant 9.99999974E-6 : f32
    %262 = vector.broadcast %cst_93 : f32 to vector<8x1xf32>
    %263 = arith.addf %259, %262 : vector<8x1xf32>
    %264 = math.rsqrt %263 : vector<8x1xf32>
    %265 = vector.broadcast %264 : vector<8x1xf32> to vector<8x128xf32>
    %266 = arith.mulf %261, %265 : vector<8x128xf32>
    %267 = vector.broadcast %14 : vector<1x128xf32> to vector<8x128xf32>
    %268 = arith.mulf %266, %267 : vector<8x128xf32>
    %269 = vector.broadcast %15 : vector<1x128xf32> to vector<8x128xf32>
    %270 = arith.addf %268, %269 : vector<8x128xf32>
    %271 = arith.truncf %270 : vector<8x128xf32> to vector<8x128xbf16>
    %cst_94 = arith.constant dense<0.000000e+00> : vector<8x128xf32>
    %272 = tpu.matmul %271, %18, %cst_94 {dimension_numbers = #tpu.dot_dimension_numbers<[1], [0], [0], [1], [0, 0, 1, 1], [], []>} : vector<8x128xbf16>, vector<128x128xbf16>, vector<8x128xf32> -> vector<8x128xf32>
    %273 = vector.broadcast %19 : vector<1x128xf32> to vector<8x128xf32>
    %274 = arith.addf %272, %273 : vector<8x128xf32>
    %cst_95 = arith.constant 0.000000e+00 : f32
    %275 = vector.broadcast %cst_95 : f32 to vector<8x128xf32>
    %276 = arith.maximumf %274, %275 : vector<8x128xf32>
    %277 = arith.truncf %276 : vector<8x128xf32> to vector<8x128xbf16>
    %cst_96 = arith.constant dense<0.000000e+00> : vector<8x128xf32>
    %278 = tpu.matmul %277, %20, %cst_96 {dimension_numbers = #tpu.dot_dimension_numbers<[1], [0], [0], [1], [0, 0, 1, 1], [], []>} : vector<8x128xbf16>, vector<128x128xbf16>, vector<8x128xf32> -> vector<8x128xf32>
    %279 = vector.broadcast %21 : vector<1x128xf32> to vector<8x128xf32>
    %280 = arith.addf %278, %279 : vector<8x128xf32>
    %281 = arith.addf %270, %280 : vector<8x128xf32>
    %cst_97 = arith.constant dense<0.000000e+00> : vector<8xf32>
    %282 = vector.multi_reduction <add>, %281, %cst_97 [1] : vector<8x128xf32> to vector<8xf32>
    %283 = vector.shape_cast %282 : vector<8xf32> to vector<8x1xf32>
    %cst_98 = arith.constant 1.280000e+02 : f32
    %284 = vector.broadcast %cst_98 : f32 to vector<8x1xf32>
    %285 = arith.divf %283, %284 : vector<8x1xf32>
    %286 = vector.broadcast %285 : vector<8x1xf32> to vector<8x128xf32>
    %287 = arith.subf %281, %286 : vector<8x128xf32>
    %288 = arith.mulf %287, %287 : vector<8x128xf32>
    %cst_99 = arith.constant dense<0.000000e+00> : vector<8xf32>
    %289 = vector.multi_reduction <add>, %288, %cst_99 [1] : vector<8x128xf32> to vector<8xf32>
    %290 = vector.shape_cast %289 : vector<8xf32> to vector<8x1xf32>
    %cst_100 = arith.constant 1.280000e+02 : f32
    %291 = vector.broadcast %cst_100 : f32 to vector<8x1xf32>
    %292 = arith.divf %290, %291 : vector<8x1xf32>
    %293 = vector.broadcast %285 : vector<8x1xf32> to vector<8x128xf32>
    %294 = arith.subf %281, %293 : vector<8x128xf32>
    %cst_101 = arith.constant 9.99999974E-6 : f32
    %295 = vector.broadcast %cst_101 : f32 to vector<8x1xf32>
    %296 = arith.addf %292, %295 : vector<8x1xf32>
    %297 = math.rsqrt %296 : vector<8x1xf32>
    %298 = vector.broadcast %297 : vector<8x1xf32> to vector<8x128xf32>
    %299 = arith.mulf %294, %298 : vector<8x128xf32>
    %300 = vector.broadcast %16 : vector<1x128xf32> to vector<8x128xf32>
    %301 = arith.mulf %299, %300 : vector<8x128xf32>
    %302 = vector.broadcast %17 : vector<1x128xf32> to vector<8x128xf32>
    %303 = arith.addf %301, %302 : vector<8x128xf32>
    %304 = vector.shape_cast %303 : vector<8x128xf32> to vector<1x8x128xf32>
    %c0_102 = arith.constant 0 : index
    %c0_103 = arith.constant 0 : index
    %305 = vector.load %arg25[%c0_102, %c0_103] : memref<128x128xf32, #tpu.memory_space<vmem>>, vector<128x128xf32>
    %306 = arith.truncf %242 : vector<1x8x8xf32> to vector<1x8x8xbf16>
    "tpu.trace_start"() <{level = 10 : i32, message = "bts,bse->bte"}> : () -> ()
    %cst_104 = arith.constant dense<0.000000e+00> : vector<1x8x128xf32>
    %307 = tpu.matmul %306, %1, %cst_104 {dimension_numbers = #tpu.dot_dimension_numbers<[2], [1], [1], [2], [0, 0, 0, 1, 1, 2], [0], [0]>} : vector<1x8x8xbf16>, vector<1x8x128xbf16>, vector<1x8x128xf32> -> vector<1x8x128xf32>
    "tpu.trace_stop"() : () -> ()
    %308 = arith.truncf %303 : vector<8x128xf32> to vector<8x128xbf16>
    %c0_105 = arith.constant 0 : index
    %c0_106 = arith.constant 0 : index
    %309 = vector.load %arg26[%c0_105, %c0_106] : memref<128x128xbf16, #tpu.memory_space<vmem>>, vector<128x128xbf16>
    %cst_107 = arith.constant dense<0.000000e+00> : vector<8x128xf32>
    %310 = tpu.matmul %308, %309, %cst_107 {dimension_numbers = #tpu.dot_dimension_numbers<[1], [0], [0], [1], [0, 0, 1, 1], [], []>} : vector<8x128xbf16>, vector<128x128xbf16>, vector<8x128xf32> -> vector<8x128xf32>
    %c0_108 = arith.constant 0 : index
    %c0_109 = arith.constant 0 : index
    %311 = vector.load %arg27[%c0_108, %c0_109] : memref<1x128xf32, #tpu.memory_space<vmem>>, vector<1x128xf32>
    %312 = vector.broadcast %311 : vector<1x128xf32> to vector<8x128xf32>
    %313 = arith.addf %310, %312 : vector<8x128xf32>
    %cst_110 = arith.constant dense<0xFF800000> : vector<8xf32>
    %314 = vector.multi_reduction <maximumf>, %313, %cst_110 [1] : vector<8x128xf32> to vector<8xf32>
    %315 = vector.shape_cast %314 : vector<8xf32> to vector<8x1xf32>
    %316 = vector.broadcast %315 : vector<8x1xf32> to vector<8x128xf32>
    %317 = arith.subf %313, %316 : vector<8x128xf32>
    %318 = math.exp %317 : vector<8x128xf32>
    %cst_111 = arith.constant dense<0.000000e+00> : vector<8xf32>
    %319 = vector.multi_reduction <add>, %318, %cst_111 [1] : vector<8x128xf32> to vector<8xf32>
    %320 = vector.shape_cast %319 : vector<8xf32> to vector<8x1xf32>
    %321 = vector.broadcast %320 : vector<8x1xf32> to vector<8x128xf32>
    %322 = arith.divf %318, %321 : vector<8x128xf32>
    %323 = vector.shape_cast %322 : vector<8x128xf32> to vector<1x8x128xf32>
    %c0_112 = arith.constant 0 : index
    %c0_113 = arith.constant 0 : index
    %324 = vector.load %arg28[%c0_112, %c0_113] : memref<3x128xf32, #tpu.memory_space<vmem>>, vector<3x128xf32>
    %c0_114 = arith.constant 0 : index
    %c0_115 = arith.constant 0 : index
    %c0_116 = arith.constant 0 : index
    %325 = vector.load %arg3[%c0_114, %c0_115, %c0_116] : memref<1x8x128xbf16, #tpu.memory_space<vmem>>, vector<1x8x128xbf16>
    %326 = arith.extf %325 : vector<1x8x128xbf16> to vector<1x8x128xf32>
    %327 = vector.extract_strided_slice %324 {offsets = [0, 0], sizes = [1, 128], strides = [1, 1]} : vector<3x128xf32> to vector<1x128xf32>
    %328 = vector.shape_cast %327 : vector<1x128xf32> to vector<1x1x128xf32>
    %329 = vector.broadcast %328 : vector<1x1x128xf32> to vector<1x8x128xf32>
    %330 = arith.mulf %307, %329 : vector<1x8x128xf32>
    %331 = vector.extract_strided_slice %324 {offsets = [1, 0], sizes = [1, 128], strides = [1, 1]} : vector<3x128xf32> to vector<1x128xf32>
    %332 = vector.shape_cast %331 : vector<1x128xf32> to vector<1x1x128xf32>
    %333 = vector.broadcast %332 : vector<1x1x128xf32> to vector<1x8x128xf32>
    %334 = arith.mulf %304, %333 : vector<1x8x128xf32>
    %335 = arith.addf %330, %334 : vector<1x8x128xf32>
    %336 = vector.extract_strided_slice %324 {offsets = [2, 0], sizes = [1, 128], strides = [1, 1]} : vector<3x128xf32> to vector<1x128xf32>
    %337 = vector.shape_cast %336 : vector<1x128xf32> to vector<1x1x128xf32>
    %338 = vector.broadcast %337 : vector<1x1x128xf32> to vector<1x8x128xf32>
    %339 = arith.mulf %326, %338 : vector<1x8x128xf32>
    %340 = arith.addf %335, %339 : vector<1x8x128xf32>
    %cst_117 = arith.constant dense<0.000000e+00> : vector<1x8xf32>
    %341 = vector.multi_reduction <add>, %340, %cst_117 [2] : vector<1x8x128xf32> to vector<1x8xf32>
    %342 = vector.shape_cast %341 : vector<1x8xf32> to vector<1x8x1xf32>
    %c0_118 = arith.constant 0 : index
    %343 = memref.load %arg29[%c0_118] : memref<1xf32, #tpu.memory_space<smem>>
    %344 = vector.broadcast %343 : f32 to vector<1x8x1xf32>
    %345 = arith.addf %342, %344 : vector<1x8x1xf32>
    %cst_119 = arith.constant 0.000000e+00 : f32
    %346 = vector.broadcast %cst_119 : f32 to vector<1x8x1xf32>
    %347 = arith.subf %346, %345 : vector<1x8x1xf32>
    %348 = math.exp %347 : vector<1x8x1xf32>
    %cst_120 = arith.constant 1.000000e+00 : f32
    %349 = vector.broadcast %cst_120 : f32 to vector<1x8x1xf32>
    %350 = arith.addf %349, %348 : vector<1x8x1xf32>
    %cst_121 = arith.constant 1.000000e+00 : f32
    %351 = vector.broadcast %cst_121 : f32 to vector<1x8x1xf32>
    %352 = arith.divf %351, %350 : vector<1x8x1xf32>
    %c0_122 = arith.constant 0 : index
    %c0_123 = arith.constant 0 : index
    %c0_124 = arith.constant 0 : index
    %353 = vector.load %arg4[%c0_122, %c0_123, %c0_124] : memref<1x8x1xi32, #tpu.memory_space<vmem>>, vector<1x8x1xi32>
    %354 = tpu.iota {dimensions = array<i32: 2>} : vector<1x8x128xi32>
    %355 = vector.broadcast %353 : vector<1x8x1xi32> to vector<1x8x128xi32>
    %356 = arith.cmpi eq, %354, %355 : vector<1x8x128xi32>
    %357 = arith.extui %356 : vector<1x8x128xi1> to vector<1x8x128xi32>
    %358 = arith.sitofp %357 : vector<1x8x128xi32> to vector<1x8x128xf32>
    "tpu.trace_start"() <{level = 10 : i32, message = "bts,bsv->btv"}> : () -> ()
    %cst_125 = arith.constant dense<0.000000e+00> : vector<1x8x128xf32>
    %359 = tpu.matmul %242, %358, %cst_125 {dimension_numbers = #tpu.dot_dimension_numbers<[2], [1], [1], [2], [0, 0, 0, 1, 1, 2], [0], [0]>} : vector<1x8x8xf32>, vector<1x8x128xf32>, vector<1x8x128xf32> -> vector<1x8x128xf32>
    "tpu.trace_stop"() : () -> ()
    %360 = vector.shape_cast %359 : vector<1x8x128xf32> to vector<8x128xf32>
    %cst_126 = arith.constant dense<0.000000e+00> : vector<8x128xf32>
    %361 = tpu.matmul %360, %305, %cst_126 {dimension_numbers = #tpu.dot_dimension_numbers<[1], [0], [0], [1], [0, 0, 1, 1], [], []>} : vector<8x128xf32>, vector<128x128xf32>, vector<8x128xf32> -> vector<8x128xf32>
    %362 = vector.shape_cast %361 : vector<8x128xf32> to vector<1x8x128xf32>
    %363 = vector.broadcast %352 : vector<1x8x1xf32> to vector<1x8x128xf32>
    %364 = arith.mulf %323, %363 : vector<1x8x128xf32>
    %cst_127 = arith.constant 1.000000e+00 : f32
    %365 = vector.broadcast %cst_127 : f32 to vector<1x8x1xf32>
    %366 = arith.subf %365, %352 : vector<1x8x1xf32>
    %367 = vector.broadcast %366 : vector<1x8x1xf32> to vector<1x8x128xf32>
    %368 = arith.mulf %362, %367 : vector<1x8x128xf32>
    %369 = arith.addf %364, %368 : vector<1x8x128xf32>
    %cst_128 = arith.constant 1.000000e-30 : f32
    %370 = vector.broadcast %cst_128 : f32 to vector<1x8x128xf32>
    %371 = arith.maximumf %369, %370 : vector<1x8x128xf32>
    %372 = math.log %371 : vector<1x8x128xf32>
    %c0_129 = arith.constant 0 : index
    %c0_130 = arith.constant 0 : index
    %c0_131 = arith.constant 0 : index
    %373 = vector.load %arg30[%c0_129, %c0_130, %c0_131] : memref<1x8x128xf32, #tpu.memory_space<vmem>>, vector<1x8x128xf32>
    tpu.vector_store %arg30[%c0_129, %c0_130, %c0_131], %372 {strides = array<i32>} : memref<1x8x128xf32, #tpu.memory_space<vmem>>, vector<1x8x128xf32>,
    return
  }
  func.func @transform_0(%arg0: i32) -> (i32, i32, i32) {
    %c0_i32 = arith.constant 0 : i32
    %c0_i32_0 = arith.constant 0 : i32
    %c0_i32_1 = arith.constant 0 : i32
    return %arg0, %c0_i32, %c0_i32_0 : i32, i32, i32
  }
  func.func @transform_1(%arg0: i32) -> (i32, i32, i32) {
    %c0_i32 = arith.constant 0 : i32
    %c0_i32_0 = arith.constant 0 : i32
    %c0_i32_1 = arith.constant 0 : i32
    return %arg0, %c0_i32, %c0_i32_0 : i32, i32, i32
  }
  func.func @transform_2(%arg0: i32) -> (i32, i32, i32) {
    %c0_i32 = arith.constant 0 : i32
    %c0_i32_0 = arith.constant 0 : i32
    %c0_i32_1 = arith.constant 0 : i32
    return %arg0, %c0_i32, %c0_i32_0 : i32, i32, i32
  }
  func.func @transform_3(%arg0: i32) -> (i32, i32, i32) {
    %c0_i32 = arith.constant 0 : i32
    %c0_i32_0 = arith.constant 0 : i32
    %c0_i32_1 = arith.constant 0 : i32
    return %arg0, %c0_i32, %c0_i32_0 : i32, i32, i32
  }
  func.func @transform_4(%arg0: i32) -> (i32, i32) {
    %c0_i32 = arith.constant 0 : i32
    %c0_i32_0 = arith.constant 0 : i32
    %c0_i32_1 = arith.constant 0 : i32
    return %c0_i32, %c0_i32_0 : i32, i32
  }
  func.func @transform_5(%arg0: i32) -> (i32, i32) {
    %c0_i32 = arith.constant 0 : i32
    %c0_i32_0 = arith.constant 0 : i32
    %c0_i32_1 = arith.constant 0 : i32
    return %c0_i32, %c0_i32_0 : i32, i32
  }
  func.func @transform_6(%arg0: i32) -> (i32, i32) {
    %c0_i32 = arith.constant 0 : i32
    %c0_i32_0 = arith.constant 0 : i32
    %c0_i32_1 = arith.constant 0 : i32
    return %c0_i32, %c0_i32_0 : i32, i32
  }
  func.func @transform_7(%arg0: i32) -> (i32, i32) {
    %c0_i32 = arith.constant 0 : i32
    %c0_i32_0 = arith.constant 0 : i32
    %c0_i32_1 = arith.constant 0 : i32
    return %c0_i32, %c0_i32_0 : i32, i32
  }
  func.func @transform_8(%arg0: i32) -> (i32, i32) {
    %c0_i32 = arith.constant 0 : i32
    %c0_i32_0 = arith.constant 0 : i32
    %c0_i32_1 = arith.constant 0 : i32
    return %c0_i32, %c0_i32_0 : i32, i32
  }
  func.func @transform_9(%arg0: i32) -> (i32, i32) {
    %c0_i32 = arith.constant 0 : i32
    %c0_i32_0 = arith.constant 0 : i32
    %c0_i32_1 = arith.constant 0 : i32
    return %c0_i32, %c0_i32_0 : i32, i32
  }
  func.func @transform_10(%arg0: i32) -> (i32, i32) {
    %c0_i32 = arith.constant 0 : i32
    %c0_i32_0 = arith.constant 0 : i32
    %c0_i32_1 = arith.constant 0 : i32
    return %c0_i32, %c0_i32_0 : i32, i32
  }
  func.func @transform_11(%arg0: i32) -> (i32, i32) {
    %c0_i32 = arith.constant 0 : i32
    %c0_i32_0 = arith.constant 0 : i32
    %c0_i32_1 = arith.constant 0 : i32
    return %c0_i32, %c0_i32_0 : i32, i32
  }
  func.func @transform_12(%arg0: i32) -> (i32, i32) {
    %c0_i32 = arith.constant 0 : i32
    %c0_i32_0 = arith.constant 0 : i32
    %c0_i32_1 = arith.constant 0 : i32
    return %c0_i32, %c0_i32_0 : i32, i32
  }
  func.func @transform_13(%arg0: i32) -> (i32, i32) {
    %c0_i32 = arith.constant 0 : i32
    %c0_i32_0 = arith.constant 0 : i32
    %c0_i32_1 = arith.constant 0 : i32
    return %c0_i32, %c0_i32_0 : i32, i32
  }
  func.func @transform_14(%arg0: i32) -> (i32, i32) {
    %c0_i32 = arith.constant 0 : i32
    %c0_i32_0 = arith.constant 0 : i32
    %c0_i32_1 = arith.constant 0 : i32
    return %c0_i32, %c0_i32_0 : i32, i32
  }
  func.func @transform_15(%arg0: i32) -> (i32, i32) {
    %c0_i32 = arith.constant 0 : i32
    %c0_i32_0 = arith.constant 0 : i32
    %c0_i32_1 = arith.constant 0 : i32
    return %c0_i32, %c0_i32_0 : i32, i32
  }
  func.func @transform_16(%arg0: i32) -> (i32, i32) {
    %c0_i32 = arith.constant 0 : i32
    %c0_i32_0 = arith.constant 0 : i32
    %c0_i32_1 = arith.constant 0 : i32
    return %c0_i32, %c0_i32_0 : i32, i32
  }
  func.func @transform_17(%arg0: i32) -> (i32, i32) {
    %c0_i32 = arith.constant 0 : i32
    %c0_i32_0 = arith.constant 0 : i32
    %c0_i32_1 = arith.constant 0 : i32
    return %c0_i32, %c0_i32_0 : i32, i32
  }
  func.func @transform_18(%arg0: i32) -> (i32, i32) {
    %c0_i32 = arith.constant 0 : i32
    %c0_i32_0 = arith.constant 0 : i32
    %c0_i32_1 = arith.constant 0 : i32
    return %c0_i32, %c0_i32_0 : i32, i32
  }
  func.func @transform_19(%arg0: i32) -> (i32, i32) {
    %c0_i32 = arith.constant 0 : i32
    %c0_i32_0 = arith.constant 0 : i32
    %c0_i32_1 = arith.constant 0 : i32
    return %c0_i32, %c0_i32_0 : i32, i32
  }
  func.func @transform_20(%arg0: i32) -> (i32, i32) {
    %c0_i32 = arith.constant 0 : i32
    %c0_i32_0 = arith.constant 0 : i32
    %c0_i32_1 = arith.constant 0 : i32
    return %c0_i32, %c0_i32_0 : i32, i32
  }
  func.func @transform_21(%arg0: i32) -> (i32, i32) {
    %c0_i32 = arith.constant 0 : i32
    %c0_i32_0 = arith.constant 0 : i32
    %c0_i32_1 = arith.constant 0 : i32
    return %c0_i32, %c0_i32_0 : i32, i32
  }
  func.func @transform_22(%arg0: i32) -> (i32, i32) {
    %c0_i32 = arith.constant 0 : i32
    %c0_i32_0 = arith.constant 0 : i32
    %c0_i32_1 = arith.constant 0 : i32
    return %c0_i32, %c0_i32_0 : i32, i32
  }
  func.func @transform_23(%arg0: i32) -> (i32, i32) {
    %c0_i32 = arith.constant 0 : i32
    %c0_i32_0 = arith.constant 0 : i32
    %c0_i32_1 = arith.constant 0 : i32
    return %c0_i32, %c0_i32_0 : i32, i32
  }
  func.func @transform_24(%arg0: i32) -> (i32, i32) {
    %c0_i32 = arith.constant 0 : i32
    %c0_i32_0 = arith.constant 0 : i32
    %c0_i32_1 = arith.constant 0 : i32
    return %c0_i32, %c0_i32_0 : i32, i32
  }
  func.func @transform_25(%arg0: i32) -> (i32, i32) {
    %c0_i32 = arith.constant 0 : i32
    %c0_i32_0 = arith.constant 0 : i32
    %c0_i32_1 = arith.constant 0 : i32
    return %c0_i32, %c0_i32_0 : i32, i32
  }
  func.func @transform_26(%arg0: i32) -> (i32, i32) {
    %c0_i32 = arith.constant 0 : i32
    %c0_i32_0 = arith.constant 0 : i32
    %c0_i32_1 = arith.constant 0 : i32
    return %c0_i32, %c0_i32_0 : i32, i32
  }
  func.func @transform_27(%arg0: i32) -> (i32, i32) {
    %c0_i32 = arith.constant 0 : i32
    %c0_i32_0 = arith.constant 0 : i32
    %c0_i32_1 = arith.constant 0 : i32
    return %c0_i32, %c0_i32_0 : i32, i32
  }
  func.func @transform_28(%arg0: i32) -> i32 {
    %c0_i32 = arith.constant 0 : i32
    %c0_i32_0 = arith.constant 0 : i32
    return %c0_i32 : i32
  }
  func.func @transform_29(%arg0: i32) -> (i32, i32, i32) {
    %c0_i32 = arith.constant 0 : i32
    %c0_i32_0 = arith.constant 0 : i32
    %c0_i32_1 = arith.constant 0 : i32
    return %arg0, %c0_i32, %c0_i32_0 : i32, i32, i32
  }
}

</mosaic_0001>

<bundles_post_ra>
// kernel: forward.4
= control target key start
LH: loop header
LB: loop body
LE: loop exit
PB: predicated region body
PF: predicated region fallthrough
CT: control target
= control target key end

     0   :  { %18 = vsyncpa [#allocation3], 0  ;;  %s2148_s0 = inlined_call_operand.vmem [shape: bf16[2,8,128], index: 0, kind: input, shape index: {}]   ;;  %s2149_s1 = inlined_call_operand.vmem [shape: bf16[128,384], index: 1, kind: input, shape index: {}]   ;;  %s2150_s2 = inlined_call_operand.vmem [shape: f32[1,384], index: 2, kind: input, shape index: {}]   ;;  %s2151_s3 = inlined_call_operand.hbm [shape: bf16[128,128], index: 3, kind: input, shape index: {}]   ;;  %s2152_s4 = inlined_call_operand.vmem [shape: f32[1,128], index: 4, kind: input, shape index: {}]   ;;  %s2153_s5 = inlined_call_operand.vmem [shape: f32[1,128], index: 5, kind: input, shape index: {}]   ;;  %s2154_s6 = inlined_call_operand.vmem [shape: f32[1,128], index: 6, kind: input, shape index: {}]   ;;  %s2155_s7 = inlined_call_operand.vmem [shape: f32[1,128], index: 7, kind: input, shape index: {}]   ;;  %s2156_s8 = inlined_call_operand.vmem [shape: f32[1,128], index: 8, kind: input, shape index: {}]   ;;  %s2157_s9 = inlined_call_operand.hbm [shape: bf16[128,128], index: 9, kind: input, shape index: {}]   ;;  %s2158_s10 = inlined_call_operand.vmem [shape: f32[1,128], index: 10, kind: input, shape index: {}]   ;;  %s2159_s11 = inlined_call_operand.hbm [shape: bf16[128,128], index: 11, kind: input, shape index: {}]   ;;  %s2160_s12 = inlined_call_operand.vmem [shape: f32[1,128], index: 12, kind: input, shape index: {}]   ;;  %s2161_s13 = inlined_call_operand.vmem [shape: bf16[2,8,128], index: 13, kind: output, shape index: {}]  }
   0x1   :  { %19 = vsyncpa [#allocation5], 0  ;;  %s1870_s25 = smov 0  }
   0x2 LB: > { %s1876_s26 = sadd.s32 4294967295, %s1789_s25   ;;  %p1350_p0 = scmp.ge.s32.totalorder %s1789_s25, 1  ;;  %s1789_s25 = sphi %s1870_s25, %s25_s25  }
   0x3   : > { %p334_p1 = scmp.lt.s32.totalorder %s1789_s25, 3  ;;  %p1633_p2 = scmp.eq.s32.totalorder %s1876_s26, 0 }
   0x4   : > { %s380_s29 = sshll.u32 %s2157_s9, 4  ;;  %s351_s16 = sshll.u32 %s2151_s3, 4  ;;  %s381_s29 = int_to_ptr.hbm [resolvable:$true] %s380_s29  ;;  %s352_s16 = int_to_ptr.hbm [resolvable:$true] %s351_s16 }
   0x5   : > { %p1884_p3 = pnand %p1350_p0, %p334_p1  ;;  %s1791_s17 = smov [#allocation4]  }
   0x6   : > { %s382_s18 = sshll.u32 %s1791_s17, 4  ;;  %s1792_s19 = smov [#allocation2]   ;;  %s383_s18 = int_to_ptr.vmem [resolvable:$true] %s382_s18 }
   0x7   : > { %p1623_p4 = pneg %p1884_p3  ;;  %s353_s20 = sshll.u32 %s1792_s19, 4  ;;  %s354_s20 = int_to_ptr.vmem [resolvable:$true] %s353_s20 }
   0x8   : > { %s397_s23 = sshll.u32 %s2159_s11, 4  ;;  %s1793_s24 = smov 64   ;;  %s398_s23 = int_to_ptr.hbm [resolvable:$true] %s397_s23 }
   0x9   : > { %p1624_p5 = pnand %p1633_p2, %p1623_p4  ;;  %s1794_s27 = smov 4  }
   0xa   : > { %s1795_s28 = smov [#allocation6]   ;;  %425 = sbr.rel (%p1884_p3) target bundleno = 2195 (0x893), region = 72 }
   0xb   : > { %1629 = dma.hbm_to_vmem [thread:$0]  (!%p1624_p5), %s381_s29, 1024, %s383_s18, [#allocation5], %s1793_s24, %s1793_s24, %s1794_s27  }
   0xc   : > { %1626 = dma.hbm_to_vmem [thread:$0]  (!%p1624_p5), %s352_s16, 1024, %s354_s20, [#allocation3], %s1793_s24, %s1793_s24, %s1794_s27  }
   0xd   : > { %s399_s14 = sshll.u32 %s1795_s28, 4  ;;  %s400_s14 = int_to_ptr.vmem [resolvable:$true] %s399_s14 }
   0xe   : > { %1632 = dma.hbm_to_vmem [thread:$0]  (!%p1624_p5), %s398_s23, 1024, %s400_s14, [#allocation5], %s1793_s24, %s1793_s24, %s1794_s27  }
   0xf   : > { %1780 = dma.done.wait (%p1633_p2), [#allocation3], 1024  }
  0x10   : > { %1782 = vsyncadd (%p1633_p2), [#allocation3], 4294966272 }
  0x11   : > { %1784 = dma.done.wait (%p1633_p2), [#allocation5], 2048  }
  0x12   : > { %1786 = vsyncadd (%p1633_p2), [#allocation5], 4294965248  ;;  %v1447_v0 = vld [vmem:[%s2149_s1 + $0xa8] sm:$0xf]  ;;  %v1585_v1 = vld [vmem:[%s2149_s1 + $0xb0] sm:$0xf0] }
  0x13   : > { %v1584_v2 = vld [vmem:[%s2149_s1 + $0xac] sm:$0xf]  ;;  %v1448_v3 = vor.u32 %v1585_v1, %v1447_v0  ;;  %v1449_v4 = vld [vmem:[%s2149_s1 + $0xb4] sm:$0xf0]  ;;  %v1435_v5 = vld [vmem:[%s2149_s1 + $0x90] sm:$0xf] }
  0x14   : > { %v1582_v6 = vld [vmem:[%s2149_s1 + $0x98] sm:$0xf0]  ;;  %v1452_v7 = vor.u32 %v1584_v2, %v1449_v4  ;;  %v1581_v8 = vld [vmem:[%s2149_s1 + $0x94] sm:$0xf]  ;;  %v1437_v9 = vld [vmem:[%s2149_s1 + $0x9c] sm:$0xf0] }
  0x15   : > { %656 = vmatpush.bf16.msra.mxu0 %v1448_v3  ;;  %v1436_v10 = vor.u32 %v1582_v6, %v1435_v5  ;;  %v1440_v11 = vor.u32 %v1581_v8, %v1437_v9  ;;  %v1423_v12 = vld [vmem:[%s2149_s1 + $0x78] sm:$0xf]  ;;  %v1579_v13 = vld [vmem:[%s2149_s1 + $0x80] sm:$0xf0]  ;;  %v1578_v14 = vld [vmem:[%s2149_s1 + $0x7c] sm:$0xf] }
  0x16   : > { %669 = vmatpush.bf16.msra.mxu1 %v1452_v7  ;;  %v1425_v15 = vld [vmem:[%s2149_s1 + $0x84] sm:$0xf0]  ;;  %v1424_v16 = vor.u32 %v1579_v13, %v1423_v12  ;;  %v1411_v18 = vld [vmem:[%s2149_s1 + $0x60] sm:$0xf]  ;;  %v1576_v19 = vld [vmem:[%s2149_s1 + $0x68] sm:$0xf0] }
  0x17   : > { %v1428_v17 = vor.u32 %v1578_v14, %v1425_v15  ;;  %v1575_v20 = vld [vmem:[%s2149_s1 + $0x64] sm:$0xf]  ;;  %v1413_v21 = vld [vmem:[%s2149_s1 + $0x6c] sm:$0xf0]  ;;  %v1412_v22 = vor.u32 %v1576_v19, %v1411_v18  ;;  %v1586_v24 = vld [vmem:[%s2149_s1 + $0xb8] sm:$0xf0] }
  0x18   : > { %v1455_v23 = vld [vmem:[%s2149_s1 + $0xb0] sm:$0xf]  ;;  %v1443_v25 = vld [vmem:[%s2149_s1 + $0x98] sm:$0xf]  ;;  %v1416_v26 = vor.u32 %v1575_v20, %v1413_v21  ;;  %v1399_v27 = vld [vmem:[%s2149_s1 + $0x48] sm:$0xf] }
  0x19   : > { %657 = vmatpush.bf16.msra.mxu0 %v1436_v10  ;;  %v1573_v28 = vld [vmem:[%s2149_s1 + $0x50] sm:$0xf0]  ;;  %v1456_v29 = vor.u32 %v1586_v24, %v1455_v23  ;;  %v1583_v30 = vld [vmem:[%s2149_s1 + $0xa0] sm:$0xf0]  ;;  %v1572_v31 = vld [vmem:[%s2149_s1 + $0x4c] sm:$0xf] }
  0x1a   : > { %670 = vmatpush.bf16.msra.mxu1 %v1440_v11  ;;  %v1401_v32 = vld [vmem:[%s2149_s1 + $0x54] sm:$0xf0]  ;;  %p478_p6 = scmp.lt.s32.totalorder %s1876_s26, 1  ;;  %v1444_v33 = vor.u32 %v1583_v30, %v1443_v25  ;;  %v1400_v34 = vor.u32 %v1573_v28, %v1399_v27  ;;  %v1387_v35 = vld [vmem:[%s2149_s1 + $0x30] sm:$0xf]  ;;  %vm698_vm0 = vcmask 261120  }
  0x1b   : > { %682 = vmatpush.bf16.msra.mxu2 %v1456_v29  ;;  %v1431_v36 = vld [vmem:[%s2149_s1 + $0x80] sm:$0xf]  ;;  %v1580_v37 = vld [vmem:[%s2149_s1 + $0x88] sm:$0xf0]  ;;  %v1404_v38 = vor.u32 %v1572_v31, %v1401_v32  ;;  %v1570_v39 = vld [vmem:[%s2149_s1 + $0x38] sm:$0xf0] }
  0x1c   : > { %v1569_v40 = vld [vmem:[%s2149_s1 + $0x34] sm:$0xf]  ;;  %v1389_v41 = vld [vmem:[%s2149_s1 + $0x3c] sm:$0xf0]  ;;  %v1432_v42 = vor.u32 %v1580_v37, %v1431_v36  ;;  %v1388_v43 = vor.u32 %v1570_v39, %v1387_v35  ;;  %v1419_v44 = vld [vmem:[%s2149_s1 + $0x68] sm:$0xf] }
  0x1d   : > { %658 = vmatpush.bf16.msra.mxu0 %v1424_v16  ;;  %v1577_v45 = vld [vmem:[%s2149_s1 + $0x70] sm:$0xf0]  ;;  %v1392_v46 = vor.u32 %v1569_v40, %v1389_v41  ;;  %v1375_v47 = vld [vmem:[%s2149_s1 + $0x18] sm:$0xf]  ;;  %v1567_v48 = vld [vmem:[%s2149_s1 + $0x20] sm:$0xf0] }
  0x1e   : > { %671 = vmatpush.bf16.msra.mxu1 %v1428_v17  ;;  %v1566_v49 = vld [vmem:[%s2149_s1 + $0x1c] sm:$0xf]  ;;  %v1377_v50 = vld [vmem:[%s2149_s1 + $0x24] sm:$0xf0]  ;;  %s2164_s26 = smov (!%p478_p6, %s1876_s26), 1  ;;  %v1420_v51 = vor.u32 %v1577_v45, %v1419_v44  ;;  %v1376_v52 = vor.u32 %v1567_v48, %v1375_v47  ;;  %s1796_s28 = smov 64  }
  0x1f   : > { %683 = vmatpush.bf16.msra.mxu2 %v1444_v33  ;;  %v1407_v53 = vld [vmem:[%s2149_s1 + $0x50] sm:$0xf]  ;;  %v1574_v54 = vld [vmem:[%s2149_s1 + $0x58] sm:$0xf0]  ;;  %v1380_v55 = vor.u32 %v1566_v49, %v1377_v50  ;;  %v1363_v56 = vld [vmem:[%s2149_s1] sm:$0xf] }
  0x20   : > { %v1564_v57 = vld [vmem:[%s2149_s1 + $0x8] sm:$0xf0]  ;;  %v1563_v58 = vld [vmem:[%s2149_s1 + $0x4] sm:$0xf]  ;;  %v1365_v59 = vld [vmem:[%s2149_s1 + $0xc] sm:$0xf0]  ;;  %v1408_v60 = vor.u32 %v1574_v54, %v1407_v53 }
  0x21   : > { %659 = vmatpush.bf16.msra.mxu0 %v1412_v22  ;;  %s1359_s22 = sshll.u32 %s2164_s26, 2  ;;  %v1364_v61 = vor.u32 %v1564_v57, %v1363_v56  ;;  %v1395_v62 = vld [vmem:[%s2149_s1 + $0x38] sm:$0xf]  ;;  %v1571_v63 = vld [vmem:[%s2149_s1 + $0x40] sm:$0xf0]  ;;  %v1368_v0 = vor.u32 %v1563_v58, %v1365_v59  ;;  %s1797_s14 = smov 96  }
  0x22   : > { %672 = vmatpush.bf16.msra.mxu1 %v1416_v26  ;;  %s481_s15 = scalar_lea.vmem %s2148_s0, %s1359_s22  ;;  %v1396_v1 = vor.u32 %v1571_v63, %v1395_v62  ;;  %v1383_v3 = vld [vmem:[%s2149_s1 + $0x20] sm:$0xf]  ;;  %v1568_v4 = vld [vmem:[%s2149_s1 + $0x28] sm:$0xf0]  ;;  %v1371_v6 = vld [vmem:[%s2149_s1 + $0x8] sm:$0xf]  ;;  %s485_s17 = scalar_lea.vmem %s2161_s13, %s1359_s22 }
  0x23   : > { %684 = vmatpush.bf16.msra.mxu2 %v1432_v42  ;;  %v2052_v2 = vld [vmem:[%s481_s15] sm:$0xf]  ;;  %v1384_v5 = vor.u32 %v1568_v4, %v1383_v3  ;;  %v1565_v7 = vld [vmem:[%s2149_s1 + $0x10] sm:$0xf0]  ;;  %s1798_s29 = smov 32   ;;  %vm734_vm1 = vcmask 1043456  }
  0x24   : > { %v1372_v8 = vor.u32 %v1565_v7, %v1371_v6  ;;  %v520_v9 = vld [vmem:[%s2150_s2] sm:$0x7]  ;;  %vm718_vm2 = vcmask 64512   ;;  %vm941_vm3 = vcmask 523264   ;;  %vm943_vm4 = vcmask 785408  }
  0x25   : > { %660 = vmatpush.bf16.msra.mxu0 %v1400_v34  ;;  %v522_v10 = vperm.slane %v520_v9, 0  ;;  %v523_v11 = vperm.slane %v520_v9, 1  ;;  %v524_v26 = vperm.slane %v520_v9, 2 }
  0x26   : > { %673 = vmatpush.bf16.msra.mxu1 %v1404_v38 }
  0x27   : > { %685 = vmatpush.bf16.msra.mxu2 %v1420_v51 }
  0x29   : > { %661 = vmatpush.bf16.msra.mxu0 %v1388_v43 }
  0x2a   : > { %674 = vmatpush.bf16.msra.mxu1 %v1392_v46 }
  0x2b   : > { %686 = vmatpush.bf16.msra.mxu2 %v1408_v60 }
  0x2d   : > { %662 = vmatpush.bf16.msra.mxu0 %v1376_v52 }
  0x2e   : > { %675 = vmatpush.bf16.msra.mxu1 %v1380_v55 }
  0x2f   : > { %687 = vmatpush.bf16.msra.mxu2 %v1396_v1 }
  0x31   : > { %663 = vmatpush.bf16.msra.mxu0 %v1364_v61 }
  0x32   : > { %676 = vmatpush.bf16.msra.mxu1 %v1368_v0 }
  0x33   : > { %688 = vmatpush.bf16.msra.mxu2 %v1384_v5 }
  0x34   : > { %664 = vmatmul.bf16.vlgmr.msra.gmra.mxu0 %v2052_v2 }
  0x35   : > { %677 = vmatmul.bf16.vlgmr.msra.gmra.mxu1 %v2052_v2 }
  0x37   : > { %689 = vmatpush.bf16.msra.mxu2 %v1372_v8 }
  0x3a   : > { %690 = vmatmul.bf16.vlgmr.msra.gmra.mxu2 %v2052_v2 }
  0xb1   : > { %v665_v12 = vpop.f32.mrf.mxu0 }
  0xb2   : > { %v678_v13 = vpop.f32.mrf.mxu1  ;;  %v666_v14 = vadd.f32 %v665_v12, %v522_v10 }
  0xb3   : > { %v679_v15 = vadd.f32 %v678_v13, %v523_v11 }
  0xb4   : > { %v695_v17 = vpack.c.bf16 %v666_v14, %v666_v14 }
  0xb5   : > { %v696_v16 = vpack.c.bf16 %v679_v15, %v679_v15 }
  0xb6   : > { %v752_v23 = vunpack.c.l.b16 %v695_v17 }
  0xb7   : > { %v757_v18 = vunpack.c.l.b16 %v696_v16  ;;  %v703_v19 = vsel %vm698_vm0, %v696_v16, 0 }
  0xb8   : > { %712 = vmatpush.bf16.xpose.msrb.mxu0 %v703_v19  ;;  %v753_v24 = vpack.c.b16 %v752_v23, %v752_v23 }
  0xb9   : > { %v758_v20 = vpack.c.b16 %v757_v18, %v757_v18  ;;  %v667_v21 = vpop.f32.mrf.mxu0 }
  0xba   : > { %v680_v22 = vpop.f32.mrf.mxu1 }
  0xbb   : > { %818 = vrot.lane.b32.xlu2 %v758_v20, %s1796_s28  ;;  %759 = vrot.lane.b32.xlu1 %v758_v20, %s1797_s14 }
  0xbd   : > { %v691_v25 = vpop.f32.mrf.mxu2 }
  0xbe   : > { %v692_v27 = vadd.f32 %v691_v25, %v524_v26 }
  0xbf   : > { %1457 = vmatmul.msk.bf16.vlgmr.msrb.gmra.mxu0 %vm698_vm0, %v695_v17 }
  0xc0   : > { %v697_v29 = vpack.c.bf16 %v692_v27, %v692_v27 }
  0xc2   : > { %v736_v30 = vsel %vm734_vm1, %v697_v29, 0  ;;  %v793_v63 = vunpack.c.l.b16 %v697_v29 }
  0xc3   : > { %874 = vrot.lane.b32.xlu2 %v758_v20, %s1798_s29  ;;  %754 = vrot.lane.b32.xlu1 %v753_v24, %s1797_s14 }
  0xc4   : > { %745 = vmatpush.bf16.msra.mxu3 %v736_v30  ;;  %v794_v0 = vpack.c.b16 %v793_v63, %v793_v63  ;;  %v1799_v63 = vmov 128.0  }
  0xc5   : > { %v693_v28 = vpop.f32.mrf.mxu2 }
  0xcb   : > { %872 = vrot.lane.b32.xlu1 %v753_v24, %s1798_s29 }
 0x115   : > { %v819_v31 = vpop.permute.xlu2 %818 }
 0x116   : > { %v824_v32 = vsel %vm698_vm0, %v819_v31, 0 }
 0x117   : > { %833 = vmatpush.bf16.xpose.msrb.mxu1 %v824_v32 }
 0x11d   : > { %v875_v46 = vpop.permute.xlu2 %874 }
 0x11e   : > { %v880_v48 = vsel %vm698_vm0, %v875_v46, 0  ;;  %v1589_v46 = vld [vmem:[#allocation2 + $0x10] sm:$0xff] }
 0x12d   : > { %v760_v33 = vpop.permute.xlu1 %759 }
 0x12e   : > { %v765_v34 = vsel %vm698_vm0, %v760_v33, 0 }
 0x12f   : > { %774 = vmatpush.bf16.xpose.msrb.mxu3 %v765_v34 }
 0x135   : > { %v755_v50 = vpop.permute.xlu1 %754 }
 0x13c   : > { %v714_v35 = vpop.f32.mrf.mxu0 }
 0x13d   : > { %v719_v36 = vsel %vm718_vm2, %v714_v35, -inf  ;;  %v873_v51 = vpop.permute.xlu1 %872 }
 0x13e   : > { %720 = vmax.xlane.f32.xlu0 %v719_v36 }
 0x144   : > { %v716_v37 = vpop.f32.mrf.mxu0 }
 0x1b1   : > { %v721_v38 = vpop.xlane.xlu0 %720 }
 0x1b2   : > { %v722_v39 = vsub.f32 %v714_v35, %v721_v38 }
 0x1b4   : > { %v723_v40 = vmul.f32 1.442695, %v722_v39 }
 0x1b6   : > { %1663 = vpow2.f32 %v723_v40 }
 0x1bc   : > { %v1664_v41 = vpop.eup %1663 }
 0x1bd   : > { %v725_v42 = vsel %vm718_vm2, %v1664_v41, 0.0 }
 0x1be   : > { %726 = vadd.xlane.f32.xlu0 %v725_v42  ;;  %v1593_v42 = vld [vmem:[#allocation2 + $0x30] sm:$0xff] }
 0x1d2   : > { %816 = vrot.lane.b32.xlu0 %v753_v24, %s1796_s28 }
 0x231   : > { %v727_v43 = vpop.xlane.xlu0 %726 }
 0x232   : > { %1665 = vrcp.f32 %v727_v43  ;;  %v1592_v43 = vld [vmem:[#allocation2 + $0x28] sm:$0xff] }
 0x238   : > { %v1666_v44 = vpop.eup %1665 }
 0x239   : > { %v729_v45 = vmul.f32 %v1666_v44, %v1664_v41  ;;  %v1594_v41 = vld [vmem:[#allocation2 + $0x38] sm:$0xff]  ;;  %v1591_v44 = vld [vmem:[#allocation2 + $0x20] sm:$0xff] }
 0x23a   : > { %1014 = vmatpush.bf16.msra.mxu1 %v1594_v41  ;;  %v1659_v41 = vld [vmem:[%s2158_s10] ss:$0 sm:$0xff] }
 0x23b   : > { %v730_v47 = vpack.c.bf16 %v729_v45, %v729_v45  ;;  %v1590_v45 = vld [vmem:[#allocation2 + $0x18] sm:$0xff] }
 0x23d   : > { %1458 = vmatmul.msk.bf16.vlgmr.msra.gmra.mxu3 %vm718_vm2, %v730_v47  ;;  %v1588_v47 = vld [vmem:[#allocation2 + $0x8] sm:$0xff] }
 0x23e   : > { %889 = vmatpush.bf16.xpose.msra.mxu3 %v880_v48  ;;  %1015 = vmatpush.bf16.msra.mxu1 %v1593_v42  ;;  %v1587_v48 = vld [vmem:[#allocation2] sm:$0xff] }
 0x242   : > { %1016 = vmatpush.bf16.msra.mxu1 %v1592_v43 }
 0x244   : > { %v817_v49 = vpop.permute.xlu0 %816 }
 0x245   : > { %1461 = vmatmul.msk.bf16.vlgmr.msrb.gmra.mxu1 %vm698_vm0, %v817_v49 }
 0x246   : > { %1017 = vmatpush.bf16.msra.mxu1 %v1591_v44 }
 0x24a   : > { %1018 = vmatpush.bf16.msra.mxu1 %v1590_v45 }
 0x24d   : > { %1459 = vmatmul.msk.bf16.vlgmr.msrb.gmra.mxu3 %vm698_vm0, %v755_v50 }
 0x24e   : > { %1019 = vmatpush.bf16.msra.mxu1 %v1589_v46 }
 0x252   : > { %1020 = vmatpush.bf16.msra.mxu1 %v1588_v47  ;;  %v1660_v47 = vld [vmem:[%s2160_s12] ss:$0 sm:$0xff] }
 0x256   : > { %1021 = vmatpush.bf16.msra.mxu1 %v1587_v48 }
 0x25d   : > { %1463 = vmatmul.msk.bf16.vlgmr.msra.gmra.mxu3 %vm698_vm0, %v873_v51 }
 0x2c0   : > { %v2090_v52 = vpop.f32.mrf.mxu3 }
 0x2c2   : > { %v835_v53 = vpop.f32.mrf.mxu1 }
 0x2c3   : > { %v839_v54 = vsel %vm718_vm2, %v835_v53, -inf }
 0x2c4   : > { %840 = vmax.xlane.f32.xlu1 %v839_v54 }
 0x2c8   : > { %v749_v55 = vpop.f32.mrf.mxu3 }
 0x2ca   : > { %v837_v56 = vpop.f32.mrf.mxu1 }
 0x2d0   : > { %v776_v57 = vpop.f32.mrf.mxu3 }
 0x2d1   : > { %v780_v58 = vsel %vm718_vm2, %v776_v57, -inf }
 0x2d2   : > { %781 = vmax.xlane.f32.xlu2 %v780_v58  ;;  %v1027_v58 = vunpack.c.l.bf16 %v2052_v2 }
 0x2d8   : > { %v778_v59 = vpop.f32.mrf.mxu3 }
 0x2e0   : > { %v891_v60 = vpop.f32.mrf.mxu3 }
 0x2e1   : > { %v895_v61 = vsel %vm718_vm2, %v891_v60, -inf }
 0x2e2   : > { %896 = vmax.xlane.f32.xlu0 %v895_v61 }
 0x2e8   : > { %v893_v62 = vpop.f32.mrf.mxu3 }
 0x2f6   : > { %851 = vrot.lane.b32.xlu0 %v794_v0, %s1796_s28 }
 0x337   : > { %v841_v1 = vpop.xlane.xlu1 %840 }
 0x338   : > { %v842_v3 = vsub.f32 %v835_v53, %v841_v1 }
 0x33a   : > { %v843_v4 = vmul.f32 1.442695, %v842_v3 }
 0x33c   : > { %1667 = vpow2.f32 %v843_v4 }
 0x342   : > { %v1668_v5 = vpop.eup %1667 }
 0x343   : > { %v845_v6 = vsel %vm718_vm2, %v1668_v5, 0.0 }
 0x344   : > { %846 = vadd.xlane.f32.xlu1 %v845_v6 }
 0x345   : > { %v782_v7 = vpop.xlane.xlu2 %781 }
 0x346   : > { %v783_v8 = vsub.f32 %v776_v57, %v782_v7  ;;  %v1656_v57 = vld [vmem:[%s2152_s4] ss:$0 sm:$0xff] }
 0x348   : > { %v784_v9 = vmul.f32 1.442695, %v783_v8 }
 0x34a   : > { %1669 = vpow2.f32 %v784_v9 }
 0x350   : > { %v1670_v10 = vpop.eup %1669 }
 0x351   : > { %v786_v11 = vsel %vm718_vm2, %v1670_v10, 0.0 }
 0x352   : > { %787 = vadd.xlane.f32.xlu2 %v786_v11  ;;  %v1600_v11 = vld [vmem:[#allocation4 + $0x28] sm:$0xff] }
 0x355   : > { %v897_v12 = vpop.xlane.xlu0 %896 }
 0x356   : > { %v898_v13 = vsub.f32 %v891_v60, %v897_v12  ;;  %v1599_v12 = vld [vmem:[#allocation4 + $0x20] sm:$0xff] }
 0x358   : > { %v899_v14 = vmul.f32 1.442695, %v898_v13  ;;  %v1598_v13 = vld [vmem:[#allocation4 + $0x18] sm:$0xff] }
 0x35a   : > { %1671 = vpow2.f32 %v899_v14  ;;  %v1597_v14 = vld [vmem:[#allocation4 + $0x10] sm:$0xff] }
 0x360   : > { %v1672_v15 = vpop.eup %1671 }
 0x361   : > { %v901_v16 = vsel %vm718_vm2, %v1672_v15, 0.0 }
 0x362   : > { %902 = vadd.xlane.f32.xlu1 %v901_v16  ;;  %v1595_v16 = vld [vmem:[#allocation4] sm:$0xff] }
 0x368   : > { %v852_v17 = vpop.permute.xlu0 %851 }
 0x369   : > { %v857_v18 = vsel %vm734_vm1, %v852_v17, 0  ;;  %v1610_v17 = vld [vmem:[#allocation6 + $0x38] sm:$0xff] }
 0x36a   : > { %795 = vrot.lane.b32.xlu2 %v794_v0, %s1797_s14  ;;  %866 = vmatpush.bf16.msrb.mxu2 %v857_v18 }
 0x36b   : > { %1218 = vmatpush.bf16.msrb.mxu3 %v1610_v17 }
 0x37b   : > { %907 = vrot.lane.b32.xlu1 %v794_v0, %s1798_s29  ;;  %v1602_v0 = vld [vmem:[#allocation4 + $0x38] sm:$0xff] }
 0x37c   : > { %1135 = vmatpush.bf16.msra.mxu2 %v1602_v0 }
 0x3b7   : > { %v847_v19 = vpop.xlane.xlu1 %846 }
 0x3b8   : > { %1673 = vrcp.f32 %v847_v19 }
 0x3be   : > { %v1674_v20 = vpop.eup %1673 }
 0x3bf   : > { %v849_v21 = vmul.f32 %v1674_v20, %v1668_v5  ;;  %v1609_v20 = vld [vmem:[#allocation6 + $0x30] sm:$0xff] }
 0x3c0   : > { %1219 = vmatpush.bf16.msrb.mxu3 %v1609_v20 }
 0x3c1   : > { %v850_v22 = vpack.c.bf16 %v849_v21, %v849_v21 }
 0x3c3   : > { %1462 = vmatmul.msk.bf16.vlgmr.msrb.gmra.mxu2 %vm718_vm2, %v850_v22  ;;  %v1608_v22 = vld [vmem:[#allocation6 + $0x28] sm:$0xff] }
 0x3c4   : > { %1220 = vmatpush.bf16.msrb.mxu3 %v1608_v22 }
 0x3c5   : > { %v788_v23 = vpop.xlane.xlu2 %787 }
 0x3c6   : > { %1675 = vrcp.f32 %v788_v23  ;;  %v1607_v23 = vld [vmem:[#allocation6 + $0x20] sm:$0xff] }
 0x3c8   : > { %1221 = vmatpush.bf16.msrb.mxu3 %v1607_v23 }
 0x3cc   : > { %v1676_v24 = vpop.eup %1675 }
 0x3cd   : > { %v790_v25 = vmul.f32 %v1676_v24, %v1670_v10  ;;  %v796_v26 = vpop.permute.xlu2 %795  ;;  %v1601_v10 = vld [vmem:[#allocation4 + $0x30] sm:$0xff] }
 0x3ce   : > { %v801_v27 = vsel %vm734_vm1, %v796_v26, 0  ;;  %1136 = vmatpush.bf16.msra.mxu2 %v1601_v10  ;;  %v1606_v26 = vld [vmem:[#allocation6 + $0x18] sm:$0xff] }
 0x3cf   : > { %v791_v28 = vpack.c.bf16 %v790_v25, %v790_v25  ;;  %810 = vmatpush.bf16.msra.mxu0 %v801_v27  ;;  %1222 = vmatpush.bf16.msrb.mxu3 %v1606_v26 }
 0x3d2   : > { %1460 = vmatmul.msk.bf16.vlgmr.msra.gmra.mxu0 %vm718_vm2, %v791_v28  ;;  %1137 = vmatpush.bf16.msra.mxu2 %v1600_v11 }
 0x3d5   : > { %v903_v29 = vpop.xlane.xlu1 %902 }
 0x3d6   : > { %1677 = vrcp.f32 %v903_v29  ;;  %1138 = vmatpush.bf16.msra.mxu2 %v1599_v12  ;;  %v1605_v29 = vld [vmem:[#allocation6 + $0x10] sm:$0xff] }
 0x3d7   : > { %1679 = vrcp.f32 %v1799_v63  ;;  %1223 = vmatpush.bf16.msrb.mxu3 %v1605_v29 }
 0x3da   : > { %1139 = vmatpush.bf16.msra.mxu2 %v1598_v13 }
 0x3dc   : > { %v1678_v30 = vpop.eup %1677 }
 0x3dd   : > { %v905_v31 = vmul.f32 %v1678_v30, %v1672_v15  ;;  %v1596_v15 = vld [vmem:[#allocation4 + $0x8] sm:$0xff] }
 0x3de   : > { %1140 = vmatpush.bf16.msra.mxu2 %v1597_v14 }
 0x3df   : > { %v906_v34 = vpack.c.bf16 %v905_v31, %v905_v31 }
 0x3e2   : > { %1141 = vmatpush.bf16.msra.mxu2 %v1596_v15 }
 0x3e6   : > { %1142 = vmatpush.bf16.msra.mxu2 %v1595_v16 }
 0x3ed   : > { %v908_v32 = vpop.permute.xlu1 %907 }
 0x3ee   : > { %v913_v33 = vsel %vm734_vm1, %v908_v32, 0  ;;  %v1657_v32 = vld [vmem:[%s2153_s5] ss:$0 sm:$0xff] }
 0x3ef   : > { %922 = vmatpush.bf16.msrb.mxu0 %v913_v33 }
 0x3f2   : > { %1464 = vmatmul.msk.bf16.vlgmr.msrb.gmra.mxu0 %vm718_vm2, %v906_v34 }
 0x446   : > { %v868_v35 = vpop.f32.mrf.mxu2 }
 0x44e   : > { %v870_v36 = vpop.f32.mrf.mxu2 }
 0x44f   : > { %v812_v37 = vpop.f32.mrf.mxu0 }
 0x450   : > { %929 = vrot.lane.b32.xlu2 %v812_v37, %s1798_s29 }
 0x457   : > { %v814_v38 = vpop.f32.mrf.mxu0 }
 0x458   : > { %933 = vrot.lane.b32.xlu2 %v868_v35, %s1796_s28  ;;  %v1658_v35 = vld [vmem:[%s2154_s6] ss:$0 sm:$0xff] }
 0x46f   : > { %v924_v39 = vpop.f32.mrf.mxu0 }
 0x470   : > { %937 = vrot.lane.b32.xlu0 %v924_v39, %s1797_s14  ;;  %v1604_v39 = vld [vmem:[#allocation6 + $0x8] sm:$0xff] }
 0x471   : > { %1224 = vmatpush.bf16.msrb.mxu3 %v1604_v39 }
 0x477   : > { %v926_v40 = vpop.f32.mrf.mxu0 }
 0x478   : > { %v1603_v40 = vld [vmem:[#allocation6] sm:$0xff] }
 0x479   : > { %1225 = vmatpush.bf16.msrb.mxu3 %v1603_v40 }
 0x4aa   : > { %v930_v49 = vpop.permute.xlu2 %929 }
 0x4ab   : > { %v940_v51 = vsel %vm698_vm0, %v2090_v52, %v930_v49  ;;  %v1680_v52 = vpop.eup %1679 }
 0x4ac   : > { %v1034_v1 = vmul.f32 128.0, %v1680_v52  ;;  %vm1038_vm5 = vweird.f32 %v1680_v52 }
 0x4ae   : > { %v1035_v3 = vsub.f32 1.0, %v1034_v1  ;;  %v1661_v1 = vld [vmem:[%s2155_s7] ss:$0 sm:$0xff] }
 0x4b0   : > { %v1036_v4 = vmul.f32 %v1680_v52, %v1035_v3 }
 0x4b2   : > { %v934_v50 = vpop.permute.xlu2 %933  ;;  %v1037_v5 = vadd.f32 %v1680_v52, %v1036_v4  ;;  %v1662_v4 = vld [vmem:[%s2156_s8] ss:$0 sm:$0xff] }
 0x4b3   : > { %v942_v53 = vsel %vm941_vm3, %v940_v51, %v934_v50 }
 0x4b4   : > { %v2116_v6 = vsel %vm1038_vm5, %v1680_v52, %v1037_v5 }
 0x4e2   : > { %v938_v54 = vpop.permute.xlu0 %937 }
 0x4e3   : > { %v944_v55 = vsel %vm943_vm4, %v942_v53, %v938_v54 }
 0x4e4   : > { %v945_v56 = vpack.c.bf16 %v944_v55, %v944_v55 }
 0x4e6   : > { %1022 = vmatmul.bf16.vlgmr.msra.gmra.mxu1 %v945_v56 }
 0x563   : > { %v1023_v59 = vpop.f32.mrf.mxu1 }
 0x564   : > { %v1024_v60 = vadd.f32 %v1656_v57, %v1023_v59 }
 0x566   : > { %v1028_v61 = vadd.f32 %v1027_v58, %v1024_v60 }
 0x568   : > { %1031 = vadd.xlane.f32.xlu2 %v1028_v61 }
 0x56b   : > { %v1025_v62 = vpop.f32.mrf.mxu1 }
 0x5db   : > { %v1032_v7 = vpop.xlane.xlu2 %1031 }
 0x5dc   : > { %v1040_v2 = vmul.f32 %v2116_v6, %v1032_v7 }
 0x5de   : > { %v1041_v8 = vsub.f32 %v1028_v61, %v1040_v2 }
 0x5e0   : > { %v1042_v9 = vmul.f32 %v1041_v8, %v1041_v8 }
 0x5e2   : > { %1043 = vadd.xlane.f32.xlu0 %v1042_v9 }
 0x655   : > { %v1044_v18 = vpop.xlane.xlu0 %1043 }
 0x656   : > { %v1045_v19 = vmul.f32 %v1044_v18, %v2116_v6 }
 0x658   : > { %v1046_v21 = vadd.f32 1e-05, %v1045_v19 }
 0x65a   : > { %1681 = vrsqrt.f32 %v1046_v21  ;;  %vm1053_vm7 = vweird.f32 %v1046_v21 }
 0x660   : > { %v1682_v24 = vpop.eup %1681 }
 0x661   : > { %v1048_v25 = vmul.f32 %v1682_v24, %v1046_v21  ;;  %vm1054_vm6 = vweird.f32 %v1682_v24 }
 0x662   : > { %vm1055_vm8 = vmor %vm1053_vm7, %vm1054_vm6 }
 0x663   : > { %v1049_v27 = vmul.f32 %v1682_v24, %v1048_v25 }
 0x665   : > { %v1050_v28 = vmul.f32 0.5, %v1049_v27 }
 0x667   : > { %v1051_v30 = vsub.f32 1.5, %v1050_v28 }
 0x669   : > { %v1052_v31 = vmul.f32 %v1682_v24, %v1051_v30 }
 0x66b   : > { %v1056_v33 = vsel %vm1055_vm8, %v1682_v24, %v1052_v31 }
 0x66c   : > { %v1057_v34 = vmul.f32 %v1056_v33, %v1041_v8 }
 0x66e   : > { %v1061_v36 = vmul.f32 %v1657_v32, %v1057_v34 }
 0x670   : > { %v1065_v37 = vadd.f32 %v1658_v35, %v1061_v36 }
 0x672   : > { %v1066_v38 = vpack.c.bf16 %v1065_v37, %v1065_v37 }
 0x674   : > { %1143 = vmatmul.bf16.vlgmr.msra.gmra.mxu2 %v1066_v38 }
 0x6f7   : > { %v1144_v42 = vpop.f32.mrf.mxu2 }
 0x6f8   : > { %v1145_v43 = vadd.f32 %v1659_v41, %v1144_v42 }
 0x6fa   : > { %v1148_v44 = vmax.f32 %v1145_v43, 0.0 }
 0x6fc   : > { %v1149_v45 = vpack.c.bf16 %v1148_v44, %v1148_v44 }
 0x6fe   : > { %1226 = vmatmul.bf16.vlgmr.msrb.gmra.mxu3 %v1149_v45 }
 0x6ff   : > { %v1146_v46 = vpop.f32.mrf.mxu2 }
 0x781   : > { %v1227_v48 = vpop.f32.mrf.mxu3 }
 0x782   : > { %v1228_v49 = vadd.f32 %v1660_v47, %v1227_v48 }
 0x784   : > { %v1231_v50 = vadd.f32 %v1228_v49, %v1065_v37 }
 0x786   : > { %1234 = vadd.xlane.f32.xlu1 %v1231_v50 }
 0x789   : > { %v1229_v51 = vpop.f32.mrf.mxu3 }
 0x7f9   : > { %v1235_v53 = vpop.xlane.xlu1 %1234 }
 0x7fa   : > { %v1236_v54 = vmul.f32 %v1235_v53, %v2116_v6 }
 0x7fc   : > { %v1237_v55 = vsub.f32 %v1231_v50, %v1236_v54 }
 0x7fe   : > { %v1238_v56 = vmul.f32 %v1237_v55, %v1237_v55 }
 0x800   : > { %1239 = vadd.xlane.f32.xlu2 %v1238_v56 }
 0x873   : > { %v1240_v57 = vpop.xlane.xlu2 %1239 }
 0x874   : > { %v1241_v58 = vmul.f32 %v1240_v57, %v2116_v6 }
 0x876   : > { %v1242_v59 = vadd.f32 1e-05, %v1241_v58 }
 0x878   : > { %1683 = vrsqrt.f32 %v1242_v59  ;;  %vm1249_vm10 = vweird.f32 %v1242_v59 }
 0x87e   : > { %v1684_v60 = vpop.eup %1683 }
 0x87f   : > { %v1244_v61 = vmul.f32 %v1684_v60, %v1242_v59  ;;  %vm1250_vm9 = vweird.f32 %v1684_v60 }
 0x880   : > { %vm1251_vm11 = vmor %vm1249_vm10, %vm1250_vm9 }
 0x881   : > { %v1245_v62 = vmul.f32 %v1684_v60, %v1244_v61 }
 0x883   : > { %v1246_v63 = vmul.f32 0.5, %v1245_v62 }
 0x885   : > { %v1247_v0 = vsub.f32 1.5, %v1246_v63 }
 0x887   : > { %v1248_v52 = vmul.f32 %v1684_v60, %v1247_v0 }
 0x889   : > { %v1252_v3 = vsel %vm1251_vm11, %v1684_v60, %v1248_v52 }
 0x88a   : > { %v1253_v5 = vmul.f32 %v1252_v3, %v1237_v55 }
 0x88c   : > { %v1257_v6 = vmul.f32 %v1661_v1, %v1253_v5 }
 0x88e   : > { %v1261_v7 = vadd.f32 %v1662_v4, %v1257_v6 }
 0x890   : > { %v1262_v2 = vpack.c.bf16 %v1261_v7, %v1261_v7 }
 0x892   : > { %1263 = vst [vmem:[%s485_s17] sm:$0xf] %v1262_v2 }
 0x893 PF: > { %s25_s25 = sadd.s32 1, %s1789_s25  }
 0x894   : > { %p22_p7 = scmp.ge.s32.totalorder %s25_s25, 4  }
 0x896   :  { %24 = sbr.rel (!%p22_p7) target bundleno = 2 (0x2), region = 115 }
 0x89b   :  { %1283 = vsyncpa [#allocation3], 1 }
 0x89c   :  { %1285 = vsyncpa [#allocation3 + $0x1], 1 }
 0x89d   :  { %1286 = vsyncpa [#allocation5], 1 }

// kernel: forward.6
= control target key start
LH: loop header
LB: loop body
LE: loop exit
PB: predicated region body
PF: predicated region fallthrough
CT: control target
= control target key end

     0   :  { %s3510_s0 = inlined_call_operand.vmem [shape: bf16[2,8,128], index: 0, kind: input, shape index: {}]   ;;  %s3511_s1 = inlined_call_operand.vmem [shape: bf16[2,8,128], index: 1, kind: input, shape index: {}]   ;;  %s3512_s2 = inlined_call_operand.hbm [shape: bf16[128,384], index: 2, kind: input, shape index: {}]   ;;  %s3513_s3 = inlined_call_operand.vmem [shape: f32[1,384], index: 3, kind: input, shape index: {}]   ;;  %s3514_s4 = inlined_call_operand.hbm [shape: bf16[128,128], index: 4, kind: input, shape index: {}]   ;;  %s3515_s5 = inlined_call_operand.vmem [shape: f32[1,128], index: 5, kind: input, shape index: {}]   ;;  %s3516_s6 = inlined_call_operand.hbm [shape: bf16[128,128], index: 6, kind: input, shape index: {}]   ;;  %s3517_s7 = inlined_call_operand.vmem [shape: f32[1,128], index: 7, kind: input, shape index: {}]   ;;  %s3518_s8 = inlined_call_operand.hbm [shape: bf16[128,256], index: 8, kind: input, shape index: {}]   ;;  %s3519_s9 = inlined_call_operand.vmem [shape: f32[1,256], index: 9, kind: input, shape index: {}]   ;;  %s3520_s10 = inlined_call_operand.hbm [shape: bf16[128,128], index: 10, kind: input, shape index: {}]   ;;  %s3521_s11 = inlined_call_operand.vmem [shape: f32[1,128], index: 11, kind: input, shape index: {}]   ;;  %s3522_s12 = inlined_call_operand.vmem [shape: f32[1,128], index: 12, kind: input, shape index: {}]   ;;  %s3523_s13 = inlined_call_operand.vmem [shape: f32[1,128], index: 13, kind: input, shape index: {}]   ;;  %s3524_s14 = inlined_call_operand.vmem [shape: f32[1,128], index: 14, kind: input, shape index: {}]   ;;  %s3525_s15 = inlined_call_operand.vmem [shape: f32[1,128], index: 15, kind: input, shape index: {}]   ;;  %s3526_s16 = inlined_call_operand.vmem [shape: f32[1,128], index: 16, kind: input, shape index: {}]   ;;  %s3527_s17 = inlined_call_operand.vmem [shape: f32[1,128], index: 17, kind: input, shape index: {}]   ;;  %s3528_s18 = inlined_call_operand.hbm [shape: bf16[128,128], index: 18, kind: input, shape index: {}]   ;;  %s3529_s19 = inlined_call_operand.vmem [shape: f32[1,128], index: 19, kind: input, shape index: {}]   ;;  %s3530_s20 = inlined_call_operand.hbm [shape: bf16[128,128], index: 20, kind: input, shape index: {}]   ;;  %s3531_s21 = inlined_call_operand.vmem [shape: f32[1,128], index: 21, kind: input, shape index: {}]   ;;  %s3532_s22 = inlined_call_operand.vmem [shape: bf16[2,8,128], index: 22, kind: output, shape index: {}]  }
   0x1   :  { %3534 = sst [smem:[#allocation18_spill]] %s3510_s0 }
   0x2   :  { %3535 = sst [smem:[#allocation19_spill]] %s3511_s1 }
   0x3   :  { %3536 = sst [smem:[#allocation20_spill]] %s3512_s2 }
   0x4   :  { %3537 = sst [smem:[#allocation21_spill]] %s3513_s3 }
   0x5   :  { %3538 = sst [smem:[#allocation22_spill]] %s3514_s4 }
   0x6   :  { %3539 = sst [smem:[#allocation23_spill]] %s3515_s5 }
   0x7   :  { %3540 = sst [smem:[#allocation24_spill]] %s3516_s6 }
   0x8   :  { %3541 = sst [smem:[#allocation25_spill]] %s3518_s8 }
   0x9   :  { %3542 = sst [smem:[#allocation26_spill]] %s3526_s16 }
   0xa   :  { %3543 = sst [smem:[#allocation27_spill]] %s3527_s17 }
   0xb   :  { %3544 = sst [smem:[#allocation28_spill]] %s3531_s21 }
   0xc   :  { %3545 = sst [smem:[#allocation29_spill]] %s3532_s22 }
   0xd   :  { %27 = vsyncpa [#allocation3], 0 }
   0xe   :  { %28 = vsyncpa [#allocation5], 0 }
   0xf   :  { %29 = vsyncpa [#allocation8], 0 }
  0x10   :  { %30 = vsyncpa [#allocation11], 0  ;;  %s3247_s3 = smov 0  }
  0x11 LB: > { %3546 = sst [smem:[#allocation17_spill]] %s3112_s3  ;;  %s3256_s0 = sadd.s32 4294967295, %s3112_s3   ;;  %s3112_s3 = sphi %s3247_s3, %s36_s3  }
  0x12   : > { %s3547_s30 = sld [smem:[#allocation22_spill]]  ;;  %p2301_p0 = scmp.ge.s32.totalorder %s3112_s3, 1 }
  0x13   : > { %p539_p1 = scmp.lt.s32.totalorder %s3112_s3, 3  ;;  %p2789_p2 = scmp.eq.s32.totalorder %s3256_s0, 0 }
  0x14   : > { %s3114_s1 = smov [#allocation4]   ;;  %s3549_s8 = sld [smem:[#allocation25_spill]] }
  0x15   : > { %p3261_p3 = pnand %p2301_p0, %p539_p1  ;;  %s569_s5 = sshll.u32 %s3114_s1, 4  ;;  %s570_s5 = int_to_ptr.vmem [resolvable:$true] %s569_s5 }
  0x16   : > { %s3115_s2 = smov [#allocation7]   ;;  %s3116_s28 = smov 64  }
  0x17   : > { %p2767_p4 = pneg %p3261_p3  ;;  %s603_s27 = sshll.u32 %s3115_s2, 4  ;;  %s604_s27 = int_to_ptr.vmem [resolvable:$true] %s603_s27 }
  0x18   : > { %s567_s4 = sshll.u32 %s3547_s30, 4  ;;  %s3117_s29 = smov 4   ;;  %s568_s4 = int_to_ptr.hbm [resolvable:$true] %s567_s4 }
  0x19   : > { %p3272_p5 = pnand %p2789_p2, %p2767_p4  ;;  %s653_s24 = sshll.u32 %s3528_s18, 4  ;;  %s654_s24 = int_to_ptr.hbm [resolvable:$true] %s653_s24 }
  0x1a   : > { %s601_s25 = sshll.u32 %s3549_s8, 4  ;;  %s3118_s6 = smov 128   ;;  %s602_s25 = int_to_ptr.hbm [resolvable:$true] %s601_s25 }
  0x1b   : > { %2773 = dma.hbm_to_vmem [thread:$0]  (!%p3272_p5), %s568_s4, 1024, %s570_s5, [#allocation5], %s3116_s28, %s3116_s28, %s3117_s29  }
  0x1c   : > { %s3119_s8 = smov 8   ;;  %s3120_s3 = smov [#allocation10]  }
  0x1d   : > { %2779 = dma.hbm_to_vmem [thread:$0]  (!%p3272_p5), %s602_s25, 2048, %s604_s27, [#allocation8], %s3118_s6, %s3118_s6, %s3119_s8  }
  0x1e   : > { %s655_s2 = sshll.u32 %s3120_s3, 4  ;;  %s3551_s16 = sld [smem:[#allocation20_spill]]  ;;  %s656_s2 = int_to_ptr.vmem [resolvable:$true] %s655_s2 }
  0x1f   : > { %2785 = dma.hbm_to_vmem [thread:$0]  (!%p3272_p5), %s654_s24, 1024, %s656_s2, [#allocation11], %s3116_s28, %s3116_s28, %s3117_s29  }
  0x20   : > { %s3121_s4 = smov [#allocation2]   ;;  %s3552_s25 = sld [smem:[#allocation24_spill]] }
  0x21   : > { %s552_s5 = sshll.u32 %s3121_s4, 4  ;;  %s3122_s3 = smov 192   ;;  %s553_s5 = int_to_ptr.vmem [resolvable:$true] %s552_s5 }
  0x22   : > { %s3123_s1 = smov 12   ;;  %s618_s24 = sshll.u32 %s3520_s10, 4  ;;  %s619_s24 = int_to_ptr.hbm [resolvable:$true] %s618_s24 }
  0x23   : > { %s670_s30 = sshll.u32 %s3530_s20, 4  ;;  %s3126_s8 = smov [#allocation12]   ;;  %s671_s30 = int_to_ptr.hbm [resolvable:$true] %s670_s30 }
  0x24   : > { %s550_s21 = sshll.u32 %s3551_s16, 4  ;;  %s3124_s16 = smov [#allocation6]   ;;  %s551_s21 = int_to_ptr.hbm [resolvable:$true] %s550_s21 }
  0x25   : > { %2770 = dma.hbm_to_vmem [thread:$0]  (!%p3272_p5), %s551_s21, 3072, %s553_s5, [#allocation3], %s3122_s3, %s3122_s3, %s3123_s1  }
  0x26   : > { %s584_s27 = sshll.u32 %s3552_s25, 4  ;;  %s586_s17 = sshll.u32 %s3124_s16, 4  ;;  %s585_s27 = int_to_ptr.hbm [resolvable:$true] %s584_s27  ;;  %s587_s17 = int_to_ptr.vmem [resolvable:$true] %s586_s17 }
  0x27   : > { %2776 = dma.hbm_to_vmem [thread:$0]  (!%p3272_p5), %s585_s27, 1024, %s587_s17, [#allocation5], %s3116_s28, %s3116_s28, %s3117_s29  }
  0x28   : > { %s3125_s21 = smov [#allocation9]   ;;  %s672_s25 = sshll.u32 %s3126_s8, 4  ;;  %s673_s25 = int_to_ptr.vmem [resolvable:$true] %s672_s25 }
  0x29   : > { %s620_s5 = sshll.u32 %s3125_s21, 4  ;;  %705 = sbr.rel (%p3261_p3) target bundleno = 3562 (0xdea), region = 108  ;;  %s621_s5 = int_to_ptr.vmem [resolvable:$true] %s620_s5 }
  0x2a   : > { %2782 = dma.hbm_to_vmem [thread:$0]  (!%p3272_p5), %s619_s24, 1024, %s621_s5, [#allocation8], %s3116_s28, %s3116_s28, %s3117_s29  }
  0x2b   : > { %2788 = dma.hbm_to_vmem [thread:$0]  (!%p3272_p5), %s671_s30, 1024, %s673_s25, [#allocation11], %s3116_s28, %s3116_s28, %s3117_s29  }
  0x2e   : > { %3095 = dma.done.wait (%p2789_p2), [#allocation3], 3072  }
  0x2f   : > { %3097 = vsyncadd (%p2789_p2), [#allocation3], 4294964224 }
  0x30   : > { %3099 = dma.done.wait (%p2789_p2), [#allocation5], 2048  }
  0x31   : > { %3101 = vsyncadd (%p2789_p2), [#allocation5], 4294965248 }
  0x32   : > { %3103 = dma.done.wait (%p2789_p2), [#allocation8], 3072  }
  0x33   : > { %3105 = vsyncadd (%p2789_p2), [#allocation8], 4294964224 }
  0x34   : > { %3107 = dma.done.wait (%p2789_p2), [#allocation11], 2048  }
  0x35   : > { %3109 = vsyncadd (%p2789_p2), [#allocation11], 4294965248  ;;  %v2407_v0 = vld [vmem:[#allocation2 + $0xa8] sm:$0xf]  ;;  %v2681_v1 = vld [vmem:[#allocation2 + $0xb0] sm:$0xf0] }
  0x36   : > { %v2680_v2 = vld [vmem:[#allocation2 + $0xac] sm:$0xf]  ;;  %v2408_v3 = vor.u32 %v2681_v1, %v2407_v0  ;;  %v2409_v4 = vld [vmem:[#allocation2 + $0xb4] sm:$0xf0]  ;;  %v2395_v5 = vld [vmem:[#allocation2 + $0x90] sm:$0xf] }
  0x37   : > { %v2678_v6 = vld [vmem:[#allocation2 + $0x98] sm:$0xf0]  ;;  %v2412_v7 = vor.u32 %v2680_v2, %v2409_v4  ;;  %v2677_v8 = vld [vmem:[#allocation2 + $0x94] sm:$0xf]  ;;  %v2397_v9 = vld [vmem:[#allocation2 + $0x9c] sm:$0xf0] }
  0x38   : > { %1097 = vmatpush.bf16.msra.mxu0 %v2408_v3  ;;  %v2396_v10 = vor.u32 %v2678_v6, %v2395_v5  ;;  %v2400_v11 = vor.u32 %v2677_v8, %v2397_v9  ;;  %v2383_v12 = vld [vmem:[#allocation2 + $0x78] sm:$0xf]  ;;  %v2675_v13 = vld [vmem:[#allocation2 + $0x80] sm:$0xf0]  ;;  %v2674_v14 = vld [vmem:[#allocation2 + $0x7c] sm:$0xf] }
  0x39   : > { %1110 = vmatpush.bf16.msra.mxu1 %v2412_v7  ;;  %v2385_v15 = vld [vmem:[#allocation2 + $0x84] sm:$0xf0]  ;;  %v2384_v16 = vor.u32 %v2675_v13, %v2383_v12  ;;  %v2371_v18 = vld [vmem:[#allocation2 + $0x60] sm:$0xf]  ;;  %v2672_v19 = vld [vmem:[#allocation2 + $0x68] sm:$0xf0] }
  0x3a   : > { %v2388_v17 = vor.u32 %v2674_v14, %v2385_v15  ;;  %v2671_v20 = vld [vmem:[#allocation2 + $0x64] sm:$0xf]  ;;  %v2373_v21 = vld [vmem:[#allocation2 + $0x6c] sm:$0xf0]  ;;  %v2372_v22 = vor.u32 %v2672_v19, %v2371_v18  ;;  %v2682_v24 = vld [vmem:[#allocation2 + $0xb8] sm:$0xf0] }
  0x3b   : > { %v2415_v23 = vld [vmem:[#allocation2 + $0xb0] sm:$0xf]  ;;  %v2403_v25 = vld [vmem:[#allocation2 + $0x98] sm:$0xf]  ;;  %v2376_v26 = vor.u32 %v2671_v20, %v2373_v21  ;;  %v2359_v27 = vld [vmem:[#allocation2 + $0x48] sm:$0xf] }
  0x3c   : > { %1098 = vmatpush.bf16.msra.mxu0 %v2396_v10  ;;  %v2669_v28 = vld [vmem:[#allocation2 + $0x50] sm:$0xf0]  ;;  %v2416_v29 = vor.u32 %v2682_v24, %v2415_v23  ;;  %v2679_v30 = vld [vmem:[#allocation2 + $0xa0] sm:$0xf0]  ;;  %v2668_v31 = vld [vmem:[#allocation2 + $0x4c] sm:$0xf] }
  0x3d   : > { %1111 = vmatpush.bf16.msra.mxu1 %v2400_v11  ;;  %v2361_v32 = vld [vmem:[#allocation2 + $0x54] sm:$0xf0]  ;;  %v2347_v33 = vld [vmem:[#allocation2 + $0x30] sm:$0xf]  ;;  %p800_p6 = scmp.lt.s32.totalorder %s3256_s0, 1  ;;  %v2404_v34 = vor.u32 %v2679_v30, %v2403_v25  ;;  %v2360_v35 = vor.u32 %v2669_v28, %v2359_v27  ;;  %s3553_s29 = sld [smem:[#allocation18_spill]] }
  0x3e   : > { %1123 = vmatpush.bf16.msra.mxu2 %v2416_v29  ;;  %v2666_v36 = vld [vmem:[#allocation2 + $0x38] sm:$0xf0]  ;;  %v2391_v37 = vld [vmem:[#allocation2 + $0x80] sm:$0xf]  ;;  %v2676_v38 = vld [vmem:[#allocation2 + $0x88] sm:$0xf0]  ;;  %v2364_v39 = vor.u32 %v2668_v31, %v2361_v32 }
  0x3f   : > { %v2665_v40 = vld [vmem:[#allocation2 + $0x34] sm:$0xf]  ;;  %v2349_v41 = vld [vmem:[#allocation2 + $0x3c] sm:$0xf0]  ;;  %v2379_v42 = vld [vmem:[#allocation2 + $0x68] sm:$0xf]  ;;  %v2392_v45 = vor.u32 %v2676_v38, %v2391_v37  ;;  %v2348_v46 = vor.u32 %v2666_v36, %v2347_v33 }
  0x40   : > { %1099 = vmatpush.bf16.msra.mxu0 %v2384_v16  ;;  %v2673_v43 = vld [vmem:[#allocation2 + $0x70] sm:$0xf0]  ;;  %v2335_v44 = vld [vmem:[#allocation2 + $0x18] sm:$0xf]  ;;  %v2352_v47 = vor.u32 %v2665_v40, %v2349_v41  ;;  %v2663_v48 = vld [vmem:[#allocation2 + $0x20] sm:$0xf0] }
  0x41   : > { %1112 = vmatpush.bf16.msra.mxu1 %v2388_v17  ;;  %v2662_v49 = vld [vmem:[#allocation2 + $0x1c] sm:$0xf]  ;;  %v2337_v50 = vld [vmem:[#allocation2 + $0x24] sm:$0xf0]  ;;  %s3563_s0 = smov (!%p800_p6, %s3256_s0), 1  ;;  %v2380_v51 = vor.u32 %v2673_v43, %v2379_v42  ;;  %v2336_v52 = vor.u32 %v2663_v48, %v2335_v44  ;;  %s3554_s1 = sld [smem:[#allocation21_spill]] }
  0x42   : > { %1124 = vmatpush.bf16.msra.mxu2 %v2404_v34  ;;  %v2367_v53 = vld [vmem:[#allocation2 + $0x50] sm:$0xf]  ;;  %v2670_v54 = vld [vmem:[#allocation2 + $0x58] sm:$0xf0]  ;;  %v2340_v55 = vor.u32 %v2662_v49, %v2337_v50  ;;  %v2323_v56 = vld [vmem:[#allocation2] sm:$0xf] }
  0x43   : > { %v2660_v57 = vld [vmem:[#allocation2 + $0x8] sm:$0xf0]  ;;  %v2659_v58 = vld [vmem:[#allocation2 + $0x4] sm:$0xf]  ;;  %v2325_v59 = vld [vmem:[#allocation2 + $0xc] sm:$0xf0]  ;;  %v2368_v60 = vor.u32 %v2670_v54, %v2367_v53 }
  0x44   : > { %1100 = vmatpush.bf16.msra.mxu0 %v2372_v22  ;;  %s3342_s23 = sshll.u32 %s3563_s0, 2  ;;  %v2324_v61 = vor.u32 %v2660_v57, %v2323_v56  ;;  %v2355_v62 = vld [vmem:[#allocation2 + $0x38] sm:$0xf]  ;;  %v2667_v63 = vld [vmem:[#allocation2 + $0x40] sm:$0xf0]  ;;  %v2328_v0 = vor.u32 %v2659_v58, %v2325_v59  ;;  %vm1139_vm0 = vcmask 261120  }
  0x45   : > { %1113 = vmatpush.bf16.msra.mxu1 %v2376_v26  ;;  %s803_s27 = scalar_lea.vmem %s3553_s29, %s3342_s23  ;;  %v2356_v1 = vor.u32 %v2667_v63, %v2355_v62  ;;  %v2343_v3 = vld [vmem:[#allocation2 + $0x20] sm:$0xf]  ;;  %v2664_v4 = vld [vmem:[#allocation2 + $0x28] sm:$0xf0]  ;;  %v2331_v6 = vld [vmem:[#allocation2 + $0x8] sm:$0xf] }
  0x46   : > { %1125 = vmatpush.bf16.msra.mxu2 %v2392_v45  ;;  %v3348_v2 = vld [vmem:[%s803_s27] sm:$0xf]  ;;  %v2344_v5 = vor.u32 %v2664_v4, %v2343_v3  ;;  %v2661_v7 = vld [vmem:[#allocation2 + $0x10] sm:$0xf0]  ;;  %s3127_s16 = smov 64   ;;  %s3128_s17 = smov 96  }
  0x47   : > { %v2332_v8 = vor.u32 %v2661_v7, %v2331_v6  ;;  %v847_v9 = vld [vmem:[%s3554_s1] sm:$0x7]  ;;  %s3129_s22 = smov 32   ;;  %vm1175_vm1 = vcmask 1043456   ;;  %v3130_v38 = vmov -1e+30  }
  0x48   : > { %1101 = vmatpush.bf16.msra.mxu0 %v2360_v35  ;;  %v963_v10 = vperm.slane %v847_v9, 0  ;;  %v964_v11 = vperm.slane %v847_v9, 1  ;;  %v965_v26 = vperm.slane %v847_v9, 2  ;;  %v956_v35 = vlaneseq  ;;  %s3555_s2 = sld [smem:[#allocation23_spill]] }
  0x49   : > { %1114 = vmatpush.bf16.msra.mxu1 %v2364_v39  ;;  %vm1159_vm3 = vcmask 64512   ;;  %vm1382_vm4 = vcmask 523264   ;;  %vm1384_vm5 = vcmask 785408   ;;  %s3556_s21 = sld [smem:[#allocation19_spill]] }
  0x4a   : > { %1126 = vmatpush.bf16.msra.mxu2 %v2380_v51  ;;  %v957_v36 = vshrl.u32 %v956_v35, 7  ;;  %v959_v37 = vand.u32 127, %v956_v35  ;;  %s3558_s26 = sld [smem:[#allocation26_spill]] }
  0x4b   : > { %s3559_s27 = sld [smem:[#allocation27_spill]] }
  0x4c   : > { %1102 = vmatpush.bf16.msra.mxu0 %v2348_v46  ;;  %vm960_vm2 = vcmp.ge.s32.totalorder %v957_v36, %v959_v37  ;;  %s3560_s1 = sld [smem:[#allocation29_spill]] }
  0x4d   : > { %1115 = vmatpush.bf16.msra.mxu1 %v2352_v47  ;;  %v961_v39 = vsel %vm960_vm2, 0.0, %v3130_v38 }
  0x4e   : > { %1127 = vmatpush.bf16.msra.mxu2 %v2368_v60 }
  0x4f   : > { %s807_s5 = scalar_lea.vmem %s3556_s21, %s3342_s23 }
  0x50   : > { %1103 = vmatpush.bf16.msra.mxu0 %v2336_v52 }
  0x51   : > { %1116 = vmatpush.bf16.msra.mxu1 %v2340_v55 }
  0x52   : > { %1128 = vmatpush.bf16.msra.mxu2 %v2356_v1 }
  0x54   : > { %1104 = vmatpush.bf16.msra.mxu0 %v2324_v61 }
  0x55   : > { %1117 = vmatpush.bf16.msra.mxu1 %v2328_v0 }
  0x56   : > { %1129 = vmatpush.bf16.msra.mxu2 %v2344_v5 }
  0x57   : > { %1105 = vmatmul.bf16.vlgmr.msra.gmra.mxu0 %v3348_v2 }
  0x58   : > { %1118 = vmatmul.bf16.vlgmr.msra.gmra.mxu1 %v3348_v2 }
  0x5a   : > { %1130 = vmatpush.bf16.msra.mxu2 %v2332_v8 }
  0x5d   : > { %1131 = vmatmul.bf16.vlgmr.msra.gmra.mxu2 %v3348_v2 }
  0xd4   : > { %v1106_v12 = vpop.f32.mrf.mxu0 }
  0xd5   : > { %v1119_v13 = vpop.f32.mrf.mxu1  ;;  %v1107_v14 = vadd.f32 %v1106_v12, %v963_v10 }
  0xd6   : > { %v1120_v15 = vadd.f32 %v1119_v13, %v964_v11 }
  0xd7   : > { %v1136_v17 = vpack.c.bf16 %v1107_v14, %v1107_v14 }
  0xd8   : > { %v1137_v16 = vpack.c.bf16 %v1120_v15, %v1120_v15 }
  0xd9   : > { %v1193_v23 = vunpack.c.l.b16 %v1136_v17 }
  0xda   : > { %v1198_v18 = vunpack.c.l.b16 %v1137_v16  ;;  %v1144_v19 = vsel %vm1139_vm0, %v1137_v16, 0 }
  0xdb   : > { %1153 = vmatpush.bf16.xpose.msrb.mxu0 %v1144_v19  ;;  %v1194_v24 = vpack.c.b16 %v1193_v23, %v1193_v23 }
  0xdc   : > { %v1199_v20 = vpack.c.b16 %v1198_v18, %v1198_v18  ;;  %v1108_v21 = vpop.f32.mrf.mxu0 }
  0xdd   : > { %v1121_v22 = vpop.f32.mrf.mxu1 }
  0xde   : > { %1259 = vrot.lane.b32.xlu2 %v1199_v20, %s3127_s16  ;;  %1200 = vrot.lane.b32.xlu1 %v1199_v20, %s3128_s17 }
  0xe0   : > { %v1132_v25 = vpop.f32.mrf.mxu2 }
  0xe1   : > { %v1133_v27 = vadd.f32 %v1132_v25, %v965_v26 }
  0xe2   : > { %2417 = vmatmul.msk.bf16.vlgmr.msrb.gmra.mxu0 %vm1139_vm0, %v1136_v17 }
  0xe3   : > { %v3363_v29 = vpack.c.bf16 %v1133_v27, %v1133_v27 }
  0xe5   : > { %v1177_v30 = vsel %vm1175_vm1, %v3363_v29, 0  ;;  %v1234_v9 = vunpack.c.l.b16 %v3363_v29 }
  0xe6   : > { %1315 = vrot.lane.b32.xlu2 %v1199_v20, %s3129_s22  ;;  %1195 = vrot.lane.b32.xlu1 %v1194_v24, %s3128_s17 }
  0xe7   : > { %1186 = vmatpush.bf16.msra.mxu3 %v1177_v30  ;;  %v1235_v10 = vpack.c.b16 %v1234_v9, %v1234_v9  ;;  %v3131_v9 = vmov 128.0  }
  0xe8   : > { %v1134_v28 = vpop.f32.mrf.mxu2 }
  0xee   : > { %1313 = vrot.lane.b32.xlu1 %v1194_v24, %s3129_s22 }
 0x138   : > { %v1260_v31 = vpop.permute.xlu2 %1259 }
 0x139   : > { %v1265_v32 = vsel %vm1139_vm0, %v1260_v31, 0 }
 0x13a   : > { %1274 = vmatpush.bf16.xpose.msrb.mxu1 %v1265_v32 }
 0x140   : > { %v1316_v52 = vpop.permute.xlu2 %1315 }
 0x141   : > { %v1321_v54 = vsel %vm1139_vm0, %v1316_v52, 0  ;;  %v2688_v52 = vld [vmem:[#allocation4 + $0x28] sm:$0xff] }
 0x150   : > { %v1201_v33 = vpop.permute.xlu1 %1200 }
 0x151   : > { %v1206_v34 = vsel %vm1139_vm0, %v1201_v33, 0 }
 0x152   : > { %1215 = vmatpush.bf16.xpose.msrb.mxu3 %v1206_v34 }
 0x158   : > { %v1196_v56 = vpop.permute.xlu1 %1195 }
 0x15f   : > { %v1155_v40 = vpop.f32.mrf.mxu0 }
 0x160   : > { %v1156_v41 = vadd.f32 %v1155_v40, %v961_v39  ;;  %v1314_v57 = vpop.permute.xlu1 %1313 }
 0x162   : > { %v1160_v42 = vsel %vm1159_vm3, %v1156_v41, -inf }
 0x163   : > { %1161 = vmax.xlane.f32.xlu0 %v1160_v42 }
 0x167   : > { %v1157_v43 = vpop.f32.mrf.mxu0 }
 0x1d6   : > { %v1162_v44 = vpop.xlane.xlu0 %1161 }
 0x1d7   : > { %v1163_v45 = vsub.f32 %v1156_v41, %v1162_v44 }
 0x1d9   : > { %v1164_v46 = vmul.f32 1.442695, %v1163_v45 }
 0x1db   : > { %2840 = vpow2.f32 %v1164_v46 }
 0x1e1   : > { %v2841_v47 = vpop.eup %2840 }
 0x1e2   : > { %v1166_v48 = vsel %vm1159_vm3, %v2841_v47, 0.0 }
 0x1e3   : > { %1167 = vadd.xlane.f32.xlu0 %v1166_v48 }
 0x1f7   : > { %1257 = vrot.lane.b32.xlu0 %v1194_v24, %s3127_s16 }
 0x256   : > { %v1168_v49 = vpop.xlane.xlu0 %1167 }
 0x257   : > { %2842 = vrcp.f32 %v1168_v49 }
 0x25d   : > { %v2843_v50 = vpop.eup %2842 }
 0x25e   : > { %v1170_v51 = vmul.f32 %v2843_v50, %v2841_v47  ;;  %v2690_v50 = vld [vmem:[#allocation4 + $0x38] sm:$0xff] }
 0x25f   : > { %1438 = vmatpush.bf16.msra.mxu1 %v2690_v50  ;;  %v2691_v50 = vld [vmem:[#allocation6] sm:$0xff] }
 0x260   : > { %v1171_v53 = vpack.c.bf16 %v1170_v51, %v1170_v51  ;;  %v2689_v51 = vld [vmem:[#allocation4 + $0x30] sm:$0xff] }
 0x262   : > { %2418 = vmatmul.msk.bf16.vlgmr.msra.gmra.mxu3 %vm1159_vm3, %v1171_v53  ;;  %v2687_v53 = vld [vmem:[#allocation4 + $0x20] sm:$0xff] }
 0x263   : > { %1330 = vmatpush.bf16.xpose.msra.mxu3 %v1321_v54  ;;  %1439 = vmatpush.bf16.msra.mxu1 %v2689_v51  ;;  %v2686_v54 = vld [vmem:[#allocation4 + $0x18] sm:$0xff] }
 0x267   : > { %1440 = vmatpush.bf16.msra.mxu1 %v2688_v52 }
 0x269   : > { %v1258_v55 = vpop.permute.xlu0 %1257 }
 0x26a   : > { %2421 = vmatmul.msk.bf16.vlgmr.msrb.gmra.mxu1 %vm1139_vm0, %v1258_v55  ;;  %v2685_v55 = vld [vmem:[#allocation4 + $0x10] sm:$0xff] }
 0x26b   : > { %1441 = vmatpush.bf16.msra.mxu1 %v2687_v53 }
 0x26f   : > { %1442 = vmatpush.bf16.msra.mxu1 %v2686_v54 }
 0x272   : > { %2419 = vmatmul.msk.bf16.vlgmr.msrb.gmra.mxu3 %vm1139_vm0, %v1196_v56  ;;  %v2684_v56 = vld [vmem:[#allocation4 + $0x8] sm:$0xff] }
 0x273   : > { %1443 = vmatpush.bf16.msra.mxu1 %v2685_v55 }
 0x277   : > { %1444 = vmatpush.bf16.msra.mxu1 %v2684_v56 }
 0x282   : > { %2423 = vmatmul.msk.bf16.vlgmr.msra.gmra.mxu3 %vm1139_vm0, %v1314_v57  ;;  %v2683_v57 = vld [vmem:[#allocation4] sm:$0xff] }
 0x283   : > { %1445 = vmatpush.bf16.msra.mxu1 %v2683_v57 }
 0x2e5   : > { %v3377_v58 = vpop.f32.mrf.mxu3 }
 0x2e7   : > { %v1276_v59 = vpop.f32.mrf.mxu1 }
 0x2e8   : > { %v1277_v60 = vadd.f32 %v1276_v59, %v961_v39 }
 0x2ea   : > { %v1280_v61 = vsel %vm1159_vm3, %v1277_v60, -inf }
 0x2eb   : > { %1281 = vmax.xlane.f32.xlu1 %v1280_v61 }
 0x2ed   : > { %v1190_v62 = vpop.f32.mrf.mxu3 }
 0x2ef   : > { %v1278_v63 = vpop.f32.mrf.mxu1 }
 0x2f5   : > { %v1217_v0 = vpop.f32.mrf.mxu3 }
 0x2f6   : > { %v1218_v1 = vadd.f32 %v1217_v0, %v961_v39 }
 0x2f8   : > { %v1221_v3 = vsel %vm1159_vm3, %v1218_v1, -inf }
 0x2f9   : > { %1222 = vmax.xlane.f32.xlu2 %v1221_v3  ;;  %v2829_v3 = vld [vmem:[%s3555_s2] ss:$0 sm:$0xff] }
 0x2fd   : > { %v1219_v4 = vpop.f32.mrf.mxu3 }
 0x2fe   : > { %v1451_v4 = vunpack.c.l.bf16 %v3348_v2 }
 0x305   : > { %v1332_v5 = vpop.f32.mrf.mxu3 }
 0x306   : > { %v1333_v6 = vadd.f32 %v1332_v5, %v961_v39 }
 0x308   : > { %v1336_v7 = vsel %vm1159_vm3, %v1333_v6, -inf }
 0x309   : > { %1337 = vmax.xlane.f32.xlu0 %v1336_v7 }
 0x30d   : > { %v1334_v8 = vpop.f32.mrf.mxu3 }
 0x31d   : > { %1292 = vrot.lane.b32.xlu0 %v1235_v10, %s3127_s16 }
 0x35e   : > { %v1282_v11 = vpop.xlane.xlu1 %1281 }
 0x35f   : > { %v1283_v12 = vsub.f32 %v1277_v60, %v1282_v11  ;;  %v2539_v11 = vld [vmem:[#allocation7 + $0x60] sm:$0xf] }
 0x361   : > { %v1284_v13 = vmul.f32 1.442695, %v1283_v12 }
 0x363   : > { %2844 = vpow2.f32 %v1284_v13  ;;  %v2712_v13 = vld [vmem:[#allocation7 + $0x64] sm:$0xf0] }
 0x369   : > { %v2845_v14 = vpop.eup %2844 }
 0x36a   : > { %v1286_v15 = vsel %vm1159_vm3, %v2845_v14, 0.0 }
 0x36b   : > { %1287 = vadd.xlane.f32.xlu1 %v1286_v15 }
 0x36c   : > { %v1223_v16 = vpop.xlane.xlu2 %1222 }
 0x36d   : > { %v1224_v17 = vsub.f32 %v1218_v1, %v1223_v16  ;;  %v2531_v16 = vld [vmem:[#allocation7 + $0x50] sm:$0xf] }
 0x36f   : > { %v1225_v18 = vmul.f32 1.442695, %v1224_v17  ;;  %v2710_v17 = vld [vmem:[#allocation7 + $0x54] sm:$0xf0] }
 0x371   : > { %2846 = vpow2.f32 %v1225_v18  ;;  %v2698_v18 = vld [vmem:[#allocation6 + $0x38] sm:$0xff] }
 0x377   : > { %v2847_v19 = vpop.eup %2846 }
 0x378   : > { %v1227_v20 = vsel %vm1159_vm3, %v2847_v19, 0.0 }
 0x379   : > { %1228 = vadd.xlane.f32.xlu2 %v1227_v20  ;;  %v2523_v20 = vld [vmem:[#allocation7 + $0x40] sm:$0xf] }
 0x37c   : > { %v1338_v21 = vpop.xlane.xlu0 %1337 }
 0x37d   : > { %v1339_v22 = vsub.f32 %v1333_v6, %v1338_v21  ;;  %v2708_v21 = vld [vmem:[#allocation7 + $0x44] sm:$0xf0] }
 0x37f   : > { %v1340_v23 = vmul.f32 1.442695, %v1339_v22 }
 0x381   : > { %2848 = vpow2.f32 %v1340_v23  ;;  %v2524_v23 = vor.u32 %v2708_v21, %v2523_v20 }
 0x387   : > { %v2849_v24 = vpop.eup %2848 }
 0x388   : > { %v1342_v25 = vsel %vm1159_vm3, %v2849_v24, 0.0 }
 0x389   : > { %1343 = vadd.xlane.f32.xlu1 %v1342_v25  ;;  %v2706_v25 = vld [vmem:[#allocation7 + $0x34] sm:$0xf0] }
 0x38f   : > { %v1293_v26 = vpop.permute.xlu0 %1292 }
 0x390   : > { %v1298_v27 = vsel %vm1175_vm1, %v1293_v26, 0 }
 0x391   : > { %1236 = vrot.lane.b32.xlu2 %v1235_v10, %s3128_s17  ;;  %1307 = vmatpush.bf16.msrb.mxu2 %v1298_v27 }
 0x395   : > { %1540 = vmatpush.bf16.msra.mxu2 %v2698_v18 }
 0x3a2   : > { %1348 = vrot.lane.b32.xlu1 %v1235_v10, %s3129_s22  ;;  %v2714_v10 = vld [vmem:[#allocation7 + $0x74] sm:$0xf0] }
 0x3de   : > { %v1288_v28 = vpop.xlane.xlu1 %1287 }
 0x3df   : > { %2850 = vrcp.f32 %v1288_v28  ;;  %v2507_v28 = vld [vmem:[#allocation7 + $0x20] sm:$0xf] }
 0x3e5   : > { %v2851_v29 = vpop.eup %2850 }
 0x3e6   : > { %v1290_v30 = vmul.f32 %v2851_v29, %v2845_v14  ;;  %v2540_v14 = vor.u32 %v2712_v13, %v2539_v11  ;;  %v2704_v29 = vld [vmem:[#allocation7 + $0x24] sm:$0xf0]  ;;  %v2832_v13 = vld [vmem:[%s3517_s7] ss:$0 sm:$0xff] }
 0x3e8   : > { %v1291_v31 = vpack.c.bf16 %v1290_v30, %v1290_v30 }
 0x3ea   : > { %2422 = vmatmul.msk.bf16.vlgmr.msrb.gmra.mxu2 %vm1159_vm3, %v1291_v31  ;;  %v2508_v31 = vor.u32 %v2704_v29, %v2507_v28  ;;  %v2709_v29 = vld [vmem:[#allocation7 + $0x54] sm:$0xf] }
 0x3ec   : > { %v1229_v32 = vpop.xlane.xlu2 %1228 }
 0x3ed   : > { %2852 = vrcp.f32 %v1229_v32  ;;  %v2499_v32 = vld [vmem:[#allocation7 + $0x10] sm:$0xf] }
 0x3f3   : > { %v2853_v33 = vpop.eup %2852 }
 0x3f4   : > { %v1231_v34 = vmul.f32 %v2853_v33, %v2847_v19  ;;  %v1237_v35 = vpop.permute.xlu2 %1236  ;;  %v2532_v19 = vor.u32 %v2710_v17, %v2531_v16  ;;  %v2702_v33 = vld [vmem:[#allocation7 + $0x14] sm:$0xf0] }
 0x3f5   : > { %v1242_v36 = vsel %vm1175_vm1, %v1237_v35, 0  ;;  %v2500_v35 = vor.u32 %v2702_v33, %v2499_v32  ;;  %v2707_v32 = vld [vmem:[#allocation7 + $0x44] sm:$0xf]  ;;  %v2525_v33 = vld [vmem:[#allocation7 + $0x48] sm:$0xf0] }
 0x3f6   : > { %v1232_v37 = vpack.c.bf16 %v1231_v34, %v1231_v34  ;;  %1251 = vmatpush.bf16.msra.mxu0 %v1242_v36 }
 0x3f9   : > { %2420 = vmatmul.msk.bf16.vlgmr.msra.gmra.mxu0 %vm1159_vm3, %v1232_v37 }
 0x3fc   : > { %v1344_v38 = vpop.xlane.xlu1 %1343 }
 0x3fd   : > { %2854 = vrcp.f32 %v1344_v38 }
 0x3fe   : > { %2856 = vrcp.f32 %v3131_v9 }
 0x403   : > { %v2855_v39 = vpop.eup %2854 }
 0x404   : > { %v1346_v40 = vmul.f32 %v2855_v39, %v2849_v24  ;;  %v2857_v15 = vpop.eup %2856  ;;  %v2515_v24 = vld [vmem:[#allocation7 + $0x30] sm:$0xf] }
 0x405   : > { %v1456_v2 = vmul.f32 128.0, %v2857_v15  ;;  %v2516_v27 = vor.u32 %v2706_v25, %v2515_v24  ;;  %vm1460_vm6 = vweird.f32 %v2857_v15  ;;  %v2549_v24 = vld [vmem:[#allocation7 + $0x78] sm:$0xf0]  ;;  %v2711_v25 = vld [vmem:[#allocation7 + $0x64] sm:$0xf] }
 0x406   : > { %v1347_v43 = vpack.c.bf16 %v1346_v40, %v1346_v40  ;;  %v2491_v40 = vld [vmem:[#allocation7] sm:$0xf] }
 0x407   : > { %v1457_v22 = vsub.f32 1.0, %v1456_v2 }
 0x409   : > { %v1458_v26 = vmul.f32 %v2857_v15, %v1457_v22 }
 0x40b   : > { %v1459_v30 = vadd.f32 %v2857_v15, %v1458_v26 }
 0x40d   : > { %v3406_v34 = vsel %vm1460_vm6, %v2857_v15, %v1459_v30  ;;  %v2533_v30 = vld [vmem:[#allocation7 + $0x58] sm:$0xf0] }
 0x414   : > { %v1349_v41 = vpop.permute.xlu1 %1348 }
 0x415   : > { %v1354_v42 = vsel %vm1175_vm1, %v1349_v41, 0  ;;  %v2700_v41 = vld [vmem:[#allocation7 + $0x4] sm:$0xf0] }
 0x416   : > { %1363 = vmatpush.bf16.msrb.mxu0 %v1354_v42  ;;  %v2697_v42 = vld [vmem:[#allocation6 + $0x30] sm:$0xff] }
 0x417   : > { %1541 = vmatpush.bf16.msra.mxu2 %v2697_v42 }
 0x419   : > { %2424 = vmatmul.msk.bf16.vlgmr.msrb.gmra.mxu0 %vm1159_vm3, %v1347_v43  ;;  %v2492_v43 = vor.u32 %v2700_v41, %v2491_v40  ;;  %v2703_v40 = vld [vmem:[#allocation7 + $0x24] sm:$0xf]  ;;  %v2509_v41 = vld [vmem:[#allocation7 + $0x28] sm:$0xf0] }
 0x41a   : > { %v2512_v42 = vor.u32 %v2703_v40, %v2509_v41 }
 0x46d   : > { %v1309_v44 = vpop.f32.mrf.mxu2 }
 0x475   : > { %v1311_v45 = vpop.f32.mrf.mxu2 }
 0x476   : > { %v1253_v46 = vpop.f32.mrf.mxu0  ;;  %v2696_v45 = vld [vmem:[#allocation6 + $0x28] sm:$0xff] }
 0x477   : > { %1370 = vrot.lane.b32.xlu2 %v1253_v46, %s3129_s22  ;;  %1542 = vmatpush.bf16.msra.mxu2 %v2696_v45  ;;  %v2695_v46 = vld [vmem:[#allocation6 + $0x20] sm:$0xff]  ;;  %v2501_v45 = vld [vmem:[#allocation7 + $0x18] sm:$0xf0] }
 0x47b   : > { %1543 = vmatpush.bf16.msra.mxu2 %v2695_v46 }
 0x47e   : > { %v1255_v47 = vpop.f32.mrf.mxu0 }
 0x47f   : > { %1374 = vrot.lane.b32.xlu2 %v1309_v44, %s3127_s16  ;;  %v3413_v44 = vld [vmem:[%s807_s5] sm:$0xf]  ;;  %v2694_v47 = vld [vmem:[#allocation6 + $0x18] sm:$0xff]  ;;  %s3557_s5 = sld [smem:[#allocation28_spill]] }
 0x480   : > { %1544 = vmatpush.bf16.msra.mxu2 %v2694_v47 }
 0x496   : > { %v1365_v48 = vpop.f32.mrf.mxu0 }
 0x497   : > { %1378 = vrot.lane.b32.xlu0 %v1365_v48, %s3128_s17  ;;  %v2693_v48 = vld [vmem:[#allocation6 + $0x10] sm:$0xff] }
 0x498   : > { %1545 = vmatpush.bf16.msra.mxu2 %v2693_v48 }
 0x49e   : > { %v1367_v49 = vpop.f32.mrf.mxu0 }
 0x49f   : > { %v2692_v49 = vld [vmem:[#allocation6 + $0x8] sm:$0xff] }
 0x4a0   : > { %1546 = vmatpush.bf16.msra.mxu2 %v2692_v49 }
 0x4a4   : > { %1547 = vmatpush.bf16.msra.mxu2 %v2691_v50 }
 0x4d1   : > { %v1371_v59 = vpop.permute.xlu2 %1370 }
 0x4d2   : > { %v1381_v61 = vsel %vm1139_vm0, %v3377_v58, %v1371_v59  ;;  %v2547_v58 = vld [vmem:[#allocation7 + $0x70] sm:$0xf] }
 0x4d3   : > { %v2548_v12 = vor.u32 %v2714_v10, %v2547_v58 }
 0x4d5   : > { %1638 = vmatpush.bf16.msrb.mxu3 %v2548_v12 }
 0x4d9   : > { %v1375_v60 = vpop.permute.xlu2 %1374  ;;  %1639 = vmatpush.bf16.msrb.mxu3 %v2540_v14 }
 0x4da   : > { %v1383_v62 = vsel %vm1382_vm4, %v1381_v61, %v1375_v60  ;;  %v2830_v61 = vld [vmem:[%s3522_s12] ss:$0 sm:$0xff] }
 0x4dd   : > { %1640 = vmatpush.bf16.msrb.mxu3 %v2532_v19 }
 0x4e1   : > { %1641 = vmatpush.bf16.msrb.mxu3 %v2524_v23  ;;  %v2713_v23 = vld [vmem:[#allocation7 + $0x74] sm:$0xf] }
 0x4e2   : > { %v2552_v26 = vor.u32 %v2713_v23, %v2549_v24 }
 0x4e4   : > { %1651 = vmatpush.bf16.msra.mxu0 %v2552_v26 }
 0x4e5   : > { %1642 = vmatpush.bf16.msrb.mxu3 %v2516_v27  ;;  %v2541_v27 = vld [vmem:[#allocation7 + $0x68] sm:$0xf0] }
 0x4e6   : > { %v2544_v28 = vor.u32 %v2711_v25, %v2541_v27 }
 0x4e8   : > { %1652 = vmatpush.bf16.msra.mxu0 %v2544_v28 }
 0x4e9   : > { %1643 = vmatpush.bf16.msrb.mxu3 %v2508_v31  ;;  %v2536_v31 = vor.u32 %v2709_v29, %v2533_v30 }
 0x4ec   : > { %1653 = vmatpush.bf16.msra.mxu0 %v2536_v31 }
 0x4ed   : > { %1644 = vmatpush.bf16.msrb.mxu3 %v2500_v35  ;;  %v2528_v35 = vor.u32 %v2707_v32, %v2525_v33 }
 0x4f0   : > { %1654 = vmatpush.bf16.msra.mxu0 %v2528_v35 }
 0x4f1   : > { %1645 = vmatpush.bf16.msrb.mxu3 %v2492_v43  ;;  %v2701_v43 = vld [vmem:[#allocation7 + $0x14] sm:$0xf] }
 0x4f2   : > { %v2504_v49 = vor.u32 %v2701_v43, %v2501_v45 }
 0x4f4   : > { %1646 = vmatmul.bf16.vlgmr.msrb.gmra.mxu3 %v3413_v44 }
 0x509   : > { %v1379_v63 = vpop.permute.xlu0 %1378 }
 0x50a   : > { %v1385_v0 = vsel %vm1384_vm5, %v1383_v62, %v1379_v63 }
 0x50b   : > { %v1386_v1 = vpack.c.bf16 %v1385_v0, %v1385_v0  ;;  %v2831_v0 = vld [vmem:[%s3523_s13] ss:$0 sm:$0xff] }
 0x50d   : > { %1446 = vmatmul.bf16.vlgmr.msra.gmra.mxu1 %v1386_v1 }
 0x58a   : > { %v1447_v5 = vpop.f32.mrf.mxu1 }
 0x58b   : > { %v1448_v6 = vadd.f32 %v2829_v3, %v1447_v5  ;;  %v3430_v5 = vld [vmem:[%s3519_s9] sm:$0x3] }
 0x58d   : > { %v1452_v7 = vadd.f32 %v1451_v4, %v1448_v6  ;;  %v1554_v6 = vperm.slane %v3430_v5, 0 }
 0x58f   : > { %1453 = vadd.xlane.f32.xlu2 %v1452_v7 }
 0x592   : > { %v1449_v8 = vpop.f32.mrf.mxu1 }
 0x602   : > { %v1454_v36 = vpop.xlane.xlu2 %1453 }
 0x603   : > { %v1462_v37 = vmul.f32 %v3406_v34, %v1454_v36  ;;  %v2705_v36 = vld [vmem:[#allocation7 + $0x34] sm:$0xf] }
 0x605   : > { %v1463_v38 = vsub.f32 %v1452_v7, %v1462_v37  ;;  %v1647_v7 = vpop.f32.mrf.mxu3  ;;  %v2517_v37 = vld [vmem:[#allocation7 + $0x38] sm:$0xf0] }
 0x606   : > { %v1648_v8 = vadd.f32 %v1647_v7, %v1554_v6 }
 0x607   : > { %v1464_v39 = vmul.f32 %v1463_v38, %v1463_v38 }
 0x608   : > { %v1665_v9 = vpack.c.bf16 %v1648_v8, %v1648_v8 }
 0x609   : > { %1465 = vadd.xlane.f32.xlu0 %v1464_v39  ;;  %v2520_v39 = vor.u32 %v2705_v36, %v2517_v37 }
 0x60a   : > { %v1671_v58 = vsel %vm1139_vm0, %v1665_v9, 0  ;;  %v1723_v10 = vunpack.c.l.b16 %v1665_v9 }
 0x60b   : > { %1680 = vmatpush.bf16.xpose.msrb.mxu1 %v1671_v58  ;;  %1655 = vmatpush.bf16.msra.mxu0 %v2520_v39 }
 0x60c   : > { %v1724_v11 = vpack.c.b16 %v1723_v10, %v1723_v10 }
 0x60d   : > { %v1649_v12 = vpop.f32.mrf.mxu3 }
 0x60e   : > { %1725 = vrot.lane.b32.xlu1 %v1724_v11, %s3128_s17 }
 0x60f   : > { %1656 = vmatpush.bf16.msra.mxu0 %v2512_v42 }
 0x613   : > { %1657 = vmatpush.bf16.msra.mxu0 %v2504_v49 }
 0x616   : > { %1784 = vrot.lane.b32.xlu1 %v1724_v11, %s3127_s16 }
 0x67c   : > { %v1466_v51 = vpop.xlane.xlu0 %1465 }
 0x67d   : > { %v1467_v52 = vmul.f32 %v1466_v51, %v3406_v34  ;;  %v2699_v51 = vld [vmem:[#allocation7 + $0x4] sm:$0xf] }
 0x67f   : > { %v1468_v53 = vadd.f32 1e-05, %v1467_v52  ;;  %v2493_v52 = vld [vmem:[#allocation7 + $0x8] sm:$0xf0] }
 0x680   : > { %v1726_v19 = vpop.permute.xlu1 %1725 }
 0x681   : > { %2858 = vrsqrt.f32 %v1468_v53  ;;  %vm1475_vm8 = vweird.f32 %v1468_v53  ;;  %v1731_v20 = vsel %vm1139_vm0, %v1726_v19, 0 }
 0x682   : > { %1740 = vmatpush.bf16.xpose.msra.mxu3 %v1731_v20 }
 0x687   : > { %v2859_v54 = vpop.eup %2858 }
 0x688   : > { %v1470_v55 = vmul.f32 %v2859_v54, %v1468_v53  ;;  %vm1476_vm7 = vweird.f32 %v2859_v54  ;;  %v1785_v21 = vpop.permute.xlu1 %1784  ;;  %v2496_v53 = vor.u32 %v2699_v51, %v2493_v52 }
 0x689   : > { %vm1477_vm9 = vmor %vm1475_vm8, %vm1476_vm7  ;;  %v1790_v22 = vsel %vm1139_vm0, %v1785_v21, 0 }
 0x68a   : > { %v1471_v56 = vmul.f32 %v2859_v54, %v1470_v55  ;;  %1799 = vmatpush.bf16.xpose.msra.mxu1 %v1790_v22  ;;  %1658 = vmatpush.bf16.msra.mxu0 %v2496_v53 }
 0x68c   : > { %v1472_v57 = vmul.f32 0.5, %v1471_v56 }
 0x68d   : > { %1659 = vmatmul.bf16.vlgmr.msra.gmra.mxu0 %v3413_v44 }
 0x68e   : > { %v1473_v59 = vsub.f32 1.5, %v1472_v57 }
 0x690   : > { %v1474_v60 = vmul.f32 %v2859_v54, %v1473_v59 }
 0x692   : > { %v1478_v62 = vsel %vm1477_vm9, %v2859_v54, %v1474_v60 }
 0x693   : > { %v1479_v63 = vmul.f32 %v1478_v62, %v1463_v38 }
 0x695   : > { %v1483_v1 = vmul.f32 %v2830_v61, %v1479_v63 }
 0x697   : > { %v3423_v3 = vadd.f32 %v2831_v0, %v1483_v1  ;;  %v1555_v1 = vperm.slane %v3430_v5, 1 }
 0x699   : > { %v1488_v4 = vpack.c.bf16 %v3423_v3, %v3423_v3 }
 0x69b   : > { %1548 = vmatmul.bf16.vlgmr.msra.gmra.mxu2 %v1488_v4 }
 0x70a   : > { %v1660_v7 = vpop.f32.mrf.mxu0 }
 0x70b   : > { %v1661_v8 = vadd.f32 %v1660_v7, %v1555_v1  ;;  %v2720_v1 = vld [vmem:[#allocation9 + $0x28] sm:$0xff]  ;;  %v2717_v7 = vld [vmem:[#allocation9 + $0x10] sm:$0xff] }
 0x70d   : > { %v1666_v9 = vpack.c.bf16 %v1661_v8, %v1661_v8  ;;  %v2716_v8 = vld [vmem:[#allocation9 + $0x8] sm:$0xff] }
 0x70f   : > { %v1702_v58 = vsel %vm1175_vm1, %v1666_v9, 0  ;;  %v1759_v5 = vunpack.c.l.b16 %v1666_v9  ;;  %v2715_v9 = vld [vmem:[#allocation9] sm:$0xff] }
 0x710   : > { %1711 = vmatpush.bf16.msrb.mxu2 %v1702_v58 }
 0x712   : > { %v1662_v12 = vpop.f32.mrf.mxu0 }
 0x71e   : > { %v1549_v14 = vpop.f32.mrf.mxu2 }
 0x71f   : > { %v1550_v15 = vadd.f32 %v2832_v13, %v1549_v14 }
 0x721   : > { %v1664_v16 = vpack.c.bf16 %v1550_v15, %v1550_v15  ;;  %v1760_v15 = vpack.c.b16 %v1759_v5, %v1759_v5  ;;  %v2833_v5 = vld [vmem:[%s3521_s11] ss:$0 sm:$0xff] }
 0x723   : > { %v1718_v17 = vunpack.c.l.b16 %v1664_v16  ;;  %2553 = vmatmul.msk.bf16.vlgmr.msrb.gmra.mxu1 %vm1139_vm0, %v1664_v16 }
 0x725   : > { %v1719_v18 = vpack.c.b16 %v1718_v17, %v1718_v17 }
 0x726   : > { %v1551_v2 = vpop.f32.mrf.mxu2 }
 0x727   : > { %1838 = vrot.lane.b32.xlu2 %v1719_v18, %s3129_s22  ;;  %1720 = vrot.lane.b32.xlu1 %v1719_v18, %s3128_s17 }
 0x72f   : > { %1840 = vrot.lane.b32.xlu1 %v1724_v11, %s3129_s22 }
 0x737   : > { %1782 = vrot.lane.b32.xlu1 %v1719_v18, %s3127_s16 }
 0x781   : > { %v1839_v55 = vpop.permute.xlu2 %1838 }
 0x799   : > { %v1721_v38 = vpop.permute.xlu1 %1720 }
 0x79a   : > { %2555 = vmatmul.msk.bf16.vlgmr.msra.gmra.mxu3 %vm1139_vm0, %v1721_v38 }
 0x7a0   : > { %v1682_v46 = vpop.f32.mrf.mxu1 }
 0x7a1   : > { %v1841_v47 = vpop.permute.xlu1 %1840  ;;  %v1686_v48 = vsel %vm1159_vm3, %v1682_v46, -inf }
 0x7a2   : > { %v1846_v50 = vsel %vm1139_vm0, %v1841_v47, 0  ;;  %1687 = vmax.xlane.f32.xlu1 %v1686_v48 }
 0x7a3   : > { %1855 = vmatpush.bf16.xpose.msrb.mxu3 %v1846_v50 }
 0x7a8   : > { %v1684_v54 = vpop.f32.mrf.mxu1 }
 0x7a9   : > { %v1783_v56 = vpop.permute.xlu1 %1782 }
 0x7aa   : > { %2557 = vmatmul.msk.bf16.vlgmr.msra.gmra.mxu1 %vm1139_vm0, %v1783_v56  ;;  %2559 = vmatmul.msk.bf16.vlgmr.msrb.gmra.mxu3 %vm1139_vm0, %v1839_v55 }
 0x815   : > { %v1688_v57 = vpop.xlane.xlu1 %1687 }
 0x816   : > { %v1689_v59 = vsub.f32 %v1682_v46, %v1688_v57 }
 0x818   : > { %v1690_v60 = vmul.f32 1.442695, %v1689_v59 }
 0x81a   : > { %2860 = vpow2.f32 %v1690_v60 }
 0x81d   : > { %v1742_v61 = vpop.f32.mrf.mxu3 }
 0x81e   : > { %v1746_v11 = vsel %vm1159_vm3, %v1742_v61, -inf }
 0x820   : > { %v2861_v62 = vpop.eup %2860 }
 0x821   : > { %v1692_v63 = vsel %vm1159_vm3, %v2861_v62, 0.0 }
 0x822   : > { %1693 = vadd.xlane.f32.xlu2 %v1692_v63  ;;  %v2722_v63 = vld [vmem:[#allocation9 + $0x38] sm:$0xff] }
 0x823   : > { %1961 = vmatpush.bf16.msrb.mxu1 %v2722_v63 }
 0x825   : > { %v1744_v0 = vpop.f32.mrf.mxu3 }
 0x826   : > { %v2721_v0 = vld [vmem:[#allocation9 + $0x30] sm:$0xff] }
 0x827   : > { %v1801_v4 = vpop.f32.mrf.mxu1  ;;  %1962 = vmatpush.bf16.msrb.mxu1 %v2721_v0 }
 0x828   : > { %v1805_v6 = vsel %vm1159_vm3, %v1801_v4, -inf }
 0x829   : > { %1806 = vmax.xlane.f32.xlu0 %v1805_v6  ;;  %v2718_v6 = vld [vmem:[#allocation9 + $0x18] sm:$0xff] }
 0x82b   : > { %1963 = vmatpush.bf16.msrb.mxu1 %v2720_v1 }
 0x82d   : > { %v1857_v44 = vpop.f32.mrf.mxu3 }
 0x82e   : > { %v1861_v14 = vsel %vm1159_vm3, %v1857_v44, -inf }
 0x82f   : > { %v1803_v10 = vpop.f32.mrf.mxu1 }
 0x831   : > { %1747 = vmax.xlane.f32.xlu0 %v1746_v11 }
 0x835   : > { %v1859_v13 = vpop.f32.mrf.mxu3 }
 0x839   : > { %1862 = vmax.xlane.f32.xlu0 %v1861_v14 }
 0x84d   : > { %1761 = vrot.lane.b32.xlu0 %v1760_v15, %s3128_s17 }
 0x895   : > { %v1694_v16 = vpop.xlane.xlu2 %1693 }
 0x896   : > { %2862 = vrcp.f32 %v1694_v16 }
 0x89c   : > { %v2863_v17 = vpop.eup %2862  ;;  %v1807_v18 = vpop.xlane.xlu0 %1806 }
 0x89d   : > { %v1696_v2 = vmul.f32 %v2863_v17, %v2861_v62  ;;  %v1808_v19 = vsub.f32 %v1801_v4, %v1807_v18  ;;  %v2719_v4 = vld [vmem:[#allocation9 + $0x20] sm:$0xff] }
 0x89e   : > { %1964 = vmatpush.bf16.msrb.mxu1 %v2719_v4 }
 0x89f   : > { %v1697_v20 = vpack.c.bf16 %v1696_v2, %v1696_v2  ;;  %v1809_v21 = vmul.f32 1.442695, %v1808_v19  ;;  %v2730_v2 = vld [vmem:[#allocation10 + $0x38] sm:$0xff] }
 0x8a1   : > { %2864 = vpow2.f32 %v1809_v21  ;;  %2554 = vmatmul.msk.bf16.vlgmr.msrb.gmra.mxu2 %vm1159_vm3, %v1697_v20 }
 0x8a2   : > { %1965 = vmatpush.bf16.msrb.mxu1 %v2718_v6 }
 0x8a4   : > { %v1748_v22 = vpop.xlane.xlu0 %1747 }
 0x8a5   : > { %v1749_v23 = vsub.f32 %v1742_v61, %v1748_v22 }
 0x8a6   : > { %1966 = vmatpush.bf16.msrb.mxu1 %v2717_v7 }
 0x8a7   : > { %v2865_v24 = vpop.eup %2864  ;;  %v1750_v25 = vmul.f32 1.442695, %v1749_v23  ;;  %v2729_v23 = vld [vmem:[#allocation10 + $0x30] sm:$0xff] }
 0x8a8   : > { %v1811_v26 = vsel %vm1159_vm3, %v2865_v24, 0.0 }
 0x8a9   : > { %2866 = vpow2.f32 %v1750_v25  ;;  %1812 = vadd.xlane.f32.xlu1 %v1811_v26  ;;  %v2727_v25 = vld [vmem:[#allocation10 + $0x20] sm:$0xff]  ;;  %v2726_v26 = vld [vmem:[#allocation10 + $0x18] sm:$0xff] }
 0x8aa   : > { %1967 = vmatpush.bf16.msrb.mxu1 %v2716_v8 }
 0x8ac   : > { %v1863_v27 = vpop.xlane.xlu0 %1862 }
 0x8ad   : > { %v1864_v28 = vsub.f32 %v1857_v44, %v1863_v27  ;;  %v2725_v27 = vld [vmem:[#allocation10 + $0x10] sm:$0xff] }
 0x8ae   : > { %1968 = vmatpush.bf16.msrb.mxu1 %v2715_v9 }
 0x8af   : > { %v2867_v29 = vpop.eup %2866  ;;  %v1865_v30 = vmul.f32 1.442695, %v1864_v28  ;;  %v2723_v28 = vld [vmem:[#allocation10] sm:$0xff] }
 0x8b0   : > { %v1752_v31 = vsel %vm1159_vm3, %v2867_v29, 0.0 }
 0x8b1   : > { %2868 = vpow2.f32 %v1865_v30  ;;  %1753 = vadd.xlane.f32.xlu0 %v1752_v31 }
 0x8b7   : > { %v2869_v32 = vpop.eup %2868 }
 0x8b8   : > { %v1867_v33 = vsel %vm1159_vm3, %v2869_v32, 0.0 }
 0x8b9   : > { %1868 = vadd.xlane.f32.xlu1 %v1867_v33 }
 0x8bf   : > { %v1762_v35 = vpop.permute.xlu0 %1761 }
 0x8c0   : > { %v1767_v36 = vsel %vm1175_vm1, %v1762_v35, 0  ;;  %v2736_v35 = vld [vmem:[#allocation12 + $0x28] sm:$0xff] }
 0x8c1   : > { %1776 = vmatpush.bf16.msrb.mxu0 %v1767_v36  ;;  %v2735_v36 = vld [vmem:[#allocation12 + $0x20] sm:$0xff] }
 0x8c5   : > { %1817 = vrot.lane.b32.xlu0 %v1760_v15, %s3127_s16 }
 0x8d2   : > { %1873 = vrot.lane.b32.xlu1 %v1760_v15, %s3129_s22 }
 0x91c   : > { %v1813_v39 = vpop.xlane.xlu1 %1812 }
 0x924   : > { %v1713_v37 = vpop.f32.mrf.mxu2  ;;  %v1754_v38 = vpop.xlane.xlu0 %1753 }
 0x925   : > { %2870 = vrcp.f32 %v1754_v38 }
 0x926   : > { %2872 = vrcp.f32 %v1813_v39  ;;  %v2734_v39 = vld [vmem:[#allocation12 + $0x18] sm:$0xff] }
 0x92b   : > { %v2871_v40 = vpop.eup %2870 }
 0x92c   : > { %v1756_v41 = vmul.f32 %v2871_v40, %v2867_v29  ;;  %v1715_v42 = vpop.f32.mrf.mxu2  ;;  %v2873_v45 = vpop.eup %2872  ;;  %v2738_v29 = vld [vmem:[#allocation12 + $0x38] sm:$0xff] }
 0x92d   : > { %v1815_v46 = vmul.f32 %v2873_v45, %v2865_v24  ;;  %v1869_v47 = vpop.xlane.xlu1 %1868  ;;  %v2728_v24 = vld [vmem:[#allocation10 + $0x28] sm:$0xff]  ;;  %2121 = vmatpush.bf16.msra.mxu3 %v2738_v29  ;;  %v2733_v42 = vld [vmem:[#allocation12 + $0x10] sm:$0xff] }
 0x92e   : > { %v1757_v43 = vpack.c.bf16 %v1756_v41, %v1756_v41  ;;  %2874 = vrcp.f32 %v1869_v47 }
 0x92f   : > { %v1816_v50 = vpack.c.bf16 %v1815_v46, %v1815_v46  ;;  %v2834_v46 = vld [vmem:[%s3524_s14] ss:$0 sm:$0xff] }
 0x930   : > { %2556 = vmatmul.msk.bf16.vlgmr.msrb.gmra.mxu0 %vm1159_vm3, %v1757_v43 }
 0x934   : > { %v2875_v51 = vpop.eup %2874 }
 0x935   : > { %v1871_v52 = vmul.f32 %v2875_v51, %v2869_v32  ;;  %v2737_v32 = vld [vmem:[#allocation12 + $0x30] sm:$0xff] }
 0x936   : > { %2122 = vmatpush.bf16.msra.mxu3 %v2737_v32 }
 0x937   : > { %v1818_v48 = vpop.permute.xlu0 %1817  ;;  %v1872_v55 = vpack.c.bf16 %v1871_v52, %v1871_v52 }
 0x938   : > { %v1823_v49 = vsel %vm1175_vm1, %v1818_v48, 0 }
 0x939   : > { %1832 = vmatpush.bf16.msra.mxu2 %v1823_v49  ;;  %v2835_v49 = vld [vmem:[%s3525_s15] ss:$0 sm:$0xff] }
 0x93a   : > { %2123 = vmatpush.bf16.msra.mxu3 %v2736_v35 }
 0x93c   : > { %2558 = vmatmul.msk.bf16.vlgmr.msra.gmra.mxu2 %vm1159_vm3, %v1816_v50 }
 0x93d   : > { %2055 = vmatpush.bf16.msrb.mxu2 %v2730_v2 }
 0x93e   : > { %2124 = vmatpush.bf16.msra.mxu3 %v2735_v36 }
 0x941   : > { %2056 = vmatpush.bf16.msrb.mxu2 %v2729_v23 }
 0x942   : > { %2125 = vmatpush.bf16.msra.mxu3 %v2734_v39 }
 0x944   : > { %v1874_v53 = vpop.permute.xlu1 %1873 }
 0x945   : > { %v1879_v54 = vsel %vm1175_vm1, %v1874_v53, 0  ;;  %2057 = vmatpush.bf16.msrb.mxu2 %v2728_v24  ;;  %v2732_v53 = vld [vmem:[#allocation12 + $0x8] sm:$0xff] }
 0x946   : > { %1888 = vmatpush.bf16.msra.mxu0 %v1879_v54  ;;  %2126 = vmatpush.bf16.msra.mxu3 %v2733_v42  ;;  %v2731_v54 = vld [vmem:[#allocation12] sm:$0xff] }
 0x949   : > { %2560 = vmatmul.msk.bf16.vlgmr.msra.gmra.mxu0 %vm1159_vm3, %v1872_v55  ;;  %2058 = vmatpush.bf16.msrb.mxu2 %v2727_v25  ;;  %v2836_v55 = vld [vmem:[%s3529_s19] ss:$0 sm:$0xff] }
 0x94a   : > { %2127 = vmatpush.bf16.msra.mxu3 %v2732_v53 }
 0x94d   : > { %2059 = vmatpush.bf16.msrb.mxu2 %v2726_v26 }
 0x94e   : > { %2128 = vmatpush.bf16.msra.mxu3 %v2731_v54 }
 0x951   : > { %2060 = vmatpush.bf16.msrb.mxu2 %v2725_v27 }
 0x9ad   : > { %v1778_v56 = vpop.f32.mrf.mxu0 }
 0x9ae   : > { %1895 = vrot.lane.b32.xlu0 %v1778_v56, %s3129_s22 }
 0x9b5   : > { %v1780_v57 = vpop.f32.mrf.mxu0 }
 0x9bf   : > { %v1834_v59 = vpop.f32.mrf.mxu2 }
 0x9c0   : > { %1899 = vrot.lane.b32.xlu2 %v1834_v59, %s3127_s16  ;;  %s811_s16 = scalar_lea.vmem %s3560_s1, %s3342_s23 }
 0x9c6   : > { %v1890_v60 = vpop.f32.mrf.mxu0 }
 0x9c7   : > { %1903 = vrot.lane.b32.xlu0 %v1890_v60, %s3128_s17  ;;  %v1836_v61 = vpop.f32.mrf.mxu2 }
 0x9ce   : > { %v1892_v62 = vpop.f32.mrf.mxu0 }
 0x9cf   : > { %v2837_v62 = vld [vmem:[%s3557_s5] ss:$0 sm:$0xff] }
 0xa1a   : > { %v1900_v10 = vpop.permute.xlu2 %1899 }
 0xa20   : > { %v1896_v44 = vpop.permute.xlu0 %1895 }
 0xa21   : > { %v1906_v58 = vsel %vm1139_vm0, %v1713_v37, %v1896_v44 }
 0xa22   : > { %v1907_v11 = vsel %vm1382_vm4, %v1906_v58, %v1900_v10 }
 0xa39   : > { %v1904_v12 = vpop.permute.xlu0 %1903 }
 0xa3a   : > { %v1908_v13 = vsel %vm1384_vm5, %v1907_v11, %v1904_v12 }
 0xa3b   : > { %v1909_v14 = vpack.c.bf16 %v1908_v13, %v1908_v13 }
 0xa3d   : > { %1969 = vmatmul.bf16.vlgmr.msrb.gmra.mxu1 %v1909_v14 }
 0xaba   : > { %v1970_v15 = vpop.f32.mrf.mxu1 }
 0xabb   : > { %v1971_v16 = vadd.f32 %v2833_v5, %v1970_v15 }
 0xabd   : > { %v1974_v17 = vadd.f32 %v1971_v16, %v3423_v3  ;;  %v2724_v3 = vld [vmem:[#allocation10 + $0x8] sm:$0xff]  ;;  %v2838_v16 = vld [vmem:[%s3558_s26] ss:$0 sm:$0xff] }
 0xabe   : > { %2061 = vmatpush.bf16.msrb.mxu2 %v2724_v3 }
 0xabf   : > { %1975 = vadd.xlane.f32.xlu0 %v1974_v17 }
 0xac2   : > { %v1972_v18 = vpop.f32.mrf.mxu1  ;;  %2062 = vmatpush.bf16.msrb.mxu2 %v2723_v28 }
 0xb32   : > { %v1976_v19 = vpop.xlane.xlu0 %1975 }
 0xb33   : > { %v1977_v20 = vmul.f32 %v1976_v19, %v3406_v34 }
 0xb35   : > { %v1978_v21 = vsub.f32 %v1974_v17, %v1977_v20 }
 0xb37   : > { %v1979_v22 = vmul.f32 %v1978_v21, %v1978_v21 }
 0xb39   : > { %1980 = vadd.xlane.f32.xlu1 %v1979_v22 }
 0xbac   : > { %v1981_v30 = vpop.xlane.xlu1 %1980 }
 0xbad   : > { %v1982_v31 = vmul.f32 %v1981_v30, %v3406_v34 }
 0xbaf   : > { %v1983_v33 = vadd.f32 1e-05, %v1982_v31 }
 0xbb1   : > { %2876 = vrsqrt.f32 %v1983_v33  ;;  %vm1990_vm11 = vweird.f32 %v1983_v33 }
 0xbb7   : > { %v2877_v37 = vpop.eup %2876 }
 0xbb8   : > { %v1985_v38 = vmul.f32 %v2877_v37, %v1983_v33  ;;  %vm1991_vm10 = vweird.f32 %v2877_v37 }
 0xbb9   : > { %vm1992_vm12 = vmor %vm1990_vm11, %vm1991_vm10 }
 0xbba   : > { %v1986_v40 = vmul.f32 %v2877_v37, %v1985_v38 }
 0xbbc   : > { %v1987_v41 = vmul.f32 0.5, %v1986_v40 }
 0xbbe   : > { %v1988_v43 = vsub.f32 1.5, %v1987_v41 }
 0xbc0   : > { %v1989_v45 = vmul.f32 %v2877_v37, %v1988_v43 }
 0xbc2   : > { %v1993_v47 = vsel %vm1992_vm12, %v2877_v37, %v1989_v45 }
 0xbc3   : > { %v1994_v48 = vmul.f32 %v1993_v47, %v1978_v21 }
 0xbc5   : > { %v1998_v50 = vmul.f32 %v2834_v46, %v1994_v48 }
 0xbc7   : > { %v2002_v51 = vadd.f32 %v2835_v49, %v1998_v50 }
 0xbc9   : > { %v2003_v52 = vpack.c.bf16 %v2002_v51, %v2002_v51 }
 0xbcb   : > { %2063 = vmatmul.bf16.vlgmr.msrb.gmra.mxu2 %v2003_v52 }
 0xc4e   : > { %v2064_v56 = vpop.f32.mrf.mxu2 }
 0xc4f   : > { %v2065_v57 = vadd.f32 %v2836_v55, %v2064_v56 }
 0xc51   : > { %v2068_v59 = vmax.f32 %v2065_v57, 0.0 }
 0xc53   : > { %v2069_v60 = vpack.c.bf16 %v2068_v59, %v2068_v59 }
 0xc55   : > { %2129 = vmatmul.bf16.vlgmr.msra.gmra.mxu3 %v2069_v60 }
 0xc56   : > { %v2066_v61 = vpop.f32.mrf.mxu2 }
 0xcd8   : > { %v2130_v63 = vpop.f32.mrf.mxu3 }
 0xcd9   : > { %v2131_v0 = vadd.f32 %v2837_v62, %v2130_v63 }
 0xcdb   : > { %v2134_v1 = vadd.f32 %v2131_v0, %v2002_v51 }
 0xcdd   : > { %2135 = vadd.xlane.f32.xlu2 %v2134_v1 }
 0xce0   : > { %v2132_v4 = vpop.f32.mrf.mxu3 }
 0xd50   : > { %v2136_v6 = vpop.xlane.xlu2 %2135 }
 0xd51   : > { %v2137_v7 = vmul.f32 %v2136_v6, %v3406_v34 }
 0xd53   : > { %v2138_v8 = vsub.f32 %v2134_v1, %v2137_v7 }
 0xd55   : > { %v2139_v9 = vmul.f32 %v2138_v8, %v2138_v8 }
 0xd57   : > { %2140 = vadd.xlane.f32.xlu0 %v2139_v9 }
 0xdca   : > { %v2141_v44 = vpop.xlane.xlu0 %2140 }
 0xdcb   : > { %v2142_v58 = vmul.f32 %v2141_v44, %v3406_v34  ;;  %v2839_v34 = vld [vmem:[%s3559_s27] ss:$0 sm:$0xff] }
 0xdcd   : > { %v2143_v10 = vadd.f32 1e-05, %v2142_v58 }
 0xdcf   : > { %2878 = vrsqrt.f32 %v2143_v10  ;;  %vm2150_vm14 = vweird.f32 %v2143_v10 }
 0xdd5   : > { %v2879_v11 = vpop.eup %2878 }
 0xdd6   : > { %v2145_v12 = vmul.f32 %v2879_v11, %v2143_v10  ;;  %vm2151_vm13 = vweird.f32 %v2879_v11 }
 0xdd7   : > { %vm2152_vm15 = vmor %vm2150_vm14, %vm2151_vm13 }
 0xdd8   : > { %v2146_v13 = vmul.f32 %v2879_v11, %v2145_v12 }
 0xdda   : > { %v2147_v14 = vmul.f32 0.5, %v2146_v13 }
 0xddc   : > { %v2148_v5 = vsub.f32 1.5, %v2147_v14 }
 0xdde   : > { %v2149_v15 = vmul.f32 %v2879_v11, %v2148_v5 }
 0xde0   : > { %v2153_v17 = vsel %vm2152_vm15, %v2879_v11, %v2149_v15 }
 0xde1   : > { %v2154_v18 = vmul.f32 %v2153_v17, %v2138_v8 }
 0xde3   : > { %v2158_v2 = vmul.f32 %v2838_v16, %v2154_v18 }
 0xde5   : > { %v2162_v19 = vadd.f32 %v2839_v34, %v2158_v2 }
 0xde7   : > { %v2163_v20 = vpack.c.bf16 %v2162_v19, %v2162_v19 }
 0xde9   : > { %2164 = vst [vmem:[%s811_s16] sm:$0xf] %v2163_v20 }
 0xdea PF: > { %s3561_s17 = sld [smem:[#allocation17_spill]] }
 0xdf0   : > { %s36_s3 = sadd.s32 1, %s3561_s17  }
 0xdf1   : > { %p33_p7 = scmp.ge.s32.totalorder %s36_s3, 4  }
 0xdf3   :  { %35 = sbr.rel (!%p33_p7) target bundleno = 17 (0x11), region = 170 }
 0xdf8   :  { %2184 = vsyncpa [#allocation3], 1 }
 0xdf9   :  { %2186 = vsyncpa [#allocation3 + $0x1], 1 }
 0xdfa   :  { %2187 = vsyncpa [#allocation5], 1 }
 0xdfb   :  { %2188 = vsyncpa [#allocation8], 1 }
 0xdfc   :  { %2189 = vsyncpa [#allocation11], 1 }

// kernel: forward.7
= control target key start
LH: loop header
LB: loop body
LE: loop exit
PB: predicated region body
PF: predicated region fallthrough
CT: control target
= control target key end

     0   :  { %s4795_s6 = smov 1   ;;  %s4796_s10 = smov 2   ;;  %s5594_s0 = inlined_call_operand.smem [shape: u32[30], index: -1, kind: input, shape index: {}] }
   0x1   :  { %s4863_s5 = sld [smem:[%s5594_s0]]   ;;  %s4797_s14 = smov 3  }
   0x2   :  { %s4868_s9 = sld [smem:[%s5594_s0 + %s4795_s6]]   ;;  %s4798_s18 = smov 4  }
   0x3   :  { %s4873_s13 = sld [smem:[%s5594_s0 + %s4796_s10]]   ;;  %s4799_s22 = smov 5  }
   0x4   :  { %s4878_s17 = sld [smem:[%s5594_s0 + %s4797_s14]]   ;;  %s4800_s26 = smov 6  }
   0x5   :  { %s4883_s21 = sld [smem:[%s5594_s0 + %s4798_s18]]   ;;  %s4801_s30 = smov 7  }
   0x6   :  { %s4888_s25 = sld [smem:[%s5594_s0 + %s4799_s22]]   ;;  %s4802_s4 = smov 8  }
   0x7   :  { %5621 = sst [smem:[#allocation48_spill]] %s4863_s5  ;;  %s4803_s10 = smov 9  }
   0x8   :  { %5622 = sst [smem:[#allocation49_spill]] %s4868_s9  ;;  %s4804_s15 = smov 10  }
   0x9   :  { %5623 = sst [smem:[#allocation50_spill]] %s4873_s13  ;;  %s4805_s20 = smov 11  }
   0xa   :  { %5624 = sst [smem:[#allocation51_spill]] %s4878_s17  ;;  %s4807_s1 = smov 13  }
   0xb   :  { %5625 = sst [smem:[#allocation52_spill]] %s4883_s21  ;;  %s4808_s7 = smov 14  }
   0xc   :  { %5626 = sst [smem:[#allocation53_spill]] %s4888_s25  ;;  %s4810_s22 = smov 16  }
   0xd   :  { %s4893_s29 = sld [smem:[%s5594_s0 + %s4800_s26]]   ;;  %s4806_s26 = smov 12  }
   0xe   :  { %s4898_s3 = sld [smem:[%s5594_s0 + %s4801_s30]]   ;;  %s4811_s28 = smov 17  }
   0xf   :  { %s4903_s8 = sld [smem:[%s5594_s0 + %s4802_s4]]  }
  0x10   :  { %s4908_s14 = sld [smem:[%s5594_s0 + %s4803_s10]]  }
  0x11   :  { %s4913_s19 = sld [smem:[%s5594_s0 + %s4804_s15]]   ;;  %s4809_s15 = smov 15  }
  0x12   :  { %s4918_s24 = sld [smem:[%s5594_s0 + %s4805_s20]]  }
  0x13   :  { %s4923_s30 = sld [smem:[%s5594_s0 + %s4806_s26]]  }
  0x14   :  { %5627 = sst [smem:[#allocation54_spill]] %s4898_s3 }
  0x15   :  { %5628 = sst [smem:[#allocation55_spill]] %s4903_s8 }
  0x16   :  { %5629 = sst [smem:[#allocation56_spill]] %s4908_s14 }
  0x17   :  { %s4928_s6 = sld [smem:[%s5594_s0 + %s4807_s1]]   ;;  %s4823_s1 = smov 29  }
  0x18   :  { %5630 = sst [smem:[#allocation57_spill]] %s4918_s24 }
  0x19   :  { %s4933_s12 = sld [smem:[%s5594_s0 + %s4808_s7]]   ;;  %s4812_s7 = smov 18  }
  0x1a   :  { %s4938_s20 = sld [smem:[%s5594_s0 + %s4809_s15]]   ;;  %s4813_s15 = smov 19  }
  0x1b   :  { %s4943_s27 = sld [smem:[%s5594_s0 + %s4810_s22]]   ;;  %s4814_s22 = smov 20  }
  0x1c   :  { %s4948_s4 = sld [smem:[%s5594_s0 + %s4811_s28]]   ;;  %s4815_s28 = smov 21  }
  0x1d   :  { %5631 = sst [smem:[#allocation58_spill]] %s4928_s6 }
  0x1e   :  { %s4953_s13 = sld [smem:[%s5594_s0 + %s4812_s7]]   ;;  %s4816_s7 = smov 22  }
  0x1f   :  { %5632 = sst [smem:[#allocation59_spill]] %s4933_s12 }
  0x20   :  { %s4958_s17 = sld [smem:[%s5594_s0 + %s4813_s15]]   ;;  %s4817_s15 = smov 23  }
  0x21   :  { %s4963_s24 = sld [smem:[%s5594_s0 + %s4814_s22]]   ;;  %s4818_s22 = smov 24  }
  0x22   :  { %5633 = sst [smem:[#allocation60_spill]] %s4948_s4 }
  0x23   :  { %s4968_s9 = sld [smem:[%s5594_s0 + %s4815_s28]]   ;;  %s4819_s28 = smov 25  }
  0x24   :  { %5634 = sst [smem:[#allocation61_spill]] %s4953_s13 }
  0x25   :  { %s4973_s25 = sld [smem:[%s5594_s0 + %s4816_s7]]   ;;  %s4820_s7 = smov 26  }
  0x26   :  { %5635 = sst [smem:[#allocation62_spill]] %s4958_s17 }
  0x27   :  { %s4978_s5 = sld [smem:[%s5594_s0 + %s4817_s15]]   ;;  %s4821_s15 = smov 27  }
  0x28   :  { %s4983_s21 = sld [smem:[%s5594_s0 + %s4818_s22]]   ;;  %s4822_s22 = smov 28  }
  0x29   :  { %5636 = sst [smem:[#allocation63_spill]] %s4968_s9 }
  0x2a   :  { %s4988_s9 = sld [smem:[%s5594_s0 + %s4819_s28]]  }
  0x2b   :  { %s4993_s17 = sld [smem:[%s5594_s0 + %s4820_s7]]  }
  0x2c   :  { %s3227_s4 = sld [smem:[%s5594_s0 + %s4822_s22]]  }
  0x2d   :  { %5637 = sst [smem:[#allocation64_spill]] %s4978_s5 }
  0x2e   :  { %s4998_s5 = sld [smem:[%s5594_s0 + %s4821_s15]]  }
  0x30   :  { %5638 = sst [smem:[#allocation65_spill]] %s4988_s9 }
  0x31   :  { %s5006_s9 = sld [smem:[%s5594_s0 + %s4823_s1]]  }
  0x32   :  { %64 = sst [smem:[#allocation2]] %s3227_s4 }
  0x33   :  { %65 = vsyncpa [#allocation4], 0 }
  0x34   :  { %66 = vsyncpa [#allocation7], 0 }
  0x35   :  { %67 = vsyncpa [#allocation10], 0 }
  0x36   :  { %68 = vsyncpa [#allocation13], 0 }
  0x37   :  { %69 = vsyncpa [#allocation16], 0 }
  0x38   :  { %70 = vsyncpa [#allocation19], 0 }
  0x39   :  { %71 = vsyncpa [#allocation22], 0 }
  0x3a   :  { %72 = vsyncpa [#allocation25], 0 }
  0x3b   :  { %73 = vsyncpa [#allocation28], 0 }
  0x3c   :  { %74 = vsyncpa [#allocation31], 0 }
  0x3d   :  { %75 = vsyncpa [#allocation34], 0 }
  0x3e   :  { %76 = vsyncpa [#allocation5], 0 }
  0x3f   :  { %78 = vsyncpa [#allocation5 + $0x1], 0  ;;  %s5008_s7 = smov 0   ;;  %s5010_s10 = smov 0  }
  0x40   :  { %s5012_s0 = smov 0   ;;  %s5014_s4 = smov 0  }
  0x41 LB: > { %s5639_s13 = sld [smem:[#allocation61_spill]]  ;;  %s5029_s11 = sadd.s32 4294967295, %s4793_s4   ;;  %s4785_s10 = sphi %s5010_s10, %s5681_s10   ;;  %s4781_s7 = sphi %s5008_s7, %s5680_s7   ;;  %s4793_s4 = sphi %s5014_s4, %s5677_s4   ;;  %s4789_s0 = sphi %s5012_s0, %s5679_s0  }
  0x42   : > { %s5640_s6 = sld [smem:[#allocation58_spill]]  ;;  %s3230_s15 = sadd.s32 4294967294, %s4793_s4  }
  0x43   : > { %s5641_s8 = sld [smem:[#allocation55_spill]]  ;;  %s5033_s16 = sadd.s32 1, %s4793_s4  }
  0x44   : > { %s5642_s12 = sld [smem:[#allocation59_spill]]  ;;  %s720_s18 = sadd.s32 1, %s4789_s0 }
  0x45   : > { %s5643_s14 = sld [smem:[#allocation56_spill]]  ;;  %s717_s22 = ssub.s32 %s4793_s4, %s5033_s16 }
  0x46   : > { %s5644_s3 = sld [smem:[#allocation54_spill]]  ;;  %p730_p0 = scmp.ne.s32.totalorder %s4789_s0, %s4785_s10 }
  0x47   : > { %5645 = sst [smem:[#allocation66_spill]] %s4781_s7  ;;  %p718_p1 = scmp.eq.s32.totalorder %s717_s22, 0 }
  0x48   : > { %5646 = sst [smem:[#allocation67_spill]] %s4789_s0  ;;  %p731_p2 = scmp.eq.s32.totalorder %s5029_s11, 1 }
  0x49   : > { %5647 = sst [smem:[#allocation68_spill]] %s4793_s4  ;;  %p736_p3 = scmp.ne.s32.totalorder %s4785_s10, %s4781_s7 }
  0x4a   : > { %5648 = sst [smem:[#allocation69_spill]] %s5033_s16  ;;  %p737_p4 = scmp.eq.s32.totalorder %s3230_s15, 1 }
  0x4b   : > { %s5044_s23 = scalar_select %p718_p1, %s4789_s0, %s720_s18  }
  0x4c   : > { %p5046_p5 = por %p731_p2, %p730_p0  ;;  %p5050_p6 = por %p737_p4, %p736_p3 }
  0x4d   : > { %5649 = sst [smem:[#allocation70_spill]] %s5044_s23  ;;  %p3231_p7 = scmp.ge.s32.totalorder %s4793_s4, 1 }
  0x4e   : > { %s5650_s26 = scalar_select %p5046_p5, 1, 0 }
  0x4f   : > { %s5652_s1 = scalar_select %p5050_p6, 1, 0 }
  0x50   : > { %5651 = sst [smem:[#allocation71_spill]] %s5650_s26  ;;  %p744_p8 = scmp.lt.s32.totalorder %s4793_s4, 3 }
  0x51   : > { %5653 = sst [smem:[#allocation72_spill]] %s5652_s1  ;;  %p3890_p9 = scmp.eq.s32.totalorder %s5029_s11, 0 }
  0x52   : > { %p5057_p10 = pnand %p3231_p7, %p744_p8  ;;  %s776_s2 = sshll.u32 %s5644_s3, 4  ;;  %s777_s2 = int_to_ptr.hbm [resolvable:$true] %s776_s2 }
  0x53   : > { %s4824_s15 = smov [#allocation6]   ;;  %s802_s22 = sshll.u32 %s5643_s14, 4  ;;  %s5071_s22 = int_to_ptr.hbm [resolvable:$true] %s802_s22 }
  0x54   : > { %p3825_p11 = pneg %p5057_p10  ;;  %s778_s18 = sshll.u32 %s4824_s15, 4  ;;  %s779_s18 = int_to_ptr.vmem [resolvable:$true] %s778_s18 }
  0x55   : > { %s4825_s0 = smov [#allocation9]   ;;  %s4087_s1 = sshra.s32 %s777_s2, 4  ;;  %s4088_s1 = int_to_ptr.hbm [resolvable:$true] %s4087_s1 }
  0x56   : > { %p5067_p12 = pnand %p3890_p9, %p3825_p11  ;;  %s5073_s16 = sshll.u32 %s4825_s0, 4  ;;  %s805_s16 = int_to_ptr.vmem [resolvable:$true] %s5073_s16 }
  0x57   : > { %s4089_s7 = scalar_lea.hbm %s4088_s1, 1  ;;  %s4094_s4 = scalar_lea.hbm %s5644_s3, 1 }
  0x58   : > { %p4090_p13 = scmp.ne.s32.totalorder %s4088_s1, %s4089_s7  ;;  %p5077_p0 = pneg %p5067_p12 }
  0x59   : > { %p4095_p3 = scmp.lt.s32.totalorder %s4088_s1, %s5644_s3  ;;  %p4096_p4 = scmp.lt.s32.totalorder %s4094_s4, %s4089_s7 }
  0x5a   : > { %p4092_p1 = pnand %p5077_p0, %p4090_p13 }
  0x5b   : > { %p4097_p7 = por %p4096_p4, %p4095_p3 }
  0x5c   : > { %p4093_p2 = pneg %p4092_p1 }
  0x5e   : > { %p4098_p8 = pnand %p4097_p7, %p4093_p2 }
  0x60   : > { %4101 = shalt.err (!%p4098_p8)
}
  0x61   : > { %3831 = dma.hbm_to_vmem [thread:$0]  (!%p5067_p12), %s777_s2, 16, %s779_s18, [#allocation7]  }
  0x62   : > { %s4117_s0 = sshra.s32 %s5071_s22, 4  ;;  %s4124_s7 = scalar_lea.hbm %s5643_s14, 1  ;;  %s4118_s0 = int_to_ptr.hbm [resolvable:$true] %s4117_s0 }
  0x63   : > { %s4119_s26 = scalar_lea.hbm %s4118_s0, 1  ;;  %p4125_p3 = scmp.lt.s32.totalorder %s4118_s0, %s5643_s14 }
  0x64   : > { %p4120_p11 = scmp.ne.s32.totalorder %s4118_s0, %s4119_s26  ;;  %p4126_p2 = scmp.lt.s32.totalorder %s4124_s7, %s4119_s26 }
  0x66   : > { %p4122_p13 = pnand %p4120_p11, %p5077_p0  ;;  %p4127_p4 = por %p4126_p2, %p4125_p3 }
  0x68   : > { %p4123_p1 = pneg %p4122_p13 }
  0x6a   : > { %p4128_p7 = pnand %p4127_p4, %p4123_p1 }
  0x6c   : > { %4131 = shalt.err (!%p4128_p7)
}
  0x6d   : > { %3837 = dma.hbm_to_vmem [thread:$0]  (!%p5067_p12), %s5071_s22, 16, %s805_s16, [#allocation10]  }
  0x6e   : > { %s830_s4 = sshll.u32 %s4923_s30, 4  ;;  %s4826_s1 = smov [#allocation12]   ;;  %s831_s4 = int_to_ptr.hbm [resolvable:$true] %s830_s4 }
  0x6f   : > { %s832_s2 = sshll.u32 %s4826_s1, 4  ;;  %s857_s18 = sshll.u32 %s5642_s12, 4  ;;  %s833_s2 = int_to_ptr.vmem [resolvable:$true] %s832_s2  ;;  %s858_s18 = int_to_ptr.hbm [resolvable:$true] %s857_s18 }
  0x70   : > { %s4147_s0 = sshra.s32 %s831_s4, 4  ;;  %s4154_s7 = scalar_lea.hbm %s4923_s30, 64  ;;  %s4148_s0 = int_to_ptr.hbm [resolvable:$true] %s4147_s0 }
  0x71   : > { %s4149_s26 = scalar_lea.hbm %s4148_s0, 64  ;;  %p4155_p1 = scmp.lt.s32.totalorder %s4148_s0, %s4923_s30 }
  0x72   : > { %p4150_p8 = scmp.ne.s32.totalorder %s4148_s0, %s4149_s26  ;;  %p4156_p3 = scmp.lt.s32.totalorder %s4154_s7, %s4149_s26 }
  0x74   : > { %p4152_p11 = pnand %p4150_p8, %p5077_p0  ;;  %p4157_p2 = por %p4156_p3, %p4155_p1 }
  0x76   : > { %p4153_p13 = pneg %p4152_p11 }
  0x78   : > { %p4158_p4 = pnand %p4157_p2, %p4153_p13 }
  0x7a   : > { %4161 = shalt.err (!%p4158_p4)
}
  0x7b   : > { %s5611_s16 = smov 64   ;;  %s5613_s22 = smov 4  }
  0x7c   : > { %3843 = dma.hbm_to_vmem [thread:$0]  (!%p5067_p12), %s831_s4, 1024, %s833_s2, [#allocation13], %s5611_s16, %s5611_s16, %s5613_s22  }
  0x7d   : > { %s4829_s1 = smov [#allocation15]   ;;  %s881_s0 = sshll.u32 %s4943_s27, 4  ;;  %s5108_s0 = int_to_ptr.hbm [resolvable:$true] %s881_s0 }
  0x7e   : > { %s859_s3 = sshll.u32 %s4829_s1, 4  ;;  %s4177_s26 = sshra.s32 %s858_s18, 4  ;;  %s860_s3 = int_to_ptr.vmem [resolvable:$true] %s859_s3  ;;  %s4178_s26 = int_to_ptr.hbm [resolvable:$true] %s4177_s26 }
  0x7f   : > { %s4179_s7 = scalar_lea.hbm %s4178_s26, 1  ;;  %s4184_s14 = scalar_lea.hbm %s5642_s12, 1 }
  0x80   : > { %p4180_p7 = scmp.ne.s32.totalorder %s4178_s26, %s4179_s7  ;;  %p4185_p13 = scmp.lt.s32.totalorder %s4178_s26, %s5642_s12 }
  0x81   : > { %p4186_p1 = scmp.lt.s32.totalorder %s4184_s14, %s4179_s7 }
  0x82   : > { %p4182_p8 = pnand %p4180_p7, %p5077_p0 }
  0x83   : > { %p4187_p3 = por %p4186_p1, %p4185_p13 }
  0x84   : > { %p4183_p11 = pneg %p4182_p8 }
  0x86   : > { %p4188_p2 = pnand %p4187_p3, %p4183_p11 }
  0x88   : > { %4191 = shalt.err (!%p4188_p2)
}
  0x89   : > { %3849 = dma.hbm_to_vmem [thread:$0]  (!%p5067_p12), %s858_s18, 16, %s860_s3, [#allocation16]  }
  0x8a   : > { %s905_s4 = sshll.u32 %s5639_s13, 4  ;;  %s4830_s2 = smov [#allocation18]   ;;  %s5117_s4 = int_to_ptr.hbm [resolvable:$true] %s905_s4 }
  0x8b   : > { %s883_s1 = sshll.u32 %s4830_s2, 4  ;;  %s4207_s16 = sshra.s32 %s5108_s0, 4  ;;  %s884_s1 = int_to_ptr.vmem [resolvable:$true] %s883_s1  ;;  %s4208_s16 = int_to_ptr.hbm [resolvable:$true] %s4207_s16 }
  0x8c   : > { %s4209_s14 = scalar_lea.hbm %s4208_s16, 1  ;;  %s4214_s26 = scalar_lea.hbm %s4943_s27, 1 }
  0x8d   : > { %p4210_p4 = scmp.ne.s32.totalorder %s4208_s16, %s4209_s14  ;;  %p4215_p11 = scmp.lt.s32.totalorder %s4208_s16, %s4943_s27 }
  0x8e   : > { %p4216_p13 = scmp.lt.s32.totalorder %s4214_s26, %s4209_s14 }
  0x8f   : > { %p4212_p7 = pnand %p4210_p4, %p5077_p0 }
  0x90   : > { %p4217_p1 = por %p4216_p13, %p4215_p11 }
  0x91   : > { %p4213_p8 = pneg %p4212_p7 }
  0x93   : > { %p4218_p3 = pnand %p4217_p1, %p4213_p8 }
  0x95   : > { %4221 = shalt.err (!%p4218_p3)
}
  0x96   : > { %3855 = dma.hbm_to_vmem [thread:$0]  (!%p5067_p12), %s5108_s0, 16, %s884_s1, [#allocation19]  }
  0x97   : > { %s4831_s3 = smov [#allocation21]   ;;  %s928_s7 = sshll.u32 %s4963_s24, 4  ;;  %s5128_s7 = int_to_ptr.hbm [resolvable:$true] %s928_s7 }
  0x98   : > { %s907_s18 = sshll.u32 %s4831_s3, 4  ;;  %s4237_s16 = sshra.s32 %s5117_s4, 4  ;;  %s908_s18 = int_to_ptr.vmem [resolvable:$true] %s907_s18  ;;  %s4238_s16 = int_to_ptr.hbm [resolvable:$true] %s4237_s16 }
  0x99   : > { %s4239_s2 = scalar_lea.hbm %s4238_s16, 1  ;;  %s4244_s14 = scalar_lea.hbm %s5639_s13, 1 }
  0x9a   : > { %p4240_p2 = scmp.ne.s32.totalorder %s4238_s16, %s4239_s2  ;;  %p4245_p8 = scmp.lt.s32.totalorder %s4238_s16, %s5639_s13 }
  0x9b   : > { %p4246_p11 = scmp.lt.s32.totalorder %s4244_s14, %s4239_s2 }
  0x9c   : > { %p4242_p4 = pnand %p4240_p2, %p5077_p0 }
  0x9d   : > { %p4247_p13 = por %p4246_p11, %p4245_p8 }
  0x9e   : > { %p4243_p7 = pneg %p4242_p4 }
  0xa0   : > { %p4248_p1 = pnand %p4247_p13, %p4243_p7 }
  0xa2   : > { %4251 = shalt.err (!%p4248_p1)
}
  0xa3   : > { %3861 = dma.hbm_to_vmem [thread:$0]  (!%p5067_p12), %s5117_s4, 16, %s908_s18, [#allocation22]  }
  0xa4   : > { %s954_s0 = sshll.u32 %s4973_s25, 4  ;;  %s4832_s1 = smov [#allocation24]   ;;  %s5139_s0 = int_to_ptr.hbm [resolvable:$true] %s954_s0 }
  0xa5   : > { %s930_s26 = sshll.u32 %s4832_s1, 4  ;;  %s4267_s3 = sshra.s32 %s5128_s7, 4  ;;  %s931_s26 = int_to_ptr.vmem [resolvable:$true] %s930_s26  ;;  %s4268_s3 = int_to_ptr.hbm [resolvable:$true] %s4267_s3 }
  0xa6   : > { %s4269_s16 = scalar_lea.hbm %s4268_s3, 64  ;;  %s4274_s2 = scalar_lea.hbm %s4963_s24, 64 }
  0xa7   : > { %p4270_p3 = scmp.ne.s32.totalorder %s4268_s3, %s4269_s16  ;;  %p4275_p7 = scmp.lt.s32.totalorder %s4268_s3, %s4963_s24 }
  0xa8   : > { %p4276_p8 = scmp.lt.s32.totalorder %s4274_s2, %s4269_s16 }
  0xa9   : > { %p4272_p2 = pnand %p4270_p3, %p5077_p0 }
  0xaa   : > { %p4277_p11 = por %p4276_p8, %p4275_p7 }
  0xab   : > { %p4273_p4 = pneg %p4272_p2 }
  0xad   : > { %p4278_p13 = pnand %p4277_p11, %p4273_p4 }
  0xaf   : > { %4281 = shalt.err (!%p4278_p13)
}
  0xb0   : > { %s5657_s4 = smov 64   ;;  %s4833_s18 = smov [#allocation27]  }
  0xb1   : > { %3867 = dma.hbm_to_vmem [thread:$0]  (!%p5067_p12), %s5128_s7, 1024, %s931_s26, [#allocation25], %s5657_s4, %s5657_s4, %s5613_s22  }
  0xb2   : > { %s956_s14 = sshll.u32 %s4833_s18, 4  ;;  %s4297_s1 = sshra.s32 %s5139_s0, 4  ;;  %s957_s14 = int_to_ptr.vmem [resolvable:$true] %s956_s14  ;;  %s4298_s1 = int_to_ptr.hbm [resolvable:$true] %s4297_s1 }
  0xb3   : > { %s4299_s3 = scalar_lea.hbm %s4298_s1, 64  ;;  %s4304_s16 = scalar_lea.hbm %s4973_s25, 64 }
  0xb4   : > { %p4300_p1 = scmp.ne.s32.totalorder %s4298_s1, %s4299_s3  ;;  %p4305_p4 = scmp.lt.s32.totalorder %s4298_s1, %s4973_s25 }
  0xb5   : > { %p4306_p7 = scmp.lt.s32.totalorder %s4304_s16, %s4299_s3 }
  0xb6   : > { %p4302_p3 = pnand %p4300_p1, %p5077_p0 }
  0xb7   : > { %p4307_p8 = por %p4306_p7, %p4305_p4 }
  0xb8   : > { %p4303_p2 = pneg %p4302_p3 }
  0xba   : > { %p4308_p11 = pnand %p4307_p8, %p4303_p2 }
  0xbc   : > { %4311 = shalt.err (!%p4308_p11)
}
  0xbd   : > { %3873 = dma.hbm_to_vmem [thread:$0]  (!%p5067_p12), %s5139_s0, 1024, %s957_s14, [#allocation28], %s5657_s4, %s5657_s4, %s5613_s22  }
  0xbe   : > { %s980_s7 = sshll.u32 %s4983_s21, 4  ;;  %s4834_s26 = smov [#allocation30]   ;;  %s981_s7 = int_to_ptr.hbm [resolvable:$true] %s980_s7 }
  0xbf   : > { %s982_s2 = sshll.u32 %s4834_s26, 4  ;;  %s761_s18 = sshll.u32 %s4893_s29, 4  ;;  %s983_s2 = int_to_ptr.vmem [resolvable:$true] %s982_s2  ;;  %s762_s18 = int_to_ptr.hbm [resolvable:$true] %s761_s18 }
  0xc0   : > { %s4327_s1 = sshra.s32 %s981_s7, 4  ;;  %s4334_s16 = scalar_lea.hbm %s4983_s21, 128  ;;  %s4328_s1 = int_to_ptr.hbm [resolvable:$true] %s4327_s1 }
  0xc1   : > { %s4329_s3 = scalar_lea.hbm %s4328_s1, 128  ;;  %p4335_p2 = scmp.lt.s32.totalorder %s4328_s1, %s4983_s21 }
  0xc2   : > { %p4330_p13 = scmp.ne.s32.totalorder %s4328_s1, %s4329_s3  ;;  %p4336_p4 = scmp.lt.s32.totalorder %s4334_s16, %s4329_s3 }
  0xc4   : > { %p4332_p1 = pnand %p4330_p13, %p5077_p0  ;;  %p4337_p7 = por %p4336_p4, %p4335_p2 }
  0xc6   : > { %p4333_p3 = pneg %p4332_p1 }
  0xc8   : > { %p4338_p8 = pnand %p4337_p7, %p4333_p3 }
  0xca   : > { %4341 = shalt.err (!%p4338_p8)
}
  0xcb   : > { %s5616_s0 = smov 128   ;;  %s4836_s14 = smov 8  }
  0xcc   : > { %3879 = dma.hbm_to_vmem [thread:$0]  (!%p5067_p12), %s981_s7, 2048, %s983_s2, [#allocation31], %s5616_s0, %s5616_s0, %s4836_s14  }
  0xcd   : > { %s4837_s26 = smov [#allocation3]   ;;  %s787_s1 = sshll.u32 %s5641_s8, 4  ;;  %s5175_s1 = int_to_ptr.hbm [resolvable:$true] %s787_s1 }
  0xce   : > { %s763_s22 = sshll.u32 %s4837_s26, 4  ;;  %s4357_s3 = sshra.s32 %s762_s18, 4  ;;  %s764_s22 = int_to_ptr.vmem [resolvable:$true] %s763_s22  ;;  %s4358_s3 = int_to_ptr.hbm [resolvable:$true] %s4357_s3 }
  0xcf   : > { %s4359_s16 = scalar_lea.hbm %s4358_s3, 64  ;;  %s4364_s12 = scalar_lea.hbm %s4893_s29, 64 }
  0xd0   : > { %p4360_p11 = scmp.ne.s32.totalorder %s4358_s3, %s4359_s16  ;;  %p4365_p3 = scmp.lt.s32.totalorder %s4358_s3, %s4893_s29 }
  0xd1   : > { %p4366_p2 = scmp.lt.s32.totalorder %s4364_s12, %s4359_s16 }
  0xd2   : > { %p4362_p13 = pnand %p4360_p11, %p5077_p0 }
  0xd3   : > { %p4367_p4 = por %p4366_p2, %p4365_p3 }
  0xd4   : > { %p4363_p1 = pneg %p4362_p13 }
  0xd6   : > { %p4368_p7 = pnand %p4367_p4, %p4363_p1 }
  0xd8   : > { %4371 = shalt.err (!%p4368_p7)
}
  0xd9   : > { %s5658_s7 = smov 4   ;;  %s813_s2 = sshll.u32 %s4913_s19, 4  ;;  %s5187_s2 = int_to_ptr.hbm [resolvable:$true] %s813_s2 }
  0xda   : > { %3828 = dma.hbm_to_vmem [thread:$0]  (!%p5067_p12), %s762_s18, 1024, %s764_s22, [#allocation4], %s5657_s4, %s5657_s4, %s5658_s7  }
  0xdb   : > { %s4838_s26 = smov [#allocation8]   ;;  %s4387_s12 = sshra.s32 %s5175_s1, 4  ;;  %s4388_s12 = int_to_ptr.hbm [resolvable:$true] %s4387_s12 }
  0xdc   : > { %s789_s0 = sshll.u32 %s4838_s26, 4  ;;  %s4389_s3 = scalar_lea.hbm %s4388_s12, 64  ;;  %s790_s0 = int_to_ptr.vmem [resolvable:$true] %s789_s0 }
  0xdd   : > { %p4390_p8 = scmp.ne.s32.totalorder %s4388_s12, %s4389_s3  ;;  %s4394_s16 = scalar_lea.hbm %s5641_s8, 64 }
  0xde   : > { %p4395_p1 = scmp.lt.s32.totalorder %s4388_s12, %s5641_s8  ;;  %p4396_p3 = scmp.lt.s32.totalorder %s4394_s16, %s4389_s3 }
  0xdf   : > { %p4392_p11 = pnand %p4390_p8, %p5077_p0 }
  0xe0   : > { %p4397_p2 = por %p4396_p3, %p4395_p1 }
  0xe1   : > { %p4393_p13 = pneg %p4392_p11 }
  0xe3   : > { %p4398_p4 = pnand %p4397_p2, %p4393_p13 }
  0xe5   : > { %4401 = shalt.err (!%p4398_p4)
}
  0xe6   : > { %3834 = dma.hbm_to_vmem [thread:$0]  (!%p5067_p12), %s5175_s1, 1024, %s790_s0, [#allocation7], %s5657_s4, %s5657_s4, %s5658_s7  }
  0xe7   : > { %s4839_s22 = smov [#allocation11]   ;;  %s845_s26 = sshll.u32 %s5640_s6, 4  ;;  %s5201_s26 = int_to_ptr.hbm [resolvable:$true] %s845_s26 }
  0xe8   : > { %s815_s18 = sshll.u32 %s4839_s22, 4  ;;  %s4417_s12 = sshra.s32 %s5187_s2, 4  ;;  %s816_s18 = int_to_ptr.vmem [resolvable:$true] %s815_s18  ;;  %s4418_s12 = int_to_ptr.hbm [resolvable:$true] %s4417_s12 }
  0xe9   : > { %s4419_s3 = scalar_lea.hbm %s4418_s12, 128  ;;  %s4424_s16 = scalar_lea.hbm %s4913_s19, 128 }
  0xea   : > { %p4420_p7 = scmp.ne.s32.totalorder %s4418_s12, %s4419_s3  ;;  %p4425_p13 = scmp.lt.s32.totalorder %s4418_s12, %s4913_s19 }
  0xeb   : > { %p4426_p1 = scmp.lt.s32.totalorder %s4424_s16, %s4419_s3 }
  0xec   : > { %p4422_p8 = pnand %p4420_p7, %p5077_p0 }
  0xed   : > { %p4427_p3 = por %p4426_p1, %p4425_p13 }
  0xee   : > { %p4423_p11 = pneg %p4422_p8 }
  0xf0   : > { %p4428_p2 = pnand %p4427_p3, %p4423_p11 }
  0xf2   : > { %4431 = shalt.err (!%p4428_p2)
}
  0xf3   : > { %s5659_s0 = smov 128   ;;  %s869_s1 = sshll.u32 %s4938_s20, 4  ;;  %s5215_s1 = int_to_ptr.hbm [resolvable:$true] %s869_s1 }
  0xf4   : > { %3840 = dma.hbm_to_vmem [thread:$0]  (!%p5067_p12), %s5187_s2, 2048, %s816_s18, [#allocation10], %s5659_s0, %s5659_s0, %s4836_s14  }
  0xf5   : > { %s4840_s22 = smov [#allocation14]   ;;  %s4447_s12 = sshra.s32 %s5201_s26, 4  ;;  %s4448_s12 = int_to_ptr.hbm [resolvable:$true] %s4447_s12 }
  0xf6   : > { %s847_s8 = sshll.u32 %s4840_s22, 4  ;;  %s4449_s3 = scalar_lea.hbm %s4448_s12, 1  ;;  %s848_s8 = int_to_ptr.vmem [resolvable:$true] %s847_s8 }
  0xf7   : > { %p4450_p4 = scmp.ne.s32.totalorder %s4448_s12, %s4449_s3  ;;  %s4454_s16 = scalar_lea.hbm %s5640_s6, 1 }
  0xf8   : > { %p4455_p11 = scmp.lt.s32.totalorder %s4448_s12, %s5640_s6  ;;  %p4456_p13 = scmp.lt.s32.totalorder %s4454_s16, %s4449_s3 }
  0xf9   : > { %p4452_p7 = pnand %p4450_p4, %p5077_p0 }
  0xfa   : > { %p4457_p1 = por %p4456_p13, %p4455_p11 }
  0xfb   : > { %p4453_p8 = pneg %p4452_p7 }
  0xfd   : > { %p4458_p3 = pnand %p4457_p1, %p4453_p8 }
  0xff   : > { %4461 = shalt.err (!%p4458_p3)
}
 0x100   : > { %s5660_s14 = sld [smem:[#allocation60_spill]]  ;;  %s4841_s2 = smov [#allocation17]  }
 0x101   : > { %3846 = dma.hbm_to_vmem [thread:$0]  (!%p5067_p12), %s5201_s26, 16, %s848_s8, [#allocation13]  }
 0x102   : > { %s871_s18 = sshll.u32 %s4841_s2, 4  ;;  %s4477_s22 = sshra.s32 %s5215_s1, 4  ;;  %s872_s18 = int_to_ptr.vmem [resolvable:$true] %s871_s18  ;;  %s4478_s22 = int_to_ptr.hbm [resolvable:$true] %s4477_s22 }
 0x103   : > { %s4479_s12 = scalar_lea.hbm %s4478_s22, 1  ;;  %s4484_s3 = scalar_lea.hbm %s4938_s20, 1 }
 0x104   : > { %p4480_p2 = scmp.ne.s32.totalorder %s4478_s22, %s4479_s12  ;;  %p4485_p8 = scmp.lt.s32.totalorder %s4478_s22, %s4938_s20 }
 0x105   : > { %p4486_p11 = scmp.lt.s32.totalorder %s4484_s3, %s4479_s12 }
 0x106   : > { %s893_s0 = sshll.u32 %s5660_s14, 4  ;;  %p4482_p4 = pnand %p4480_p2, %p5077_p0  ;;  %s5226_s0 = int_to_ptr.hbm [resolvable:$true] %s893_s0 }
 0x107   : > { %p4487_p13 = por %p4486_p11, %p4485_p8 }
 0x108   : > { %p4483_p7 = pneg %p4482_p4 }
 0x10a   : > { %p4488_p1 = pnand %p4487_p13, %p4483_p7 }
 0x10c   : > { %4491 = shalt.err (!%p4488_p1)
}
 0x10d   : > { %s5661_s8 = sld [smem:[#allocation62_spill]]  ;;  %s4842_s16 = smov [#allocation20]  }
 0x10e   : > { %3852 = dma.hbm_to_vmem [thread:$0]  (!%p5067_p12), %s5215_s1, 16, %s872_s18, [#allocation16]  }
 0x10f   : > { %s895_s2 = sshll.u32 %s4842_s16, 4  ;;  %s4507_s22 = sshra.s32 %s5226_s0, 4  ;;  %s896_s2 = int_to_ptr.vmem [resolvable:$true] %s895_s2  ;;  %s4508_s22 = int_to_ptr.hbm [resolvable:$true] %s4507_s22 }
 0x110   : > { %s4509_s12 = scalar_lea.hbm %s4508_s22, 1  ;;  %s4514_s3 = scalar_lea.hbm %s5660_s14, 1 }
 0x111   : > { %p4510_p3 = scmp.ne.s32.totalorder %s4508_s22, %s4509_s12  ;;  %p4515_p7 = scmp.lt.s32.totalorder %s4508_s22, %s5660_s14 }
 0x112   : > { %p4516_p8 = scmp.lt.s32.totalorder %s4514_s3, %s4509_s12 }
 0x113   : > { %s917_s26 = sshll.u32 %s5661_s8, 4  ;;  %p4512_p2 = pnand %p4510_p3, %p5077_p0  ;;  %s5237_s26 = int_to_ptr.hbm [resolvable:$true] %s917_s26 }
 0x114   : > { %p4517_p11 = por %p4516_p8, %p4515_p7 }
 0x115   : > { %p4513_p4 = pneg %p4512_p2 }
 0x117   : > { %p4518_p13 = pnand %p4517_p11, %p4513_p4 }
 0x119   : > { %4521 = shalt.err (!%p4518_p13)
}
 0x11a   : > { %s5662_s1 = sld [smem:[#allocation63_spill]]  ;;  %s4843_s18 = smov [#allocation23]  }
 0x11b   : > { %3858 = dma.hbm_to_vmem [thread:$0]  (!%p5067_p12), %s5226_s0, 16, %s896_s2, [#allocation19]  }
 0x11c   : > { %s919_s16 = sshll.u32 %s4843_s18, 4  ;;  %s4537_s22 = sshra.s32 %s5237_s26, 4  ;;  %s920_s16 = int_to_ptr.vmem [resolvable:$true] %s919_s16  ;;  %s4538_s22 = int_to_ptr.hbm [resolvable:$true] %s4537_s22 }
 0x11d   : > { %s4539_s12 = scalar_lea.hbm %s4538_s22, 1  ;;  %s4544_s3 = scalar_lea.hbm %s5661_s8, 1 }
 0x11e   : > { %p4540_p1 = scmp.ne.s32.totalorder %s4538_s22, %s4539_s12  ;;  %p4545_p4 = scmp.lt.s32.totalorder %s4538_s22, %s5661_s8 }
 0x11f   : > { %p4546_p7 = scmp.lt.s32.totalorder %s4544_s3, %s4539_s12 }
 0x120   : > { %s943_s6 = sshll.u32 %s5662_s1, 4  ;;  %p4542_p3 = pnand %p4540_p1, %p5077_p0  ;;  %s5248_s6 = int_to_ptr.hbm [resolvable:$true] %s943_s6 }
 0x121   : > { %p4547_p8 = por %p4546_p7, %p4545_p4 }
 0x122   : > { %p4543_p2 = pneg %p4542_p3 }
 0x124   : > { %p4548_p11 = pnand %p4547_p8, %p4543_p2 }
 0x126   : > { %4551 = shalt.err (!%p4548_p11)
}
 0x127   : > { %s5663_s0 = sld [smem:[#allocation64_spill]]  ;;  %s4844_s13 = smov [#allocation26]  }
 0x128   : > { %3864 = dma.hbm_to_vmem [thread:$0]  (!%p5067_p12), %s5237_s26, 16, %s920_s16, [#allocation22]  }
 0x129   : > { %s945_s14 = sshll.u32 %s4844_s13, 4  ;;  %s4567_s22 = sshra.s32 %s5248_s6, 4  ;;  %s946_s14 = int_to_ptr.vmem [resolvable:$true] %s945_s14  ;;  %s4568_s22 = int_to_ptr.hbm [resolvable:$true] %s4567_s22 }
 0x12a   : > { %s4569_s12 = scalar_lea.hbm %s4568_s22, 1  ;;  %s4574_s3 = scalar_lea.hbm %s5662_s1, 1 }
 0x12b   : > { %p4570_p13 = scmp.ne.s32.totalorder %s4568_s22, %s4569_s12  ;;  %p4575_p2 = scmp.lt.s32.totalorder %s4568_s22, %s5662_s1 }
 0x12c   : > { %p4576_p4 = scmp.lt.s32.totalorder %s4574_s3, %s4569_s12 }
 0x12d   : > { %s5664_s2 = smov %s5663_s0  ;;  %s969_s18 = sshll.u32 %s5663_s0, 4  ;;  %s5259_s18 = int_to_ptr.hbm [resolvable:$true] %s969_s18 }
 0x12e   : > { %p4572_p1 = pnand %p4570_p13, %p5077_p0  ;;  %p4577_p7 = por %p4576_p4, %p4575_p2 }
 0x130   : > { %p4573_p3 = pneg %p4572_p1 }
 0x132   : > { %p4578_p8 = pnand %p4577_p7, %p4573_p3 }
 0x134   : > { %4581 = shalt.err (!%p4578_p8)
}
 0x135   : > { %s5665_s13 = sld [smem:[#allocation65_spill]]  ;;  %s4845_s26 = smov [#allocation29]  }
 0x136   : > { %3870 = dma.hbm_to_vmem [thread:$0]  (!%p5067_p12), %s5248_s6, 16, %s946_s14, [#allocation25]  }
 0x137   : > { %s971_s16 = sshll.u32 %s4845_s26, 4  ;;  %s4597_s22 = sshra.s32 %s5259_s18, 4  ;;  %s972_s16 = int_to_ptr.vmem [resolvable:$true] %s971_s16  ;;  %s4598_s22 = int_to_ptr.hbm [resolvable:$true] %s4597_s22 }
 0x138   : > { %s4599_s12 = scalar_lea.hbm %s4598_s22, 1  ;;  %s4604_s3 = scalar_lea.hbm %s5664_s2, 1 }
 0x139   : > { %p4600_p11 = scmp.ne.s32.totalorder %s4598_s22, %s4599_s12  ;;  %p4605_p3 = scmp.lt.s32.totalorder %s4598_s22, %s5664_s2 }
 0x13a   : > { %p4606_p2 = scmp.lt.s32.totalorder %s4604_s3, %s4599_s12 }
 0x13b   : > { %s994_s0 = sshll.u32 %s5665_s13, 4  ;;  %p4602_p13 = pnand %p4600_p11, %p5077_p0  ;;  %s5270_s0 = int_to_ptr.hbm [resolvable:$true] %s994_s0 }
 0x13c   : > { %p4607_p4 = por %p4606_p2, %p4605_p3 }
 0x13d   : > { %p4603_p1 = pneg %p4602_p13 }
 0x13f   : > { %p4608_p7 = pnand %p4607_p4, %p4603_p1 }
 0x141   : > { %4611 = shalt.err (!%p4608_p7)
}
 0x142   : > { %3876 = dma.hbm_to_vmem [thread:$0]  (!%p5067_p12), %s5259_s18, 16, %s972_s16, [#allocation28]  }
 0x143   : > { %s1009_s6 = sshll.u32 %s4993_s17, 4  ;;  %s4846_s14 = smov [#allocation32]   ;;  %s5281_s6 = int_to_ptr.hbm [resolvable:$true] %s1009_s6 }
 0x144   : > { %s996_s26 = sshll.u32 %s4846_s14, 4  ;;  %s4627_s22 = sshra.s32 %s5270_s0, 4  ;;  %s997_s26 = int_to_ptr.vmem [resolvable:$true] %s996_s26  ;;  %s4628_s22 = int_to_ptr.hbm [resolvable:$true] %s4627_s22 }
 0x145   : > { %s4629_s12 = scalar_lea.hbm %s4628_s22, 64  ;;  %s4634_s3 = scalar_lea.hbm %s5665_s13, 64 }
 0x146   : > { %p4630_p8 = scmp.ne.s32.totalorder %s4628_s22, %s4629_s12  ;;  %p4635_p1 = scmp.lt.s32.totalorder %s4628_s22, %s5665_s13 }
 0x147   : > { %p4636_p3 = scmp.lt.s32.totalorder %s4634_s3, %s4629_s12 }
 0x148   : > { %p4632_p11 = pnand %p4630_p8, %p5077_p0 }
 0x149   : > { %p4637_p2 = por %p4636_p3, %p4635_p1 }
 0x14a   : > { %p4633_p13 = pneg %p4632_p11 }
 0x14c   : > { %p4638_p4 = pnand %p4637_p2, %p4633_p13 }
 0x14e   : > { %4641 = shalt.err (!%p4638_p4)
}
 0x14f   : > { %3882 = dma.hbm_to_vmem [thread:$0]  (!%p5067_p12), %s5270_s0, 1024, %s997_s26, [#allocation31], %s5657_s4, %s5657_s4, %s5658_s7  }
 0x150   : > { %s4847_s18 = smov [#allocation33]   ;;  %s4657_s14 = sshra.s32 %s5281_s6, 4  ;;  %s4658_s14 = int_to_ptr.hbm [resolvable:$true] %s4657_s14 }
 0x151   : > { %s1011_s16 = sshll.u32 %s4847_s18, 4  ;;  %s4659_s22 = scalar_lea.hbm %s4658_s14, 1  ;;  %s1012_s16 = int_to_ptr.vmem [resolvable:$true] %s1011_s16 }
 0x152   : > { %p4660_p7 = scmp.ne.s32.totalorder %s4658_s14, %s4659_s22  ;;  %s4664_s12 = scalar_lea.hbm %s4993_s17, 1 }
 0x153   : > { %p4665_p13 = scmp.lt.s32.totalorder %s4658_s14, %s4993_s17  ;;  %p4666_p1 = scmp.lt.s32.totalorder %s4664_s12, %s4659_s22 }
 0x154   : > { %p4662_p8 = pnand %p4660_p7, %p5077_p0 }
 0x155   : > { %p4667_p3 = por %p4666_p1, %p4665_p13 }
 0x156   : > { %p4663_p11 = pneg %p4662_p8 }
 0x158   : > { %p4668_p2 = pnand %p4667_p3, %p4663_p11 }
 0x15a   : > { %4671 = shalt.err (!%p4668_p2)
}
 0x15b   : > { %3885 = dma.hbm_to_vmem [thread:$0]  (!%p5067_p12), %s5281_s6, 16, %s1012_s16, [#allocation34]  }
 0x15c   : > { %1058 = sbr.rel (%p5057_p10) target bundleno = 4655 (0x122f), region = 136 }
 0x161   : > { %4732 = dma.done.wait (%p3890_p9), [#allocation4], 1024  }
 0x162   : > { %4734 = vsyncadd (%p3890_p9), [#allocation4], 4294966272 }
 0x163   : > { %4736 = dma.done.wait (%p3890_p9), [#allocation7], 1040  }
 0x164   : > { %4738 = vsyncadd (%p3890_p9), [#allocation7], 4294966256 }
 0x165   : > { %4740 = dma.done.wait (%p3890_p9), [#allocation10], 2064  }
 0x166   : > { %4742 = vsyncadd (%p3890_p9), [#allocation10], 4294965232 }
 0x167   : > { %4744 = dma.done.wait (%p3890_p9), [#allocation13], 1040  }
 0x168   : > { %4746 = vsyncadd (%p3890_p9), [#allocation13], 4294966256 }
 0x169   : > { %4748 = dma.done.wait (%p3890_p9), [#allocation16], 32  }
 0x16a   : > { %4750 = vsyncadd (%p3890_p9), [#allocation16], 4294967264 }
 0x16b   : > { %4752 = dma.done.wait (%p3890_p9), [#allocation19], 32  }
 0x16c   : > { %4754 = vsyncadd (%p3890_p9), [#allocation19], 4294967264 }
 0x16d   : > { %4756 = dma.done.wait (%p3890_p9), [#allocation22], 32  }
 0x16e   : > { %4758 = vsyncadd (%p3890_p9), [#allocation22], 4294967264 }
 0x16f   : > { %4760 = dma.done.wait (%p3890_p9), [#allocation25], 1040  }
 0x170   : > { %4762 = vsyncadd (%p3890_p9), [#allocation25], 4294966256 }
 0x171   : > { %4764 = dma.done.wait (%p3890_p9), [#allocation28], 1040  }
 0x172   : > { %4766 = vsyncadd (%p3890_p9), [#allocation28], 4294966256 }
 0x173   : > { %4768 = dma.done.wait (%p3890_p9), [#allocation31], 3072  }
 0x174   : > { %4770 = vsyncadd (%p3890_p9), [#allocation31], 4294964224 }
 0x175   : > { %4772 = dma.done.wait (%p3890_p9), [#allocation34], 16  }
 0x176   : > { %4774 = vsyncadd (%p3890_p9), [#allocation34], 4294967280  ;;  %s5666_s23 = sld [smem:[#allocation52_spill]]  ;;  %p1241_p9 = scmp.lt.s32.totalorder %s5029_s11, 1  ;;  %vm1584_vm0 = vcmask 261120   ;;  %vm1620_vm1 = vcmask 1043456  }
 0x177   : > { %s5667_s15 = sld [smem:[#allocation48_spill]]  ;;  %s4848_s6 = smov 96   ;;  %vm1604_vm3 = vcmask 64512   ;;  %vm1827_vm4 = vcmask 523264   ;;  %vm1829_vm5 = vcmask 785408  }
 0x178   : > { %s5388_s28 = scalar_select %p1241_p9, %s5029_s11, 1 }
 0x179   : > { %s5668_s0 = sld [smem:[#allocation53_spill]]  ;;  %s4849_s26 = smov 64  }
 0x17a   : > { %s5397_s4 = sshll.u32 %s5388_s28, 2  ;;  %s4850_s3 = smov 32  }
 0x17b   : > { %s5669_s18 = sld [smem:[#allocation49_spill]]  ;;  %s3278_s12 = sshll.u32 %s5388_s28, 3 }
 0x17c   : > { %v3365_v0 = vld [vmem:[%s5666_s23 + $0xa8] sm:$0xf]  ;;  %v3677_v1 = vld [vmem:[%s5666_s23 + $0xb0] sm:$0xf0]  ;;  %v3676_v2 = vld [vmem:[%s5666_s23 + $0xac] sm:$0xf] }
 0x17d   : > { %v3366_v3 = vor.u32 %v3677_v1, %v3365_v0  ;;  %v3367_v4 = vld [vmem:[%s5666_s23 + $0xb4] sm:$0xf0]  ;;  %v3353_v5 = vld [vmem:[%s5666_s23 + $0x90] sm:$0xf]  ;;  %v3674_v6 = vld [vmem:[%s5666_s23 + $0x98] sm:$0xf0]  ;;  %s1244_s7 = scalar_lea.vmem %s5667_s15, %s5397_s4 }
 0x17e   : > { %v3370_v7 = vor.u32 %v3676_v2, %v3367_v4  ;;  %v3673_v8 = vld [vmem:[%s5666_s23 + $0x94] sm:$0xf]  ;;  %v3355_v9 = vld [vmem:[%s5666_s23 + $0x9c] sm:$0xf0]  ;;  %v3354_v10 = vor.u32 %v3674_v6, %v3353_v5  ;;  %v3341_v12 = vld [vmem:[%s5666_s23 + $0x78] sm:$0xf] }
 0x17f   : > { %1542 = vmatpush.bf16.msra.mxu0 %v3366_v3  ;;  %v3358_v11 = vor.u32 %v3673_v8, %v3355_v9  ;;  %v3671_v13 = vld [vmem:[%s5666_s23 + $0x80] sm:$0xf0]  ;;  %v3670_v14 = vld [vmem:[%s5666_s23 + $0x7c] sm:$0xf]  ;;  %v3343_v15 = vld [vmem:[%s5666_s23 + $0x84] sm:$0xf0] }
 0x180   : > { %1555 = vmatpush.bf16.msra.mxu1 %v3370_v7  ;;  %v3342_v16 = vor.u32 %v3671_v13, %v3341_v12  ;;  %v3346_v17 = vor.u32 %v3670_v14, %v3343_v15  ;;  %v3329_v18 = vld [vmem:[%s5666_s23 + $0x60] sm:$0xf]  ;;  %v3668_v19 = vld [vmem:[%s5666_s23 + $0x68] sm:$0xf0]  ;;  %v3667_v20 = vld [vmem:[%s5666_s23 + $0x64] sm:$0xf] }
 0x181   : > { %v3331_v21 = vld [vmem:[%s5666_s23 + $0x6c] sm:$0xf0]  ;;  %v3330_v22 = vor.u32 %v3668_v19, %v3329_v18  ;;  %v3678_v24 = vld [vmem:[%s5666_s23 + $0xb8] sm:$0xf0]  ;;  %v3361_v25 = vld [vmem:[%s5666_s23 + $0x98] sm:$0xf]  ;;  %s1248_s16 = scalar_lea.vmem %s5669_s18, %s5397_s4 }
 0x182   : > { %v3373_v23 = vld [vmem:[%s5666_s23 + $0xb0] sm:$0xf]  ;;  %v3334_v26 = vor.u32 %v3667_v20, %v3331_v21  ;;  %v3317_v27 = vld [vmem:[%s5666_s23 + $0x48] sm:$0xf]  ;;  %v3665_v28 = vld [vmem:[%s5666_s23 + $0x50] sm:$0xf0] }
 0x183   : > { %1543 = vmatpush.bf16.msra.mxu0 %v3354_v10  ;;  %v3374_v29 = vor.u32 %v3678_v24, %v3373_v23  ;;  %v3675_v30 = vld [vmem:[%s5666_s23 + $0xa0] sm:$0xf0]  ;;  %v3664_v31 = vld [vmem:[%s5666_s23 + $0x4c] sm:$0xf]  ;;  %v3319_v32 = vld [vmem:[%s5666_s23 + $0x54] sm:$0xf0]  ;;  %v3318_v35 = vor.u32 %v3665_v28, %v3317_v27 }
 0x184   : > { %1556 = vmatpush.bf16.msra.mxu1 %v3358_v11  ;;  %v3305_v33 = vld [vmem:[%s5666_s23 + $0x30] sm:$0xf]  ;;  %v3362_v34 = vor.u32 %v3675_v30, %v3361_v25  ;;  %v3662_v36 = vld [vmem:[%s5666_s23 + $0x38] sm:$0xf0]  ;;  %v3349_v37 = vld [vmem:[%s5666_s23 + $0x80] sm:$0xf]  ;;  %v3322_v39 = vor.u32 %v3664_v31, %v3319_v32 }
 0x185   : > { %1568 = vmatpush.bf16.msra.mxu2 %v3374_v29  ;;  %v3672_v38 = vld [vmem:[%s5666_s23 + $0x88] sm:$0xf0]  ;;  %v3661_v40 = vld [vmem:[%s5666_s23 + $0x34] sm:$0xf]  ;;  %v3307_v41 = vld [vmem:[%s5666_s23 + $0x3c] sm:$0xf0]  ;;  %v3306_v47 = vor.u32 %v3662_v36, %v3305_v33  ;;  %v1401_v33 = vlaneseq }
 0x186   : > { %v3337_v42 = vld [vmem:[%s5666_s23 + $0x68] sm:$0xf]  ;;  %v3669_v43 = vld [vmem:[%s5666_s23 + $0x70] sm:$0xf0]  ;;  %v3293_v44 = vld [vmem:[%s5666_s23 + $0x18] sm:$0xf]  ;;  %v3350_v46 = vor.u32 %v3672_v38, %v3349_v37  ;;  %v3310_v48 = vor.u32 %v3661_v40, %v3307_v41 }
 0x187   : > { %1544 = vmatpush.bf16.msra.mxu0 %v3342_v16  ;;  %v3659_v45 = vld [vmem:[%s5666_s23 + $0x20] sm:$0xf0]  ;;  %v3658_v49 = vld [vmem:[%s5666_s23 + $0x1c] sm:$0xf]  ;;  %v3295_v50 = vld [vmem:[%s5666_s23 + $0x24] sm:$0xf0]  ;;  %v3338_v51 = vor.u32 %v3669_v43, %v3337_v42 }
 0x188   : > { %1557 = vmatpush.bf16.msra.mxu1 %v3346_v17  ;;  %v3294_v52 = vor.u32 %v3659_v45, %v3293_v44  ;;  %v3325_v53 = vld [vmem:[%s5666_s23 + $0x50] sm:$0xf]  ;;  %v3666_v54 = vld [vmem:[%s5666_s23 + $0x58] sm:$0xf0]  ;;  %v3298_v55 = vor.u32 %v3658_v49, %v3295_v50  ;;  %v3281_v56 = vld [vmem:[%s5666_s23] sm:$0xf] }
 0x189   : > { %1569 = vmatpush.bf16.msra.mxu2 %v3362_v34  ;;  %v3656_v57 = vld [vmem:[%s5666_s23 + $0x8] sm:$0xf0]  ;;  %v3655_v58 = vld [vmem:[%s5666_s23 + $0x4] sm:$0xf]  ;;  %v3283_v59 = vld [vmem:[%s5666_s23 + $0xc] sm:$0xf0]  ;;  %v3326_v60 = vor.u32 %v3666_v54, %v3325_v53 }
 0x18a   : > { %v3282_v61 = vor.u32 %v3656_v57, %v3281_v56  ;;  %v3313_v62 = vld [vmem:[%s5666_s23 + $0x38] sm:$0xf]  ;;  %v3663_v63 = vld [vmem:[%s5666_s23 + $0x40] sm:$0xf0]  ;;  %v3286_v0 = vor.u32 %v3655_v58, %v3283_v59  ;;  %v5403_v2 = vld [vmem:[%s1244_s7] sm:$0xf] }
 0x18b   : > { %1545 = vmatpush.bf16.msra.mxu0 %v3330_v22  ;;  %v3314_v1 = vor.u32 %v3663_v63, %v3313_v62  ;;  %v3301_v3 = vld [vmem:[%s5666_s23 + $0x20] sm:$0xf]  ;;  %v3660_v4 = vld [vmem:[%s5666_s23 + $0x28] sm:$0xf0]  ;;  %v3289_v6 = vld [vmem:[%s5666_s23 + $0x8] sm:$0xf] }
 0x18c   : > { %1558 = vmatpush.bf16.msra.mxu1 %v3334_v26  ;;  %v3302_v5 = vor.u32 %v3660_v4, %v3301_v3  ;;  %v3657_v7 = vld [vmem:[%s5666_s23 + $0x10] sm:$0xf0]  ;;  %v1292_v9 = vld [vmem:[%s5668_s0] sm:$0x7]  ;;  %v1402_v34 = vshrl.u32 %v1401_v33, 7  ;;  %s5670_s14 = sld [smem:[#allocation57_spill]] }
 0x18d   : > { %1570 = vmatpush.bf16.msra.mxu2 %v3350_v46  ;;  %v3290_v8 = vor.u32 %v3657_v7, %v3289_v6  ;;  %v1408_v10 = vperm.slane %v1292_v9, 0  ;;  %v1409_v11 = vperm.slane %v1292_v9, 1  ;;  %v1410_v27 = vperm.slane %v1292_v9, 2  ;;  %s5671_s22 = sld [smem:[#allocation51_spill]]  ;;  %s1238_s0 = sand.u32 1, %s4785_s10  }
 0x18e   : > { %v4851_v36 = vmov -1e+30   ;;  %s5672_s28 = sld [smem:[#allocation50_spill]] }
 0x18f   : > { %1546 = vmatpush.bf16.msra.mxu0 %v3318_v35  ;;  %v5426_v35 = vand.u32 127, %v1401_v33 }
 0x190   : > { %1559 = vmatpush.bf16.msra.mxu1 %v3322_v39 }
 0x191   : > { %1571 = vmatpush.bf16.msra.mxu2 %v3338_v51  ;;  %vm1405_vm2 = vcmp.ge.s32.totalorder %v1402_v34, %v5426_v35 }
 0x192   : > { %v5429_v37 = vsel %vm1405_vm2, 0.0, %v4851_v36 }
 0x193   : > { %1547 = vmatpush.bf16.msra.mxu0 %v3306_v47  ;;  %s1256_s15 = scalar_lea.vmem %s5671_s22, %s3278_s12  ;;  %s2898_s12 = scalar_lea.sflag [#allocation5], %s1238_s0 }
 0x194   : > { %1560 = vmatpush.bf16.msra.mxu1 %v3310_v48  ;;  %s1252_s7 = scalar_lea.vmem %s5672_s28, %s5397_s4  ;;  %s2817_s4 = sld [smem:[#allocation2]] }
 0x195   : > { %1572 = vmatpush.bf16.msra.mxu2 %v3326_v60 }
 0x197   : > { %1548 = vmatpush.bf16.msra.mxu0 %v3294_v52 }
 0x198   : > { %1561 = vmatpush.bf16.msra.mxu1 %v3298_v55 }
 0x199   : > { %1573 = vmatpush.bf16.msra.mxu2 %v3314_v1 }
 0x19b   : > { %1549 = vmatpush.bf16.msra.mxu0 %v3282_v61 }
 0x19c   : > { %1562 = vmatpush.bf16.msra.mxu1 %v3286_v0 }
 0x19d   : > { %1574 = vmatpush.bf16.msra.mxu2 %v3302_v5 }
 0x19e   : > { %1550 = vmatmul.bf16.vlgmr.msra.gmra.mxu0 %v5403_v2 }
 0x19f   : > { %1563 = vmatmul.bf16.vlgmr.msra.gmra.mxu1 %v5403_v2 }
 0x1a1   : > { %1575 = vmatpush.bf16.msra.mxu2 %v3290_v8 }
 0x1a4   : > { %1576 = vmatmul.bf16.vlgmr.msra.gmra.mxu2 %v5403_v2 }
 0x21b   : > { %v1551_v12 = vpop.f32.mrf.mxu0 }
 0x21c   : > { %v1564_v13 = vpop.f32.mrf.mxu1  ;;  %v1552_v14 = vadd.f32 %v1551_v12, %v1408_v10 }
 0x21d   : > { %v1565_v15 = vadd.f32 %v1564_v13, %v1409_v11 }
 0x21e   : > { %v1581_v17 = vpack.c.bf16 %v1552_v14, %v1552_v14 }
 0x21f   : > { %v1582_v16 = vpack.c.bf16 %v1565_v15, %v1565_v15 }
 0x220   : > { %v1638_v23 = vunpack.c.l.b16 %v1581_v17 }
 0x221   : > { %v1643_v18 = vunpack.c.l.b16 %v1582_v16  ;;  %v1589_v19 = vsel %vm1584_vm0, %v1582_v16, 0 }
 0x222   : > { %1598 = vmatpush.bf16.xpose.msra.mxu3 %v1589_v19  ;;  %v1639_v24 = vpack.c.b16 %v1638_v23, %v1638_v23 }
 0x223   : > { %v5414_v20 = vpack.c.b16 %v1643_v18, %v1643_v18  ;;  %v1553_v21 = vpop.f32.mrf.mxu0 }
 0x224   : > { %v1566_v22 = vpop.f32.mrf.mxu1 }
 0x225   : > { %1645 = vrot.lane.b32.xlu1 %v5414_v20, %s4848_s6 }
 0x227   : > { %v1577_v25 = vpop.f32.mrf.mxu2 }
 0x228   : > { %v1578_v28 = vadd.f32 %v1577_v25, %v1410_v27 }
 0x229   : > { %3375 = vmatmul.msk.bf16.vlgmr.msra.gmra.mxu3 %vm1584_vm0, %v1581_v17 }
 0x22a   : > { %v1583_v29 = vpack.c.bf16 %v1578_v28, %v1578_v28 }
 0x22c   : > { %v1622_v30 = vsel %vm1620_vm1, %v1583_v29, 0  ;;  %v1679_v47 = vunpack.c.l.b16 %v1583_v29 }
 0x22d   : > { %1640 = vrot.lane.b32.xlu1 %v1639_v24, %s4848_s6  ;;  %1631 = vmatpush.bf16.msrb.mxu3 %v1622_v30 }
 0x22e   : > { %v5434_v48 = vpack.c.b16 %v1679_v47, %v1679_v47  ;;  %v3686_v47 = vld [vmem:[#allocation3 + $0x38] sm:$0xff] }
 0x22f   : > { %v1579_v26 = vpop.f32.mrf.mxu2 }
 0x235   : > { %1704 = vrot.lane.b32.xlu1 %v5414_v20, %s4849_s26 }
 0x23d   : > { %1702 = vrot.lane.b32.xlu1 %v1639_v24, %s4849_s26 }
 0x245   : > { %1758 = vrot.lane.b32.xlu1 %v1639_v24, %s4850_s3 }
 0x297   : > { %v1646_v31 = vpop.permute.xlu1 %1645 }
 0x298   : > { %v1651_v32 = vsel %vm1584_vm0, %v1646_v31, 0 }
 0x299   : > { %1660 = vmatpush.bf16.xpose.msra.mxu3 %v1651_v32 }
 0x29f   : > { %v1641_v51 = vpop.permute.xlu1 %1640 }
 0x2a7   : > { %v1705_v54 = vpop.permute.xlu1 %1704 }
 0x2a8   : > { %v1710_v57 = vsel %vm1584_vm0, %v1705_v54, 0 }
 0x2ac   : > { %v1600_v38 = vpop.f32.mrf.mxu3 }
 0x2ad   : > { %v1601_v39 = vadd.f32 %v1600_v38, %v5429_v37 }
 0x2af   : > { %v1605_v40 = vsel %vm1604_vm3, %v1601_v39, -inf  ;;  %v1703_v7 = vpop.permute.xlu1 %1702 }
 0x2b0   : > { %1606 = vmax.xlane.f32.xlu0 %v1605_v40 }
 0x2b4   : > { %v1602_v41 = vpop.f32.mrf.mxu3 }
 0x2b7   : > { %v1759_v13 = vpop.permute.xlu1 %1758 }
 0x323   : > { %v1607_v42 = vpop.xlane.xlu0 %1606 }
 0x324   : > { %v1608_v43 = vsub.f32 %v1601_v39, %v1607_v42 }
 0x326   : > { %v1609_v44 = vmul.f32 1.442695, %v1608_v43 }
 0x328   : > { %4037 = vpow2.f32 %v1609_v44 }
 0x32e   : > { %v4038_v45 = vpop.eup %4037 }
 0x32f   : > { %v1611_v46 = vsel %vm1604_vm3, %v4038_v45, 0.0 }
 0x330   : > { %1612 = vadd.xlane.f32.xlu0 %v1611_v46 }
 0x344   : > { %1681 = vrot.lane.b32.xlu0 %v5434_v48, %s4848_s6 }
 0x3a3   : > { %v1613_v49 = vpop.xlane.xlu0 %1612 }
 0x3a4   : > { %4039 = vrcp.f32 %v1613_v49  ;;  %v3684_v49 = vld [vmem:[#allocation3 + $0x28] sm:$0xff] }
 0x3aa   : > { %v4040_v50 = vpop.eup %4039 }
 0x3ab   : > { %v1615_v52 = vmul.f32 %v4040_v50, %v4038_v45  ;;  %v3683_v50 = vld [vmem:[#allocation3 + $0x20] sm:$0xff] }
 0x3ad   : > { %v1616_v53 = vpack.c.bf16 %v1615_v52, %v1615_v52 }
 0x3af   : > { %3376 = vmatmul.msk.bf16.vlgmr.msrb.gmra.mxu3 %vm1604_vm3, %v1616_v53 }
 0x3b6   : > { %v1682_v55 = vpop.permute.xlu0 %1681 }
 0x3b7   : > { %v1687_v56 = vsel %vm1620_vm1, %v1682_v55, 0  ;;  %v3682_v55 = vld [vmem:[#allocation3 + $0x18] sm:$0xff] }
 0x3b8   : > { %1696 = vmatpush.bf16.msrb.mxu1 %v1687_v56  ;;  %v3681_v56 = vld [vmem:[#allocation3 + $0x10] sm:$0xff] }
 0x3bc   : > { %1719 = vmatpush.bf16.xpose.msra.mxu1 %v1710_v57  ;;  %v3680_v57 = vld [vmem:[#allocation3 + $0x8] sm:$0xff] }
 0x3bf   : > { %3377 = vmatmul.msk.bf16.vlgmr.msra.gmra.mxu3 %vm1584_vm0, %v1641_v51 }
 0x432   : > { %v5442_v58 = vpop.f32.mrf.mxu3 }
 0x43a   : > { %v1635_v59 = vpop.f32.mrf.mxu3 }
 0x43b   : > { %v3679_v59 = vld [vmem:[#allocation3] sm:$0xff] }
 0x442   : > { %v1662_v60 = vpop.f32.mrf.mxu3 }
 0x443   : > { %v1663_v61 = vadd.f32 %v1662_v60, %v5429_v37 }
 0x445   : > { %v1666_v62 = vsel %vm1604_vm3, %v1663_v61, -inf }
 0x446   : > { %1667 = vmax.xlane.f32.xlu2 %v1666_v62 }
 0x44a   : > { %v1664_v63 = vpop.f32.mrf.mxu3 }
 0x4b9   : > { %v1668_v0 = vpop.xlane.xlu2 %1667 }
 0x4ba   : > { %v1669_v1 = vsub.f32 %v1663_v61, %v1668_v0 }
 0x4bc   : > { %v1670_v3 = vmul.f32 1.442695, %v1669_v1 }
 0x4be   : > { %4041 = vpow2.f32 %v1670_v3 }
 0x4c4   : > { %v4042_v4 = vpop.eup %4041 }
 0x4c5   : > { %v1672_v5 = vsel %vm1604_vm3, %v4042_v4, 0.0 }
 0x4c6   : > { %1673 = vadd.xlane.f32.xlu2 %v1672_v5  ;;  %v1896_v5 = vunpack.c.l.bf16 %v5403_v2 }
 0x4de   : > { %1760 = vrot.lane.b32.xlu2 %v5414_v20, %s4850_s3 }
 0x539   : > { %v1674_v6 = vpop.xlane.xlu2 %1673 }
 0x53a   : > { %4043 = vrcp.f32 %v1674_v6 }
 0x540   : > { %v4044_v8 = vpop.eup %4043 }
 0x541   : > { %v1676_v9 = vmul.f32 %v4044_v8, %v4042_v4  ;;  %v1761_v10 = vpop.permute.xlu2 %1760  ;;  %v4025_v4 = vld [vmem:[#allocation6] ss:$0 sm:$0xff] }
 0x542   : > { %v1766_v11 = vsel %vm1584_vm0, %v1761_v10, 0  ;;  %v4852_v10 = vmov 128.0  }
 0x543   : > { %1775 = vmatpush.bf16.xpose.msrb.mxu3 %v1766_v11  ;;  %v1677_v12 = vpack.c.bf16 %v1676_v9, %v1676_v9  ;;  %v3505_v11 = vld [vmem:[#allocation11 + $0x70] sm:$0xf] }
 0x545   : > { %3378 = vmatmul.msk.bf16.vlgmr.msrb.gmra.mxu1 %vm1604_vm3, %v1677_v12  ;;  %v3710_v12 = vld [vmem:[#allocation11 + $0x74] sm:$0xf0] }
 0x546   : > { %1883 = vmatpush.bf16.msrb.mxu1 %v3686_v47  ;;  %v3692_v47 = vld [vmem:[#allocation8 + $0x28] sm:$0xff] }
 0x54a   : > { %3381 = vmatmul.msk.bf16.vlgmr.msrb.gmra.mxu3 %vm1584_vm0, %v1759_v13  ;;  %v3506_v13 = vor.u32 %v3710_v12, %v3505_v11 }
 0x54c   : > { %2083 = vmatpush.bf16.msra.mxu3 %v3506_v13 }
 0x555   : > { %3379 = vmatmul.msk.bf16.vlgmr.msra.gmra.mxu1 %vm1584_vm0, %v1703_v7 }
 0x5c2   : > { %v1698_v14 = vpop.f32.mrf.mxu1 }
 0x5ca   : > { %v1700_v15 = vpop.f32.mrf.mxu1 }
 0x5cd   : > { %v1777_v16 = vpop.f32.mrf.mxu3 }
 0x5ce   : > { %v1778_v17 = vadd.f32 %v1777_v16, %v5429_v37 }
 0x5d0   : > { %v1781_v18 = vsel %vm1604_vm3, %v1778_v17, -inf }
 0x5d1   : > { %1782 = vmax.xlane.f32.xlu1 %v1781_v18  ;;  %v3706_v18 = vld [vmem:[#allocation11 + $0x54] sm:$0xf0] }
 0x5d2   : > { %v1721_v19 = vpop.f32.mrf.mxu1 }
 0x5d3   : > { %v1722_v20 = vadd.f32 %v1721_v19, %v5429_v37  ;;  %v3694_v19 = vld [vmem:[#allocation8 + $0x38] sm:$0xff] }
 0x5d5   : > { %v1779_v21 = vpop.f32.mrf.mxu3  ;;  %v1725_v22 = vsel %vm1604_vm3, %v1722_v20, -inf }
 0x5d6   : > { %1726 = vmax.xlane.f32.xlu0 %v1725_v22  ;;  %v3481_v21 = vld [vmem:[#allocation11 + $0x40] sm:$0xf]  ;;  %v3704_v22 = vld [vmem:[#allocation11 + $0x44] sm:$0xf0] }
 0x5da   : > { %v1723_v23 = vpop.f32.mrf.mxu1 }
 0x5ea   : > { %1793 = vrot.lane.b32.xlu1 %v5434_v48, %s4850_s3 }
 0x644   : > { %v1783_v24 = vpop.xlane.xlu1 %1782 }
 0x645   : > { %v1784_v25 = vsub.f32 %v1778_v17, %v1783_v24  ;;  %v3489_v17 = vld [vmem:[#allocation11 + $0x50] sm:$0xf]  ;;  %v3482_v24 = vor.u32 %v3704_v22, %v3481_v21 }
 0x647   : > { %v1785_v26 = vmul.f32 1.442695, %v1784_v25  ;;  %v3473_v25 = vld [vmem:[#allocation11 + $0x30] sm:$0xf] }
 0x649   : > { %4045 = vpow2.f32 %v1785_v26  ;;  %v1727_v27 = vpop.xlane.xlu0 %1726  ;;  %v3702_v26 = vld [vmem:[#allocation11 + $0x34] sm:$0xf0] }
 0x64a   : > { %v1728_v28 = vsub.f32 %v1722_v20, %v1727_v27  ;;  %v3490_v20 = vor.u32 %v3706_v18, %v3489_v17 }
 0x64c   : > { %v1729_v29 = vmul.f32 1.442695, %v1728_v28  ;;  %v3474_v28 = vor.u32 %v3702_v26, %v3473_v25  ;;  %v3709_v25 = vld [vmem:[#allocation11 + $0x74] sm:$0xf]  ;;  %v3507_v26 = vld [vmem:[#allocation11 + $0x78] sm:$0xf0] }
 0x64e   : > { %4047 = vpow2.f32 %v1729_v29  ;;  %v3465_v29 = vld [vmem:[#allocation11 + $0x20] sm:$0xf] }
 0x64f   : > { %v4046_v30 = vpop.eup %4045 }
 0x650   : > { %v1787_v31 = vsel %vm1604_vm3, %v4046_v30, 0.0 }
 0x651   : > { %1788 = vadd.xlane.f32.xlu0 %v1787_v31 }
 0x654   : > { %v4048_v32 = vpop.eup %4047 }
 0x655   : > { %v1731_v33 = vsel %vm1604_vm3, %v4048_v32, 0.0 }
 0x656   : > { %1732 = vadd.xlane.f32.xlu2 %v1731_v33  ;;  %v3457_v33 = vld [vmem:[#allocation11 + $0x10] sm:$0xf] }
 0x65c   : > { %v1794_v34 = vpop.permute.xlu1 %1793 }
 0x65d   : > { %v1799_v36 = vsel %vm1620_vm1, %v1794_v34, 0  ;;  %v3698_v34 = vld [vmem:[#allocation11 + $0x14] sm:$0xf0] }
 0x65e   : > { %1808 = vmatpush.bf16.msrb.mxu0 %v1799_v36 }
 0x665   : > { %1815 = vrot.lane.b32.xlu0 %v1698_v14, %s4850_s3  ;;  %v3708_v14 = vld [vmem:[#allocation11 + $0x64] sm:$0xf0] }
 0x66e   : > { %1737 = vrot.lane.b32.xlu2 %v5434_v48, %s4849_s26  ;;  %v3685_v48 = vld [vmem:[#allocation3 + $0x30] sm:$0xff] }
 0x66f   : > { %1884 = vmatpush.bf16.msrb.mxu1 %v3685_v48  ;;  %v3691_v48 = vld [vmem:[#allocation8 + $0x20] sm:$0xff] }
 0x673   : > { %1885 = vmatpush.bf16.msrb.mxu1 %v3684_v49  ;;  %v3690_v49 = vld [vmem:[#allocation8 + $0x18] sm:$0xff] }
 0x677   : > { %1886 = vmatpush.bf16.msrb.mxu1 %v3683_v50  ;;  %v3689_v50 = vld [vmem:[#allocation8 + $0x10] sm:$0xff] }
 0x67b   : > { %1887 = vmatpush.bf16.msrb.mxu1 %v3682_v55 }
 0x67f   : > { %1888 = vmatpush.bf16.msrb.mxu1 %v3681_v56 }
 0x683   : > { %1889 = vmatpush.bf16.msrb.mxu1 %v3680_v57 }
 0x687   : > { %1890 = vmatpush.bf16.msrb.mxu1 %v3679_v59 }
 0x6c4   : > { %v1789_v37 = vpop.xlane.xlu0 %1788 }
 0x6c5   : > { %4049 = vrcp.f32 %v1789_v37  ;;  %v3458_v37 = vor.u32 %v3698_v34, %v3457_v33  ;;  %v3703_v34 = vld [vmem:[#allocation11 + $0x44] sm:$0xf] }
 0x6c9   : > { %v1733_v38 = vpop.xlane.xlu2 %1732 }
 0x6ca   : > { %4051 = vrcp.f32 %v1733_v38 }
 0x6cb   : > { %v4050_v39 = vpop.eup %4049  ;;  %4053 = vrcp.f32 %v4852_v10 }
 0x6cc   : > { %v1791_v40 = vmul.f32 %v4050_v39, %v4046_v30  ;;  %v3700_v30 = vld [vmem:[#allocation11 + $0x24] sm:$0xf0] }
 0x6ce   : > { %v1792_v41 = vpack.c.bf16 %v1791_v40, %v1791_v40 }
 0x6d0   : > { %v4052_v42 = vpop.eup %4051  ;;  %3382 = vmatmul.msk.bf16.vlgmr.msrb.gmra.mxu0 %vm1604_vm3, %v1792_v41 }
 0x6d1   : > { %v1735_v43 = vmul.f32 %v4052_v42, %v4048_v32  ;;  %v1738_v44 = vpop.permute.xlu2 %1737  ;;  %v4054_v16 = vpop.eup %4053  ;;  %v3466_v32 = vor.u32 %v3700_v30, %v3465_v29  ;;  %v3449_v42 = vld [vmem:[#allocation11] sm:$0xf]  ;;  %v3499_v29 = vld [vmem:[#allocation11 + $0x68] sm:$0xf0] }
 0x6d2   : > { %v1743_v45 = vsel %vm1620_vm1, %v1738_v44, 0  ;;  %v1901_v2 = vmul.f32 128.0, %v4054_v16  ;;  %vm1905_vm6 = vweird.f32 %v4054_v16  ;;  %v3693_v44 = vld [vmem:[#allocation8 + $0x30] sm:$0xff] }
 0x6d3   : > { %1752 = vmatpush.bf16.msrb.mxu2 %v1743_v45  ;;  %v1736_v46 = vpack.c.bf16 %v1735_v43, %v1735_v43  ;;  %v3696_v43 = vld [vmem:[#allocation11 + $0x4] sm:$0xf0] }
 0x6d4   : > { %v1902_v23 = vsub.f32 1.0, %v1901_v2  ;;  %v3450_v45 = vor.u32 %v3696_v43, %v3449_v42 }
 0x6d6   : > { %3380 = vmatmul.msk.bf16.vlgmr.msrb.gmra.mxu2 %vm1604_vm3, %v1736_v46  ;;  %v1903_v27 = vmul.f32 %v4054_v16, %v1902_v23  ;;  %v5480_v46 = vld [vmem:[%s1248_s16] sm:$0xf] }
 0x6d7   : > { %v1816_v60 = vpop.permute.xlu0 %1815  ;;  %1985 = vmatpush.bf16.msra.mxu2 %v3694_v19 }
 0x6d8   : > { %v1826_v62 = vsel %vm1584_vm0, %v5442_v58, %v1816_v60  ;;  %v3497_v58 = vld [vmem:[#allocation11 + $0x60] sm:$0xf]  ;;  %v1904_v31 = vadd.f32 %v4054_v16, %v1903_v27  ;;  %v3707_v27 = vld [vmem:[#allocation11 + $0x64] sm:$0xf] }
 0x6d9   : > { %v3498_v15 = vor.u32 %v3708_v14, %v3497_v58  ;;  %v3502_v30 = vor.u32 %v3707_v27, %v3499_v29 }
 0x6da   : > { %v5475_v36 = vsel %vm1905_vm6, %v4054_v16, %v1904_v31  ;;  %v3705_v31 = vld [vmem:[#allocation11 + $0x54] sm:$0xf] }
 0x6db   : > { %2084 = vmatpush.bf16.msra.mxu3 %v3498_v15  ;;  %1986 = vmatpush.bf16.msra.mxu2 %v3693_v44  ;;  %v4028_v15 = vld [vmem:[#allocation9] ss:$0 sm:$0xff] }
 0x6df   : > { %2085 = vmatpush.bf16.msra.mxu3 %v3490_v20  ;;  %1987 = vmatpush.bf16.msra.mxu2 %v3692_v47 }
 0x6e3   : > { %2086 = vmatpush.bf16.msra.mxu3 %v3482_v24  ;;  %1988 = vmatpush.bf16.msra.mxu2 %v3691_v48  ;;  %v3701_v48 = vld [vmem:[#allocation11 + $0x34] sm:$0xf] }
 0x6e7   : > { %2087 = vmatpush.bf16.msra.mxu3 %v3474_v28  ;;  %1989 = vmatpush.bf16.msra.mxu2 %v3690_v49  ;;  %v3510_v28 = vor.u32 %v3709_v25, %v3507_v26  ;;  %v3475_v49 = vld [vmem:[#allocation11 + $0x38] sm:$0xf0] }
 0x6e9   : > { %2096 = vmatpush.bf16.msra.mxu0 %v3510_v28 }
 0x6eb   : > { %2088 = vmatpush.bf16.msra.mxu3 %v3466_v32  ;;  %1990 = vmatpush.bf16.msra.mxu2 %v3689_v50  ;;  %v3491_v32 = vld [vmem:[#allocation11 + $0x58] sm:$0xf0]  ;;  %v3478_v50 = vor.u32 %v3701_v48, %v3475_v49 }
 0x6ec   : > { %v3494_v33 = vor.u32 %v3705_v31, %v3491_v32 }
 0x6ed   : > { %2097 = vmatpush.bf16.msra.mxu0 %v3502_v30 }
 0x6ef   : > { %2089 = vmatpush.bf16.msra.mxu3 %v3458_v37  ;;  %v3483_v37 = vld [vmem:[#allocation11 + $0x48] sm:$0xf0] }
 0x6f1   : > { %2098 = vmatpush.bf16.msra.mxu0 %v3494_v33 }
 0x6f3   : > { %2090 = vmatpush.bf16.msra.mxu3 %v3450_v45 }
 0x6f6   : > { %2091 = vmatmul.bf16.vlgmr.msra.gmra.mxu3 %v5480_v46 }
 0x74d   : > { %v1810_v51 = vpop.f32.mrf.mxu0 }
 0x74e   : > { %1823 = vrot.lane.b32.xlu0 %v1810_v51, %s4848_s6  ;;  %v3688_v51 = vld [vmem:[#allocation8 + $0x8] sm:$0xff] }
 0x74f   : > { %1991 = vmatpush.bf16.msra.mxu2 %v3688_v51  ;;  %v3699_v51 = vld [vmem:[#allocation11 + $0x24] sm:$0xf] }
 0x755   : > { %v1812_v52 = vpop.f32.mrf.mxu0 }
 0x756   : > { %v3687_v52 = vld [vmem:[#allocation8] sm:$0xff] }
 0x757   : > { %1992 = vmatpush.bf16.msra.mxu2 %v3687_v52  ;;  %v3467_v52 = vld [vmem:[#allocation11 + $0x28] sm:$0xf0] }
 0x759   : > { %v1754_v53 = vpop.f32.mrf.mxu2 }
 0x75a   : > { %1819 = vrot.lane.b32.xlu2 %v1754_v53, %s4849_s26 }
 0x761   : > { %v1756_v54 = vpop.f32.mrf.mxu2 }
 0x7b4   : > { %v1820_v61 = vpop.permute.xlu2 %1819 }
 0x7b5   : > { %v1828_v63 = vsel %vm1827_vm4, %v1826_v62, %v1820_v61 }
 0x7c0   : > { %v1824_v0 = vpop.permute.xlu0 %1823 }
 0x7c1   : > { %v1830_v1 = vsel %vm1829_vm5, %v1828_v63, %v1824_v0  ;;  %v4026_v63 = vld [vmem:[#allocation15] ss:$0 sm:$0xff] }
 0x7c2   : > { %v1831_v3 = vpack.c.bf16 %v1830_v1, %v1830_v1 }
 0x7c4   : > { %1891 = vmatmul.bf16.vlgmr.msrb.gmra.mxu1 %v1831_v3  ;;  %v4027_v3 = vld [vmem:[#allocation17] ss:$0 sm:$0xff] }
 0x841   : > { %v1892_v6 = vpop.f32.mrf.mxu1 }
 0x842   : > { %v1893_v7 = vadd.f32 %v4025_v4, %v1892_v6 }
 0x844   : > { %v1897_v8 = vadd.f32 %v1896_v5, %v1893_v7  ;;  %v5489_v7 = vld [vmem:[%s5670_s14] sm:$0x3] }
 0x846   : > { %1898 = vadd.xlane.f32.xlu1 %v1897_v8 }
 0x849   : > { %v1894_v9 = vpop.f32.mrf.mxu1 }
 0x84a   : > { %v2092_v9 = vpop.f32.mrf.mxu3 }
 0x852   : > { %v2094_v14 = vpop.f32.mrf.mxu3 }
 0x8b9   : > { %v1899_v38 = vpop.xlane.xlu1 %1898 }
 0x8ba   : > { %v1907_v39 = vmul.f32 %v5475_v36, %v1899_v38  ;;  %v3486_v38 = vor.u32 %v3703_v34, %v3483_v37 }
 0x8bc   : > { %v1908_v40 = vsub.f32 %v1897_v8, %v1907_v39  ;;  %v1999_v8 = vperm.slane %v5489_v7, 0  ;;  %2099 = vmatpush.bf16.msra.mxu0 %v3486_v38 }
 0x8be   : > { %v1909_v41 = vmul.f32 %v1908_v40, %v1908_v40  ;;  %v2093_v10 = vadd.f32 %v2092_v9, %v1999_v8 }
 0x8c0   : > { %1910 = vadd.xlane.f32.xlu2 %v1909_v41  ;;  %v2110_v11 = vpack.c.bf16 %v2093_v10, %v2093_v10  ;;  %2100 = vmatpush.bf16.msra.mxu0 %v3478_v50 }
 0x8c2   : > { %v2116_v12 = vsel %vm1584_vm0, %v2110_v11, 0  ;;  %v2181_v58 = vunpack.c.l.b16 %v2110_v11 }
 0x8c3   : > { %2125 = vmatpush.bf16.xpose.msra.mxu1 %v2116_v12 }
 0x8c4   : > { %v2182_v13 = vpack.c.b16 %v2181_v58, %v2181_v58 }
 0x8c6   : > { %2183 = vrot.lane.b32.xlu0 %v2182_v13, %s4848_s6 }
 0x8ce   : > { %2256 = vrot.lane.b32.xlu0 %v2182_v13, %s4849_s26 }
 0x933   : > { %v1911_v53 = vpop.xlane.xlu2 %1910 }
 0x934   : > { %v1912_v54 = vmul.f32 %v1911_v53, %v5475_v36  ;;  %v3470_v53 = vor.u32 %v3699_v51, %v3467_v52 }
 0x936   : > { %v1913_v55 = vadd.f32 1e-05, %v1912_v54  ;;  %2101 = vmatpush.bf16.msra.mxu0 %v3470_v53  ;;  %v3697_v54 = vld [vmem:[#allocation11 + $0x14] sm:$0xf] }
 0x938   : > { %4055 = vrsqrt.f32 %v1913_v55  ;;  %vm1920_vm8 = vweird.f32 %v1913_v55  ;;  %v2184_v21 = vpop.permute.xlu0 %2183 }
 0x939   : > { %v2189_v22 = vsel %vm1584_vm0, %v2184_v21, 0 }
 0x93a   : > { %2198 = vmatpush.bf16.xpose.msrb.mxu3 %v2189_v22 }
 0x93e   : > { %v4056_v56 = vpop.eup %4055 }
 0x93f   : > { %v1915_v57 = vmul.f32 %v4056_v56, %v1913_v55  ;;  %vm1921_vm7 = vweird.f32 %v4056_v56  ;;  %v3459_v55 = vld [vmem:[#allocation11 + $0x18] sm:$0xf0] }
 0x940   : > { %vm1922_vm9 = vmor %vm1920_vm8, %vm1921_vm7  ;;  %v2257_v23 = vpop.permute.xlu0 %2256 }
 0x941   : > { %v1916_v59 = vmul.f32 %v4056_v56, %v1915_v57  ;;  %v2262_v24 = vsel %vm1584_vm0, %v2257_v23, 0  ;;  %v3695_v57 = vld [vmem:[#allocation11 + $0x4] sm:$0xf] }
 0x942   : > { %2271 = vmatpush.bf16.xpose.msrb.mxu1 %v2262_v24 }
 0x943   : > { %v1917_v60 = vmul.f32 0.5, %v1916_v59  ;;  %v3451_v59 = vld [vmem:[#allocation11 + $0x8] sm:$0xf0] }
 0x945   : > { %v1918_v61 = vsub.f32 1.5, %v1917_v60  ;;  %v3454_v60 = vor.u32 %v3695_v57, %v3451_v59 }
 0x947   : > { %v1919_v62 = vmul.f32 %v4056_v56, %v1918_v61 }
 0x949   : > { %v1923_v0 = vsel %vm1922_vm9, %v4056_v56, %v1919_v62  ;;  %v3462_v56 = vor.u32 %v3697_v54, %v3459_v55 }
 0x94a   : > { %v1924_v1 = vmul.f32 %v1923_v0, %v1908_v40 }
 0x94b   : > { %2102 = vmatpush.bf16.msra.mxu0 %v3462_v56 }
 0x94c   : > { %v1928_v4 = vmul.f32 %v4026_v63, %v1924_v1 }
 0x94e   : > { %v5484_v5 = vadd.f32 %v4027_v3, %v1928_v4 }
 0x94f   : > { %2103 = vmatpush.bf16.msra.mxu0 %v3454_v60 }
 0x950   : > { %v1933_v6 = vpack.c.bf16 %v5484_v5, %v5484_v5 }
 0x952   : > { %1993 = vmatmul.bf16.vlgmr.msra.gmra.mxu2 %v1933_v6  ;;  %2104 = vmatmul.bf16.vlgmr.msra.gmra.mxu0 %v5480_v46 }
 0x9cf   : > { %v2105_v14 = vpop.f32.mrf.mxu0 }
 0x9d5   : > { %v1994_v16 = vpop.f32.mrf.mxu2 }
 0x9d6   : > { %v1995_v17 = vadd.f32 %v4028_v15, %v1994_v16 }
 0x9d8   : > { %v2109_v18 = vpack.c.bf16 %v1995_v17, %v1995_v17 }
 0x9da   : > { %v2176_v19 = vunpack.c.l.b16 %v2109_v18  ;;  %3511 = vmatmul.msk.bf16.vlgmr.msra.gmra.mxu1 %vm1584_vm0, %v2109_v18 }
 0x9dc   : > { %v2177_v2 = vpack.c.b16 %v2176_v19, %v2176_v19 }
 0x9dd   : > { %v1996_v20 = vpop.f32.mrf.mxu2 }
 0x9de   : > { %2324 = vrot.lane.b32.xlu1 %v2177_v2, %s4850_s3  ;;  %2178 = vrot.lane.b32.xlu0 %v2177_v2, %s4848_s6 }
 0x9e6   : > { %2326 = vrot.lane.b32.xlu0 %v2182_v13, %s4850_s3  ;;  %v2000_v13 = vperm.slane %v5489_v7, 1 }
 0x9e8   : > { %v2106_v15 = vadd.f32 %v2105_v14, %v2000_v13 }
 0x9ea   : > { %v2111_v16 = vpack.c.bf16 %v2106_v15, %v2106_v15 }
 0x9ec   : > { %v2160_v17 = vsel %vm1620_vm1, %v2111_v16, 0  ;;  %v2230_v18 = vunpack.c.l.b16 %v2111_v16 }
 0x9ed   : > { %2169 = vmatpush.bf16.msrb.mxu2 %v2160_v17 }
 0x9ee   : > { %2254 = vrot.lane.b32.xlu0 %v2177_v2, %s4849_s26  ;;  %v2231_v19 = vpack.c.b16 %v2230_v18, %v2230_v18  ;;  %v2107_v2 = vpop.f32.mrf.mxu0 }
 0xa50   : > { %v2179_v39 = vpop.permute.xlu0 %2178  ;;  %v2325_v45 = vpop.permute.xlu1 %2324 }
 0xa51   : > { %3513 = vmatmul.msk.bf16.vlgmr.msrb.gmra.mxu3 %vm1584_vm0, %v2179_v39 }
 0xa57   : > { %v2127_v40 = vpop.f32.mrf.mxu1 }
 0xa58   : > { %v2327_v41 = vpop.permute.xlu0 %2326  ;;  %v2131_v42 = vsel %vm1604_vm3, %v2127_v40, -inf }
 0xa59   : > { %v2332_v43 = vsel %vm1584_vm0, %v2327_v41, 0  ;;  %2132 = vmax.xlane.f32.xlu0 %v2131_v42 }
 0xa5a   : > { %2341 = vmatpush.bf16.xpose.msra.mxu3 %v2332_v43 }
 0xa5f   : > { %v2129_v44 = vpop.f32.mrf.mxu1 }
 0xa60   : > { %v2255_v47 = vpop.permute.xlu0 %2254 }
 0xa61   : > { %3515 = vmatmul.msk.bf16.vlgmr.msrb.gmra.mxu1 %vm1584_vm0, %v2255_v47  ;;  %3517 = vmatmul.msk.bf16.vlgmr.msra.gmra.mxu3 %vm1584_vm0, %v2325_v45 }
 0xa6d   : > { %2232 = vrot.lane.b32.xlu0 %v2231_v19, %s4848_s6 }
 0xa75   : > { %2372 = vrot.lane.b32.xlu0 %v2231_v19, %s4850_s3 }
 0xacc   : > { %v2133_v61 = vpop.xlane.xlu0 %2132 }
 0xacd   : > { %v2134_v62 = vsub.f32 %v2127_v40, %v2133_v61 }
 0xacf   : > { %v2135_v63 = vmul.f32 1.442695, %v2134_v62 }
 0xad1   : > { %4057 = vpow2.f32 %v2135_v63 }
 0xad4   : > { %v2200_v0 = vpop.f32.mrf.mxu3 }
 0xad5   : > { %v2204_v1 = vsel %vm1604_vm3, %v2200_v0, -inf }
 0xad6   : > { %2205 = vmax.xlane.f32.xlu2 %v2204_v1 }
 0xad7   : > { %v4058_v3 = vpop.eup %4057 }
 0xad8   : > { %v2137_v4 = vsel %vm1604_vm3, %v4058_v3, 0.0 }
 0xad9   : > { %2138 = vadd.xlane.f32.xlu1 %v2137_v4 }
 0xadc   : > { %v2202_v6 = vpop.f32.mrf.mxu3 }
 0xade   : > { %v2273_v8 = vpop.f32.mrf.mxu1 }
 0xadf   : > { %v2277_v9 = vsel %vm1604_vm3, %v2273_v8, -inf  ;;  %v2233_v50 = vpop.permute.xlu0 %2232 }
 0xae0   : > { %2278 = vmax.xlane.f32.xlu2 %v2277_v9  ;;  %v2238_v51 = vsel %vm1620_vm1, %v2233_v50, 0  ;;  %v3715_v50 = vld [vmem:[#allocation12 + $0x20] sm:$0xff] }
 0xae1   : > { %2247 = vmatpush.bf16.msrb.mxu0 %v2238_v51 }
 0xae4   : > { %v2343_v10 = vpop.f32.mrf.mxu3 }
 0xae5   : > { %v2347_v12 = vsel %vm1604_vm3, %v2343_v10, -inf }
 0xae6   : > { %v2275_v11 = vpop.f32.mrf.mxu1 }
 0xae7   : > { %v2373_v52 = vpop.permute.xlu0 %2372 }
 0xae8   : > { %2348 = vmax.xlane.f32.xlu2 %v2347_v12  ;;  %v2378_v53 = vsel %vm1620_vm1, %v2373_v52, 0 }
 0xae9   : > { %2387 = vmatpush.bf16.msra.mxu0 %v2378_v53 }
 0xaec   : > { %v2345_v58 = vpop.f32.mrf.mxu3 }
 0xb49   : > { %v2206_v20 = vpop.xlane.xlu2 %2205 }
 0xb4a   : > { %v2207_v25 = vsub.f32 %v2200_v0, %v2206_v20 }
 0xb4c   : > { %v2139_v21 = vpop.xlane.xlu1 %2138  ;;  %v2208_v31 = vmul.f32 1.442695, %v2207_v25 }
 0xb4d   : > { %4059 = vrcp.f32 %v2139_v21  ;;  %v2151_v28 = vand.u32 2147483648, %v2139_v21  ;;  %v2149_v30 = vand.u32 2147483647, %v2139_v21  ;;  %vm2145_vm11 = vweird.f32 %v2139_v21 }
 0xb4f   : > { %v2152_v33 = vor.u32 1.1754944e-38, %v2151_v28  ;;  %vm2150_vm13 = vcmp.eq.f32.partialorder %v2149_v30, 8.507059e+37 }
 0xb53   : > { %v4060_v22 = vpop.eup %4059  ;;  %v2279_v23 = vpop.xlane.xlu2 %2278 }
 0xb54   : > { %v2141_v24 = vmul.f32 %v4060_v22, %v2139_v21  ;;  %v2280_v7 = vsub.f32 %v2273_v8, %v2279_v23  ;;  %vm2146_vm10 = vweird.f32 %v4060_v22 }
 0xb55   : > { %vm2147_vm12 = vmor %vm2145_vm11, %vm2146_vm10 }
 0xb56   : > { %v2142_v26 = vsub.f32 1.0, %v2141_v24  ;;  %v2281_v27 = vmul.f32 1.442695, %v2280_v7 }
 0xb58   : > { %v2143_v29 = vmul.f32 %v4060_v22, %v2142_v26  ;;  %4061 = vpow2.f32 %v2281_v27  ;;  %v2685_v26 = vsel %vm1620_vm1, %v5480_v46, 0 }
 0xb59   : > { %4063 = vpow2.f32 %v2208_v31 }
 0xb5a   : > { %v2144_v32 = vadd.f32 %v4060_v22, %v2143_v29 }
 0xb5b   : > { %v2349_v34 = vpop.xlane.xlu2 %2348 }
 0xb5c   : > { %v2148_v37 = vsel %vm2147_vm12, %v4060_v22, %v2144_v32  ;;  %v2350_v41 = vsub.f32 %v2343_v10, %v2349_v34 }
 0xb5d   : > { %v2153_v38 = vsel %vm2150_vm13, %v2152_v33, %v2148_v37 }
 0xb5e   : > { %v4062_v39 = vpop.eup %4061  ;;  %v5516_v40 = vmul.f32 %v4058_v3, %v2153_v38  ;;  %v2351_v44 = vmul.f32 1.442695, %v2350_v41 }
 0xb5f   : > { %v2283_v42 = vsel %vm1604_vm3, %v4062_v39, 0.0  ;;  %v4064_v45 = vpop.eup %4063 }
 0xb60   : > { %2284 = vadd.xlane.f32.xlu2 %v2283_v42  ;;  %v2155_v43 = vpack.c.bf16 %v5516_v40, %v5516_v40  ;;  %4065 = vpow2.f32 %v2351_v44  ;;  %v2210_v47 = vsel %vm1604_vm3, %v4064_v45, 0.0 }
 0xb62   : > { %3512 = vmatmul.msk.bf16.vlgmr.msrb.gmra.mxu2 %vm1604_vm3, %v2155_v43 }
 0xb66   : > { %v5523_v48 = vpop.eup %4065 }
 0xb67   : > { %v2353_v49 = vsel %vm1604_vm3, %v5523_v48, 0.0 }
 0xb68   : > { %2211 = vadd.xlane.f32.xlu2 %v2210_v47 }
 0xb70   : > { %2354 = vadd.xlane.f32.xlu2 %v2353_v49 }
 0xb88   : > { %2302 = vrot.lane.b32.xlu2 %v2231_v19, %s4849_s26 }
 0xbd3   : > { %v2285_v54 = vpop.xlane.xlu2 %2284 }
 0xbd4   : > { %4067 = vrcp.f32 %v2285_v54  ;;  %v2297_v62 = vand.u32 2147483648, %v2285_v54  ;;  %vm2291_vm15 = vweird.f32 %v2285_v54  ;;  %v2295_v0 = vand.u32 2147483647, %v2285_v54 }
 0xbd6   : > { %v2298_v6 = vor.u32 1.1754944e-38, %v2297_v62  ;;  %vm2296_vm6 = vcmp.eq.f32.partialorder %v2295_v0, 8.507059e+37 }
 0xbda   : > { %v4068_v55 = vpop.eup %4067 }
 0xbdb   : > { %v2287_v56 = vmul.f32 %v4068_v55, %v2285_v54  ;;  %v2212_v57 = vpop.xlane.xlu2 %2211  ;;  %vm2292_vm14 = vweird.f32 %v4068_v55  ;;  %v3714_v54 = vld [vmem:[#allocation12 + $0x18] sm:$0xff] }
 0xbdc   : > { %4069 = vrcp.f32 %v2212_v57  ;;  %vm2293_vm2 = vmor %vm2291_vm15, %vm2292_vm14  ;;  %v2224_v10 = vand.u32 2147483648, %v2212_v57  ;;  %v2222_v58 = vand.u32 2147483647, %v2212_v57  ;;  %vm2218_vm8 = vweird.f32 %v2212_v57 }
 0xbdd   : > { %v2288_v59 = vsub.f32 1.0, %v2287_v56  ;;  %v3712_v56 = vld [vmem:[#allocation12 + $0x8] sm:$0xff] }
 0xbde   : > { %v2225_v16 = vor.u32 1.1754944e-38, %v2224_v10  ;;  %vm2223_vm10 = vcmp.eq.f32.partialorder %v2222_v58, 8.507059e+37 }
 0xbdf   : > { %v2289_v60 = vmul.f32 %v4068_v55, %v2288_v59 }
 0xbe1   : > { %v2290_v61 = vadd.f32 %v4068_v55, %v2289_v60 }
 0xbe2   : > { %v4070_v63 = vpop.eup %4069 }
 0xbe3   : > { %v2214_v1 = vmul.f32 %v4070_v63, %v2212_v57  ;;  %v2355_v3 = vpop.xlane.xlu2 %2354  ;;  %v2294_v4 = vsel %vm2293_vm2, %v4068_v55, %v2290_v61  ;;  %vm2219_vm7 = vweird.f32 %v4070_v63  ;;  %v3713_v55 = vld [vmem:[#allocation12 + $0x10] sm:$0xff]  ;;  %v3711_v57 = vld [vmem:[#allocation12] sm:$0xff] }
 0xbe4   : > { %4071 = vrcp.f32 %v2355_v3  ;;  %v2299_v11 = vsel %vm2296_vm6, %v2298_v6, %v2294_v4  ;;  %vm2220_vm9 = vmor %vm2218_vm8, %vm2219_vm7  ;;  %v2367_v28 = vand.u32 2147483648, %v2355_v3  ;;  %vm2361_vm12 = vweird.f32 %v2355_v3 }
 0xbe5   : > { %v2215_v8 = vsub.f32 1.0, %v2214_v1  ;;  %v5530_v9 = vpop.f32.mrf.mxu2  ;;  %v2300_v15 = vmul.f32 %v4062_v39, %v2299_v11  ;;  %v2365_v29 = vand.u32 2147483647, %v2355_v3  ;;  %v3726_v11 = vld [vmem:[#allocation24 + $0x38] sm:$0xff] }
 0xbe6   : > { %v2368_v31 = vor.u32 1.1754944e-38, %v2367_v28 }
 0xbe7   : > { %v2216_v12 = vmul.f32 %v4070_v63, %v2215_v8  ;;  %v2301_v24 = vpack.c.bf16 %v2300_v15, %v2300_v15  ;;  %vm2366_vm14 = vcmp.eq.f32.partialorder %v2365_v29, 8.507059e+37  ;;  %v3730_v29 = vld [vmem:[#allocation27 + $0x18] sm:$0xff] }
 0xbe9   : > { %v2217_v13 = vadd.f32 %v4070_v63, %v2216_v12 }
 0xbea   : > { %v4072_v14 = vpop.eup %4071 }
 0xbeb   : > { %v2221_v17 = vsel %vm2220_vm9, %v4070_v63, %v2217_v13  ;;  %v2357_v18 = vmul.f32 %v4072_v14, %v2355_v3  ;;  %v2303_v19 = vpop.permute.xlu2 %2302  ;;  %vm2362_vm11 = vweird.f32 %v4072_v14  ;;  %v4029_v3 = vld [vmem:[#allocation14] ss:$0 sm:$0xff] }
 0xbec   : > { %v2226_v2 = vsel %vm2223_vm10, %v2225_v16, %v2221_v17  ;;  %v2308_v20 = vsel %vm1620_vm1, %v2303_v19, 0  ;;  %vm2363_vm13 = vmor %vm2361_vm12, %vm2362_vm11  ;;  %v3723_v16 = vld [vmem:[#allocation24 + $0x20] sm:$0xff]  ;;  %v3722_v17 = vld [vmem:[#allocation24 + $0x18] sm:$0xff] }
 0xbed   : > { %v2227_v21 = vmul.f32 %v4064_v45, %v2226_v2  ;;  %v2358_v22 = vsub.f32 1.0, %v2357_v18  ;;  %v2173_v23 = vpop.f32.mrf.mxu2  ;;  %2317 = vmatpush.bf16.msra.mxu2 %v2308_v20  ;;  %v3718_v45 = vld [vmem:[#allocation12 + $0x38] sm:$0xff]  ;;  %v3719_v19 = vld [vmem:[#allocation24] sm:$0xff] }
 0xbee   : > { %2462 = vmatpush.bf16.msra.mxu1 %v3718_v45  ;;  %v3720_v18 = vld [vmem:[#allocation24 + $0x8] sm:$0xff]  ;;  %v3734_v20 = vld [vmem:[#allocation27 + $0x38] sm:$0xff] }
 0xbef   : > { %v2359_v7 = vmul.f32 %v4072_v14, %v2358_v22  ;;  %v2228_v25 = vpack.c.bf16 %v2227_v21, %v2227_v21  ;;  %v2253_v46 = vadd.f32 %v2227_v21, %v5516_v40  ;;  %v3717_v40 = vld [vmem:[#allocation12 + $0x30] sm:$0xff]  ;;  %v2839_v2 = vld [vmem:[%s1256_s15] sm:$0xff]  ;;  %v4853_v22 = vmov 0   ;;  %2622 = vmatpush.bf16.msrb.mxu3 %v3734_v20 }
 0xbf0   : > { %3516 = vmatmul.msk.bf16.vlgmr.msra.gmra.mxu2 %vm1604_vm3, %v2301_v24  ;;  %4023 = vset.pattern.permute.xlu2 %v4853_v22  ;;  %v3733_v24 = vld [vmem:[#allocation27 + $0x30] sm:$0xff]  ;;  %v3728_v45 = vld [vmem:[#allocation27 + $0x8] sm:$0xff] }
 0xbf1   : > { %v2360_v27 = vadd.f32 %v4072_v14, %v2359_v7  ;;  %3514 = vmatmul.msk.bf16.vlgmr.msrb.gmra.mxu0 %vm1604_vm3, %v2228_v25  ;;  %v2323_v37 = vadd.f32 %v2300_v15, %v2253_v46  ;;  %2556 = vmatpush.bf16.msrb.mxu2 %v3726_v11  ;;  %v3724_v15 = vld [vmem:[#allocation24 + $0x28] sm:$0xff]  ;;  %v4030_v46 = vld [vmem:[#allocation18] ss:$0 sm:$0xff] }
 0xbf2   : > { %2694 = vmatpush.bf16.msrb.mxu0 %v2685_v26  ;;  %2463 = vmatpush.bf16.msra.mxu1 %v3717_v40  ;;  %v3732_v25 = vld [vmem:[#allocation27 + $0x28] sm:$0xff]  ;;  %v3731_v26 = vld [vmem:[#allocation27 + $0x20] sm:$0xff] }
 0xbf3   : > { %v2364_v30 = vsel %vm2363_vm13, %v4072_v14, %v2360_v27  ;;  %v3725_v14 = vld [vmem:[#allocation24 + $0x30] sm:$0xff]  ;;  %4024 = vset.pattern.permute.xlu0 %v4853_v22  ;;  %2623 = vmatpush.bf16.msrb.mxu3 %v3733_v24  ;;  %v3727_v40 = vld [vmem:[#allocation27] sm:$0xff] }
 0xbf4   : > { %v2369_v32 = vsel %vm2366_vm14, %v2368_v31, %v2364_v30  ;;  %v2664_v11 = vld [vmem:[#allocation30] sm:$0xff]  ;;  %v3737_v22 = vld [vmem:[#allocation32 + $0x10] sm:$0xff] }
 0xbf5   : > { %v2370_v33 = vmul.f32 %v5523_v48, %v2369_v32  ;;  %v3716_v48 = vld [vmem:[#allocation12 + $0x28] sm:$0xff]  ;;  %2557 = vmatpush.bf16.msrb.mxu2 %v3725_v14  ;;  %v3729_v32 = vld [vmem:[#allocation27 + $0x10] sm:$0xff]  ;;  %v3739_v20 = vld [vmem:[#allocation32 + $0x20] sm:$0xff] }
 0xbf6   : > { %2464 = vmatpush.bf16.msra.mxu1 %v3716_v48  ;;  %v4854_v48 = vmov 1.0   ;;  %v3735_v24 = vld [vmem:[#allocation32] sm:$0xff] }
 0xbf7   : > { %v2371_v34 = vpack.c.bf16 %v2370_v33, %v2370_v33  ;;  %v2393_v38 = vadd.f32 %v2370_v33, %v2323_v37  ;;  %2624 = vmatpush.bf16.msrb.mxu3 %v3732_v25 }
 0xbf9   : > { %v5540_v39 = vmul.f32 0.25, %v2393_v38  ;;  %2558 = vmatpush.bf16.msrb.mxu2 %v3724_v15  ;;  %v3742_v15 = vld [vmem:[#allocation32 + $0x38] sm:$0xff] }
 0xbfa   : > { %2465 = vmatpush.bf16.msra.mxu1 %v3715_v50  ;;  %v2678_v50 = vld [vmem:[#allocation30 + $0x70] sm:$0xff] }
 0xbfb   : > { %v2680_v41 = vpack.c.bf16 %v5540_v39, %v5540_v39  ;;  %2625 = vmatpush.bf16.msrb.mxu3 %v3731_v26 }
 0xbfd   : > { %2559 = vmatpush.bf16.msrb.mxu2 %v3723_v16 }
 0xbfe   : > { %2466 = vmatpush.bf16.msra.mxu1 %v3714_v54  ;;  %v4032_v54 = vld [vmem:[#allocation26] ss:$0 sm:$0xff] }
 0xbff   : > { %2626 = vmatpush.bf16.msrb.mxu3 %v3730_v29 }
 0xc01   : > { %3518 = vmatmul.msk.bf16.vlgmr.msra.gmra.mxu0 %vm1604_vm3, %v2371_v34  ;;  %2560 = vmatpush.bf16.msrb.mxu2 %v3722_v17 }
 0xc02   : > { %2467 = vmatpush.bf16.msra.mxu1 %v3713_v55  ;;  %v2675_v55 = vld [vmem:[#allocation30 + $0x58] sm:$0xff]  ;;  %2769 = vmatpush.bf16.msra.mxu0 %v3742_v15 }
 0xc03   : > { %2627 = vmatpush.bf16.msrb.mxu3 %v3729_v32 }
 0xc06   : > { %2468 = vmatpush.bf16.msra.mxu1 %v3712_v56  ;;  %v2674_v56 = vld [vmem:[#allocation30 + $0x50] sm:$0xff] }
 0xc07   : > { %2628 = vmatpush.bf16.msrb.mxu3 %v3728_v45 }
 0xc0a   : > { %2469 = vmatpush.bf16.msra.mxu1 %v3711_v57 }
 0xc0b   : > { %2629 = vmatpush.bf16.msrb.mxu3 %v3727_v40 }
 0xc11   : > { %3615 = vmatmul.msk.bf16.vlgmr.msrb.gmra.mxu0 %vm1604_vm3, %v2680_v41  ;;  %v4031_v41 = vld [vmem:[#allocation20] ss:$0 sm:$0xff] }
 0xc6e   : > { %v2249_v42 = vpop.f32.mrf.mxu0 }
 0xc6f   : > { %2395 = vrot.lane.b32.xlu1 %v2249_v42, %s4850_s3 }
 0xc73   : > { %v2319_v43 = vpop.f32.mrf.mxu2 }
 0xc74   : > { %2399 = vrot.lane.b32.xlu0 %v2319_v43, %s4849_s26  ;;  %s3652_s26 = sshll.u32 %s5029_s11, 3  ;;  %s4707_s11 = scalar_lea.hbm %s5006_s9, 16 }
 0xc75   : > { %s2908_s18 = scalar_lea.hbm %s5006_s9, %s3652_s26 }
 0xc76   : > { %v2251_v44 = vpop.f32.mrf.mxu0  ;;  %s2912_s22 = sshll.u32 %s2908_s18, 4  ;;  %s2913_s22 = int_to_ptr.hbm [resolvable:$true] %s2912_s22 }
 0xc77   : > { %s4701_s15 = sshra.s32 %s2913_s22, 4  ;;  %s4702_s15 = int_to_ptr.hbm [resolvable:$true] %s4701_s15 }
 0xc78   : > { %s4703_s28 = scalar_lea.hbm %s4702_s15, 8  ;;  %p4708_p4 = scmp.lt.s32.totalorder %s4702_s15, %s5006_s9 }
 0xc79   : > { %p4704_p10 = scmp.ne.s32.totalorder %s4702_s15, %s4703_s28  ;;  %p4709_p7 = scmp.lt.s32.totalorder %s4707_s11, %s4703_s28 }
 0xc7b   : > { %v2321_v47 = vpop.f32.mrf.mxu2  ;;  %p4705_p12 = pnand %p4704_p10, %p5046_p5  ;;  %p4710_p8 = por %p4709_p7, %p4708_p4 }
 0xc7d   : > { %p4706_p0 = pneg %p4705_p12 }
 0xc7e   : > { %v2389_v49 = vpop.f32.mrf.mxu0 }
 0xc7f   : > { %2403 = vrot.lane.b32.xlu2 %v2389_v49, %s4848_s6  ;;  %v2679_v49 = vld [vmem:[#allocation30 + $0x78] sm:$0xff]  ;;  %s3274_s6 = sshll.u32 %s1238_s0, 3  ;;  %p4711_p11 = pnand %p4710_p8, %p4706_p0 }
 0xc80   : > { %s1240_s16 = scalar_lea.vmem [#allocation35], %s3274_s6 }
 0xc81   : > { %s2910_s14 = sshll.u32 %s1240_s16, 4  ;;  %s2911_s14 = int_to_ptr.vmem [resolvable:$true] %s2910_s14 }
 0xc86   : > { %v2391_v51 = vpop.f32.mrf.mxu0 }
 0xc87   : > { %v2677_v51 = vld [vmem:[#allocation30 + $0x68] sm:$0xff] }
 0xc8e   : > { %v5548_v52 = vpop.f32.mrf.mxu0 }
 0xc96   : > { %v2698_v53 = vpop.f32.mrf.mxu0 }
 0xc97   : > { %v2676_v53 = vld [vmem:[#allocation30 + $0x60] sm:$0xff] }
 0xcd9   : > { %v2404_v62 = vpop.permute.xlu2 %2403 }
 0xce1   : > { %v2396_v59 = vpop.permute.xlu1 %2395 }
 0xce2   : > { %v2406_v60 = vsel %vm1584_vm0, %v5530_v9, %v2396_v59 }
 0xce6   : > { %v2400_v61 = vpop.permute.xlu0 %2399 }
 0xce7   : > { %v2407_v63 = vsel %vm1827_vm4, %v2406_v60, %v2400_v61  ;;  %v2673_v60 = vld [vmem:[#allocation30 + $0x48] sm:$0xff] }
 0xce8   : > { %v2408_v0 = vsel %vm1829_vm5, %v2407_v63, %v2404_v62  ;;  %v2672_v63 = vld [vmem:[#allocation30 + $0x40] sm:$0xff] }
 0xce9   : > { %v2410_v1 = vpack.c.bf16 %v2408_v0, %v2408_v0  ;;  %v2671_v0 = vld [vmem:[#allocation30 + $0x38] sm:$0xff] }
 0xceb   : > { %2470 = vmatmul.bf16.vlgmr.msra.gmra.mxu1 %v2410_v1  ;;  %v2670_v1 = vld [vmem:[#allocation30 + $0x30] sm:$0xff] }
 0xd68   : > { %v2471_v4 = vpop.f32.mrf.mxu1 }
 0xd69   : > { %v2472_v6 = vadd.f32 %v4029_v3, %v2471_v4  ;;  %v2669_v3 = vld [vmem:[#allocation30 + $0x28] sm:$0xff]  ;;  %v2668_v4 = vld [vmem:[#allocation30 + $0x20] sm:$0xff] }
 0xd6b   : > { %v2475_v8 = vadd.f32 %v2472_v6, %v5484_v5  ;;  %v3721_v5 = vld [vmem:[#allocation24 + $0x10] sm:$0xff]  ;;  %v2667_v6 = vld [vmem:[#allocation30 + $0x18] sm:$0xff] }
 0xd6c   : > { %2561 = vmatpush.bf16.msrb.mxu2 %v3721_v5 }
 0xd6d   : > { %2476 = vadd.xlane.f32.xlu0 %v2475_v8 }
 0xd70   : > { %v2473_v10 = vpop.f32.mrf.mxu1  ;;  %2562 = vmatpush.bf16.msrb.mxu2 %v3720_v18 }
 0xd71   : > { %v2665_v10 = vld [vmem:[#allocation30 + $0x8] sm:$0xff] }
 0xd74   : > { %2563 = vmatpush.bf16.msrb.mxu2 %v3719_v19  ;;  %v3741_v19 = vld [vmem:[#allocation32 + $0x30] sm:$0xff] }
 0xd75   : > { %2770 = vmatpush.bf16.msra.mxu0 %v3741_v19 }
 0xd78   : > { %2869 = vmatpush.msra.mxu2 %v2679_v49 }
 0xd7a   : > { %2870 = vmatpush.msra.mxu2 %v2678_v50 }
 0xd7c   : > { %2871 = vmatpush.msra.mxu2 %v2677_v51 }
 0xd7e   : > { %2872 = vmatpush.msra.mxu2 %v2676_v53 }
 0xd80   : > { %2873 = vmatpush.msra.mxu2 %v2675_v55 }
 0xd82   : > { %2874 = vmatpush.msra.mxu2 %v2674_v56 }
 0xd84   : > { %2875 = vmatpush.msra.mxu2 %v2673_v60 }
 0xd86   : > { %2876 = vmatpush.msra.mxu2 %v2672_v63 }
 0xd88   : > { %2877 = vmatpush.msra.mxu2 %v2671_v0 }
 0xd8a   : > { %2878 = vmatpush.msra.mxu2 %v2670_v1 }
 0xd8c   : > { %2879 = vmatpush.msra.mxu2 %v2669_v3 }
 0xd8e   : > { %2880 = vmatpush.msra.mxu2 %v2668_v4 }
 0xd90   : > { %2881 = vmatpush.msra.mxu2 %v2667_v6 }
 0xde0   : > { %v2477_v12 = vpop.xlane.xlu0 %2476 }
 0xde1   : > { %v2478_v9 = vmul.f32 %v2477_v12, %v5475_v36  ;;  %v4033_v12 = vld [vmem:[#allocation29] ss:$0 sm:$0xff] }
 0xde3   : > { %v2479_v58 = vsub.f32 %v2475_v8, %v2478_v9  ;;  %v2666_v8 = vld [vmem:[#allocation30 + $0x10] sm:$0xff] }
 0xde4   : > { %2882 = vmatpush.msra.mxu2 %v2666_v8 }
 0xde5   : > { %v2480_v13 = vmul.f32 %v2479_v58, %v2479_v58 }
 0xde6   : > { %2883 = vmatpush.msra.mxu2 %v2665_v10 }
 0xde7   : > { %2481 = vadd.xlane.f32.xlu2 %v2480_v13 }
 0xde8   : > { %2884 = vmatpush.msra.mxu2 %v2664_v11 }
 0xdff   : > { %2841 = vperm.xlu2 %4023, %v2839_v2   ;;  %v3740_v2 = vld [vmem:[#allocation32 + $0x28] sm:$0xff] }
 0xe00   : > { %2771 = vmatpush.bf16.msra.mxu0 %v3740_v2 }
 0xe04   : > { %2772 = vmatpush.bf16.msra.mxu0 %v3739_v20 }
 0xe5a   : > { %v2482_v21 = vpop.xlane.xlu2 %2481 }
 0xe5b   : > { %v2483_v23 = vmul.f32 %v2482_v21, %v5475_v36  ;;  %v3738_v21 = vld [vmem:[#allocation32 + $0x18] sm:$0xff] }
 0xe5c   : > { %2773 = vmatpush.bf16.msra.mxu0 %v3738_v21 }
 0xe5d   : > { %v2484_v7 = vadd.f32 1e-05, %v2483_v23  ;;  %v3736_v23 = vld [vmem:[#allocation32 + $0x8] sm:$0xff] }
 0xe5f   : > { %4073 = vrsqrt.f32 %v2484_v7  ;;  %vm2491_vm1 = vweird.f32 %v2484_v7 }
 0xe60   : > { %2774 = vmatpush.bf16.msra.mxu0 %v3737_v22 }
 0xe62   : > { %v2842_v47 = vpop.permute.xlu2 %2841 }
 0xe63   : > { %vm2843_vm5 = vcmp.eq.s32.totalorder %v5426_v35, %v2842_v47 }
 0xe64   : > { %3649 = vmatpush.msk.msra.mxu3 %vm2843_vm5, %v4854_v48  ;;  %2775 = vmatpush.bf16.msra.mxu0 %v3736_v23 }
 0xe65   : > { %v4074_v27 = vpop.eup %4073 }
 0xe66   : > { %v2486_v28 = vmul.f32 %v4074_v27, %v2484_v7  ;;  %vm2492_vm0 = vweird.f32 %v4074_v27 }
 0xe67   : > { %vm2493_vm4 = vmor %vm2491_vm1, %vm2492_vm0 }
 0xe68   : > { %v2487_v30 = vmul.f32 %v4074_v27, %v2486_v28  ;;  %2776 = vmatpush.bf16.msra.mxu0 %v3735_v24 }
 0xe6a   : > { %v2488_v31 = vmul.f32 0.5, %v2487_v30 }
 0xe6c   : > { %v2489_v33 = vsub.f32 1.5, %v2488_v31 }
 0xe6e   : > { %v2490_v34 = vmul.f32 %v4074_v27, %v2489_v33  ;;  %v2804_v33 = vld [vmem:[%s4998_s5] sm:$0x7] }
 0xe6f   : > { %v2812_v45 = vperm.slane %v2804_v33, 2 }
 0xe70   : > { %v2494_v37 = vsel %vm2493_vm4, %v4074_v27, %v2490_v34  ;;  %v4034_v34 = vld [vmem:[#allocation21] ss:$0 sm:$0xff] }
 0xe71   : > { %v2495_v38 = vmul.f32 %v2494_v37, %v2479_v58  ;;  %v2805_v37 = vld [vmem:[%s1252_s7] sm:$0xf] }
 0xe73   : > { %v2499_v42 = vmul.f32 %v4030_v46, %v2495_v38 }
 0xe75   : > { %v2503_v43 = vadd.f32 %v4031_v41, %v2499_v42  ;;  %v4035_v41 = vld [vmem:[#allocation23] ss:$0 sm:$0xff]  ;;  %v2807_v42 = vperm.slane %v2804_v33, 0 }
 0xe77   : > { %v2504_v44 = vpack.c.bf16 %v2503_v43, %v2503_v43  ;;  %v2808_v47 = vmul.f32 %v2807_v42, %v5548_v52  ;;  %v2818_v52 = vstv %s2817_s4 }
 0xe79   : > { %2564 = vmatmul.bf16.vlgmr.msrb.gmra.mxu2 %v2504_v44  ;;  %v2806_v44 = vunpack.c.l.bf16 %v2805_v37 }
 0xe7b   : > { %v2813_v50 = vmul.f32 %v2812_v45, %v2806_v44 }
 0xefc   : > { %v2565_v57 = vpop.f32.mrf.mxu2 }
 0xefd   : > { %v2566_v59 = vadd.f32 %v4032_v54, %v2565_v57  ;;  %v4036_v54 = vld [vmem:[#allocation33] ss:$0 sm:$0xff] }
 0xeff   : > { %v2569_v61 = vmax.f32 %v2566_v59, 0.0 }
 0xf01   : > { %v2570_v35 = vpack.c.bf16 %v2569_v61, %v2569_v61 }
 0xf03   : > { %2630 = vmatmul.bf16.vlgmr.msrb.gmra.mxu3 %v2570_v35 }
 0xf04   : > { %v2567_v62 = vpop.f32.mrf.mxu2 }
 0xf13   : > { %3650 = vmatmul.msk.f32.vlgmr.msra.gmra.mxu3 %vm1604_vm3, %v5540_v39 }
 0xf86   : > { %v2631_v39 = vpop.f32.mrf.mxu3 }
 0xf87   : > { %v2632_v9 = vadd.f32 %v4033_v12, %v2631_v39 }
 0xf89   : > { %v2635_v58 = vadd.f32 %v2632_v9, %v2503_v43 }
 0xf8b   : > { %2636 = vadd.xlane.f32.xlu1 %v2635_v58 }
 0xf8e   : > { %v2633_v13 = vpop.f32.mrf.mxu3 }
 0xf96   : > { %v2866_v14 = vpop.f32.mrf.mxu3 }
 0xf97   : > { %2885 = vmatmul.f32.vlgmr.msra.gmra.mxu2 %v2866_v14 }
 0xffe   : > { %v2637_v16 = vpop.xlane.xlu1 %2636 }
 0xfff   : > { %v2638_v17 = vmul.f32 %v2637_v16, %v5475_v36 }
0x1001   : > { %v2639_v5 = vsub.f32 %v2635_v58, %v2638_v17 }
0x1003   : > { %v2640_v18 = vmul.f32 %v2639_v5, %v2639_v5 }
0x1005   : > { %2641 = vadd.xlane.f32.xlu0 %v2640_v18 }
0x1078   : > { %v2642_v7 = vpop.xlane.xlu0 %2641 }
0x1079   : > { %v2643_v25 = vmul.f32 %v2642_v7, %v5475_v36  ;;  %v2809_v36 = vperm.slane %v2804_v33, 1 }
0x107b   : > { %v2644_v26 = vadd.f32 1e-05, %v2643_v25  ;;  %v2886_v25 = vpop.f32.mrf.mxu2 }
0x107d   : > { %4075 = vrsqrt.f32 %v2644_v26  ;;  %vm2651_vm15 = vweird.f32 %v2644_v26 }
0x1083   : > { %v4076_v27 = vpop.eup %4075 }
0x1084   : > { %v2646_v28 = vmul.f32 %v4076_v27, %v2644_v26  ;;  %vm2652_vm3 = vweird.f32 %v4076_v27 }
0x1085   : > { %vm2653_vm2 = vmor %vm2651_vm15, %vm2652_vm3 }
0x1086   : > { %v2647_v29 = vmul.f32 %v4076_v27, %v2646_v28 }
0x1088   : > { %v2648_v30 = vmul.f32 0.5, %v2647_v29 }
0x108a   : > { %v2649_v31 = vsub.f32 1.5, %v2648_v30 }
0x108c   : > { %v2650_v32 = vmul.f32 %v4076_v27, %v2649_v31 }
0x108e   : > { %v2654_v46 = vsel %vm2653_vm2, %v4076_v27, %v2650_v32 }
0x108f   : > { %v2655_v38 = vmul.f32 %v2654_v46, %v2639_v5 }
0x1091   : > { %v2659_v43 = vmul.f32 %v4034_v34, %v2655_v38 }
0x1093   : > { %v2663_v40 = vadd.f32 %v4035_v41, %v2659_v43 }
0x1095   : > { %v2700_v48 = vpack.c.bf16 %v2663_v40, %v2663_v40  ;;  %v2810_v49 = vmul.f32 %v2809_v36, %v2663_v40 }
0x1097   : > { %2777 = vmatmul.bf16.vlgmr.msra.gmra.mxu0 %v2700_v48  ;;  %v2811_v51 = vadd.f32 %v2810_v49, %v2808_v47 }
0x1099   : > { %v2814_v53 = vadd.f32 %v2813_v50, %v2811_v51 }
0x109b   : > { %2815 = vadd.xlane.f32.xlu1 %v2814_v53 }
0x110e   : > { %v2816_v62 = vpop.xlane.xlu1 %2815 }
0x110f   : > { %v2819_v63 = vadd.f32 %v2818_v52, %v2816_v62 }
0x1111   : > { %v2820_v0 = vsub.f32 0.0, %v2819_v63 }
0x1113   : > { %v2821_v1 = vmul.f32 1.442695, %v2820_v0 }
0x1114   : > { %v2778_v55 = vpop.f32.mrf.mxu0 }
0x1115   : > { %v2779_v56 = vadd.f32 %v4036_v54, %v2778_v55 }
0x1117   : > { %2782 = vmax.xlane.f32.xlu0 %v2779_v56 }
0x111c   : > { %v2780_v57 = vpop.f32.mrf.mxu0 }
0x118a   : > { %v2783_v59 = vpop.xlane.xlu0 %2782 }
0x118b   : > { %v2784_v60 = vsub.f32 %v2779_v56, %v2783_v59 }
0x118d   : > { %v2785_v61 = vmul.f32 1.442695, %v2784_v60 }
0x118f   : > { %4077 = vpow2.f32 %v2785_v61 }
0x1190   : > { %4079 = vpow2.f32 %v2821_v1 }
0x1195   : > { %v4078_v35 = vpop.eup %4077 }
0x1196   : > { %2787 = vadd.xlane.f32.xlu0 %v4078_v35  ;;  %v4080_v3 = vpop.eup %4079 }
0x1197   : > { %v2823_v4 = vadd.f32 1.0, %v4080_v3 }
0x1199   : > { %4081 = vrcp.f32 %v2823_v4  ;;  %v2835_v58 = vand.u32 2147483648, %v2823_v4  ;;  %vm2829_vm7 = vweird.f32 %v2823_v4  ;;  %v2833_v13 = vand.u32 2147483647, %v2823_v4 }
0x119b   : > { %v2836_v17 = vor.u32 1.1754944e-38, %v2835_v58  ;;  %vm2834_vm9 = vcmp.eq.f32.partialorder %v2833_v13, 8.507059e+37 }
0x119f   : > { %v4082_v6 = vpop.eup %4081 }
0x11a0   : > { %v2825_v8 = vmul.f32 %v4082_v6, %v2823_v4  ;;  %vm2830_vm6 = vweird.f32 %v4082_v6 }
0x11a1   : > { %vm2831_vm8 = vmor %vm2829_vm7, %vm2830_vm6 }
0x11a2   : > { %v2826_v10 = vsub.f32 1.0, %v2825_v8 }
0x11a4   : > { %v2827_v12 = vmul.f32 %v4082_v6, %v2826_v10 }
0x11a6   : > { %v2828_v39 = vadd.f32 %v4082_v6, %v2827_v12 }
0x11a8   : > { %v2832_v15 = vsel %vm2831_vm8, %v4082_v6, %v2828_v39 }
0x11a9   : > { %v2837_v2 = vsel %vm2834_vm9, %v2836_v17, %v2832_v15 }
0x11aa   : > { %v2890_v22 = vsub.f32 1.0, %v2837_v2 }
0x11ac   : > { %v2891_v27 = vmul.f32 %v2890_v22, %v2886_v25 }
0x1209   : > { %v2788_v11 = vpop.xlane.xlu0 %2787 }
0x120a   : > { %4083 = vrcp.f32 %v2788_v11  ;;  %v2800_v5 = vand.u32 2147483648, %v2788_v11  ;;  %v2798_v19 = vand.u32 2147483647, %v2788_v11  ;;  %vm2794_vm11 = vweird.f32 %v2788_v11 }
0x120c   : > { %v2801_v21 = vor.u32 1.1754944e-38, %v2800_v5  ;;  %vm2799_vm13 = vcmp.eq.f32.partialorder %v2798_v19, 8.507059e+37 }
0x1210   : > { %v4084_v9 = vpop.eup %4083 }
0x1211   : > { %v2790_v14 = vmul.f32 %v4084_v9, %v2788_v11  ;;  %vm2795_vm10 = vweird.f32 %v4084_v9 }
0x1212   : > { %vm2796_vm12 = vmor %vm2794_vm11, %vm2795_vm10 }
0x1213   : > { %v2791_v16 = vsub.f32 1.0, %v2790_v14 }
0x1215   : > { %v2792_v18 = vmul.f32 %v4084_v9, %v2791_v16 }
0x1217   : > { %v2793_v20 = vadd.f32 %v4084_v9, %v2792_v18 }
0x1219   : > { %v2797_v23 = vsel %vm2796_vm12, %v4084_v9, %v2793_v20 }
0x121a   : > { %v2802_v24 = vsel %vm2799_vm13, %v2801_v21, %v2797_v23 }
0x121b   : > { %v2803_v7 = vmul.f32 %v4078_v35, %v2802_v24 }
0x121d   : > { %v2889_v26 = vmul.f32 %v2837_v2, %v2803_v7 }
0x121f   : > { %v2892_v28 = vadd.f32 %v2891_v27, %v2889_v26 }
0x1221   : > { %v2893_v29 = vmax.f32 %v2892_v28, 1e-30 }
0x1223   : > { %4085 = vlog2.f32 %v2893_v29 }
0x1229   : > { %v4086_v30 = vpop.eup %4085 }
0x122a   : > { %v2895_v31 = vmul.f32 0.6931472, %v4086_v30 }
0x122c   : > { %2896 = vst [vmem:[%s1240_s16] sm:$0xff] %v2895_v31 }
0x122d   : > { %4714 = shalt.err (!%p4711_p11)
}
0x122e   : > { %3823 = dma.vmem_to_hbm [thread:$0]  (%p5046_p5), %s2911_s14, 128, %s2913_s22, %s2898_s12  }
0x122f PF: > { %s5674_s7 = sld [smem:[#allocation68_spill]] }
0x1230   : > { %s5675_s4 = sld [smem:[#allocation66_spill]] }
0x1235   : > { %p3930_p13 = scmp.ge.s32.totalorder %s5674_s7, 2 }
0x1236   : > { %s2924_s6 = sand.u32 1, %s5675_s4  }
0x1237   : > { %p3887_p1 = pnand %p3930_p13, %p5050_p6  ;;  %s2925_s26 = scalar_lea.sflag [#allocation5], %s2924_s6 }
0x1239   : > { %p3888_p3 = pneg %p3887_p1 }
0x123b   : > { %4776 = dma.done.wait (%p3888_p3), %s2925_s26, 128  }
0x123c   : > { %4778 = vsyncadd (%p3888_p3), %s2925_s26, 4294967168  ;;  %s5677_s4 = sld [smem:[#allocation69_spill]]  ;;  %s5680_s7 = smov %s4785_s10 }
0x123d   : > { %s5678_s18 = sld [smem:[#allocation67_spill]] }
0x123e   : > { %s5679_s0 = sld [smem:[#allocation70_spill]] }
0x1242   : > { %p81_p2 = scmp.ge.s32.totalorder %s5677_s4, 4  }
0x1243   : > { %s5681_s10 = smov %s5678_s18 }
0x1244   :  { %83 = sbr.rel (!%p81_p2) target bundleno = 65 (0x41), region = 290 }
0x1249   :  { %2931 = vsyncpa [#allocation4], 1 }
0x124a   :  { %2933 = vsyncpa [#allocation4 + $0x1], 1 }
0x124b   :  { %2934 = vsyncpa [#allocation7], 1 }
0x124c   :  { %2935 = vsyncpa [#allocation10], 1 }
0x124d   :  { %2936 = vsyncpa [#allocation13], 1 }
0x124e   :  { %2937 = vsyncpa [#allocation16], 1 }
0x124f   :  { %2938 = vsyncpa [#allocation19], 1 }
0x1250   :  { %2939 = vsyncpa [#allocation22], 1 }
0x1251   :  { %2940 = vsyncpa [#allocation25], 1 }
0x1252   :  { %2941 = vsyncpa [#allocation28], 1 }
0x1253   :  { %2942 = vsyncpa [#allocation31], 1 }
0x1254   :  { %2943 = vsyncpa [#allocation34], 1 }
0x1255   :  { %2944 = vsyncpa [#allocation5], 1 }
0x1256   :  { %2946 = vsyncpa [#allocation5 + $0x1], 1 }

</bundles_post_ra>
